<compile_context>
chip_gen: v6e
topology: v6e:2x2x1
jax: 0.10.0
libtpu: 0.0.40
codegen_flags: <defaults>
</compile_context>

<pallas_src>
import jax
import jax.numpy as jnp
from jax.experimental import pallas as pl
from jax.experimental.pallas import tpu as pltpu


# ----------------------------- fused kernel -------------------------------- #

def _make_kernel(H, W, Cin, Cmid):
    """Fused conv-relu-conv-relu-maxpool-avgpool for one image per grid step."""
    Wp, Hp = W + 2, H + 2                    # spatially padded dims
    slab = H * Wp                            # conv-output rows: s = h*Wp + w
    need_rows = 2 * Wp + 2 + slab            # deepest padded-input row touched + 1
    rows_pad = ((need_rows + 15) // 16) * 16  # 16-aligned (bf16 sublane packing)
    OH, OW = H // 4, W // 4                  # after maxpool(2) + avgpool(2)
    shifts = [(dh, dw) for dh in range(3) for dw in range(3)]

    def kernel(x_ref, w1_ref, b1_ref, w2_ref, b2_ref, out_ref,
               acc_ref, tmp_ref, padb_ref):
        # x_ref    : (rows_pad, Cin)   bf16  zero-padded, row-flattened NHWC image
        # w1_ref   : (9, Cin, Cmid)    bf16
        # w2_ref   : (9, Cmid, Cmid)   bf16
        # b1/b2    : (1, Cmid)         f32
        # out_ref  : (OH*OW, Cmid)     f32
        # acc_ref  : (slab, Cmid)      f32   conv2 output / pooling ping-pong
        # tmp_ref  : (slab, Cmid)      f32   pooling ping-pong
        # padb_ref : (rows_pad, Cmid)  bf16  padded conv1 output (conv2 input)

        def conv(src_ref, w_ref):
            # 3x3 conv as 9 shifted-slab matmuls, bf16 operands, f32 value accum.
            acc = None
            for idx, (dh, dw) in enumerate(shifts):
                off = dh * Wp + dw
                xs = src_ref[off:off + slab, :]                       # bf16 (slab, Cin_k)
                c = jnp.dot(xs, w_ref[idx], preferred_element_type=jnp.float32)
                acc = c if acc is None else acc + c
            return acc

        # ---------- conv1 + bias + ReLU ----------
        y1 = jnp.maximum(conv(x_ref, w1_ref) + b1_ref[...], 0.0)     # (slab, Cmid) f32
        # Zero the two junk columns of each image row (w in {W, W+1}) so that,
        # re-embedded at offset Wp+1, they become conv2's zero padding.
        wcol = jax.lax.broadcasted_iota(jnp.int32, (slab, Cmid), 0) % Wp
        y1 = jnp.where(wcol < W, y1, 0.0)

        # ---------- re-embed into padded bf16 slab for conv2 ----------
        padb_ref[...] = jnp.zeros_like(padb_ref)
        padb_ref[Wp + 1:Wp + 1 + slab, :] = y1.astype(jnp.bfloat16)  # (h,w) -> (h+1)*Wp+(w+1)

        # ---------- conv2 + bias + ReLU ----------
        acc_ref[...] = jnp.maximum(conv(padb_ref, w2_ref) + b2_ref[...], 0.0)

        # ---------- fused MaxPool2x2 -> AvgPool2x2 (shifted-slice reductions) ----------
        # y2 row s = h*Wp + w.
        #   mp[a,b]    = max_{u,v in {0,1}} y2[(2a+u)*Wp + (2b+v)]
        #   out[oi,oj] = 0.25 * sum_{si,sj in {0,1}} mp[2oi+si, 2oj+sj]
        L1 = slab - 1
        tmp_ref[0:L1, :] = jnp.maximum(acc_ref[0:L1, :], acc_ref[1:1 + L1, :])      # max over v
        L2 = L1 - Wp
        acc_ref[0:L2, :] = jnp.maximum(tmp_ref[0:L2, :], tmp_ref[Wp:Wp + L2, :])    # max over u
        L3 = L2 - 2
        tmp_ref[0:L3, :] = acc_ref[0:L3, :] + acc_ref[2:2 + L3, :]                  # sum over sj
        L4 = L3 - 2 * Wp
        acc_ref[0:L4, :] = tmp_ref[0:L4, :] + tmp_ref[2 * Wp:2 * Wp + L4, :]        # sum over si

        # ---------- gather: row 4*oi*Wp + 4*oj -> out row oi*OW + oj ----------
        for oi in range(OH):
            out_ref[oi * OW:(oi + 1) * OW, :] = (
                0.25 * acc_ref[pl.ds(4 * oi * Wp, OW, stride=4), :])

    return kernel, slab, rows_pad, OH, OW


# ------------------------------ wrapper ------------------------------------ #

def build_vgg_forward(N, H, W, Cin, Cmid):
    assert H % 4 == 0 and W % 4 == 0, "spatial dims must be multiples of 4"
    kernel, slab, rows_pad, OH, OW = _make_kernel(H, W, Cin, Cmid)
    Hp, Wp = H + 2, W + 2

    grid_spec = pltpu.PrefetchScalarGridSpec(
        num_scalar_prefetch=0,
        grid=(N,),
        in_specs=[
            pl.BlockSpec((None, rows_pad, Cin), lambda n: (n, 0, 0)),     # x (per image, bf16)
            pl.BlockSpec((9, Cin, Cmid), lambda n: (0, 0, 0)),            # w1 (resident)
            pl.BlockSpec((1, Cmid), lambda n: (0, 0)),                    # b1
            pl.BlockSpec((9, Cmid, Cmid), lambda n: (0, 0, 0)),           # w2 (resident)
            pl.BlockSpec((1, Cmid), lambda n: (0, 0)),                    # b2
        ],
        out_specs=pl.BlockSpec((None, OH * OW, Cmid), lambda n: (n, 0, 0)),
        scratch_shapes=[
            pltpu.VMEM((slab, Cmid), jnp.float32),                        # acc / pooling
            pltpu.VMEM((slab, Cmid), jnp.float32),                        # pooling ping-pong
            pltpu.VMEM((rows_pad, Cmid), jnp.bfloat16),                   # padded conv2 input
        ],
    )

    call = pl.pallas_call(
        kernel,
        out_shape=jax.ShapeDtypeStruct((N, OH * OW, Cmid), jnp.float32),
        grid_spec=grid_spec,
        compiler_params=pltpu.CompilerParams(
            dimension_semantics=("parallel",)),
    )

    @jax.jit
    def forward(x_nchw, params):
        # NCHW -> zero-padded, row-flattened NHWC slab (row = h_pad*(W+2) + w_pad), bf16.
        x = jnp.transpose(x_nchw, (0, 2, 3, 1)).astype(jnp.float32)       # (N,H,W,Cin)
        xp = jnp.pad(x, ((0, 0), (1, 1), (1, 1), (0, 0)))                 # (N,Hp,Wp,Cin)
        xf = xp.reshape(N, Hp * Wp, Cin)
        xf = jnp.pad(xf, ((0, 0), (0, rows_pad - Hp * Wp), (0, 0)))
        xf = xf.astype(jnp.bfloat16)

        w1 = params["w1"].reshape(9, Cin, Cmid).astype(jnp.bfloat16)
        w2 = params["w2"].reshape(9, Cmid, Cmid).astype(jnp.bfloat16)
        b1 = params["b1"].reshape(1, Cmid).astype(jnp.float32)
        b2 = params["b2"].reshape(1, Cmid).astype(jnp.float32)

        out = call(xf, w1, b1, w2, b2)                                    # (N, OH*OW, Cmid)
        out = out.reshape(N, OH, OW, Cmid)
        return jnp.transpose(out, (0, 3, 1, 2))                           # NCHW (torch layout)

    return forward


# --------------------------- params & reference ---------------------------- #

def init_params(key, cin, c_mid):
    k1, k2, k3, k4 = jax.random.split(key, 4)
    s1 = 1.0 / jnp.sqrt(9.0 * cin)
    s2 = 1.0 / jnp.sqrt(9.0 * c_mid)
    return {
        "w1": jax.random.normal(k1, (3, 3, cin, c_mid), jnp.float32) * s1,
        "b1": jax.random.normal(k2, (c_mid,), jnp.float32) * s1,
        "w2": jax.random.normal(k3, (3, 3, c_mid, c_mid), jnp.float32) * s2,
        "b2": jax.random.normal(k4, (c_mid,), jnp.float32) * s2,
    }


def reference_forward(x_nchw, params):
    """Pure-JAX (XLA, f32) reference of the same forward pass."""
    x = jnp.transpose(x_nchw, (0, 2, 3, 1))

    def conv_relu(x, w, b):
        N, H, W, _ = x.shape
        xp = jnp.pad(x, ((0, 0), (1, 1), (1, 1), (0, 0)))
        acc = jnp.zeros((N, H, W, w.shape[-1]), jnp.float32)
        for dh in range(3):
            for dw in range(3):
                acc = acc + jnp.einsum("nhwc,cd->nhwd",
                                       xp[:, dh:dh + H, dw:dw + W, :], w[dh, dw])
        return jax.nn.relu(acc + b)

    x = conv_relu(x, params["w1"], params["b1"])
    x = conv_relu(x, params["w2"], params["b2"])
    N, H, W, C = x.shape
    x = x.reshape(N, H // 2, 2, W // 2, 2, C).max(axis=(2, 4))            # MaxPool2d(2,2)
    N, H, W, C = x.shape
    x = x.reshape(N, H // 2, 2, W // 2, 2, C).mean(axis=(2, 4))           # AvgPool2d(2,2)
    return jnp.transpose(x, (0, 3, 1, 2))


# ---------------------------------- main ------------------------------------ #

if __name__ == "__main__":
    key = jax.random.PRNGKey(0)
    kx, kp = jax.random.split(key)

    N, Cin, H, W, Cmid = 2, 4, 16, 16, 16
    x = jax.random.normal(kx, (N, Cin, H, W), jnp.float32)
    params = init_params(kp, Cin, Cmid)

    forward = build_vgg_forward(N, H, W, Cin, Cmid)
    out = forward(x, params)
    jax.block_until_ready(out)

    # features: 16x16 -> conv/relu x2 -> maxpool -> 8x8 ; avgpool -> 4x4
    assert out.shape == (N, Cmid, H // 4, W // 4), out.shape

    ref = reference_forward(x, params)
    err = float(jnp.max(jnp.abs(out - ref)))
    assert err < 0.1, f"max abs error vs reference: {err}"   # bf16 matmul operands vs f32 ref

    print("KERNEL_OK")
</pallas_src>

<mosaic_0001>
module attributes {stable_mosaic.version = 11 : i64} {
  func.func @kernel(%arg0: i32, %arg1: memref<1x336x4xbf16, #tpu.memory_space<vmem>>, %arg2: memref<9x4x16xbf16, #tpu.memory_space<vmem>>, %arg3: memref<1x16xf32, #tpu.memory_space<vmem>>, %arg4: memref<9x16x16xbf16, #tpu.memory_space<vmem>>, %arg5: memref<1x16xf32, #tpu.memory_space<vmem>>, %arg6: memref<1x16x16xf32, #tpu.memory_space<vmem>>, %arg7: memref<288x16xf32, #tpu.memory_space<vmem>>, %arg8: memref<288x16xf32, #tpu.memory_space<vmem>>, %arg9: memref<336x16xbf16, #tpu.memory_space<vmem>>) attributes {dimension_semantics = [#tpu.dimension_semantics<parallel>], iteration_bounds = array<i64: 2>, scalar_prefetch = 0 : i64, scratch_operands = 3 : i64, tpu.core_type = #tpu.core_type<tc>, window_params = [{transform_indices = @transform_0, window_bounds = array<i64: 1, 336, 4>}, {pipeline_mode = #tpu.pipeline_mode<synchronous>, transform_indices = @transform_1, window_bounds = array<i64: 9, 4, 16>}, {pipeline_mode = #tpu.pipeline_mode<synchronous>, transform_indices = @transform_2, window_bounds = array<i64: 1, 16>}, {pipeline_mode = #tpu.pipeline_mode<synchronous>, transform_indices = @transform_3, window_bounds = array<i64: 9, 16, 16>}, {pipeline_mode = #tpu.pipeline_mode<synchronous>, transform_indices = @transform_4, window_bounds = array<i64: 1, 16>}, {transform_indices = @transform_5, window_bounds = array<i64: 1, 16, 16>}]} {
    %c0 = arith.constant 0 : index
    %c0_0 = arith.constant 0 : index
    %c0_1 = arith.constant 0 : index
    %0 = vector.load %arg1[%c0, %c0_0, %c0_1] : memref<1x336x4xbf16, #tpu.memory_space<vmem>>, vector<1x288x4xbf16>
    %1 = vector.shape_cast %0 : vector<1x288x4xbf16> to vector<288x4xbf16>
    %c0_2 = arith.constant 0 : index
    %c0_3 = arith.constant 0 : index
    %c0_4 = arith.constant 0 : index
    %2 = vector.load %arg2[%c0_2, %c0_3, %c0_4] : memref<9x4x16xbf16, #tpu.memory_space<vmem>>, vector<1x4x16xbf16>
    %3 = vector.shape_cast %2 : vector<1x4x16xbf16> to vector<4x16xbf16>
    %cst = arith.constant dense<0.000000e+00> : vector<288x16xf32>
    %4 = tpu.matmul %1, %3, %cst {dimension_numbers = #tpu.dot_dimension_numbers<[1], [0], [0], [1], [0, 0, 1, 1], [], []>} : vector<288x4xbf16>, vector<4x16xbf16>, vector<288x16xf32> -> vector<288x16xf32>
    %c0_5 = arith.constant 0 : index
    %c1 = arith.constant 1 : index
    %c0_6 = arith.constant 0 : index
    %5 = vector.load %arg1[%c0_5, %c1, %c0_6] : memref<1x336x4xbf16, #tpu.memory_space<vmem>>, vector<1x288x4xbf16>
    %6 = vector.shape_cast %5 : vector<1x288x4xbf16> to vector<288x4xbf16>
    %c1_7 = arith.constant 1 : index
    %c0_8 = arith.constant 0 : index
    %c0_9 = arith.constant 0 : index
    %7 = vector.load %arg2[%c1_7, %c0_8, %c0_9] : memref<9x4x16xbf16, #tpu.memory_space<vmem>>, vector<1x4x16xbf16>
    %8 = vector.shape_cast %7 : vector<1x4x16xbf16> to vector<4x16xbf16>
    %cst_10 = arith.constant dense<0.000000e+00> : vector<288x16xf32>
    %9 = tpu.matmul %6, %8, %cst_10 {dimension_numbers = #tpu.dot_dimension_numbers<[1], [0], [0], [1], [0, 0, 1, 1], [], []>} : vector<288x4xbf16>, vector<4x16xbf16>, vector<288x16xf32> -> vector<288x16xf32>
    %10 = arith.addf %4, %9 : vector<288x16xf32>
    %c0_11 = arith.constant 0 : index
    %c2 = arith.constant 2 : index
    %c0_12 = arith.constant 0 : index
    %11 = vector.load %arg1[%c0_11, %c2, %c0_12] : memref<1x336x4xbf16, #tpu.memory_space<vmem>>, vector<1x288x4xbf16>
    %12 = vector.shape_cast %11 : vector<1x288x4xbf16> to vector<288x4xbf16>
    %c2_13 = arith.constant 2 : index
    %c0_14 = arith.constant 0 : index
    %c0_15 = arith.constant 0 : index
    %13 = vector.load %arg2[%c2_13, %c0_14, %c0_15] : memref<9x4x16xbf16, #tpu.memory_space<vmem>>, vector<1x4x16xbf16>
    %14 = vector.shape_cast %13 : vector<1x4x16xbf16> to vector<4x16xbf16>
    %cst_16 = arith.constant dense<0.000000e+00> : vector<288x16xf32>
    %15 = tpu.matmul %12, %14, %cst_16 {dimension_numbers = #tpu.dot_dimension_numbers<[1], [0], [0], [1], [0, 0, 1, 1], [], []>} : vector<288x4xbf16>, vector<4x16xbf16>, vector<288x16xf32> -> vector<288x16xf32>
    %16 = arith.addf %10, %15 : vector<288x16xf32>
    %c0_17 = arith.constant 0 : index
    %c18 = arith.constant 18 : index
    %c0_18 = arith.constant 0 : index
    %17 = vector.load %arg1[%c0_17, %c18, %c0_18] : memref<1x336x4xbf16, #tpu.memory_space<vmem>>, vector<1x288x4xbf16>
    %18 = vector.shape_cast %17 : vector<1x288x4xbf16> to vector<288x4xbf16>
    %c3 = arith.constant 3 : index
    %c0_19 = arith.constant 0 : index
    %c0_20 = arith.constant 0 : index
    %19 = vector.load %arg2[%c3, %c0_19, %c0_20] : memref<9x4x16xbf16, #tpu.memory_space<vmem>>, vector<1x4x16xbf16>
    %20 = vector.shape_cast %19 : vector<1x4x16xbf16> to vector<4x16xbf16>
    %cst_21 = arith.constant dense<0.000000e+00> : vector<288x16xf32>
    %21 = tpu.matmul %18, %20, %cst_21 {dimension_numbers = #tpu.dot_dimension_numbers<[1], [0], [0], [1], [0, 0, 1, 1], [], []>} : vector<288x4xbf16>, vector<4x16xbf16>, vector<288x16xf32> -> vector<288x16xf32>
    %22 = arith.addf %16, %21 : vector<288x16xf32>
    %c0_22 = arith.constant 0 : index
    %c19 = arith.constant 19 : index
    %c0_23 = arith.constant 0 : index
    %23 = vector.load %arg1[%c0_22, %c19, %c0_23] : memref<1x336x4xbf16, #tpu.memory_space<vmem>>, vector<1x288x4xbf16>
    %24 = vector.shape_cast %23 : vector<1x288x4xbf16> to vector<288x4xbf16>
    %c4 = arith.constant 4 : index
    %c0_24 = arith.constant 0 : index
    %c0_25 = arith.constant 0 : index
    %25 = vector.load %arg2[%c4, %c0_24, %c0_25] : memref<9x4x16xbf16, #tpu.memory_space<vmem>>, vector<1x4x16xbf16>
    %26 = vector.shape_cast %25 : vector<1x4x16xbf16> to vector<4x16xbf16>
    %cst_26 = arith.constant dense<0.000000e+00> : vector<288x16xf32>
    %27 = tpu.matmul %24, %26, %cst_26 {dimension_numbers = #tpu.dot_dimension_numbers<[1], [0], [0], [1], [0, 0, 1, 1], [], []>} : vector<288x4xbf16>, vector<4x16xbf16>, vector<288x16xf32> -> vector<288x16xf32>
    %28 = arith.addf %22, %27 : vector<288x16xf32>
    %c0_27 = arith.constant 0 : index
    %c20 = arith.constant 20 : index
    %c0_28 = arith.constant 0 : index
    %29 = vector.load %arg1[%c0_27, %c20, %c0_28] : memref<1x336x4xbf16, #tpu.memory_space<vmem>>, vector<1x288x4xbf16>
    %30 = vector.shape_cast %29 : vector<1x288x4xbf16> to vector<288x4xbf16>
    %c5 = arith.constant 5 : index
    %c0_29 = arith.constant 0 : index
    %c0_30 = arith.constant 0 : index
    %31 = vector.load %arg2[%c5, %c0_29, %c0_30] : memref<9x4x16xbf16, #tpu.memory_space<vmem>>, vector<1x4x16xbf16>
    %32 = vector.shape_cast %31 : vector<1x4x16xbf16> to vector<4x16xbf16>
    %cst_31 = arith.constant dense<0.000000e+00> : vector<288x16xf32>
    %33 = tpu.matmul %30, %32, %cst_31 {dimension_numbers = #tpu.dot_dimension_numbers<[1], [0], [0], [1], [0, 0, 1, 1], [], []>} : vector<288x4xbf16>, vector<4x16xbf16>, vector<288x16xf32> -> vector<288x16xf32>
    %34 = arith.addf %28, %33 : vector<288x16xf32>
    %c0_32 = arith.constant 0 : index
    %c36 = arith.constant 36 : index
    %c0_33 = arith.constant 0 : index
    %35 = vector.load %arg1[%c0_32, %c36, %c0_33] : memref<1x336x4xbf16, #tpu.memory_space<vmem>>, vector<1x288x4xbf16>
    %36 = vector.shape_cast %35 : vector<1x288x4xbf16> to vector<288x4xbf16>
    %c6 = arith.constant 6 : index
    %c0_34 = arith.constant 0 : index
    %c0_35 = arith.constant 0 : index
    %37 = vector.load %arg2[%c6, %c0_34, %c0_35] : memref<9x4x16xbf16, #tpu.memory_space<vmem>>, vector<1x4x16xbf16>
    %38 = vector.shape_cast %37 : vector<1x4x16xbf16> to vector<4x16xbf16>
    %cst_36 = arith.constant dense<0.000000e+00> : vector<288x16xf32>
    %39 = tpu.matmul %36, %38, %cst_36 {dimension_numbers = #tpu.dot_dimension_numbers<[1], [0], [0], [1], [0, 0, 1, 1], [], []>} : vector<288x4xbf16>, vector<4x16xbf16>, vector<288x16xf32> -> vector<288x16xf32>
    %40 = arith.addf %34, %39 : vector<288x16xf32>
    %c0_37 = arith.constant 0 : index
    %c37 = arith.constant 37 : index
    %c0_38 = arith.constant 0 : index
    %41 = vector.load %arg1[%c0_37, %c37, %c0_38] : memref<1x336x4xbf16, #tpu.memory_space<vmem>>, vector<1x288x4xbf16>
    %42 = vector.shape_cast %41 : vector<1x288x4xbf16> to vector<288x4xbf16>
    %c7 = arith.constant 7 : index
    %c0_39 = arith.constant 0 : index
    %c0_40 = arith.constant 0 : index
    %43 = vector.load %arg2[%c7, %c0_39, %c0_40] : memref<9x4x16xbf16, #tpu.memory_space<vmem>>, vector<1x4x16xbf16>
    %44 = vector.shape_cast %43 : vector<1x4x16xbf16> to vector<4x16xbf16>
    %cst_41 = arith.constant dense<0.000000e+00> : vector<288x16xf32>
    %45 = tpu.matmul %42, %44, %cst_41 {dimension_numbers = #tpu.dot_dimension_numbers<[1], [0], [0], [1], [0, 0, 1, 1], [], []>} : vector<288x4xbf16>, vector<4x16xbf16>, vector<288x16xf32> -> vector<288x16xf32>
    %46 = arith.addf %40, %45 : vector<288x16xf32>
    %c0_42 = arith.constant 0 : index
    %c38 = arith.constant 38 : index
    %c0_43 = arith.constant 0 : index
    %47 = vector.load %arg1[%c0_42, %c38, %c0_43] : memref<1x336x4xbf16, #tpu.memory_space<vmem>>, vector<1x288x4xbf16>
    %48 = vector.shape_cast %47 : vector<1x288x4xbf16> to vector<288x4xbf16>
    %c8 = arith.constant 8 : index
    %c0_44 = arith.constant 0 : index
    %c0_45 = arith.constant 0 : index
    %49 = vector.load %arg2[%c8, %c0_44, %c0_45] : memref<9x4x16xbf16, #tpu.memory_space<vmem>>, vector<1x4x16xbf16>
    %50 = vector.shape_cast %49 : vector<1x4x16xbf16> to vector<4x16xbf16>
    %cst_46 = arith.constant dense<0.000000e+00> : vector<288x16xf32>
    %51 = tpu.matmul %48, %50, %cst_46 {dimension_numbers = #tpu.dot_dimension_numbers<[1], [0], [0], [1], [0, 0, 1, 1], [], []>} : vector<288x4xbf16>, vector<4x16xbf16>, vector<288x16xf32> -> vector<288x16xf32>
    %52 = arith.addf %46, %51 : vector<288x16xf32>
    %c0_47 = arith.constant 0 : index
    %c0_48 = arith.constant 0 : index
    %53 = vector.load %arg3[%c0_47, %c0_48] : memref<1x16xf32, #tpu.memory_space<vmem>>, vector<1x16xf32>
    %54 = vector.broadcast %53 : vector<1x16xf32> to vector<288x16xf32>
    %55 = arith.addf %52, %54 : vector<288x16xf32>
    %cst_49 = arith.constant 0.000000e+00 : f32
    %56 = vector.broadcast %cst_49 : f32 to vector<288x16xf32>
    %57 = arith.maximumf %55, %56 : vector<288x16xf32>
    %58 = tpu.iota {dimensions = array<i32: 0>} : vector<288x16xi32>
    %c18_i32 = arith.constant 18 : i32
    %c0_i32 = arith.constant 0 : i32
    %59 = arith.cmpi eq, %c18_i32, %c0_i32 : i32
    %c1_i32 = arith.constant 1 : i32
    %60 = arith.select %59, %c1_i32, %c18_i32 : i32
    %61 = vector.broadcast %60 : i32 to vector<288x16xi32>
    %62 = arith.remsi %58, %61 : vector<288x16xi32>
    %c0_i32_50 = arith.constant 0 : i32
    %63 = vector.broadcast %c0_i32_50 : i32 to vector<288x16xi32>
    %64 = arith.cmpi ne, %62, %63 : vector<288x16xi32>
    %c0_i32_51 = arith.constant 0 : i32
    %65 = vector.broadcast %c0_i32_51 : i32 to vector<288x16xi32>
    %66 = arith.cmpi slt, %62, %65 : vector<288x16xi32>
    %c0_i32_52 = arith.constant 0 : i32
    %67 = arith.cmpi slt, %60, %c0_i32_52 : i32
    %68 = vector.broadcast %67 : i1 to vector<288x16xi1>
    %69 = vector.broadcast %68 : vector<288x16xi1> to vector<288x16xi1>
    %70 = arith.xori %66, %69 : vector<288x16xi1>
    %71 = arith.andi %70, %64 : vector<288x16xi1>
    %72 = vector.broadcast %60 : i32 to vector<288x16xi32>
    %73 = arith.addi %62, %72 : vector<288x16xi32>
    %74 = arith.select %71, %73, %62 : vector<288x16xi1>, vector<288x16xi32>
    %c16_i32 = arith.constant 16 : i32
    %75 = vector.broadcast %c16_i32 : i32 to vector<288x16xi32>
    %76 = arith.cmpi slt, %74, %75 : vector<288x16xi32>
    %cst_53 = arith.constant 0.000000e+00 : f32
    %77 = vector.broadcast %cst_53 : f32 to vector<288x16xf32>
    %78 = arith.select %76, %57, %77 : vector<288x16xi1>, vector<288x16xf32>
    %cst_54 = arith.constant 0.000000e+00 : bf16
    %79 = vector.broadcast %cst_54 : bf16 to vector<336x16xbf16>
    %c0_55 = arith.constant 0 : index
    %c0_56 = arith.constant 0 : index
    %80 = vector.load %arg9[%c0_55, %c0_56] : memref<336x16xbf16, #tpu.memory_space<vmem>>, vector<336x16xbf16>
    tpu.vector_store %arg9[%c0_55, %c0_56], %79 {strides = array<i32>} : memref<336x16xbf16, #tpu.memory_space<vmem>>, vector<336x16xbf16>,
    %81 = arith.truncf %78 : vector<288x16xf32> to vector<288x16xbf16>
    %c19_57 = arith.constant 19 : index
    %c0_58 = arith.constant 0 : index
    %82 = vector.load %arg9[%c19_57, %c0_58] : memref<336x16xbf16, #tpu.memory_space<vmem>>, vector<288x16xbf16>
    tpu.vector_store %arg9[%c19_57, %c0_58], %81 {strides = array<i32>} : memref<336x16xbf16, #tpu.memory_space<vmem>>, vector<288x16xbf16>,
    %c0_59 = arith.constant 0 : index
    %c0_60 = arith.constant 0 : index
    %83 = vector.load %arg9[%c0_59, %c0_60] : memref<336x16xbf16, #tpu.memory_space<vmem>>, vector<288x16xbf16>
    %c0_61 = arith.constant 0 : index
    %c0_62 = arith.constant 0 : index
    %c0_63 = arith.constant 0 : index
    %84 = vector.load %arg4[%c0_61, %c0_62, %c0_63] : memref<9x16x16xbf16, #tpu.memory_space<vmem>>, vector<1x16x16xbf16>
    %85 = vector.shape_cast %84 : vector<1x16x16xbf16> to vector<16x16xbf16>
    %cst_64 = arith.constant dense<0.000000e+00> : vector<288x16xf32>
    %86 = tpu.matmul %83, %85, %cst_64 {dimension_numbers = #tpu.dot_dimension_numbers<[1], [0], [0], [1], [0, 0, 1, 1], [], []>} : vector<288x16xbf16>, vector<16x16xbf16>, vector<288x16xf32> -> vector<288x16xf32>
    %c1_65 = arith.constant 1 : index
    %c0_66 = arith.constant 0 : index
    %87 = vector.load %arg9[%c1_65, %c0_66] : memref<336x16xbf16, #tpu.memory_space<vmem>>, vector<288x16xbf16>
    %c1_67 = arith.constant 1 : index
    %c0_68 = arith.constant 0 : index
    %c0_69 = arith.constant 0 : index
    %88 = vector.load %arg4[%c1_67, %c0_68, %c0_69] : memref<9x16x16xbf16, #tpu.memory_space<vmem>>, vector<1x16x16xbf16>
    %89 = vector.shape_cast %88 : vector<1x16x16xbf16> to vector<16x16xbf16>
    %cst_70 = arith.constant dense<0.000000e+00> : vector<288x16xf32>
    %90 = tpu.matmul %87, %89, %cst_70 {dimension_numbers = #tpu.dot_dimension_numbers<[1], [0], [0], [1], [0, 0, 1, 1], [], []>} : vector<288x16xbf16>, vector<16x16xbf16>, vector<288x16xf32> -> vector<288x16xf32>
    %91 = arith.addf %86, %90 : vector<288x16xf32>
    %c2_71 = arith.constant 2 : index
    %c0_72 = arith.constant 0 : index
    %92 = vector.load %arg9[%c2_71, %c0_72] : memref<336x16xbf16, #tpu.memory_space<vmem>>, vector<288x16xbf16>
    %c2_73 = arith.constant 2 : index
    %c0_74 = arith.constant 0 : index
    %c0_75 = arith.constant 0 : index
    %93 = vector.load %arg4[%c2_73, %c0_74, %c0_75] : memref<9x16x16xbf16, #tpu.memory_space<vmem>>, vector<1x16x16xbf16>
    %94 = vector.shape_cast %93 : vector<1x16x16xbf16> to vector<16x16xbf16>
    %cst_76 = arith.constant dense<0.000000e+00> : vector<288x16xf32>
    %95 = tpu.matmul %92, %94, %cst_76 {dimension_numbers = #tpu.dot_dimension_numbers<[1], [0], [0], [1], [0, 0, 1, 1], [], []>} : vector<288x16xbf16>, vector<16x16xbf16>, vector<288x16xf32> -> vector<288x16xf32>
    %96 = arith.addf %91, %95 : vector<288x16xf32>
    %c18_77 = arith.constant 18 : index
    %c0_78 = arith.constant 0 : index
    %97 = vector.load %arg9[%c18_77, %c0_78] : memref<336x16xbf16, #tpu.memory_space<vmem>>, vector<288x16xbf16>
    %c3_79 = arith.constant 3 : index
    %c0_80 = arith.constant 0 : index
    %c0_81 = arith.constant 0 : index
    %98 = vector.load %arg4[%c3_79, %c0_80, %c0_81] : memref<9x16x16xbf16, #tpu.memory_space<vmem>>, vector<1x16x16xbf16>
    %99 = vector.shape_cast %98 : vector<1x16x16xbf16> to vector<16x16xbf16>
    %cst_82 = arith.constant dense<0.000000e+00> : vector<288x16xf32>
    %100 = tpu.matmul %97, %99, %cst_82 {dimension_numbers = #tpu.dot_dimension_numbers<[1], [0], [0], [1], [0, 0, 1, 1], [], []>} : vector<288x16xbf16>, vector<16x16xbf16>, vector<288x16xf32> -> vector<288x16xf32>
    %101 = arith.addf %96, %100 : vector<288x16xf32>
    %c19_83 = arith.constant 19 : index
    %c0_84 = arith.constant 0 : index
    %102 = vector.load %arg9[%c19_83, %c0_84] : memref<336x16xbf16, #tpu.memory_space<vmem>>, vector<288x16xbf16>
    %c4_85 = arith.constant 4 : index
    %c0_86 = arith.constant 0 : index
    %c0_87 = arith.constant 0 : index
    %103 = vector.load %arg4[%c4_85, %c0_86, %c0_87] : memref<9x16x16xbf16, #tpu.memory_space<vmem>>, vector<1x16x16xbf16>
    %104 = vector.shape_cast %103 : vector<1x16x16xbf16> to vector<16x16xbf16>
    %cst_88 = arith.constant dense<0.000000e+00> : vector<288x16xf32>
    %105 = tpu.matmul %102, %104, %cst_88 {dimension_numbers = #tpu.dot_dimension_numbers<[1], [0], [0], [1], [0, 0, 1, 1], [], []>} : vector<288x16xbf16>, vector<16x16xbf16>, vector<288x16xf32> -> vector<288x16xf32>
    %106 = arith.addf %101, %105 : vector<288x16xf32>
    %c20_89 = arith.constant 20 : index
    %c0_90 = arith.constant 0 : index
    %107 = vector.load %arg9[%c20_89, %c0_90] : memref<336x16xbf16, #tpu.memory_space<vmem>>, vector<288x16xbf16>
    %c5_91 = arith.constant 5 : index
    %c0_92 = arith.constant 0 : index
    %c0_93 = arith.constant 0 : index
    %108 = vector.load %arg4[%c5_91, %c0_92, %c0_93] : memref<9x16x16xbf16, #tpu.memory_space<vmem>>, vector<1x16x16xbf16>
    %109 = vector.shape_cast %108 : vector<1x16x16xbf16> to vector<16x16xbf16>
    %cst_94 = arith.constant dense<0.000000e+00> : vector<288x16xf32>
    %110 = tpu.matmul %107, %109, %cst_94 {dimension_numbers = #tpu.dot_dimension_numbers<[1], [0], [0], [1], [0, 0, 1, 1], [], []>} : vector<288x16xbf16>, vector<16x16xbf16>, vector<288x16xf32> -> vector<288x16xf32>
    %111 = arith.addf %106, %110 : vector<288x16xf32>
    %c36_95 = arith.constant 36 : index
    %c0_96 = arith.constant 0 : index
    %112 = vector.load %arg9[%c36_95, %c0_96] : memref<336x16xbf16, #tpu.memory_space<vmem>>, vector<288x16xbf16>
    %c6_97 = arith.constant 6 : index
    %c0_98 = arith.constant 0 : index
    %c0_99 = arith.constant 0 : index
    %113 = vector.load %arg4[%c6_97, %c0_98, %c0_99] : memref<9x16x16xbf16, #tpu.memory_space<vmem>>, vector<1x16x16xbf16>
    %114 = vector.shape_cast %113 : vector<1x16x16xbf16> to vector<16x16xbf16>
    %cst_100 = arith.constant dense<0.000000e+00> : vector<288x16xf32>
    %115 = tpu.matmul %112, %114, %cst_100 {dimension_numbers = #tpu.dot_dimension_numbers<[1], [0], [0], [1], [0, 0, 1, 1], [], []>} : vector<288x16xbf16>, vector<16x16xbf16>, vector<288x16xf32> -> vector<288x16xf32>
    %116 = arith.addf %111, %115 : vector<288x16xf32>
    %c37_101 = arith.constant 37 : index
    %c0_102 = arith.constant 0 : index
    %117 = vector.load %arg9[%c37_101, %c0_102] : memref<336x16xbf16, #tpu.memory_space<vmem>>, vector<288x16xbf16>
    %c7_103 = arith.constant 7 : index
    %c0_104 = arith.constant 0 : index
    %c0_105 = arith.constant 0 : index
    %118 = vector.load %arg4[%c7_103, %c0_104, %c0_105] : memref<9x16x16xbf16, #tpu.memory_space<vmem>>, vector<1x16x16xbf16>
    %119 = vector.shape_cast %118 : vector<1x16x16xbf16> to vector<16x16xbf16>
    %cst_106 = arith.constant dense<0.000000e+00> : vector<288x16xf32>
    %120 = tpu.matmul %117, %119, %cst_106 {dimension_numbers = #tpu.dot_dimension_numbers<[1], [0], [0], [1], [0, 0, 1, 1], [], []>} : vector<288x16xbf16>, vector<16x16xbf16>, vector<288x16xf32> -> vector<288x16xf32>
    %121 = arith.addf %116, %120 : vector<288x16xf32>
    %c38_107 = arith.constant 38 : index
    %c0_108 = arith.constant 0 : index
    %122 = vector.load %arg9[%c38_107, %c0_108] : memref<336x16xbf16, #tpu.memory_space<vmem>>, vector<288x16xbf16>
    %c8_109 = arith.constant 8 : index
    %c0_110 = arith.constant 0 : index
    %c0_111 = arith.constant 0 : index
    %123 = vector.load %arg4[%c8_109, %c0_110, %c0_111] : memref<9x16x16xbf16, #tpu.memory_space<vmem>>, vector<1x16x16xbf16>
    %124 = vector.shape_cast %123 : vector<1x16x16xbf16> to vector<16x16xbf16>
    %cst_112 = arith.constant dense<0.000000e+00> : vector<288x16xf32>
    %125 = tpu.matmul %122, %124, %cst_112 {dimension_numbers = #tpu.dot_dimension_numbers<[1], [0], [0], [1], [0, 0, 1, 1], [], []>} : vector<288x16xbf16>, vector<16x16xbf16>, vector<288x16xf32> -> vector<288x16xf32>
    %126 = arith.addf %121, %125 : vector<288x16xf32>
    %c0_113 = arith.constant 0 : index
    %c0_114 = arith.constant 0 : index
    %127 = vector.load %arg5[%c0_113, %c0_114] : memref<1x16xf32, #tpu.memory_space<vmem>>, vector<1x16xf32>
    %128 = vector.broadcast %127 : vector<1x16xf32> to vector<288x16xf32>
    %129 = arith.addf %126, %128 : vector<288x16xf32>
    %cst_115 = arith.constant 0.000000e+00 : f32
    %130 = vector.broadcast %cst_115 : f32 to vector<288x16xf32>
    %131 = arith.maximumf %129, %130 : vector<288x16xf32>
    %c0_116 = arith.constant 0 : index
    %c0_117 = arith.constant 0 : index
    %132 = vector.load %arg7[%c0_116, %c0_117] : memref<288x16xf32, #tpu.memory_space<vmem>>, vector<288x16xf32>
    tpu.vector_store %arg7[%c0_116, %c0_117], %131 {strides = array<i32>} : memref<288x16xf32, #tpu.memory_space<vmem>>, vector<288x16xf32>,
    %c0_118 = arith.constant 0 : index
    %c0_119 = arith.constant 0 : index
    %133 = vector.load %arg7[%c0_118, %c0_119] : memref<288x16xf32, #tpu.memory_space<vmem>>, vector<287x16xf32>
    %c1_120 = arith.constant 1 : index
    %c0_121 = arith.constant 0 : index
    %134 = vector.load %arg7[%c1_120, %c0_121] : memref<288x16xf32, #tpu.memory_space<vmem>>, vector<287x16xf32>
    %135 = arith.maximumf %133, %134 : vector<287x16xf32>
    %c0_122 = arith.constant 0 : index
    %c0_123 = arith.constant 0 : index
    %136 = vector.load %arg8[%c0_122, %c0_123] : memref<288x16xf32, #tpu.memory_space<vmem>>, vector<287x16xf32>
    tpu.vector_store %arg8[%c0_122, %c0_123], %135 {strides = array<i32>} : memref<288x16xf32, #tpu.memory_space<vmem>>, vector<287x16xf32>,
    %c0_124 = arith.constant 0 : index
    %c0_125 = arith.constant 0 : index
    %137 = vector.load %arg8[%c0_124, %c0_125] : memref<288x16xf32, #tpu.memory_space<vmem>>, vector<269x16xf32>
    %c18_126 = arith.constant 18 : index
    %c0_127 = arith.constant 0 : index
    %138 = vector.load %arg8[%c18_126, %c0_127] : memref<288x16xf32, #tpu.memory_space<vmem>>, vector<269x16xf32>
    %139 = arith.maximumf %137, %138 : vector<269x16xf32>
    %c0_128 = arith.constant 0 : index
    %c0_129 = arith.constant 0 : index
    %140 = vector.load %arg7[%c0_128, %c0_129] : memref<288x16xf32, #tpu.memory_space<vmem>>, vector<269x16xf32>
    tpu.vector_store %arg7[%c0_128, %c0_129], %139 {strides = array<i32>} : memref<288x16xf32, #tpu.memory_space<vmem>>, vector<269x16xf32>,
    %c0_130 = arith.constant 0 : index
    %c0_131 = arith.constant 0 : index
    %141 = vector.load %arg7[%c0_130, %c0_131] : memref<288x16xf32, #tpu.memory_space<vmem>>, vector<267x16xf32>
    %c2_132 = arith.constant 2 : index
    %c0_133 = arith.constant 0 : index
    %142 = vector.load %arg7[%c2_132, %c0_133] : memref<288x16xf32, #tpu.memory_space<vmem>>, vector<267x16xf32>
    %143 = arith.addf %141, %142 : vector<267x16xf32>
    %c0_134 = arith.constant 0 : index
    %c0_135 = arith.constant 0 : index
    %144 = vector.load %arg8[%c0_134, %c0_135] : memref<288x16xf32, #tpu.memory_space<vmem>>, vector<267x16xf32>
    tpu.vector_store %arg8[%c0_134, %c0_135], %143 {strides = array<i32>} : memref<288x16xf32, #tpu.memory_space<vmem>>, vector<267x16xf32>,
    %c0_136 = arith.constant 0 : index
    %c0_137 = arith.constant 0 : index
    %145 = vector.load %arg8[%c0_136, %c0_137] : memref<288x16xf32, #tpu.memory_space<vmem>>, vector<231x16xf32>
    %c36_138 = arith.constant 36 : index
    %c0_139 = arith.constant 0 : index
    %146 = vector.load %arg8[%c36_138, %c0_139] : memref<288x16xf32, #tpu.memory_space<vmem>>, vector<231x16xf32>
    %147 = arith.addf %145, %146 : vector<231x16xf32>
    %c0_140 = arith.constant 0 : index
    %c0_141 = arith.constant 0 : index
    %148 = vector.load %arg7[%c0_140, %c0_141] : memref<288x16xf32, #tpu.memory_space<vmem>>, vector<231x16xf32>
    tpu.vector_store %arg7[%c0_140, %c0_141], %147 {strides = array<i32>} : memref<288x16xf32, #tpu.memory_space<vmem>>, vector<231x16xf32>,
    %c0_142 = arith.constant 0 : index
    %c0_143 = arith.constant 0 : index
    %149 = tpu.strided_load %arg7[%c0_142, %c0_143] {strides = array<i32: 4, 1>} : memref<288x16xf32, #tpu.memory_space<vmem>>, vector<4x16xf32>
    %cst_144 = arith.constant 2.500000e-01 : f32
    %150 = vector.broadcast %cst_144 : f32 to vector<4x16xf32>
    %151 = arith.mulf %150, %149 : vector<4x16xf32>
    %c0_145 = arith.constant 0 : index
    %c0_146 = arith.constant 0 : index
    %c0_147 = arith.constant 0 : index
    %152 = vector.load %arg6[%c0_145, %c0_146, %c0_147] : memref<1x16x16xf32, #tpu.memory_space<vmem>>, vector<1x4x16xf32>
    %153 = vector.shape_cast %152 : vector<1x4x16xf32> to vector<4x16xf32>
    %154 = vector.shape_cast %151 : vector<4x16xf32> to vector<1x4x16xf32>
    tpu.vector_store %arg6[%c0_145, %c0_146, %c0_147], %154 {strides = array<i32>} : memref<1x16x16xf32, #tpu.memory_space<vmem>>, vector<1x4x16xf32>,
    %c72 = arith.constant 72 : index
    %c0_148 = arith.constant 0 : index
    %155 = tpu.strided_load %arg7[%c72, %c0_148] {strides = array<i32: 4, 1>} : memref<288x16xf32, #tpu.memory_space<vmem>>, vector<4x16xf32>
    %cst_149 = arith.constant 2.500000e-01 : f32
    %156 = vector.broadcast %cst_149 : f32 to vector<4x16xf32>
    %157 = arith.mulf %156, %155 : vector<4x16xf32>
    %c0_150 = arith.constant 0 : index
    %c4_151 = arith.constant 4 : index
    %c0_152 = arith.constant 0 : index
    %158 = vector.load %arg6[%c0_150, %c4_151, %c0_152] : memref<1x16x16xf32, #tpu.memory_space<vmem>>, vector<1x4x16xf32>
    %159 = vector.shape_cast %158 : vector<1x4x16xf32> to vector<4x16xf32>
    %160 = vector.shape_cast %157 : vector<4x16xf32> to vector<1x4x16xf32>
    tpu.vector_store %arg6[%c0_150, %c4_151, %c0_152], %160 {strides = array<i32>} : memref<1x16x16xf32, #tpu.memory_space<vmem>>, vector<1x4x16xf32>,
    %c144 = arith.constant 144 : index
    %c0_153 = arith.constant 0 : index
    %161 = tpu.strided_load %arg7[%c144, %c0_153] {strides = array<i32: 4, 1>} : memref<288x16xf32, #tpu.memory_space<vmem>>, vector<4x16xf32>
    %cst_154 = arith.constant 2.500000e-01 : f32
    %162 = vector.broadcast %cst_154 : f32 to vector<4x16xf32>
    %163 = arith.mulf %162, %161 : vector<4x16xf32>
    %c0_155 = arith.constant 0 : index
    %c8_156 = arith.constant 8 : index
    %c0_157 = arith.constant 0 : index
    %164 = vector.load %arg6[%c0_155, %c8_156, %c0_157] : memref<1x16x16xf32, #tpu.memory_space<vmem>>, vector<1x4x16xf32>
    %165 = vector.shape_cast %164 : vector<1x4x16xf32> to vector<4x16xf32>
    %166 = vector.shape_cast %163 : vector<4x16xf32> to vector<1x4x16xf32>
    tpu.vector_store %arg6[%c0_155, %c8_156, %c0_157], %166 {strides = array<i32>} : memref<1x16x16xf32, #tpu.memory_space<vmem>>, vector<1x4x16xf32>,
    %c216 = arith.constant 216 : index
    %c0_158 = arith.constant 0 : index
    %167 = tpu.strided_load %arg7[%c216, %c0_158] {strides = array<i32: 4, 1>} : memref<288x16xf32, #tpu.memory_space<vmem>>, vector<4x16xf32>
    %cst_159 = arith.constant 2.500000e-01 : f32
    %168 = vector.broadcast %cst_159 : f32 to vector<4x16xf32>
    %169 = arith.mulf %168, %167 : vector<4x16xf32>
    %c0_160 = arith.constant 0 : index
    %c12 = arith.constant 12 : index
    %c0_161 = arith.constant 0 : index
    %170 = vector.load %arg6[%c0_160, %c12, %c0_161] : memref<1x16x16xf32, #tpu.memory_space<vmem>>, vector<1x4x16xf32>
    %171 = vector.shape_cast %170 : vector<1x4x16xf32> to vector<4x16xf32>
    %172 = vector.shape_cast %169 : vector<4x16xf32> to vector<1x4x16xf32>
    tpu.vector_store %arg6[%c0_160, %c12, %c0_161], %172 {strides = array<i32>} : memref<1x16x16xf32, #tpu.memory_space<vmem>>, vector<1x4x16xf32>,
    return
  }
  func.func @transform_0(%arg0: i32) -> (i32, i32, i32) {
    %c0_i32 = arith.constant 0 : i32
    %c0_i32_0 = arith.constant 0 : i32
    %c0_i32_1 = arith.constant 0 : i32
    return %arg0, %c0_i32, %c0_i32_0 : i32, i32, i32
  }
  func.func @transform_1(%arg0: i32) -> (i32, i32, i32) {
    %c0_i32 = arith.constant 0 : i32
    %c0_i32_0 = arith.constant 0 : i32
    %c0_i32_1 = arith.constant 0 : i32
    %c0_i32_2 = arith.constant 0 : i32
    return %c0_i32, %c0_i32_0, %c0_i32_1 : i32, i32, i32
  }
  func.func @transform_2(%arg0: i32) -> (i32, i32) {
    %c0_i32 = arith.constant 0 : i32
    %c0_i32_0 = arith.constant 0 : i32
    %c0_i32_1 = arith.constant 0 : i32
    return %c0_i32, %c0_i32_0 : i32, i32
  }
  func.func @transform_3(%arg0: i32) -> (i32, i32, i32) {
    %c0_i32 = arith.constant 0 : i32
    %c0_i32_0 = arith.constant 0 : i32
    %c0_i32_1 = arith.constant 0 : i32
    %c0_i32_2 = arith.constant 0 : i32
    return %c0_i32, %c0_i32_0, %c0_i32_1 : i32, i32, i32
  }
  func.func @transform_4(%arg0: i32) -> (i32, i32) {
    %c0_i32 = arith.constant 0 : i32
    %c0_i32_0 = arith.constant 0 : i32
    %c0_i32_1 = arith.constant 0 : i32
    return %c0_i32, %c0_i32_0 : i32, i32
  }
  func.func @transform_5(%arg0: i32) -> (i32, i32, i32) {
    %c0_i32 = arith.constant 0 : i32
    %c0_i32_0 = arith.constant 0 : i32
    %c0_i32_1 = arith.constant 0 : i32
    return %arg0, %c0_i32, %c0_i32_0 : i32, i32, i32
  }
}

</mosaic_0001>

<bundles_post_ra>
// kernel: forward.1
= control target key start
LH: loop header
LB: loop body
LE: loop exit
PB: predicated region body
PF: predicated region fallthrough
CT: control target
= control target key end

     0   :  { %10 = vsyncpa [#allocation6], 0  ;;  %s16463_s0 = inlined_call_operand.vmem [shape: bf16[2,336,4], index: 0, kind: input, shape index: {}]   ;;  %s16464_s1 = inlined_call_operand.vmem [shape: bf16[9,4,16], index: 1, kind: input, shape index: {}]   ;;  %s16465_s2 = inlined_call_operand.vmem [shape: f32[1,16], index: 2, kind: input, shape index: {}]   ;;  %s16466_s3 = inlined_call_operand.vmem [shape: bf16[9,16,16], index: 3, kind: input, shape index: {}]   ;;  %s16467_s4 = inlined_call_operand.vmem [shape: f32[1,16], index: 4, kind: input, shape index: {}]   ;;  %s16468_s5 = inlined_call_operand.hbm [shape: f32[2,16,16], index: 5, kind: output, shape index: {}]  }
   0x1   :  { %12 = vsyncpa [#allocation6 + $0x1], 0  ;;  %s11205_s18 = smov 0   ;;  %s11207_s19 = smov 0  }
   0x2   :  { %s11209_s20 = smov 0   ;;  %s11211_s21 = smov 0  }
   0x3 LB: > { %s11226_s22 = sadd.s32 4294967295, %s11169_s21   ;;  %s9250_s23 = sadd.s32 4294967294, %s11169_s21   ;;  %s11169_s21 = sphi %s11211_s21, %s17722_s21   ;;  %s11165_s20 = sphi %s11209_s20, %s17721_s20   ;;  %s11161_s19 = sphi %s11207_s19, %s17720_s19   ;;  %s11157_s18 = sphi %s11205_s18, %s17719_s18  }
   0x4   : > { %s11230_s24 = sadd.s32 1, %s11169_s21   ;;  %s135_s25 = sadd.s32 1, %s11165_s20 }
   0x5   : > { %s132_s26 = ssub.s32 %s11169_s21, %s11230_s24  ;;  %p145_p0 = scmp.ne.s32.totalorder %s11165_s20, %s11161_s19 }
   0x6   : > { %p133_p1 = scmp.eq.s32.totalorder %s132_s26, 0  ;;  %p146_p2 = scmp.eq.s32.totalorder %s11226_s22, 1 }
   0x7   : > { %p151_p3 = scmp.ne.s32.totalorder %s11161_s19, %s11157_s18  ;;  %p152_p4 = scmp.eq.s32.totalorder %s9250_s23, 1 }
   0x8   : > { %s11241_s27 = scalar_select %p133_p1, %s11165_s20, %s135_s25  }
   0x9   : > { %p11243_p5 = por %p146_p2, %p145_p0  ;;  %p11247_p6 = por %p152_p4, %p151_p3 }
   0xa   : > { %p9253_p7 = scmp.ge.s32.totalorder %s11169_s21, 1  ;;  %p190_p8 = scmp.lt.s32.totalorder %s11169_s21, 3 }
   0xc   : > { %p191_p9 = pnand %p9253_p7, %p190_p8 }
   0xe   : > { %194 = sbr.rel (%p191_p9) target bundleno = 1370 (0x55a), region = 40 }
  0x13   : > { %v9256_v0 = vld [vmem:[%s16464_s1 + $0x2] sm:$0x3]  ;;  %vm561_vm0 = vcmask 1041408   ;;  %v260_v1 = vld [vmem:[%s16464_s1] sm:$0x3]  ;;  %p218_p10 = scmp.lt.s32.totalorder %s11226_s22, 1 }
  0x14   : > { %10843 = vmatprep.subr.msk.bf16.mxu0 %vm561_vm0, %v9256_v0  ;;  %v563_v2 = vsel %vm561_vm0, %v9256_v0, 0  ;;  %10844 = vmatprep.subr.msk.bf16.mxu1 %vm561_vm0, %v260_v1  ;;  %v779_v3 = vsel %vm561_vm0, %v260_v1, 0  ;;  %v9312_v4 = vld [vmem:[%s16464_s1 + $0x4] sm:$0x3]  ;;  %v9332_v5 = vld [vmem:[%s16464_s1 + $0x6] sm:$0x3] }
  0x15   : > { %10160 = vmatpush3.bf16.msra.mxu0 %v563_v2  ;;  %10198 = vmatpush3.bf16.msra.mxu1 %v779_v3  ;;  %s219_s9 = scalar_select %p218_p10, %s11226_s22, 1  ;;  %vm506_vm1 = vcmask 31744   ;;  %vm16499_vm2 = vsmask.f32 7424  ;;  %v1496_v11 = vsel %vm561_vm0, %v9332_v5, 0  ;;  %v1057_v23 = vsel %vm561_vm0, %v9312_v4, 0 }
  0x16   : > { %10845 = vmatprep.subr.msk.bf16.mxu0 %vm561_vm0, %v9312_v4  ;;  %10846 = vmatprep.subr.msk.bf16.mxu1 %vm561_vm0, %v9332_v5  ;;  %v9370_v32 = vld [vmem:[%s16464_s1 + $0x8] sm:$0x3]  ;;  %vm16497_vm3 = vcmask 1046528   ;;  %vm16480_vm4 = vsmask.f32 6400  ;;  %vm16486_vm5 = vcmask 1045504  }
  0x17   : > { %s10852_s14 = smul.u32 168, %s219_s9  ;;  %v11371_v2 = vsel %vm561_vm0, %v9370_v32, 0  ;;  %vm16477_vm6 = vsmask.f32 5376  ;;  %vm16478_vm7 = vcmask 1044480   ;;  %vm16504_vm8 = vcmask 125952  }
  0x18   : > { %s215_s8 = sand.u32 1, %s11161_s19   ;;  %s9816_s11 = sshll.u32 %s11226_s22, 8 }
  0x19   : > { %s11276_s17 = scalar_lea.vmem %s16463_s0, %s10852_s14  ;;  %s16388_s9 = sshll.u32 %s215_s8, 4 }
  0x1a   : > { %v224_v6 = vld [vmem:[%s11276_s17] sm:$0xf]  ;;  %v11280_v7 = vld [vmem:[%s11276_s17 + $0x4] sm:$0xf]  ;;  %v11284_v9 = vld [vmem:[%s11276_s17 + $0x8] sm:$0xff]   ;;  %s217_s10 = scalar_lea.vmem [#allocation5], %s16388_s9  ;;  %s16415_s15 = scalar_lea.hbm %s16468_s5, %s9816_s11 }
  0x1b   : > { %v9257_v8 = vcombine.low %v224_v6, %v11280_v7  ;;  %v11287_v10 = vld [vmem:[%s11276_s17 + $0x10] sm:$0xff]   ;;  %v366_v14 = vshll.u32 %v11284_v9, 16  ;;  %v370_v15 = vshrl.u32 %v11284_v9, 16  ;;  %v11297_v17 = vld [vmem:[%s11276_s17 + $0x18] sm:$0xff]   ;;  %v11301_v19 = vld [vmem:[%s11276_s17 + $0x20] sm:$0xff]   ;;  %s9188_s12 = sshll.u32 %s217_s10, 4  ;;  %s16417_s12 = int_to_ptr.vmem [resolvable:$true] %s9188_s12 }
  0x1c   : > { %v374_v16 = vshll.u32 %v11287_v10, 16  ;;  %v378_v18 = vshrl.u32 %v11287_v10, 16  ;;  %v382_v24 = vshll.u32 %v11297_v17, 16  ;;  %v390_v27 = vshll.u32 %v11301_v19, 16  ;;  %v11309_v28 = vld [vmem:[%s11276_s17 + $0x28] sm:$0xff]   ;;  %v11322_v38 = vld [vmem:[%s11276_s17 + $0x30] sm:$0xff]  }
  0x1d   : > { %v359_v12 = vshrl.u32 %v9257_v8, 16  ;;  %v361_v13 = vshll.u32 %v9257_v8, 16  ;;  %10199 = vmatprep.mubr.msk.bf16.mxu1 %vm506_vm1, %v9257_v8  ;;  %v368_v21 = vrot.slane %v366_v14, 1  ;;  %v386_v31 = vshrl.u32 %v11297_v17, 16  ;;  %v11326_v40 = vld [vmem:[%s11276_s17 + $0x38] sm:$0xff]   ;;  %v11337_v46 = vld [vmem:[%s11276_s17 + $0x40] sm:$0xff]  }
  0x1e   : > { %10200 = vmatmul.mubr.msk.bf16.vlgmr.msra.gmra.mxu1 %vm506_vm1, %v11284_v9  ;;  %v376_v22 = vrot.slane %v374_v16, 1  ;;  %v384_v30 = vrot.slane %v382_v24, 1  ;;  %v394_v35 = vshrl.u32 %v11301_v19, 16  ;;  %v398_v36 = vshll.u32 %v11309_v28, 16  ;;  %v11341_v48 = vld [vmem:[%s11276_s17 + $0x48] sm:$0xff]   ;;  %v11346_v51 = vld [vmem:[%s11276_s17 + $0x50] sm:$0xff]  }
  0x1f   : > { %v363_v20 = vrot.slane %v361_v13, 1  ;;  %10203 = vmatprep.mubr.msk.bf16.mxu1 %vm506_vm1, %v11287_v10  ;;  %10274 = vmatpush3.bf16.msra.mxu1 %v1496_v11  ;;  %v372_v26 = vor.u32 %v370_v15, %v368_v21  ;;  %v392_v39 = vrot.slane %v390_v27, 1  ;;  %v402_v44 = vshrl.u32 %v11309_v28, 16  ;;  %v11350_v53 = vld [vmem:[%s11276_s17 + $0x58] sm:$0xff]   ;;  %v11353_v55 = vld [vmem:[%s11276_s17 + $0x60] sm:$0xff]   ;;  %v11361_v62 = vld [vmem:[%s11276_s17 + $0x68] sm:$0xff]  }
  0x20   : > { %v380_v29 = vor.u32 %v378_v18, %v376_v22  ;;  %v388_v41 = vor.u32 %v386_v31, %v384_v30  ;;  %v400_v43 = vrot.slane %v398_v36, 1  ;;  %v406_v45 = vshll.u32 %v11322_v38, 16  ;;  %v11368_v1 = vld [vmem:[%s11276_s17 + $0x70] sm:$0xff]   ;;  %v11396_v27 = vld [vmem:[%s11276_s17 + $0x80] sm:$0xff]   ;;  %s16423_s22 = scalar_lea.sflag [#allocation6], %s215_s8  ;;  %s11109_s16 = scalar_lea.vmem %s16417_s12, 256 }
  0x21   : > { %v364_v25 = vor.u32 %v363_v20, %v359_v12  ;;  %v377_v34 = vsel %vm16499_vm2, %v372_v26, %v376_v22  ;;  %v396_v42 = vor.u32 %v394_v35, %v392_v39  ;;  %v414_v47 = vshll.u32 %v11326_v40, 16  ;;  %v11381_v12 = vld [vmem:[%s11276_s17 + $0x78] sm:$0xff]   ;;  %v958_v22 = vld [vmem:[%s11276_s17] sm:$0xe]  ;;  %p11110_p11 = scmp.ne.s32.totalorder %s16417_s12, %s11109_s16 }
  0x22   : > { %v385_v37 = vsel %vm16499_vm2, %v380_v29, %v384_v30  ;;  %v393_v49 = vsel %vm16499_vm2, %v388_v41, %v392_v39  ;;  %v410_v50 = vshrl.u32 %v11322_v38, 16  ;;  %v408_v54 = vrot.slane %v406_v45, 1 }
  0x23   : > { %v369_v33 = vsel %vm16499_vm2, %v364_v25, %v368_v21  ;;  %v401_v52 = vsel %vm16499_vm2, %v396_v42, %v400_v43  ;;  %v404_v56 = vor.u32 %v402_v44, %v400_v43  ;;  %v416_v57 = vrot.slane %v414_v47, 1  ;;  %p11111_p12 = pnand %p11110_p11, %p11243_p5 }
  0x24   : > { %10161 = vmatprep.mubr.msk.bf16.mxu0 %vm506_vm1, %v369_v33  ;;  %v422_v58 = vshll.u32 %v11337_v46, 16  ;;  %v430_v59 = vshll.u32 %v11341_v48, 16  ;;  %v412_v60 = vor.u32 %v410_v50, %v408_v54  ;;  %v438_v61 = vshll.u32 %v11346_v51, 16 }
  0x25   : > { %10162 = vmatmul.mubr.msk.bf16.vlgmr.msra.gmra.mxu0 %vm506_vm1, %v377_v34  ;;  %v418_v63 = vshrl.u32 %v11326_v40, 16  ;;  %v446_v0 = vshll.u32 %v11350_v53, 16  ;;  %v426_v3 = vshrl.u32 %v11337_v46, 16  ;;  %v454_v4 = vshll.u32 %v11353_v55, 16  ;;  %v11407_v34 = vld [vmem:[%s11276_s17 + $0x88] sm:$0xff]   ;;  %p11112_p13 = pneg %p11111_p12 }
  0x26   : > { %10236 = vmatpush3.bf16.msra.mxu0 %v1057_v23  ;;  %10165 = vmatprep.mubr.msk.bf16.mxu0 %vm506_vm1, %v385_v37  ;;  %v409_v5 = vsel %vm16499_vm2, %v404_v56, %v408_v54  ;;  %v424_v6 = vrot.slane %v422_v58, 1  ;;  %v434_v8 = vshrl.u32 %v11341_v48, 16  ;;  %v442_v11 = vshrl.u32 %v11346_v51, 16  ;;  %v11441_v58 = vld [vmem:[%s11276_s17 + $0x90] ss:$0 sps:$4 sm:$0x11]  }
  0x27   : > { %10204 = vmatmul.mubr.msk.bf16.gmra.mxu1 %vm506_vm1, %v11297_v17  ;;  %10847 = vmatprep.subr.msk.bf16.mxu0 %vm561_vm0, %v9370_v32  ;;  %v417_v13 = vsel %vm16499_vm2, %v412_v60, %v416_v57  ;;  %v432_v14 = vrot.slane %v430_v59, 1  ;;  %v440_v15 = vrot.slane %v438_v61, 1  ;;  %v462_v16 = vshll.u32 %v11361_v62, 16 }
  0x28   : > { %10207 = vmatprep.mubr.msk.bf16.mxu1 %vm506_vm1, %v11301_v19  ;;  %v11385_v18 = vrot.slane %v446_v0, 1  ;;  %v450_v20 = vshrl.u32 %v11350_v53, 16  ;;  %v470_v21 = vshll.u32 %v11368_v1, 16  ;;  %v966_v23 = vrot.slane %v11284_v9, 1  ;;  %v11461_v0 = vld [vmem:[%s11276_s17 + $0xc] sm:$0xf] }
  0x29   : > { %v11391_v24 = vrot.slane %v454_v4, 1  ;;  %v458_v25 = vshrl.u32 %v11353_v55, 16  ;;  %v466_v26 = vshrl.u32 %v11361_v62, 16  ;;  %v9313_v29 = vcombine.low %v958_v22, %v11280_v7 }
  0x2a   : > { %v420_v30 = vor.u32 %v418_v63, %v416_v57  ;;  %v478_v31 = vshll.u32 %v11381_v12, 16  ;;  %v968_v32 = vrot.slane %v11287_v10, 1  ;;  %v11403_v9 = vrot.slane %v462_v16, 1  ;;  %v1272_v63 = vld [vmem:[%s11276_s17 + $0x8] sm:$0xe] }
  0x2b   : > { %v474_v33 = vshrl.u32 %v11368_v1, 16  ;;  %v965_v35 = vrot.slane %v9313_v29, 1  ;;  %v428_v7 = vor.u32 %v426_v3, %v424_v6  ;;  %v11411_v36 = vrot.slane %v470_v21, 1 }
  0x2c   : > { %v482_v37 = vshrl.u32 %v11381_v12, 16  ;;  %v11415_v39 = vsel %vm16497_vm3, %v966_v23, %v968_v32  ;;  %v970_v41 = vrot.slane %v11297_v17, 1  ;;  %v972_v42 = vrot.slane %v11301_v19, 1 }
  0x2d   : > { %10166 = vmatmul.mubr.msk.bf16.gmra.mxu0 %vm506_vm1, %v393_v49  ;;  %v11420_v10 = vsel %vm16497_vm3, %v965_v35, %v966_v23  ;;  %v425_v43 = vsel %vm16499_vm2, %v420_v30, %v424_v6  ;;  %v11425_v44 = vrot.slane %v478_v31, 1  ;;  %v486_v45 = vshll.u32 %v11396_v27, 16  ;;  %v11485_v23 = vld [vmem:[%s11276_s17 + $0x10] sm:$0xff]   ;;  %v11500_v35 = vld [vmem:[%s11276_s17 + $0x18] sm:$0xff]  }
  0x2e   : > { %10169 = vmatprep.mubr.msk.bf16.mxu0 %vm506_vm1, %v401_v52  ;;  %v11429_v47 = vsel %vm16497_vm3, %v968_v32, %v970_v41  ;;  %v11432_v49 = vsel %vm16497_vm3, %v970_v41, %v972_v42  ;;  %v974_v50 = vrot.slane %v11309_v28, 1  ;;  %v976_v52 = vrot.slane %v11322_v38, 1 }
  0x2f   : > { %10208 = vmatmul.mubr.msk.bf16.gmra.mxu1 %vm506_vm1, %v11309_v28  ;;  %v433_v17 = vsel %vm16499_vm2, %v428_v7, %v432_v14  ;;  %v978_v19 = vrot.slane %v11326_v40, 1  ;;  %v980_v54 = vrot.slane %v11337_v46, 1  ;;  %v436_v56 = vor.u32 %v434_v8, %v432_v14 }
  0x30   : > { %10211 = vmatprep.mubr.msk.bf16.mxu1 %vm506_vm1, %v11322_v38  ;;  %v494_v57 = vshll.u32 %v11407_v34, 16  ;;  %v11444_v59 = vsel %vm16497_vm3, %v972_v42, %v974_v50  ;;  %v11447_v28 = vsel %vm16497_vm3, %v974_v50, %v976_v52  ;;  %v984_v60 = vrot.slane %v11346_v51, 1  ;;  %v11504_v42 = vld [vmem:[%s11276_s17 + $0x20] sm:$0xff]  }
  0x31   : > { %v11451_v38 = vsel %vm16497_vm3, %v976_v52, %v978_v19  ;;  %v444_v61 = vor.u32 %v442_v11, %v440_v15  ;;  %v490_v3 = vshrl.u32 %v11396_v27, 16  ;;  %v986_v6 = vrot.slane %v11350_v53, 1 }
  0x32   : > { %v441_v8 = vsel %vm16499_vm2, %v436_v56, %v440_v15  ;;  %v452_v11 = vor.u32 %v450_v20, %v11385_v18  ;;  %v460_v14 = vor.u32 %v458_v25, %v11391_v24  ;;  %v496_v16 = vrot.slane %v494_v57, 1 }
  0x33   : > { %v502_v21 = vshll.u32 %v11441_v58, 16  ;;  %v11482_v22 = vsel %vm16497_vm3, %v984_v60, %v986_v6  ;;  %v488_v15 = vrot.slane %v486_v45, 1  ;;  %v990_v20 = vrot.slane %v11361_v62, 1  ;;  %v11514_v45 = vld [vmem:[%s11276_s17 + $0x28] sm:$0xff]  }
  0x34   : > { %v992_v29 = vrot.slane %v11368_v1, 1  ;;  %v449_v25 = vsel %vm16499_vm2, %v444_v61, %v11385_v18  ;;  %v468_v30 = vor.u32 %v466_v26, %v11403_v9  ;;  %v476_v31 = vor.u32 %v474_v33, %v11411_v36 }
  0x35   : > { %10170 = vmatmul.mubr.msk.bf16.gmra.mxu0 %vm506_vm1, %v409_v5  ;;  %v9333_v32 = vcombine.low %v1272_v63, %v11461_v0  ;;  %v484_v7 = vor.u32 %v482_v37, %v11425_v44  ;;  %v492_v41 = vor.u32 %v490_v3, %v488_v15  ;;  %v504_v33 = vrot.slane %v502_v21, 1  ;;  %v2158_v21 = vld [vmem:[%s11276_s17 + $0x8] sm:$0xc] }
  0x36   : > { %10173 = vmatprep.mubr.msk.bf16.mxu0 %vm506_vm1, %v417_v13  ;;  %v988_v13 = vrot.slane %v11353_v55, 1  ;;  %v11510_v18 = vsel %vm16497_vm3, %v990_v20, %v992_v29  ;;  %v994_v50 = vrot.slane %v11381_v12, 1  ;;  %v996_v52 = vrot.slane %v11396_v27, 1 }
  0x37   : > { %10212 = vmatmul.mubr.msk.bf16.gmra.mxu1 %vm506_vm1, %v11326_v40  ;;  %v11454_v40 = vsel %vm16497_vm3, %v978_v19, %v980_v54  ;;  %v457_v37 = vsel %vm16499_vm2, %v452_v11, %v11391_v24  ;;  %v1405_v19 = vrot.slane %v11485_v23, 1  ;;  %v1404_v56 = vrot.slane %v9333_v32, 1 }
  0x38   : > { %10215 = vmatprep.mubr.msk.bf16.mxu1 %vm506_vm1, %v11337_v46  ;;  %v982_v46 = vrot.slane %v11341_v48, 1  ;;  %v1407_v57 = vrot.slane %v11500_v35, 1  ;;  %v473_v24 = vsel %vm16499_vm2, %v468_v30, %v11411_v36  ;;  %v1000_v61 = vrot.slane %v11441_v58, 1 }
  0x39   : > { %v11547_v63 = vsel %vm16499_vm2, %v484_v7, %v488_v15  ;;  %v11550_v3 = vsel %vm16499_vm2, %v492_v41, %v496_v16  ;;  %v16469_v36 = vrot.slane %v11504_v42, 1  ;;  %v1722_v15 = vshll.u32 %v9333_v32, 16 }
  0x3a   : > { %v11467_v4 = vsel %vm16497_vm3, %v980_v54, %v982_v46  ;;  %v11470_v5 = vsel %vm16497_vm3, %v982_v46, %v984_v60  ;;  %v11525_v54 = vld [vmem:[%s11276_s17 + $0x30] sm:$0xff]   ;;  %v11531_v46 = vsel %vm16497_vm3, %v992_v29, %v994_v50  ;;  %v11534_v60 = vsel %vm16497_vm3, %v994_v50, %v996_v52 }
  0x3b   : > { %v1730_v29 = vshll.u32 %v11485_v23, 16  ;;  %v11585_v30 = vsel %vm16497_vm3, %v1407_v57, %v16469_v36  ;;  %v1739_v7 = vshll.u32 %v11500_v35, 16 }
  0x3d   : > { %10174 = vmatmul.mubr.msk.bf16.gmra.mxu0 %vm506_vm1, %v425_v43  ;;  %v11507_v43 = vsel %vm16497_vm3, %v988_v13, %v990_v20  ;;  %v1727_v20 = vshrl.u32 %v11485_v23, 16  ;;  %v1741_v50 = vrot.slane %v1739_v7, 2  ;;  %v2172_v7 = vrot.slane %v11514_v45, 2 }
  0x3e   : > { %10177 = vmatprep.mubr.msk.bf16.mxu0 %vm506_vm1, %v433_v17  ;;  %v465_v17 = vsel %vm16499_vm2, %v460_v14, %v11403_v9  ;;  %v11542_v9 = vsel %vm16499_vm2, %v476_v31, %v11425_v44  ;;  %v9390_v44 = vld [vmem:[%s16464_s1 + $0xa] sm:$0x3] }
  0x3f   : > { %10216 = vmatmul.mubr.msk.bf16.gmra.mxu1 %vm506_vm1, %v11341_v48  ;;  %v498_v48 = vshrl.u32 %v11407_v34, 16  ;;  %10848 = vmatprep.subr.msk.bf16.mxu1 %vm561_vm0, %v9390_v44  ;;  %v11575_v14 = vsel %vm561_vm0, %v9390_v44, 0  ;;  %v1729_v41 = vrot.slane %v1727_v20, 1 }
  0x40   : > { %10219 = vmatprep.mubr.msk.bf16.mxu1 %vm506_vm1, %v11346_v51  ;;  %v11488_v51 = vsel %vm16497_vm3, %v986_v6, %v988_v13  ;;  %v11572_v13 = vsel %vm16497_vm3, %v1405_v19, %v1407_v57  ;;  %v1745_v57 = vshrl.u32 %v11504_v42, 16 }
  0x41   : > { %v500_v26 = vor.u32 %v498_v48, %v496_v16  ;;  %v11569_v48 = vsel %vm16497_vm3, %v1404_v56, %v1405_v19  ;;  %v1719_v16 = vshrl.u32 %v9333_v32, 16  ;;  %v1724_v32 = vrot.slane %v1722_v15, 2 }
  0x43   : > { %v1721_v31 = vrot.slane %v1719_v16, 1 }
  0x45   : > { %10178 = vmatmul.mubr.msk.bf16.gmra.mxu0 %vm506_vm1, %v441_v8  ;;  %v1725_v19 = vor.u32 %v1724_v32, %v1721_v31  ;;  %v2170_v31 = vrot.slane %v11504_v42, 2  ;;  %v1763_v32 = vshrl.u32 %v11525_v54, 16 }
  0x46   : > { %10181 = vmatprep.mubr.msk.bf16.mxu0 %vm506_vm1, %v449_v25  ;;  %v1736_v25 = vshrl.u32 %v11500_v35, 16 }
  0x47   : > { %10220 = vmatmul.mubr.msk.bf16.gmra.mxu1 %vm506_vm1, %v11350_v53  ;;  %v998_v53 = vrot.slane %v11407_v34, 1 }
  0x48   : > { %10223 = vmatprep.mubr.msk.bf16.mxu1 %vm506_vm1, %v11353_v55  ;;  %v11553_v55 = vsel %vm16499_vm2, %v500_v26, %v504_v33  ;;  %v1732_v26 = vrot.slane %v1730_v29, 2  ;;  %v1738_v33 = vrot.slane %v1736_v25, 1 }
  0x49   : > { %v11562_v58 = vsel %vm16497_vm3, %v996_v52, %v998_v53  ;;  %v11565_v11 = vsel %vm16497_vm3, %v998_v53, %v1000_v61  ;;  %v9391_v52 = vcombine.low %v2158_v21, %v11461_v0  ;;  %v11598_v53 = vld [vmem:[%s11276_s17 + $0x38] sm:$0xff]   ;;  %v1754_v0 = vshrl.u32 %v11514_v45, 16 }
  0x4a   : > { %v1733_v56 = vor.u32 %v1732_v26, %v1729_v41  ;;  %v1742_v61 = vor.u32 %v1741_v50, %v1738_v33  ;;  %v1766_v26 = vshll.u32 %v11525_v54, 16  ;;  %v1772_v33 = vshrl.u32 %v11598_v53, 16 }
  0x4b   : > { %v2165_v44 = vrot.slane %v9391_v52, 2  ;;  %v1756_v29 = vrot.slane %v1754_v0, 1  ;;  %v1775_v50 = vshll.u32 %v11598_v53, 16  ;;  %v11625_v52 = vld [vmem:[%s11276_s17 + $0x40] sm:$0xff]  }
  0x4c   : > { %v11603_v16 = vsel %vm16480_vm4, %v1725_v19, %v1733_v56  ;;  %v11610_v21 = vsel %vm16480_vm4, %v1733_v56, %v1742_v61  ;;  %v1765_v56 = vrot.slane %v1763_v32, 1 }
  0x4d   : > { %10182 = vmatmul.mubr.msk.bf16.gmra.mxu0 %vm506_vm1, %v457_v37  ;;  %v2166_v37 = vrot.slane %v11485_v23, 2  ;;  %v1777_v0 = vrot.slane %v1775_v50, 2 }
  0x4e   : > { %10185 = vmatprep.mubr.msk.bf16.mxu0 %vm506_vm1, %v465_v17  ;;  %v2168_v17 = vrot.slane %v11500_v35, 2  ;;  %v1757_v35 = vshll.u32 %v11514_v45, 16 }
  0x4f   : > { %10224 = vmatmul.mubr.msk.bf16.gmra.mxu1 %vm506_vm1, %v11361_v62  ;;  %v1748_v62 = vshll.u32 %v11504_v42, 16  ;;  %v11613_v15 = vsel %vm16486_vm5, %v2165_v44, %v2166_v37 }
  0x50   : > { %10227 = vmatprep.mubr.msk.bf16.mxu1 %vm506_vm1, %v11368_v1  ;;  %v11606_v23 = vsel %vm16486_vm5, %v2166_v37, %v2168_v17  ;;  %v1747_v1 = vrot.slane %v1745_v57, 1  ;;  %v1759_v25 = vrot.slane %v1757_v35, 2  ;;  %v11628_v19 = vsel %vm16486_vm5, %v2168_v17, %v2170_v31  ;;  %v11636_v57 = vld [vmem:[%s11276_s17 + $0x48] sm:$0xff]   ;;  %v11644_v17 = vld [vmem:[%s11276_s17 + $0x50] sm:$0xff]  }
  0x51   : > { %v1750_v20 = vrot.slane %v1748_v62, 2  ;;  %v1774_v62 = vrot.slane %v1772_v33, 1  ;;  %v2174_v35 = vrot.slane %v11525_v54, 2  ;;  %v1790_v32 = vshrl.u32 %v11636_v57, 16 }
  0x52   : > { %v1760_v37 = vor.u32 %v1759_v25, %v1756_v29  ;;  %v11653_v29 = vld [vmem:[%s11276_s17 + $0x58] sm:$0xff]   ;;  %v1793_v33 = vshll.u32 %v11636_v57, 16  ;;  %v2180_v8 = vrot.slane %v11636_v57, 2 }
  0x53   : > { %v1751_v41 = vor.u32 %v1750_v20, %v1747_v1  ;;  %v1781_v20 = vshrl.u32 %v11625_v52, 16  ;;  %v1778_v25 = vor.u32 %v1777_v0, %v1774_v62  ;;  %v1792_v62 = vrot.slane %v1790_v32, 1  ;;  %v11681_v32 = vld [vmem:[%s11276_s17 + $0x60] sm:$0xff]  }
  0x54   : > { %v1795_v0 = vrot.slane %v1793_v33, 2 }
  0x55   : > { %10186 = vmatmul.mubr.msk.bf16.gmra.mxu0 %vm506_vm1, %v473_v24  ;;  %v11631_v24 = vsel %vm16486_vm5, %v2170_v31, %v2172_v7  ;;  %v11639_v44 = vsel %vm16480_vm4, %v1742_v61, %v1751_v41  ;;  %v11647_v1 = vsel %vm16480_vm4, %v1751_v41, %v1760_v37  ;;  %v1784_v31 = vshll.u32 %v11625_v52, 16 }
  0x56   : > { %10189 = vmatprep.mubr.msk.bf16.mxu0 %vm506_vm1, %v11542_v9  ;;  %v1768_v9 = vrot.slane %v1766_v26, 2  ;;  %v1783_v26 = vrot.slane %v1781_v20, 1  ;;  %v1796_v33 = vor.u32 %v1795_v0, %v1792_v62  ;;  %v2182_v0 = vrot.slane %v11644_v17, 2 }
  0x57   : > { %10228 = vmatmul.mubr.msk.bf16.gmra.mxu1 %vm506_vm1, %v11381_v12  ;;  %v2176_v12 = vrot.slane %v11598_v53, 2 }
  0x58   : > { %10231 = vmatprep.mubr.msk.bf16.mxu1 %vm506_vm1, %v11396_v27  ;;  %v1769_v61 = vor.u32 %v1768_v9, %v1765_v56  ;;  %v11658_v27 = vsel %vm16486_vm5, %v2172_v7, %v2174_v35  ;;  %v1786_v9 = vrot.slane %v1784_v31, 2  ;;  %v2178_v7 = vrot.slane %v11625_v52, 2 }
  0x59   : > { %v11661_v41 = vsel %vm16486_vm5, %v2174_v35, %v2176_v12  ;;  %v1799_v35 = vshrl.u32 %v11644_v17, 16  ;;  %v1811_v31 = vshll.u32 %v11653_v29, 16 }
  0x5a   : > { %16610 = vst [vmem:[#allocation8_spill] sm:$0xff] %v11661_v41  ;;  %v11665_v50 = vsel %vm16480_vm4, %v1760_v37, %v1769_v61  ;;  %v11668_v56 = vsel %vm16480_vm4, %v1769_v61, %v1778_v25  ;;  %v1787_v20 = vor.u32 %v1786_v9, %v1783_v26  ;;  %v1802_v37 = vshll.u32 %v11644_v17, 16  ;;  %v11692_v9 = vld [vmem:[%s11276_s17 + $0x68] sm:$0xff]  }
  0x5b   : > { %16611 = vst [vmem:[#allocation9_spill] sm:$0xff] %v11668_v56  ;;  %v1808_v61 = vshrl.u32 %v11653_v29, 16  ;;  %v11684_v36 = vsel %vm16486_vm5, %v2176_v12, %v2178_v7  ;;  %v1801_v26 = vrot.slane %v1799_v35, 1  ;;  %v1813_v41 = vrot.slane %v1811_v31, 2  ;;  %v11700_v12 = vld [vmem:[%s11276_s17 + $0x70] sm:$0xff]   ;;  %v11709_v35 = vld [vmem:[%s11276_s17 + $0x78] sm:$0xff]  }
  0x5c   : > { %16612 = vst [vmem:[#allocation10_spill] sm:$0xff] %v11684_v36  ;;  %v11695_v6 = vsel %vm16480_vm4, %v1778_v25, %v1787_v20  ;;  %v11703_v62 = vsel %vm16480_vm4, %v1787_v20, %v1796_v33  ;;  %v1826_v31 = vshrl.u32 %v11692_v9, 16 }
  0x5d   : > { %10190 = vmatmul.mubr.msk.bf16.gmra.mxu0 %vm506_vm1, %v11547_v63  ;;  %v11687_v63 = vsel %vm16486_vm5, %v2178_v7, %v2180_v8  ;;  %16614 = vst [vmem:[#allocation12_spill] sm:$0xff] %v11695_v6  ;;  %v1810_v56 = vrot.slane %v1808_v61, 1  ;;  %16615 = vst [vmem:[#allocation13_spill] sm:$0xff] %v11703_v62  ;;  %v1817_v7 = vshrl.u32 %v11681_v32, 16  ;;  %v1820_v61 = vshll.u32 %v11681_v32, 16 }
  0x5e   : > { %10193 = vmatprep.mubr.msk.bf16.mxu0 %vm506_vm1, %v11550_v3  ;;  %16613 = vst [vmem:[#allocation11_spill] sm:$0xff] %v11687_v63  ;;  %v1804_v3 = vrot.slane %v1802_v37, 2  ;;  %v1829_v63 = vshll.u32 %v11692_v9, 16 }
  0x5f   : > { %10232 = vmatmul.mubr.msk.bf16.gmra.mxu1 %vm506_vm1, %v11407_v34  ;;  %v2184_v34 = vrot.slane %v11653_v29, 2  ;;  %v1814_v37 = vor.u32 %v1813_v41, %v1810_v56  ;;  %v1819_v62 = vrot.slane %v1817_v7, 1  ;;  %v1822_v41 = vrot.slane %v1820_v61, 2 }
  0x60   : > { %10275 = vmatprep.mubr.msk.bf16.mxu1 %vm506_vm1, %v11569_v48  ;;  %v1805_v25 = vor.u32 %v1804_v3, %v1801_v26  ;;  %v11714_v48 = vsel %vm16486_vm5, %v2180_v8, %v2182_v0  ;;  %v1828_v56 = vrot.slane %v1826_v31, 1  ;;  %v1831_v3 = vrot.slane %v1829_v63, 2  ;;  %v11737_v63 = vld [vmem:[%s11276_s17 + $0x80] sm:$0xff]  }
  0x61   : > { %16616 = vst [vmem:[#allocation14_spill] sm:$0xff] %v11714_v48  ;;  %v11717_v20 = vsel %vm16486_vm5, %v2182_v0, %v2184_v34  ;;  %v2186_v8 = vrot.slane %v11681_v32, 2  ;;  %v2188_v48 = vrot.slane %v11692_v9, 2  ;;  %v1835_v0 = vshrl.u32 %v11700_v12, 16 }
  0x62   : > { %16617 = vst [vmem:[#allocation15_spill] sm:$0xff] %v11717_v20  ;;  %v11721_v6 = vsel %vm16480_vm4, %v1796_v33, %v1805_v25  ;;  %v11724_v26 = vsel %vm16480_vm4, %v1805_v25, %v1814_v37  ;;  %v1823_v7 = vor.u32 %v1822_v41, %v1819_v62  ;;  %v1838_v33 = vshll.u32 %v11700_v12, 16  ;;  %v11748_v62 = vld [vmem:[%s11276_s17 + $0x88] sm:$0xff]  }
  0x63   : > { %16618 = vst [vmem:[#allocation16_spill] sm:$0xff] %v11721_v6  ;;  %16619 = vst [vmem:[#allocation17_spill] sm:$0xff] %v11724_v26  ;;  %v1844_v20 = vshrl.u32 %v11709_v35, 16  ;;  %v1847_v25 = vshll.u32 %v11709_v35, 16  ;;  %v1832_v61 = vor.u32 %v1831_v3, %v1828_v56  ;;  %v11740_v31 = vsel %vm16486_vm5, %v2184_v34, %v2186_v8 }
  0x64   : > { %v11743_v26 = vsel %vm16486_vm5, %v2186_v8, %v2188_v48  ;;  %v11751_v41 = vsel %vm16480_vm4, %v1814_v37, %v1823_v7  ;;  %v1840_v6 = vrot.slane %v1838_v33, 2  ;;  %v2190_v56 = vrot.slane %v11700_v12, 2 }
  0x65   : > { %10194 = vmatmul.mubr.msk.bf16.gmra.mxu0 %vm506_vm1, %v11553_v55  ;;  %v1837_v55 = vrot.slane %v1835_v0, 1  ;;  %v1849_v36 = vrot.slane %v1847_v25, 2  ;;  %v11757_v34 = vsel %vm16480_vm4, %v1823_v7, %v1832_v61  ;;  %v1853_v3 = vshrl.u32 %v11737_v63, 16  ;;  %v11772_v25 = vld [vmem:[%s11276_s17 + $0x90] sm:$0xff]  }
  0x66   : > { %10237 = vmatprep.mubr.msk.bf16.mxu0 %vm506_vm1, %v11420_v10  ;;  %v1846_v10 = vrot.slane %v1844_v20, 1  ;;  %16620 = vst [vmem:[#allocation18_spill] sm:$0xff] %v11757_v34  ;;  %v1856_v20 = vshll.u32 %v11737_v63, 16  ;;  %v1862_v0 = vshrl.u32 %v11748_v62, 16  ;;  %v11765_v33 = vsel %vm16486_vm5, %v2188_v48, %v2190_v56 }
  0x67   : > { %10276 = vmatmul.mubr.msk.bf16.vlgmr.msra.gmra.mxu1 %vm506_vm1, %v11572_v13  ;;  %v2192_v13 = vrot.slane %v11709_v35, 2  ;;  %v1841_v37 = vor.u32 %v1840_v6, %v1837_v55  ;;  %v1865_v7 = vshll.u32 %v11748_v62, 16  ;;  %v16625_v48 = vrot.slane %v11504_v42, 1 }
  0x68   : > { %10279 = vmatprep.mubr.msk.bf16.mxu1 %vm506_vm1, %v11585_v30  ;;  %10350 = vmatpush3.bf16.msra.mxu1 %v11575_v14  ;;  %v1850_v8 = vor.u32 %v1849_v36, %v1846_v10  ;;  %v1855_v30 = vrot.slane %v1853_v3, 1  ;;  %v1858_v6 = vrot.slane %v1856_v20, 2  ;;  %v1864_v55 = vrot.slane %v1862_v0, 1  ;;  %v11788_v3 = vld [vmem:[%s16464_s1 + $0xc] sm:$0x3] }
  0x69   : > { %v11768_v14 = vsel %vm16486_vm5, %v2190_v56, %v2192_v13  ;;  %v11775_v34 = vsel %vm16480_vm4, %v1832_v61, %v1841_v37  ;;  %v16624_v10 = vrot.slane %v11514_v45, 1  ;;  %v2194_v61 = vrot.slane %v11737_v63, 2 }
  0x6a   : > { %16621 = vst [vmem:[#allocation19_spill] sm:$0xff] %v11768_v14  ;;  %16622 = vst [vmem:[#allocation20_spill] sm:$0xff] %v11775_v34  ;;  %v11778_v36 = vsel %vm16480_vm4, %v1841_v37, %v1850_v8  ;;  %v1867_v14 = vrot.slane %v1865_v7, 2  ;;  %v2196_v34 = vrot.slane %v11748_v62, 2  ;;  %v16626_v37 = vrot.slane %v11525_v54, 1 }
  0x6b   : > { %16623 = vst [vmem:[#allocation21_spill] sm:$0xff] %v11778_v36  ;;  %v1412_v56 = vsel %vm16497_vm3, %v16625_v48, %v16624_v10  ;;  %v16627_v20 = vmov %v16624_v10  ;;  %v1859_v0 = vor.u32 %v1858_v6, %v1855_v30  ;;  %v1871_v10 = vshrl.u32 %v11772_v25, 16 }
  0x6c   : > { %v1414_v42 = vsel %vm16497_vm3, %v16627_v20, %v16626_v37  ;;  %v1874_v48 = vshll.u32 %v11772_v25, 16  ;;  %v1868_v7 = vor.u32 %v1867_v14, %v1864_v55  ;;  %v11805_v36 = vsel %vm16486_vm5, %v2192_v13, %v2194_v61 }
  0x6d   : > { %10238 = vmatmul.mubr.msk.bf16.vlgmr.msra.gmra.mxu0 %vm506_vm1, %v11415_v39  ;;  %v11808_v39 = vsel %vm16486_vm5, %v2194_v61, %v2196_v34  ;;  %v11814_v45 = vsel %vm16480_vm4, %v1850_v8, %v1859_v0  ;;  %v1873_v30 = vrot.slane %v1871_v10, 1  ;;  %v1417_v14 = vrot.slane %v11625_v52, 1 }
  0x6e   : > { %10312 = vmatpush3.bf16.msra.mxu0 %v11371_v2  ;;  %10241 = vmatprep.mubr.msk.bf16.mxu0 %vm506_vm1, %v11429_v47  ;;  %v1876_v2 = vrot.slane %v1874_v48, 2  ;;  %v1415_v47 = vrot.slane %v11598_v53, 1  ;;  %v11819_v13 = vsel %vm16480_vm4, %v1859_v0, %v1868_v7  ;;  %v2198_v8 = vrot.slane %v11772_v25, 2  ;;  %v11975_v0 = vld [vmem:[%s11276_s17 + $0x18] sm:$0xff]  }
  0x6f   : > { %10280 = vmatmul.mubr.msk.bf16.gmra.mxu1 %vm506_vm1, %v1412_v56  ;;  %10849 = vmatprep.subr.msk.bf16.mxu0 %vm561_vm0, %v11788_v3  ;;  %v16628_v56 = vmov %v16626_v37  ;;  %v1419_v54 = vrot.slane %v11636_v57, 1  ;;  %v1421_v37 = vrot.slane %v11644_v17, 1  ;;  %v1423_v57 = vrot.slane %v11653_v29, 1 }
  0x70   : > { %10283 = vmatprep.mubr.msk.bf16.mxu1 %vm506_vm1, %v1414_v42  ;;  %v11822_v6 = vor.u32 %v1876_v2, %v1873_v30  ;;  %v1416_v61 = vsel %vm16497_vm3, %v16628_v56, %v1415_v47  ;;  %v1418_v53 = vsel %vm16497_vm3, %v1415_v47, %v1417_v14  ;;  %v11838_v52 = vsel %vm16486_vm5, %v2196_v34, %v2198_v8  ;;  %v11005_v42 = vld [vmem:[%s11276_s17 + $0x98] ss:$0 sps:$4 sm:$0x11]  }
  0x71   : > { %v1420_v34 = vsel %vm16497_vm3, %v1417_v14, %v1419_v54  ;;  %v1425_v17 = vrot.slane %v11681_v32, 1  ;;  %v1424_v20 = vsel %vm16497_vm3, %v1421_v37, %v1423_v57  ;;  %v1429_v29 = vrot.slane %v11700_v12, 1  ;;  %v16641_v10 = vld [vmem:[#allocation19_spill] sm:$0xff]  ;;  %v11007_v14 = vld [vmem:[%s11276_s17 + $0x98] ss:$0 sps:$4 sm:$0x33]  }
  0x72   : > { %v11826_v55 = vsel %vm16480_vm4, %v1868_v7, %v11822_v6  ;;  %v2927_v30 = vshrl.u32 %v11975_v0, 16  ;;  %v2930_v2 = vshll.u32 %v11975_v0, 16 }
  0x75   : > { %10242 = vmatmul.mubr.msk.bf16.gmra.mxu0 %vm506_vm1, %v11432_v49  ;;  %v9448_v49 = vld [vmem:[%s16464_s1 + $0xe] sm:$0x3] }
  0x76   : > { %10245 = vmatprep.mubr.msk.bf16.mxu0 %vm506_vm1, %v11444_v59  ;;  %10850 = vmatprep.subr.msk.bf16.mxu1 %vm561_vm0, %v9448_v49  ;;  %v1422_v59 = vsel %vm16497_vm3, %v1419_v54, %v1421_v37  ;;  %v16642_v54 = vld [vmem:[#allocation21_spill] sm:$0xff] }
  0x77   : > { %10284 = vmatmul.mubr.msk.bf16.gmra.mxu1 %vm506_vm1, %v1416_v61  ;;  %v11989_v61 = vld [vmem:[%s11276_s17 + $0x20] sm:$0xff]  }
  0x78   : > { %10287 = vmatprep.mubr.msk.bf16.mxu1 %vm506_vm1, %v1418_v53 }
  0x7d   : > { %10246 = vmatmul.mubr.msk.bf16.gmra.mxu0 %vm506_vm1, %v11447_v28  ;;  %v1426_v28 = vsel %vm16497_vm3, %v1423_v57, %v1425_v17 }
  0x7e   : > { %10249 = vmatprep.mubr.msk.bf16.mxu0 %vm506_vm1, %v11451_v38  ;;  %v1427_v38 = vrot.slane %v11692_v9, 1  ;;  %v1433_v9 = vrot.slane %v11737_v63, 1 }
  0x7f   : > { %10288 = vmatmul.mubr.msk.bf16.gmra.mxu1 %vm506_vm1, %v1420_v34  ;;  %v2932_v34 = vrot.slane %v2930_v2, 3 }
  0x80   : > { %10291 = vmatprep.mubr.msk.bf16.mxu1 %vm506_vm1, %v1422_v59  ;;  %v1428_v32 = vsel %vm16497_vm3, %v1425_v17, %v1427_v38  ;;  %v11994_v59 = vld [vmem:[%s11276_s17 + $0x28] sm:$0xff]   ;;  %v1880_v17 = vshrl.u32 %v11007_v14, 16 }
  0x85   : > { %10250 = vmatmul.mubr.msk.bf16.gmra.mxu0 %vm506_vm1, %v11454_v40  ;;  %v1430_v40 = vsel %vm16497_vm3, %v1427_v38, %v1429_v29 }
  0x86   : > { %10253 = vmatprep.mubr.msk.bf16.mxu0 %vm506_vm1, %v11467_v4  ;;  %v1431_v4 = vrot.slane %v11709_v35, 1  ;;  %v1437_v35 = vrot.slane %v11772_v25, 1 }
  0x87   : > { %10292 = vmatmul.mubr.msk.bf16.gmra.mxu1 %vm506_vm1, %v1424_v20  ;;  %v1883_v20 = vshll.u32 %v11007_v14, 16 }
  0x88   : > { %10295 = vmatprep.mubr.msk.bf16.mxu1 %vm506_vm1, %v1426_v28  ;;  %v1432_v12 = vsel %vm16497_vm3, %v1429_v29, %v1431_v4 }
  0x8d   : > { %10254 = vmatmul.mubr.msk.bf16.gmra.mxu0 %vm506_vm1, %v11470_v5  ;;  %v1434_v5 = vsel %vm16497_vm3, %v1431_v4, %v1433_v9  ;;  %v2939_v4 = vshll.u32 %v11989_v61, 16 }
  0x8e   : > { %10257 = vmatprep.mubr.msk.bf16.mxu0 %vm506_vm1, %v11482_v22  ;;  %v1435_v22 = vrot.slane %v11748_v62, 1 }
  0x8f   : > { %10296 = vmatmul.mubr.msk.bf16.gmra.mxu1 %vm506_vm1, %v1428_v32  ;;  %v2200_v32 = vrot.slane %v11007_v14, 2 }
  0x90   : > { %10299 = vmatprep.mubr.msk.bf16.mxu1 %vm506_vm1, %v1430_v40  ;;  %v1436_v63 = vsel %vm16497_vm3, %v1433_v9, %v1435_v22  ;;  %v2936_v40 = vshrl.u32 %v11989_v61, 16 }
  0x95   : > { %10258 = vmatmul.mubr.msk.bf16.gmra.mxu0 %vm506_vm1, %v11488_v51  ;;  %v1438_v51 = vsel %vm16497_vm3, %v1435_v22, %v1437_v35  ;;  %v2945_v22 = vshrl.u32 %v11994_v59, 16 }
  0x96   : > { %10261 = vmatprep.mubr.msk.bf16.mxu0 %vm506_vm1, %v11507_v43  ;;  %v1439_v43 = vrot.slane %v11005_v42, 1  ;;  %v1885_v42 = vrot.slane %v1883_v20, 2 }
  0x97   : > { %10300 = vmatmul.mubr.msk.bf16.gmra.mxu1 %vm506_vm1, %v1432_v12 }
  0x98   : > { %10303 = vmatprep.mubr.msk.bf16.mxu1 %vm506_vm1, %v1434_v5  ;;  %v1440_v62 = vsel %vm16497_vm3, %v1437_v35, %v1439_v43  ;;  %v2948_v35 = vshll.u32 %v11994_v59, 16 }
  0x9d   : > { %10262 = vmatmul.mubr.msk.bf16.gmra.mxu0 %vm506_vm1, %v11510_v18  ;;  %v3143_v18 = vsel %vm561_vm0, %v9448_v49, 0 }
  0x9e   : > { %10265 = vmatprep.mubr.msk.bf16.mxu0 %vm506_vm1, %v11531_v46  ;;  %v2696_v46 = vsel %vm561_vm0, %v11788_v3, 0  ;;  %v16639_v3 = vld [vmem:[#allocation18_spill] sm:$0xff] }
  0x9f   : > { %10304 = vmatmul.mubr.msk.bf16.gmra.mxu1 %vm506_vm1, %v1436_v63  ;;  %v1882_v63 = vrot.slane %v1880_v17, 1 }
  0xa0   : > { %10307 = vmatprep.mubr.msk.bf16.mxu1 %vm506_vm1, %v1438_v51 }
  0xa1   : > { %v1886_v25 = vor.u32 %v1885_v42, %v1882_v63 }
  0xa5   : > { %10266 = vmatmul.mubr.msk.bf16.gmra.mxu0 %vm506_vm1, %v11534_v60  ;;  %v11921_v60 = vld [vmem:[%s16464_s1 + $0x10] sm:$0x3] }
  0xa6   : > { %10269 = vmatprep.mubr.msk.bf16.mxu0 %vm506_vm1, %v11562_v58  ;;  %v16629_v58 = vld [vmem:[#allocation8_spill] sm:$0xff] }
  0xa7   : > { %10308 = vmatmul.mubr.msk.bf16.gmra.mxu1 %vm506_vm1, %v1440_v62  ;;  %v2201_v62 = vsel %vm16486_vm5, %v2198_v8, %v2200_v32  ;;  %v2607_v32 = vrot.slane %v11989_v61, 2 }
  0xa8   : > { %10351 = vmatprep.mubr.msk.bf16.mxu1 %vm506_vm1, %v11613_v15  ;;  %v16634_v15 = vld [vmem:[#allocation14_spill] sm:$0xff] }
  0xad   : > { %10270 = vmatmul.mubr.msk.bf16.gmra.mxu0 %vm506_vm1, %v11565_v11  ;;  %v16630_v11 = vld [vmem:[#allocation10_spill] sm:$0xff] }
  0xae   : > { %10313 = vmatprep.mubr.msk.bf16.mxu0 %vm506_vm1, %v11603_v16  ;;  %v16631_v16 = vld [vmem:[#allocation9_spill] sm:$0xff] }
  0xaf   : > { %10352 = vmatmul.mubr.msk.bf16.vlgmr.msra.gmra.mxu1 %vm506_vm1, %v11606_v23  ;;  %v16632_v23 = vld [vmem:[#allocation12_spill] sm:$0xff] }
  0xb0   : > { %10355 = vmatprep.mubr.msk.bf16.mxu1 %vm506_vm1, %v11628_v19  ;;  %10426 = vmatpush3.bf16.msra.mxu1 %v3143_v18  ;;  %v16635_v19 = vld [vmem:[#allocation13_spill] sm:$0xff]  ;;  %v2938_v18 = vrot.slane %v2936_v40, 2 }
  0xb5   : > { %10314 = vmatmul.mubr.msk.bf16.vlgmr.msra.gmra.mxu0 %vm506_vm1, %v11610_v21  ;;  %v16633_v21 = vld [vmem:[#allocation11_spill] sm:$0xff] }
  0xb6   : > { %10388 = vmatpush3.bf16.msra.mxu0 %v2696_v46  ;;  %10317 = vmatprep.mubr.msk.bf16.mxu0 %vm506_vm1, %v11639_v44  ;;  %v16637_v44 = vld [vmem:[#allocation15_spill] sm:$0xff]  ;;  %v2941_v46 = vrot.slane %v2939_v4, 3 }
  0xb7   : > { %10356 = vmatmul.mubr.msk.bf16.gmra.mxu1 %vm506_vm1, %v11631_v24  ;;  %10851 = vmatprep.subr.msk.bf16.mxu0 %vm561_vm0, %v11921_v60  ;;  %v16636_v24 = vld [vmem:[#allocation16_spill] sm:$0xff] }
  0xb8   : > { %10359 = vmatprep.mubr.msk.bf16.mxu1 %vm506_vm1, %v11658_v27  ;;  %v2472_v27 = vld [vmem:[%s11276_s17 + $0x10] sm:$0xc] }
  0xbd   : > { %10318 = vmatmul.mubr.msk.bf16.gmra.mxu0 %vm506_vm1, %v11647_v1  ;;  %v16638_v1 = vld [vmem:[#allocation17_spill] sm:$0xff] }
  0xbe   : > { %10321 = vmatprep.mubr.msk.bf16.mxu0 %vm506_vm1, %v11665_v50  ;;  %v11967_v50 = vld [vmem:[%s11276_s17 + $0x14] sm:$0xf] }
  0xbf   : > { %10360 = vmatmul.mubr.msk.bf16.gmra.mxu1 %vm506_vm1, %v16629_v58  ;;  %v12018_v58 = vld [vmem:[%s11276_s17 + $0x30] sm:$0xff]  }
  0xc0   : > { %10363 = vmatprep.mubr.msk.bf16.mxu1 %vm506_vm1, %v16630_v11 }
  0xc5   : > { %10322 = vmatmul.mubr.msk.bf16.gmra.mxu0 %vm506_vm1, %v16631_v16 }
  0xc6   : > { %10325 = vmatprep.mubr.msk.bf16.mxu0 %vm506_vm1, %v16632_v23 }
  0xc7   : > { %10364 = vmatmul.mubr.msk.bf16.gmra.mxu1 %vm506_vm1, %v16633_v21  ;;  %v2947_v21 = vrot.slane %v2945_v22, 2 }
  0xc8   : > { %10367 = vmatprep.mubr.msk.bf16.mxu1 %vm506_vm1, %v16634_v15  ;;  %v2950_v15 = vrot.slane %v2948_v35, 3 }
  0xcd   : > { %10326 = vmatmul.mubr.msk.bf16.gmra.mxu0 %vm506_vm1, %v16635_v19  ;;  %v12024_v19 = vld [vmem:[%s11276_s17 + $0x38] sm:$0xff]  }
  0xce   : > { %10329 = vmatprep.mubr.msk.bf16.mxu0 %vm506_vm1, %v16636_v24 }
  0xcf   : > { %10368 = vmatmul.mubr.msk.bf16.gmra.mxu1 %vm506_vm1, %v16637_v44 }
  0xd0   : > { %10371 = vmatprep.mubr.msk.bf16.mxu1 %vm506_vm1, %v11740_v31  ;;  %v11972_v31 = vcombine.low %v2472_v27, %v11967_v50 }
  0xd2   : > { %v2919_v48 = vshrl.u32 %v11972_v31, 16  ;;  %v2922_v7 = vshll.u32 %v11972_v31, 16 }
  0xd4   : > { %v2921_v37 = vrot.slane %v2919_v48, 2  ;;  %v2924_v49 = vrot.slane %v2922_v7, 3  ;;  %v2963_v48 = vshrl.u32 %v12024_v19, 16  ;;  %v2966_v7 = vshll.u32 %v12024_v19, 16 }
  0xd5   : > { %10330 = vmatmul.mubr.msk.bf16.gmra.mxu0 %vm506_vm1, %v16638_v1  ;;  %v2604_v1 = vrot.slane %v11972_v31, 2 }
  0xd6   : > { %10333 = vmatprep.mubr.msk.bf16.mxu0 %vm506_vm1, %v11751_v41  ;;  %v16640_v41 = vld [vmem:[#allocation20_spill] sm:$0xff]  ;;  %v2925_v12 = vor.u32 %v2924_v49, %v2921_v37  ;;  %v12049_v49 = vld [vmem:[%s11276_s17 + $0x40] sm:$0xff]   ;;  %v2965_v20 = vrot.slane %v2963_v48, 2 }
  0xd7   : > { %10372 = vmatmul.mubr.msk.bf16.gmra.mxu1 %vm506_vm1, %v11743_v26  ;;  %v2975_v22 = vshll.u32 %v12049_v49, 16 }
  0xd8   : > { %10375 = vmatprep.mubr.msk.bf16.mxu1 %vm506_vm1, %v11765_v33 }
  0xdd   : > { %10334 = vmatmul.mubr.msk.bf16.gmra.mxu0 %vm506_vm1, %v16639_v3  ;;  %v2942_v3 = vor.u32 %v2941_v46, %v2938_v18 }
  0xde   : > { %10337 = vmatprep.mubr.msk.bf16.mxu0 %vm506_vm1, %v16640_v41  ;;  %v10201_v26 = vpop.f32.mrf.mxu1  ;;  %v2954_v41 = vshrl.u32 %v12018_v58, 16 }
  0xdf   : > { %10376 = vmatmul.mubr.msk.bf16.gmra.mxu1 %vm506_vm1, %v16641_v10 }
  0xe0   : > { %v815_v33 = vpop.f32.mrf.mxu1  ;;  %10379 = vmatprep.mubr.msk.bf16.mxu1 %vm506_vm1, %v11805_v36  ;;  %v2929_v36 = vrot.slane %v2927_v30, 2  ;;  %v1887_v30 = vsel %vm16480_vm4, %v11822_v6, %v1886_v25  ;;  %v2968_v6 = vrot.slane %v2966_v7, 3  ;;  %v2613_v7 = vrot.slane %v12024_v19, 2 }
  0xe2   : > { %v10202_v47 = vpop.f32.mrf.mxu1  ;;  %v2933_v5 = vor.u32 %v2932_v34, %v2929_v36  ;;  %v2969_v42 = vor.u32 %v2968_v6, %v2965_v20 }
  0xe4   : > { %v818_v56 = vpop.f32.mrf.mxu1  ;;  %v2934_v23 = vsel %vm16477_vm6, %v2925_v12, %v2933_v5 }
  0xe5   : > { %v10163_v53 = vpop.f32.mrf.mxu0  ;;  %10338 = vmatmul.mubr.msk.bf16.gmra.mxu0 %vm506_vm1, %v16642_v54  ;;  %v2956_v54 = vrot.slane %v2954_v41, 2 }
  0xe6   : > { %v11996_v57 = vadd.f32 %v10201_v26, %v10163_v53  ;;  %10341 = vmatprep.mubr.msk.bf16.mxu0 %vm506_vm1, %v11814_v45  ;;  %v2957_v26 = vshll.u32 %v12018_v58, 16  ;;  %v2943_v53 = vsel %vm16477_vm6, %v2933_v5, %v2942_v3  ;;  %v2972_v5 = vshrl.u32 %v12049_v49, 16 }
  0xe7   : > { %v599_v28 = vpop.f32.mrf.mxu0  ;;  %v10205_v38 = vpop.f32.mrf.mxu1  ;;  %10380 = vmatmul.mubr.msk.bf16.gmra.mxu1 %vm506_vm1, %v11808_v39 }
  0xe8   : > { %v12002_v29 = vadd.f32 %v815_v33, %v599_v28  ;;  %10383 = vmatprep.mubr.msk.bf16.mxu1 %vm506_vm1, %v11838_v52  ;;  %v2951_v33 = vor.u32 %v2950_v15, %v2947_v21  ;;  %v2959_v37 = vrot.slane %v2957_v26, 3  ;;  %v12054_v28 = vld [vmem:[%s11276_s17 + $0x48] sm:$0xff]   ;;  %v2974_v25 = vrot.slane %v2972_v5, 2 }
  0xe9   : > { %v10164_v9 = vpop.f32.mrf.mxu0  ;;  %v831_v45 = vpop.f32.mrf.mxu1 }
  0xea   : > { %v12010_v39 = vadd.f32 %v10202_v47, %v10164_v9  ;;  %v2952_v17 = vsel %vm16477_vm6, %v2942_v3, %v2951_v33  ;;  %v2609_v9 = vrot.slane %v11994_v59, 2  ;;  %v2960_v12 = vor.u32 %v2959_v37, %v2956_v54 }
  0xeb   : > { %v602_v52 = vpop.f32.mrf.mxu0  ;;  %v10206_v51 = vpop.f32.mrf.mxu1 }
  0xec   : > { %v12012_v43 = vadd.f32 %v818_v56, %v602_v52  ;;  %v2981_v52 = vshrl.u32 %v12054_v28, 16  ;;  %v2961_v15 = vsel %vm16477_vm6, %v2951_v33, %v2960_v12  ;;  %v2970_v3 = vsel %vm16477_vm6, %v2960_v12, %v2969_v42 }
  0xed   : > { %v10167_v11 = vpop.f32.mrf.mxu0  ;;  %10342 = vmatmul.mubr.msk.bf16.gmra.mxu0 %vm506_vm1, %v11819_v13  ;;  %v834_v16 = vpop.f32.mrf.mxu1  ;;  %v2605_v13 = vrot.slane %v11975_v0, 2 }
  0xee   : > { %v12026_v24 = vadd.f32 %v10205_v38, %v10167_v11  ;;  %10345 = vmatprep.mubr.msk.bf16.mxu0 %vm506_vm1, %v11826_v55  ;;  %v3457_v11 = vsel %vm561_vm0, %v11921_v60, 0  ;;  %v2983_v41 = vrot.slane %v2981_v52, 2  ;;  %v12084_v60 = vld [vmem:[%s11276_s17 + $0x58] sm:$0xff]  }
  0xef   : > { %v615_v8 = vpop.f32.mrf.mxu0  ;;  %v10209_v44 = vpop.f32.mrf.mxu1  ;;  %10384 = vmatmul.mubr.msk.bf16.gmra.mxu1 %vm506_vm1, %v2201_v62  ;;  %v2606_v14 = vsel %vm16486_vm5, %v2604_v1, %v2605_v13  ;;  %v2608_v18 = vsel %vm16486_vm5, %v2605_v13, %v2607_v32 }
  0xf0   : > { %v12033_v27 = vadd.f32 %v831_v45, %v615_v8  ;;  %10427 = vmatprep.mubr.msk.bf16.mxu1 %vm506_vm1, %v2934_v23  ;;  %v2610_v23 = vsel %vm16486_vm5, %v2607_v32, %v2609_v9  ;;  %v2977_v8 = vrot.slane %v2975_v22, 3 }
  0xf1   : > { %v10168_v55 = vpop.f32.mrf.mxu0  ;;  %v847_v10 = vpop.f32.mrf.mxu1 }
  0xf2   : > { %v12040_v31 = vadd.f32 %v10206_v51, %v10168_v55  ;;  %v2984_v51 = vshll.u32 %v12054_v28, 16 }
  0xf3   : > { %v618_v2 = vpop.f32.mrf.mxu0  ;;  %v10210_v47 = vpop.f32.mrf.mxu1 }
  0xf4   : > { %v12045_v56 = vadd.f32 %v834_v16, %v618_v2  ;;  %v2986_v26 = vrot.slane %v2984_v51, 3  ;;  %v2978_v2 = vor.u32 %v2977_v8, %v2974_v25 }
  0xf5   : > { %v10171_v36 = vpop.f32.mrf.mxu0  ;;  %10346 = vmatmul.mubr.msk.bf16.gmra.mxu0 %vm506_vm1, %v1887_v30  ;;  %v850_v34 = vpop.f32.mrf.mxu1 }
  0xf6   : > { %v12056_v38 = vadd.f32 %v10209_v44, %v10171_v36  ;;  %10389 = vmatprep.mubr.msk.bf16.mxu0 %vm506_vm1, %v2606_v14  ;;  %v12079_v44 = vld [vmem:[%s11276_s17 + $0x50] sm:$0xff]   ;;  %v2987_v37 = vor.u32 %v2986_v26, %v2983_v41  ;;  %v2999_v36 = vshrl.u32 %v12084_v60, 16  ;;  %v2979_v12 = vsel %vm16477_vm6, %v2969_v42, %v2978_v2 }
  0xf7   : > { %v631_v40 = vpop.f32.mrf.mxu0  ;;  %v10213_v4 = vpop.f32.mrf.mxu1  ;;  %10428 = vmatmul.mubr.msk.bf16.vlgmr.msra.gmra.mxu1 %vm506_vm1, %v2943_v53  ;;  %v2993_v14 = vshll.u32 %v12079_v44, 16  ;;  %v2615_v42 = vrot.slane %v12049_v49, 2 }
  0xf8   : > { %v12062_v45 = vadd.f32 %v847_v10, %v631_v40  ;;  %10431 = vmatprep.mubr.msk.bf16.mxu1 %vm506_vm1, %v2952_v17  ;;  %v2611_v10 = vrot.slane %v12018_v58, 2  ;;  %v2988_v51 = vsel %vm16477_vm6, %v2978_v2, %v2987_v37 }
  0xf9   : > { %v10172_v35 = vpop.f32.mrf.mxu0  ;;  %v863_v63 = vpop.f32.mrf.mxu1  ;;  %v2995_v22 = vrot.slane %v2993_v14, 3  ;;  %v2616_v2 = vsel %vm16486_vm5, %v2613_v7, %v2615_v42 }
  0xfa   : > { %v12069_v62 = vadd.f32 %v10210_v47, %v10172_v35  ;;  %v2990_v47 = vshrl.u32 %v12079_v44, 16  ;;  %v2612_v20 = vsel %vm16486_vm5, %v2609_v9, %v2611_v10  ;;  %v2614_v40 = vsel %vm16486_vm5, %v2611_v10, %v2613_v7  ;;  %v12107_v35 = vld [vmem:[%s11276_s17 + $0x60] sm:$0xff]  }
  0xfb   : > { %v634_v46 = vpop.f32.mrf.mxu0  ;;  %v10214_v16 = vpop.f32.mrf.mxu1  ;;  %16643 = vst [vmem:[#allocation8_spill] sm:$0xff] %v12107_v35 }
  0xfc   : > { %v12075_v21 = vadd.f32 %v850_v34, %v634_v46  ;;  %v3002_v34 = vshll.u32 %v12084_v60, 16  ;;  %v2992_v5 = vrot.slane %v2990_v47, 2  ;;  %v12112_v46 = vld [vmem:[%s11276_s17 + $0x68] sm:$0xff]  }
  0xfd   : > { %v10175_v1 = vpop.f32.mrf.mxu0  ;;  %10390 = vmatmul.mubr.msk.bf16.vlgmr.msra.gmra.mxu0 %vm506_vm1, %v2608_v18  ;;  %v866_v13 = vpop.f32.mrf.mxu1  ;;  %v3001_v18 = vrot.slane %v2999_v36, 2  ;;  %16644 = vst [vmem:[#allocation10_spill] sm:$0xff] %v12112_v46  ;;  %v3017_v10 = vshrl.u32 %v12112_v46, 16 }
  0xfe   : > { %v12086_v55 = vadd.f32 %v10213_v4, %v10175_v1  ;;  %10464 = vmatpush3.bf16.msra.mxu0 %v3457_v11  ;;  %10393 = vmatprep.mubr.msk.bf16.mxu0 %vm506_vm1, %v2610_v23  ;;  %v3004_v9 = vrot.slane %v3002_v34, 3  ;;  %v2996_v8 = vor.u32 %v2995_v22, %v2992_v5  ;;  %v3008_v1 = vshrl.u32 %v12107_v35, 16  ;;  %v12140_v22 = vld [vmem:[%s11276_s17 + $0x78] sm:$0xff]  }
  0xff   : > { %v647_v33 = vpop.f32.mrf.mxu0  ;;  %v10217_v48 = vpop.f32.mrf.mxu1  ;;  %10432 = vmatmul.mubr.msk.bf16.gmra.mxu1 %vm506_vm1, %v2961_v15  ;;  %v2617_v15 = vrot.slane %v12054_v28, 2  ;;  %v3019_v5 = vrot.slane %v3017_v10, 2  ;;  %16646 = vst [vmem:[#allocation12_spill] sm:$0xff] %v12140_v22  ;;  %v3038_v10 = vshll.u32 %v12140_v22, 16 }
 0x100   : > { %v12092_v30 = vadd.f32 %v863_v63, %v647_v33  ;;  %10435 = vmatprep.mubr.msk.bf16.mxu1 %vm506_vm1, %v2970_v3  ;;  %v3005_v26 = vor.u32 %v3004_v9, %v3001_v18  ;;  %v3020_v33 = vshll.u32 %v12112_v46, 16  ;;  %v2997_v36 = vsel %vm16477_vm6, %v2987_v37, %v2996_v8 }
 0x101   : > { %v10176_v53 = vpop.f32.mrf.mxu0  ;;  %v879_v54 = vpop.f32.mrf.mxu1  ;;  %v3010_v34 = vrot.slane %v3008_v1, 2  ;;  %v2619_v37 = vrot.slane %v12079_v44, 2  ;;  %v2621_v18 = vrot.slane %v12084_v60, 2 }
 0x102   : > { %v12099_v17 = vadd.f32 %v10214_v16, %v10176_v53  ;;  %v2618_v53 = vsel %vm16486_vm5, %v2615_v42, %v2617_v15  ;;  %v3022_v7 = vrot.slane %v3020_v33, 3 }
 0x103   : > { %v650_v6 = vpop.f32.mrf.mxu0  ;;  %v10218_v32 = vpop.f32.mrf.mxu1 }
 0x104   : > { %v12103_v4 = vadd.f32 %v866_v13, %v650_v6  ;;  %v3011_v13 = vshll.u32 %v12107_v35, 16  ;;  %v12135_v6 = vld [vmem:[%s11276_s17 + $0x70] sm:$0xff]  }
 0x105   : > { %v10179_v63 = vpop.f32.mrf.mxu0  ;;  %10394 = vmatmul.mubr.msk.bf16.gmra.mxu0 %vm506_vm1, %v2612_v20  ;;  %v882_v52 = vpop.f32.mrf.mxu1  ;;  %16645 = vst [vmem:[#allocation9_spill] sm:$0xff] %v12135_v6 }
 0x106   : > { %v12114_v11 = vadd.f32 %v10217_v48, %v10179_v63  ;;  %10397 = vmatprep.mubr.msk.bf16.mxu0 %vm506_vm1, %v2614_v40  ;;  %v3013_v20 = vrot.slane %v3011_v13, 3  ;;  %v3023_v13 = vor.u32 %v3022_v7, %v3019_v5 }
 0x107   : > { %v663_v16 = vpop.f32.mrf.mxu0  ;;  %v10221_v23 = vpop.f32.mrf.mxu1  ;;  %10436 = vmatmul.mubr.msk.bf16.gmra.mxu1 %vm506_vm1, %v2979_v12  ;;  %v3006_v12 = vsel %vm16477_vm6, %v2996_v8, %v3005_v26 }
 0x108   : > { %v12120_v25 = vadd.f32 %v879_v54, %v663_v16  ;;  %10439 = vmatprep.mubr.msk.bf16.mxu1 %vm506_vm1, %v2988_v51  ;;  %v3014_v42 = vor.u32 %v3013_v20, %v3010_v34  ;;  %v3026_v16 = vshrl.u32 %v12135_v6, 16 }
 0x109   : > { %v10180_v3 = vpop.f32.mrf.mxu0  ;;  %v895_v41 = vpop.f32.mrf.mxu1 }
 0x10a   : > { %v12127_v48 = vadd.f32 %v10218_v32, %v10180_v3  ;;  %v3035_v3 = vshrl.u32 %v12140_v22, 16  ;;  %v3015_v34 = vsel %vm16477_vm6, %v3005_v26, %v3014_v42  ;;  %v3028_v20 = vrot.slane %v3026_v16, 2 }
 0x10b   : > { %v666_v47 = vpop.f32.mrf.mxu0  ;;  %v10222_v14 = vpop.f32.mrf.mxu1  ;;  %v3024_v7 = vsel %vm16477_vm6, %v3014_v42, %v3023_v13  ;;  %v2623_v26 = vrot.slane %v12107_v35, 2  ;;  %v2625_v16 = vrot.slane %v12112_v46, 2 }
 0x10c   : > { %v12131_v54 = vadd.f32 %v882_v52, %v666_v47 }
 0x10d   : > { %v10183_v40 = vpop.f32.mrf.mxu0  ;;  %10398 = vmatmul.mubr.msk.bf16.gmra.mxu0 %vm506_vm1, %v2616_v2  ;;  %v898_v32 = vpop.f32.mrf.mxu1 }
 0x10e   : > { %v12142_v63 = vadd.f32 %v10221_v23, %v10183_v40  ;;  %10401 = vmatprep.mubr.msk.bf16.mxu0 %vm506_vm1, %v2618_v53  ;;  %v3029_v23 = vshll.u32 %v12135_v6, 16  ;;  %v2622_v53 = vsel %vm16486_vm5, %v2619_v37, %v2621_v18 }
 0x10f   : > { %v679_v52 = vpop.f32.mrf.mxu0  ;;  %v10225_v51 = vpop.f32.mrf.mxu1  ;;  %10440 = vmatmul.mubr.msk.bf16.gmra.mxu1 %vm506_vm1, %v2997_v36 }
 0x110   : > { %v12148_v9 = vadd.f32 %v895_v41, %v679_v52  ;;  %10443 = vmatprep.mubr.msk.bf16.mxu1 %vm506_vm1, %v3006_v12  ;;  %v2620_v41 = vsel %vm16486_vm5, %v2617_v15, %v2619_v37  ;;  %v3031_v40 = vrot.slane %v3029_v23, 3  ;;  %v12163_v12 = vld [vmem:[%s11276_s17 + $0x80] sm:$0xff]   ;;  %v3037_v52 = vrot.slane %v3035_v3, 2 }
 0x111   : > { %v10184_v8 = vpop.f32.mrf.mxu0  ;;  %v911_v1 = vpop.f32.mrf.mxu1  ;;  %v3040_v15 = vrot.slane %v3038_v10, 3  ;;  %v3044_v3 = vshrl.u32 %v12163_v12, 16 }
 0x112   : > { %v12155_v33 = vadd.f32 %v10222_v14, %v10184_v8  ;;  %v12168_v8 = vld [vmem:[%s11276_s17 + $0x88] sm:$0xff]   ;;  %v3032_v42 = vor.u32 %v3031_v40, %v3028_v20  ;;  %v2626_v20 = vsel %vm16486_vm5, %v2623_v26, %v2625_v16 }
 0x113   : > { %v682_v2 = vpop.f32.mrf.mxu0  ;;  %v10226_v47 = vpop.f32.mrf.mxu1  ;;  %v3046_v46 = vrot.slane %v3044_v3, 2  ;;  %v2629_v3 = vrot.slane %v12140_v22, 2 }
 0x114   : > { %16647 = vst [vmem:[#allocation11_spill] sm:$0xff] %v12155_v33  ;;  %v12159_v36 = vadd.f32 %v898_v32, %v682_v2  ;;  %v3041_v2 = vor.u32 %v3040_v15, %v3037_v52  ;;  %v12191_v52 = vld [vmem:[%s11276_s17 + $0x90] sm:$0xff]  }
 0x115   : > { %v10187_v5 = vpop.f32.mrf.mxu0  ;;  %10402 = vmatmul.mubr.msk.bf16.gmra.mxu0 %vm506_vm1, %v2620_v41  ;;  %v914_v14 = vpop.f32.mrf.mxu1  ;;  %16652 = vst [vmem:[#allocation17_spill] sm:$0xff] %v12191_v52 }
 0x116   : > { %16648 = vst [vmem:[#allocation14_spill] sm:$0xff] %v12159_v36  ;;  %v12170_v33 = vadd.f32 %v10225_v51, %v10187_v5  ;;  %10405 = vmatprep.mubr.msk.bf16.mxu0 %vm506_vm1, %v2622_v53  ;;  %v3047_v51 = vshll.u32 %v12163_v12, 16  ;;  %v3053_v53 = vshrl.u32 %v12168_v8, 16  ;;  %v3056_v5 = vshll.u32 %v12168_v8, 16 }
 0x117   : > { %v695_v32 = vpop.f32.mrf.mxu0  ;;  %v10229_v37 = vpop.f32.mrf.mxu1  ;;  %10444 = vmatmul.mubr.msk.bf16.gmra.mxu1 %vm506_vm1, %v3015_v34 }
 0x118   : > { %16649 = vst [vmem:[#allocation13_spill] sm:$0xff] %v12170_v33  ;;  %v12176_v23 = vadd.f32 %v911_v1, %v695_v32  ;;  %10447 = vmatprep.mubr.msk.bf16.mxu1 %vm506_vm1, %v3024_v7  ;;  %v2624_v1 = vsel %vm16486_vm5, %v2621_v18, %v2623_v26  ;;  %v3049_v35 = vrot.slane %v3047_v51, 3  ;;  %v3058_v18 = vrot.slane %v3056_v5, 3  ;;  %v12196_v33 = vld [vmem:[%s11276_s17 + $0x98] sm:$0xff]  }
 0x119   : > { %v10188_v10 = vpop.f32.mrf.mxu0  ;;  %v927_v41 = vpop.f32.mrf.mxu1  ;;  %16653 = vst [vmem:[#allocation18_spill] sm:$0xff] %v12196_v33 }
 0x11a   : > { %16650 = vst [vmem:[#allocation16_spill] sm:$0xff] %v12176_v23  ;;  %v12183_v34 = vadd.f32 %v10226_v47, %v10188_v10  ;;  %v3033_v23 = vsel %vm16477_vm6, %v3023_v13, %v3032_v42  ;;  %v3042_v10 = vsel %vm16477_vm6, %v3032_v42, %v3041_v2  ;;  %v2627_v13 = vrot.slane %v12135_v6, 2 }
 0x11b   : > { %v698_v32 = vpop.f32.mrf.mxu0  ;;  %v10230_v7 = vpop.f32.mrf.mxu1  ;;  %v3050_v42 = vor.u32 %v3049_v35, %v3046_v46 }
 0x11c   : > { %16651 = vst [vmem:[#allocation15_spill] sm:$0xff] %v12183_v34  ;;  %v12187_v40 = vadd.f32 %v914_v14, %v698_v32  ;;  %v3055_v34 = vrot.slane %v3053_v53, 2  ;;  %v3062_v53 = vshrl.u32 %v12191_v52, 16  ;;  %v2630_v35 = vsel %vm16486_vm5, %v2627_v13, %v2629_v3 }
 0x11d   : > { %v10191_v15 = vpop.f32.mrf.mxu0  ;;  %10406 = vmatmul.mubr.msk.bf16.gmra.mxu0 %vm506_vm1, %v2624_v1  ;;  %v930_v47 = vpop.f32.mrf.mxu1 }
 0x11e   : > { %v12198_v36 = vadd.f32 %v10229_v37, %v10191_v15  ;;  %10409 = vmatprep.mubr.msk.bf16.mxu0 %vm506_vm1, %v2626_v20  ;;  %v3065_v37 = vshll.u32 %v12191_v52, 16  ;;  %v3059_v32 = vor.u32 %v3058_v18, %v3055_v34  ;;  %v3071_v20 = vshrl.u32 %v12196_v33, 16 }
 0x11f   : > { %v711_v14 = vpop.f32.mrf.mxu0  ;;  %v10233_v26 = vpop.f32.mrf.mxu1  ;;  %10448 = vmatmul.mubr.msk.bf16.gmra.mxu1 %vm506_vm1, %v3033_v23  ;;  %v3074_v15 = vshll.u32 %v12196_v33, 16  ;;  %v3064_v22 = vrot.slane %v3062_v53, 2  ;;  %v2633_v53 = vrot.slane %v12168_v8, 2 }
 0x120   : > { %16654 = vst [vmem:[#allocation20_spill] sm:$0xff] %v12198_v36  ;;  %v12204_v51 = vadd.f32 %v927_v41, %v711_v14  ;;  %10451 = vmatprep.mubr.msk.bf16.mxu1 %vm506_vm1, %v3042_v10  ;;  %v2628_v41 = vsel %vm16486_vm5, %v2625_v16, %v2627_v13  ;;  %v3051_v10 = vsel %vm16477_vm6, %v3041_v2, %v3050_v42  ;;  %v3067_v6 = vrot.slane %v3065_v37, 3  ;;  %v12219_v36 = vld [vmem:[%s11276_s17 + $0xa0] ss:$0 sps:$4 sm:$0x77]  }
 0x121   : > { %v10192_v5 = vpop.f32.mrf.mxu0  ;;  %v943_v1 = vpop.f32.mrf.mxu1  ;;  %16657 = vst [vmem:[#allocation22_spill] sm:$0xff] %v12219_v36  ;;  %v3073_v16 = vrot.slane %v3071_v20, 2 }
 0x122   : > { %16655 = vst [vmem:[#allocation19_spill] sm:$0xff] %v12204_v51  ;;  %v12211_v23 = vadd.f32 %v10230_v7, %v10192_v5  ;;  %v3060_v7 = vsel %vm16477_vm6, %v3050_v42, %v3059_v32  ;;  %v3076_v5 = vrot.slane %v3074_v15, 3  ;;  %v3080_v42 = vshrl.u32 %v12219_v36, 16 }
 0x123   : > { %v714_v14 = vpop.f32.mrf.mxu0  ;;  %v10234_v51 = vpop.f32.mrf.mxu1 }
 0x124   : > { %16656 = vst [vmem:[#allocation21_spill] sm:$0xff] %v12211_v23  ;;  %v12215_v46 = vadd.f32 %v930_v47, %v714_v14  ;;  %v2631_v47 = vrot.slane %v12163_v12, 2  ;;  %v3077_v14 = vor.u32 %v3076_v5, %v3073_v16 }
 0x125   : > { %v10195_v34 = vpop.f32.mrf.mxu0  ;;  %10410 = vmatmul.mubr.msk.bf16.gmra.mxu0 %vm506_vm1, %v2628_v41  ;;  %v12222_v18 = vpop.f32.mrf.mxu1  ;;  %v3068_v41 = vor.u32 %v3067_v6, %v3064_v22 }
 0x126   : > { %16658 = vst [vmem:[#allocation23_spill] sm:$0xff] %v12222_v18  ;;  %v12225_v23 = vadd.f32 %v10233_v26, %v10195_v34  ;;  %10413 = vmatprep.mubr.msk.bf16.mxu0 %vm506_vm1, %v2630_v35  ;;  %v3083_v26 = vshll.u32 %v12219_v36, 16  ;;  %v2632_v34 = vsel %vm16486_vm5, %v2629_v3, %v2631_v47  ;;  %v2635_v3 = vrot.slane %v12191_v52, 2 }
 0x127   : > { %v727_v2 = vpop.f32.mrf.mxu0  ;;  %v10277_v13 = vpop.f32.mrf.mxu1  ;;  %10452 = vmatmul.mubr.msk.bf16.gmra.mxu1 %vm506_vm1, %v3051_v10 }
 0x128   : > { %v12231_v37 = vadd.f32 %v943_v1, %v727_v2  ;;  %10455 = vmatprep.mubr.msk.bf16.mxu1 %vm506_vm1, %v3060_v7  ;;  %v2634_v1 = vsel %vm16486_vm5, %v2631_v47, %v2633_v53  ;;  %v3069_v2 = vsel %vm16477_vm6, %v3059_v32, %v3068_v41  ;;  %v3082_v7 = vrot.slane %v3080_v42, 2 }
 0x129   : > { %v10196_v20 = vpop.f32.mrf.mxu0  ;;  %v1532_v15 = vpop.f32.mrf.mxu1  ;;  %v3085_v6 = vrot.slane %v3083_v26, 3  ;;  %v2637_v32 = vrot.slane %v12196_v33, 2 }
 0x12a   : > { %v12236_v35 = vadd.f32 %v10234_v51, %v10196_v20  ;;  %v3078_v51 = vsel %vm16477_vm6, %v3068_v41, %v3077_v14  ;;  %v3358_v20 = vld [vmem:[%s11276_s17 + $0x10] sm:$0x8] }
 0x12b   : > { %v12239_v18 = vpop.f32.mrf.mxu0  ;;  %v10278_v10 = vpop.f32.mrf.mxu1  ;;  %v3086_v41 = vor.u32 %v3085_v6, %v3082_v7  ;;  %v2638_v33 = vsel %vm16486_vm5, %v2635_v3, %v2637_v32 }
 0x12c   : > { %16659 = vst [vmem:[#allocation24_spill] sm:$0xff] %v12239_v18  ;;  %v11026_v18 = vld [vmem:[%s11276_s17 + $0xa0] ss:$0 sps:$4 sm:$0x33]   ;;  %s11172_s17 = smov [#allocation5]  }
 0x12d   : > { %v10239_v22 = vpop.f32.mrf.mxu0  ;;  %10414 = vmatmul.mubr.msk.bf16.gmra.mxu0 %vm506_vm1, %v2632_v34  ;;  %v12244_v36 = vpop.f32.mrf.mxu1  ;;  %v3087_v6 = vsel %vm16477_vm6, %v3077_v14, %v3086_v41  ;;  %s11113_s23 = sshll.u32 %s11172_s17, 4  ;;  %s11114_s23 = int_to_ptr.vmem [resolvable:$false] %s11113_s23 }
 0x12e   : > { %16660 = vst [vmem:[#allocation25_spill] sm:$0xff] %v12244_v36  ;;  %v1238_v16 = vadd.f32 %v10239_v22, %v11996_v57  ;;  %10417 = vmatprep.mubr.msk.bf16.mxu0 %vm506_vm1, %v2634_v1  ;;  %v2636_v36 = vsel %vm16486_vm5, %v2633_v53, %v2635_v3  ;;  %s11115_s25 = scalar_lea.vmem %s11114_s23, 512  ;;  %p11116_p0 = scmp.lt.s32.totalorder %s16417_s12, %s11114_s23 }
 0x12f   : > { %v1093_v5 = vpop.f32.mrf.mxu0  ;;  %v10281_v47 = vpop.f32.mrf.mxu1  ;;  %10456 = vmatmul.mubr.msk.bf16.gmra.mxu1 %vm506_vm1, %v3069_v2  ;;  %p11117_p1 = scmp.lt.s32.totalorder %s11115_s25, %s11109_s16 }
 0x130   : > { %v1236_v42 = vadd.f32 %v1093_v5, %v12002_v29  ;;  %v12253_v26 = vadd.f32 %v10277_v13, %v1238_v16  ;;  %10459 = vmatprep.mubr.msk.bf16.mxu1 %vm506_vm1, %v3078_v51  ;;  %v9469_v29 = vcombine.low %v3358_v20, %v11967_v50 }
 0x131   : > { %v10240_v57 = vpop.f32.mrf.mxu0  ;;  %v1548_v34 = vpop.f32.mrf.mxu1  ;;  %p11118_p2 = por %p11117_p1, %p11116_p0 }
 0x132   : > { %v1239_v1 = vadd.f32 %v10240_v57, %v12010_v39  ;;  %v12258_v22 = vadd.f32 %v1532_v15, %v1236_v42  ;;  %v2639_v15 = vrot.slane %v11026_v18, 2  ;;  %v3365_v50 = vrot.slane %v9469_v29, 3 }
 0x133   : > { %v1096_v2 = vpop.f32.mrf.mxu0  ;;  %v10282_v52 = vpop.f32.mrf.mxu1  ;;  %p11119_p3 = pnand %p11118_p2, %p11112_p13 }
 0x134   : > { %v12265_v13 = vadd.f32 %v1096_v2, %v12012_v43  ;;  %v12267_v7 = vadd.f32 %v10278_v10, %v1239_v1  ;;  %v3366_v43 = vrot.slane %v11975_v0, 3  ;;  %v3370_v2 = vrot.slane %v11994_v59, 3 }
 0x135   : > { %v10243_v51 = vpop.f32.mrf.mxu0  ;;  %10418 = vmatmul.mubr.msk.bf16.gmra.mxu0 %vm506_vm1, %v2636_v36  ;;  %v12271_v39 = vpop.f32.mrf.mxu1 }
 0x136   : > { %v1242_v53 = vadd.f32 %v10243_v51, %v12026_v24  ;;  %10421 = vmatprep.mubr.msk.bf16.mxu0 %vm506_vm1, %v2638_v33  ;;  %v2640_v33 = vsel %vm16486_vm5, %v2637_v32, %v2639_v15  ;;  %v3367_v20 = vsel %vm16478_vm7, %v3365_v50, %v3366_v43  ;;  %v3368_v32 = vrot.slane %v11989_v61, 3 }
 0x137   : > { %v1109_v16 = vpop.f32.mrf.mxu0  ;;  %v10285_v3 = vpop.f32.mrf.mxu1  ;;  %10460 = vmatmul.mubr.msk.bf16.gmra.mxu1 %vm506_vm1, %v3087_v6 }
 0x138   : > { %v1240_v10 = vadd.f32 %v1109_v16, %v12033_v27  ;;  %v12278_v14 = vadd.f32 %v10281_v47, %v1242_v53  ;;  %v3371_v61 = vsel %vm16478_vm7, %v3368_v32, %v3370_v2 }
 0x139   : > { %v10244_v36 = vpop.f32.mrf.mxu0  ;;  %v1564_v5 = vpop.f32.mrf.mxu1 }
 0x13a   : > { %v1243_v42 = vadd.f32 %v10244_v36, %v12040_v31  ;;  %v12281_v24 = vadd.f32 %v1548_v34, %v1240_v10 }
 0x13b   : > { %v1112_v18 = vpop.f32.mrf.mxu0  ;;  %v10286_v41 = vpop.f32.mrf.mxu1 }
 0x13c   : > { %v12286_v57 = vadd.f32 %v1112_v18, %v12045_v56  ;;  %v12288_v0 = vadd.f32 %v10282_v52, %v1243_v42 }
 0x13d   : > { %v10247_v27 = vpop.f32.mrf.mxu0  ;;  %10422 = vmatmul.mubr.msk.bf16.gmra.mxu0 %vm506_vm1, %v2640_v33  ;;  %v12291_v47 = vpop.f32.mrf.mxu1 }
 0x13e   : > { %v1246_v31 = vadd.f32 %v10247_v27, %v12056_v38  ;;  %10465 = vmatprep.mubr.msk.bf16.mxu0 %vm506_vm1, %v3367_v20  ;;  %v3369_v38 = vsel %vm16478_vm7, %v3366_v43, %v3368_v32  ;;  %v3372_v43 = vrot.slane %v12018_v58, 3 }
 0x13f   : > { %v1125_v34 = vpop.f32.mrf.mxu0  ;;  %v10289_v1 = vpop.f32.mrf.mxu1 }
 0x140   : > { %v1244_v56 = vadd.f32 %v1125_v34, %v12062_v45  ;;  %v12298_v29 = vadd.f32 %v10285_v3, %v1246_v31 }
 0x141   : > { %v10248_v52 = vpop.f32.mrf.mxu0  ;;  %v1580_v6 = vpop.f32.mrf.mxu1 }
 0x142   : > { %v1247_v51 = vadd.f32 %v10248_v52, %v12069_v62  ;;  %v12301_v53 = vadd.f32 %v1564_v5, %v1244_v56  ;;  %v3374_v5 = vrot.slane %v12024_v19, 3  ;;  %v3378_v52 = vrot.slane %v12054_v28, 3 }
 0x143   : > { %v1128_v15 = vpop.f32.mrf.mxu0  ;;  %v10290_v16 = vpop.f32.mrf.mxu1 }
 0x144   : > { %v12306_v50 = vadd.f32 %v1128_v15, %v12075_v21  ;;  %v12308_v59 = vadd.f32 %v10286_v41, %v1247_v51  ;;  %v3375_v58 = vsel %vm16478_vm7, %v3372_v43, %v3374_v5 }
 0x145   : > { %v10251_v45 = vpop.f32.mrf.mxu0  ;;  %10466 = vmatmul.mubr.msk.bf16.vlgmr.msra.gmra.mxu0 %vm506_vm1, %v3369_v38  ;;  %v12311_v3 = vpop.f32.mrf.mxu1 }
 0x146   : > { %v1250_v62 = vadd.f32 %v10251_v45, %v12086_v55  ;;  %10469 = vmatprep.mubr.msk.bf16.mxu0 %vm506_vm1, %v3371_v61  ;;  %v3373_v55 = vsel %vm16478_vm7, %v3370_v2, %v3372_v43 }
 0x147   : > { %v1141_v10 = vpop.f32.mrf.mxu0  ;;  %v10293_v36 = vpop.f32.mrf.mxu1 }
 0x148   : > { %v1248_v21 = vadd.f32 %v1141_v10, %v12092_v30  ;;  %v12318_v42 = vadd.f32 %v10289_v1, %v1250_v62  ;;  %v3376_v1 = vrot.slane %v12049_v49, 3  ;;  %v3380_v10 = vrot.slane %v12079_v44, 3 }
 0x149   : > { %v10252_v33 = vpop.f32.mrf.mxu0  ;;  %v1596_v18 = vpop.f32.mrf.mxu1 }
 0x14a   : > { %v1251_v41 = vadd.f32 %v10252_v33, %v12099_v17  ;;  %v12321_v20 = vadd.f32 %v1580_v6, %v1248_v21  ;;  %v3379_v49 = vsel %vm16478_vm7, %v3376_v1, %v3378_v52  ;;  %v3382_v21 = vrot.slane %v12084_v60, 3 }
 0x14b   : > { %v1144_v27 = vpop.f32.mrf.mxu0  ;;  %v10294_v31 = vpop.f32.mrf.mxu1 }
 0x14c   : > { %v12326_v32 = vadd.f32 %v1144_v27, %v12103_v4  ;;  %v12328_v19 = vadd.f32 %v10290_v16, %v1251_v41  ;;  %v3383_v44 = vsel %vm16478_vm7, %v3380_v10, %v3382_v21 }
 0x14d   : > { %v10255_v30 = vpop.f32.mrf.mxu0  ;;  %10470 = vmatmul.mubr.msk.bf16.gmra.mxu0 %vm506_vm1, %v3373_v55  ;;  %v12331_v34 = vpop.f32.mrf.mxu1  ;;  %v16661_v55 = vld [vmem:[#allocation11_spill] sm:$0xff] }
 0x14e   : > { %v1254_v17 = vadd.f32 %v10255_v30, %v12114_v11  ;;  %10473 = vmatprep.mubr.msk.bf16.mxu0 %vm506_vm1, %v3375_v58  ;;  %v3377_v11 = vsel %vm16478_vm7, %v3374_v5, %v3376_v1 }
 0x14f   : > { %v1157_v2 = vpop.f32.mrf.mxu0  ;;  %v10297_v56 = vpop.f32.mrf.mxu1 }
 0x150   : > { %v1252_v4 = vadd.f32 %v1157_v2, %v12120_v25  ;;  %v12338_v6 = vadd.f32 %v10293_v36, %v1254_v17  ;;  %v16662_v17 = vld [vmem:[#allocation14_spill] sm:$0xff] }
 0x151   : > { %v10256_v51 = vpop.f32.mrf.mxu0  ;;  %v1612_v38 = vpop.f32.mrf.mxu1 }
 0x152   : > { %v1255_v15 = vadd.f32 %v10256_v51, %v12127_v48  ;;  %v12341_v16 = vadd.f32 %v1596_v18, %v1252_v4  ;;  %v16664_v51 = vld [vmem:[#allocation8_spill] sm:$0xff] }
 0x153   : > { %v1160_v61 = vpop.f32.mrf.mxu0  ;;  %v10298_v45 = vpop.f32.mrf.mxu1 }
 0x154   : > { %v12346_v62 = vadd.f32 %v1160_v61, %v12131_v54  ;;  %v12348_v28 = vadd.f32 %v10294_v31, %v1255_v15 }
 0x155   : > { %v10259_v25 = vpop.f32.mrf.mxu0  ;;  %10474 = vmatmul.mubr.msk.bf16.gmra.mxu0 %vm506_vm1, %v3377_v11  ;;  %v12351_v43 = vpop.f32.mrf.mxu1  ;;  %v16665_v11 = vld [vmem:[#allocation10_spill] sm:$0xff] }
 0x156   : > { %v1258_v48 = vadd.f32 %v10259_v25, %v12142_v63  ;;  %10477 = vmatprep.mubr.msk.bf16.mxu0 %vm506_vm1, %v3379_v49  ;;  %v3381_v63 = vsel %vm16478_vm7, %v3378_v52, %v3380_v10  ;;  %v3384_v52 = vrot.slane %v16664_v51, 3  ;;  %v3386_v61 = vrot.slane %v16665_v11, 3  ;;  %v16666_v49 = vld [vmem:[#allocation16_spill] sm:$0xff]  ;;  %v16672_v11 = vld [vmem:[#allocation19_spill] sm:$0xff] }
 0x157   : > { %v1173_v36 = vpop.f32.mrf.mxu0  ;;  %v10301_v5 = vpop.f32.mrf.mxu1 }
 0x158   : > { %v1256_v54 = vadd.f32 %v1173_v36, %v12148_v9  ;;  %v12358_v33 = vadd.f32 %v10297_v56, %v1258_v48  ;;  %v16663_v56 = vld [vmem:[#allocation13_spill] sm:$0xff]  ;;  %v16667_v36 = vld [vmem:[#allocation15_spill] sm:$0xff] }
 0x159   : > { %v10260_v18 = vpop.f32.mrf.mxu0  ;;  %v1628_v41 = vpop.f32.mrf.mxu1 }
 0x15a   : > { %v1259_v27 = vadd.f32 %v10260_v18, %v16661_v55  ;;  %v12361_v31 = vadd.f32 %v1612_v38, %v1256_v54  ;;  %v3385_v55 = vsel %vm16478_vm7, %v3382_v21, %v3384_v52 }
 0x15b   : > { %v1176_v58 = vpop.f32.mrf.mxu0  ;;  %v10302_v30 = vpop.f32.mrf.mxu1 }
 0x15c   : > { %v12366_v1 = vadd.f32 %v1176_v58, %v16662_v17  ;;  %v12368_v60 = vadd.f32 %v10298_v45, %v1259_v27  ;;  %v3387_v58 = vsel %vm16478_vm7, %v3384_v52, %v3386_v61 }
 0x15d   : > { %v10263_v9 = vpop.f32.mrf.mxu0  ;;  %10478 = vmatmul.mubr.msk.bf16.gmra.mxu0 %vm506_vm1, %v3381_v63  ;;  %v12371_v2 = vpop.f32.mrf.mxu1 }
 0x15e   : > { %v1262_v4 = vadd.f32 %v10263_v9, %v16663_v56  ;;  %10481 = vmatprep.mubr.msk.bf16.mxu0 %vm506_vm1, %v3383_v44  ;;  %v16669_v56 = vld [vmem:[#allocation20_spill] sm:$0xff] }
 0x15f   : > { %v1189_v38 = vpop.f32.mrf.mxu0  ;;  %v10305_v15 = vpop.f32.mrf.mxu1 }
 0x160   : > { %v1260_v25 = vadd.f32 %v1189_v38, %v16666_v49  ;;  %v12378_v48 = vadd.f32 %v10301_v5, %v1262_v4  ;;  %v11029_v5 = vld [vmem:[%s16466_s3 + $0x8] sm:$0xff]   ;;  %v16670_v4 = vld [vmem:[#allocation9_spill] sm:$0xff] }
 0x161   : > { %v10264_v45 = vpop.f32.mrf.mxu0  ;;  %v1644_v10 = vpop.f32.mrf.mxu1  ;;  %v3388_v51 = vrot.slane %v16670_v4, 3  ;;  %10501 = vmatprep.subr.bf16.mxu1 %v11029_v5 }
 0x162   : > { %v1263_v54 = vadd.f32 %v10264_v45, %v16667_v36  ;;  %v12381_v18 = vadd.f32 %v1628_v41, %v1260_v25  ;;  %10502 = vmatpush3.bf16.msra.mxu1 %v11029_v5 }
 0x163   : > { %v1192_v27 = vpop.f32.mrf.mxu0  ;;  %v10306_v63 = vpop.f32.mrf.mxu1 }
 0x164   : > { %v12386_v44 = vadd.f32 %v1192_v27, %v12187_v40  ;;  %v12388_v17 = vadd.f32 %v10302_v30, %v1263_v54  ;;  %v16671_v30 = vld [vmem:[#allocation12_spill] sm:$0xff]  ;;  %v16673_v54 = vld [vmem:[#allocation21_spill] sm:$0xff] }
 0x165   : > { %v10267_v9 = vpop.f32.mrf.mxu0  ;;  %10482 = vmatmul.mubr.msk.bf16.gmra.mxu0 %vm506_vm1, %v3385_v55  ;;  %v12394_v41 = vpop.f32.mrf.mxu1  ;;  %v3390_v38 = vrot.slane %v16671_v30, 3 }
 0x166   : > { %16668 = vst [vmem:[#allocation11_spill] sm:$0xff] %v12388_v17  ;;  %v1266_v21 = vadd.f32 %v10267_v9, %v16669_v56  ;;  %10485 = vmatprep.mubr.msk.bf16.mxu0 %vm506_vm1, %v3387_v58  ;;  %v3389_v58 = vsel %vm16478_vm7, %v3386_v61, %v3388_v51  ;;  %v3392_v61 = vrot.slane %v12163_v12, 3 }
 0x167   : > { %v1205_v40 = vpop.f32.mrf.mxu0  ;;  %v10309_v52 = vpop.f32.mrf.mxu1  ;;  %v3391_v4 = vsel %vm16478_vm7, %v3388_v51, %v3390_v38  ;;  %v3394_v51 = vrot.slane %v12168_v8, 3 }
 0x168   : > { %v1264_v49 = vadd.f32 %v1205_v40, %v16672_v11  ;;  %v12401_v25 = vadd.f32 %v10305_v15, %v1266_v21 }
 0x169   : > { %v10268_v45 = vpop.f32.mrf.mxu0  ;;  %v1660_v36 = vpop.f32.mrf.mxu1  ;;  %v3395_v12 = vsel %vm16478_vm7, %v3392_v61, %v3394_v51 }
 0x16a   : > { %v1267_v55 = vadd.f32 %v10268_v45, %v16673_v54  ;;  %v12404_v27 = vadd.f32 %v1644_v10, %v1264_v49 }
 0x16b   : > { %v1208_v9 = vpop.f32.mrf.mxu0  ;;  %v10310_v56 = vpop.f32.mrf.mxu1 }
 0x16c   : > { %v12409_v17 = vadd.f32 %v1208_v9, %v12215_v46  ;;  %v12411_v5 = vadd.f32 %v10306_v63, %v1267_v55 }
 0x16d   : > { %v10271_v40 = vpop.f32.mrf.mxu0  ;;  %10486 = vmatmul.mubr.msk.bf16.gmra.mxu0 %vm506_vm1, %v3389_v58  ;;  %v12414_v15 = vpop.f32.mrf.mxu1 }
 0x16e   : > { %v1270_v21 = vadd.f32 %v10271_v40, %v12225_v23  ;;  %10489 = vmatprep.mubr.msk.bf16.mxu0 %vm506_vm1, %v3391_v4  ;;  %v3393_v23 = vsel %vm16478_vm7, %v3390_v38, %v3392_v61  ;;  %v16678_v40 = vld [vmem:[#allocation18_spill] sm:$0xff] }
 0x16f   : > { %v1221_v10 = vpop.f32.mrf.mxu0  ;;  %v10353_v30 = vpop.f32.mrf.mxu1 }
 0x170   : > { %v1268_v46 = vadd.f32 %v1221_v10, %v12231_v37  ;;  %v12421_v11 = vadd.f32 %v10309_v52, %v1270_v21  ;;  %v3398_v21 = vrot.slane %v16678_v40, 3 }
 0x171   : > { %v10272_v63 = vpop.f32.mrf.mxu0  ;;  %v2293_v49 = vpop.f32.mrf.mxu1 }
 0x172   : > { %16674 = vst [vmem:[#allocation14_spill] sm:$0xff] %v12421_v11  ;;  %v1271_v45 = vadd.f32 %v10272_v63, %v12236_v35  ;;  %v12424_v54 = vadd.f32 %v1660_v36, %v1268_v46  ;;  %v16677_v35 = vld [vmem:[#allocation17_spill] sm:$0xff] }
 0x173   : > { %v12427_v55 = vpop.f32.mrf.mxu0  ;;  %v10354_v58 = vpop.f32.mrf.mxu1  ;;  %v3396_v36 = vrot.slane %v16677_v35, 3  ;;  %v3751_v35 = vlaneseq }
 0x174   : > { %16675 = vst [vmem:[#allocation13_spill] sm:$0xff] %v12424_v54  ;;  %v12430_v9 = vadd.f32 %v10310_v56, %v1271_v45 }
 0x175   : > { %v10315_v8 = vpop.f32.mrf.mxu0  ;;  %10490 = vmatmul.mubr.msk.bf16.gmra.mxu0 %vm506_vm1, %v3393_v23  ;;  %v12433_v37 = vpop.f32.mrf.mxu1 }
 0x176   : > { %16676 = vst [vmem:[#allocation8_spill] sm:$0xff] %v12430_v9  ;;  %v2124_v52 = vadd.f32 %v10315_v8, %v12253_v26  ;;  %10493 = vmatprep.mubr.msk.bf16.mxu0 %vm506_vm1, %v3395_v12  ;;  %v3397_v26 = vsel %vm16478_vm7, %v3394_v51, %v3396_v36  ;;  %v3399_v8 = vsel %vm16478_vm7, %v3396_v36, %v3398_v21 }
 0x177   : > { %v1979_v4 = vpop.f32.mrf.mxu0  ;;  %v10357_v38 = vpop.f32.mrf.mxu1 }
 0x178   : > { %v2122_v10 = vadd.f32 %v1979_v4, %v12258_v22  ;;  %v12440_v61 = vadd.f32 %v10353_v30, %v2124_v52  ;;  %v12457_v4 = vshrl.u32 %v3751_v35, 7 }
 0x179   : > { %v10316_v56 = vpop.f32.mrf.mxu0  ;;  %v2309_v46 = vpop.f32.mrf.mxu1 }
 0x17a   : > { %16679 = vst [vmem:[#allocation10_spill] sm:$0xff] %v12440_v61  ;;  %v2125_v63 = vadd.f32 %v10316_v56, %v12267_v7  ;;  %v12443_v45 = vadd.f32 %v2293_v49, %v2122_v10  ;;  %v16682_v7 = vld [vmem:[#allocation22_spill] sm:$0xff]  ;;  %v16695_v61 = vld [vmem:[#allocation25_spill] sm:$0xff] }
 0x17b   : > { %v12446_v23 = vpop.f32.mrf.mxu0  ;;  %v10358_v12 = vpop.f32.mrf.mxu1  ;;  %v3400_v49 = vrot.slane %v16682_v7, 3  ;;  %v12469_v7 = vadd.s32 16, %v12457_v4  ;;  %v1676_v54 = vadd.f32 %v16695_v61, %v12265_v13 }
 0x17c   : > { %16680 = vst [vmem:[#allocation16_spill] sm:$0xff] %v12443_v45  ;;  %v12449_v9 = vadd.f32 %v10354_v58, %v2125_v63 }
 0x17d   : > { %v10319_v40 = vpop.f32.mrf.mxu0  ;;  %10494 = vmatmul.mubr.msk.bf16.gmra.mxu0 %vm506_vm1, %v3397_v26  ;;  %v12452_v22 = vpop.f32.mrf.mxu1 }
 0x17e   : > { %16681 = vst [vmem:[#allocation15_spill] sm:$0xff] %v12449_v9  ;;  %v2128_v30 = vadd.f32 %v10319_v40, %v12278_v14  ;;  %10497 = vmatprep.mubr.msk.bf16.mxu0 %vm506_vm1, %v3399_v8  ;;  %v3401_v14 = vsel %vm16478_vm7, %v3398_v21, %v3400_v49  ;;  %v12482_v49 = vadd.s32 24, %v12457_v4 }
 0x17f   : > { %v1995_v51 = vpop.f32.mrf.mxu0  ;;  %v10361_v52 = vpop.f32.mrf.mxu1 }
 0x180   : > { %v2126_v36 = vadd.f32 %v1995_v51, %v12281_v24  ;;  %v12460_v10 = vadd.f32 %v10357_v38, %v2128_v30  ;;  %v12478_v30 = vmul.u32.u64.low 3817748708, %v12469_v7  ;;  %v12479_v21 = vmul.u32.u64.high 3817748708, %v12469_v7, %v12478_v30 }
 0x181   : > { %v10320_v58 = vpop.f32.mrf.mxu0  ;;  %v2325_v56 = vpop.f32.mrf.mxu1 }
 0x182   : > { %16683 = vst [vmem:[#allocation20_spill] sm:$0xff] %v12460_v10  ;;  %v2129_v63 = vadd.f32 %v10320_v58, %v12288_v0  ;;  %v12463_v26 = vadd.f32 %v2309_v46, %v2126_v36 }
 0x183   : > { %v12466_v40 = vpop.f32.mrf.mxu0  ;;  %v10362_v8 = vpop.f32.mrf.mxu1 }
 0x184   : > { %16684 = vst [vmem:[#allocation9_spill] sm:$0xff] %v12463_v26  ;;  %v12471_v35 = vadd.f32 %v10358_v12, %v2129_v63 }
 0x185   : > { %v10323_v9 = vpop.f32.mrf.mxu0  ;;  %10498 = vmatmul.mubr.msk.bf16.gmra.mxu0 %vm506_vm1, %v3401_v14  ;;  %v12474_v24 = vpop.f32.mrf.mxu1  ;;  %v12490_v63 = vmul.u32.u64.low 3817748708, %v12457_v4  ;;  %v12491_v14 = vmul.u32.u64.high 3817748708, %v12457_v4, %v12490_v63 }
 0x186   : > { %16685 = vst [vmem:[#allocation12_spill] sm:$0xff] %v12471_v35  ;;  %v2132_v38 = vadd.f32 %v10323_v9, %v12298_v29  ;;  %v12516_v63 = vadd.s32 48, %v12457_v4 }
 0x187   : > { %v2011_v0 = vpop.f32.mrf.mxu0  ;;  %v10365_v46 = vpop.f32.mrf.mxu1 }
 0x188   : > { %v2130_v51 = vadd.f32 %v2011_v0, %v12301_v53  ;;  %v12485_v12 = vadd.f32 %v10361_v52, %v2132_v38  ;;  %v12501_v26 = vmul.u32.u64.low 3817748708, %v12482_v49  ;;  %v12502_v53 = vmul.u32.u64.high 3817748708, %v12482_v49, %v12501_v26 }
 0x189   : > { %v10324_v36 = vpop.f32.mrf.mxu0  ;;  %v12487_v58 = vpop.f32.mrf.mxu1 }
 0x18a   : > { %16686 = vst [vmem:[#allocation19_spill] sm:$0xff] %v12485_v12  ;;  %v2133_v29 = vadd.f32 %v10324_v36, %v12308_v59  ;;  %v12494_v9 = vadd.f32 %v2325_v56, %v2130_v51  ;;  %v12510_v59 = vadd.s32 8, %v12457_v4  ;;  %v3816_v36 = vshrl.u32 %v12479_v21, 4 }
 0x18b   : > { %v12496_v35 = vpop.f32.mrf.mxu0  ;;  %v12498_v30 = vpop.f32.mrf.mxu1  ;;  %v3827_v10 = vshrl.u32 %v12502_v53, 4 }
 0x18c   : > { %16687 = vst [vmem:[#allocation21_spill] sm:$0xff] %v12494_v9  ;;  %v12504_v52 = vadd.f32 %v10362_v8, %v2133_v29  ;;  %v11171_v29 = vmov 0   ;;  %v3817_v9 = vmul.u32 18, %v3816_v36  ;;  %v16693_v36 = vld [vmem:[#allocation24_spill] sm:$0xff] }
 0x18d   : > { %v10327_v38 = vpop.f32.mrf.mxu0  ;;  %v12506_v0 = vpop.f32.mrf.mxu1  ;;  %4439 = vst.msk [vmem:[#allocation4 + $0x8] sm:$0xf] %vm16504_vm8, %v11171_v29  ;;  %4437 = vst.msk [vmem:[#allocation4] sm:$0xf] %vm16504_vm8, %v11171_v29 }
 0x18e   : > { %16688 = vst [vmem:[#allocation17_spill] sm:$0xff] %v12504_v52  ;;  %v2136_v12 = vadd.f32 %v10327_v38, %v12318_v42  ;;  %4438 = vst.msk [vmem:[#allocation4 + $0x4] sm:$0xf] %vm16504_vm8, %v11171_v29 }
 0x18f   : > { %v2027_v56 = vpop.f32.mrf.mxu0  ;;  %v12512_v51 = vpop.f32.mrf.mxu1  ;;  %4440 = vst.msk [vmem:[#allocation4 + $0xc] sm:$0xf] %vm16504_vm8, %v11171_v29  ;;  %4441 = vst.msk [vmem:[#allocation4 + $0x10] sm:$0xf] %vm16504_vm8, %v11171_v29 }
 0x190   : > { %v2134_v26 = vadd.f32 %v2027_v56, %v12321_v20  ;;  %v12519_v8 = vadd.f32 %v10365_v46, %v2136_v12  ;;  %4442 = vst.msk [vmem:[#allocation4 + $0x14] sm:$0xf] %vm16504_vm8, %v11171_v29  ;;  %4443 = vst.msk [vmem:[#allocation4 + $0x18] sm:$0xf] %vm16504_vm8, %v11171_v29  ;;  %v3794_v46 = vshrl.u32 %v12491_v14, 4 }
 0x191   : > { %4444 = vst.msk [vmem:[#allocation4 + $0x1c] sm:$0xf] %vm16504_vm8, %v11171_v29  ;;  %4445 = vst.msk [vmem:[#allocation4 + $0x20] sm:$0xf] %vm16504_vm8, %v11171_v29  ;;  %v10328_v42 = vpop.f32.mrf.mxu0  ;;  %v2357_v20 = vpop.f32.mrf.mxu1  ;;  %v12568_v38 = vmul.u32.u64.low 3817748708, %v12510_v59  ;;  %v12569_v56 = vmul.u32.u64.high 3817748708, %v12510_v59, %v12568_v38 }
 0x192   : > { %16689 = vst [vmem:[#allocation18_spill] sm:$0xff] %v12519_v8  ;;  %4446 = vst.msk [vmem:[#allocation4 + $0x24] sm:$0xf] %vm16504_vm8, %v11171_v29  ;;  %v2137_v21 = vadd.f32 %v10328_v42, %v12328_v19  ;;  %v12565_v12 = vadd.f32 %v12487_v58, %v2134_v26  ;;  %v12582_v19 = vadd.s32 32, %v12457_v4  ;;  %v3795_v42 = vmul.u32 18, %v3794_v46 }
 0x193   : > { %4447 = vst.msk [vmem:[#allocation4 + $0x28] sm:$0xf] %vm16504_vm8, %v11171_v29  ;;  %4448 = vst.msk [vmem:[#allocation4 + $0x2c] sm:$0xf] %vm16504_vm8, %v11171_v29  ;;  %v12571_v8 = vpop.f32.mrf.mxu0  ;;  %v10370_v52 = vpop.f32.mrf.mxu1  ;;  %v12587_v38 = vadd.s32 56, %v12457_v4  ;;  %v12600_v46 = vadd.f32 %v12311_v3, %v12326_v32 }
 0x194   : > { %4449 = vst.msk [vmem:[#allocation4 + $0x30] sm:$0xf] %vm16504_vm8, %v11171_v29  ;;  %4450 = vst.msk [vmem:[#allocation4 + $0x34] sm:$0xf] %vm16504_vm8, %v11171_v29  ;;  %v12579_v14 = vadd.f32 %v12498_v30, %v2137_v21  ;;  %v1680_v30 = vadd.f32 %v12271_v39, %v12286_v57  ;;  %v12610_v39 = vmul.u32.u64.low 3817748708, %v12582_v19  ;;  %v12611_v57 = vmul.u32.u64.high 3817748708, %v12582_v19, %v12610_v39 }
 0x195   : > { %4451 = vst.msk [vmem:[#allocation4 + $0x38] sm:$0xf] %vm16504_vm8, %v11171_v29  ;;  %4452 = vst.msk [vmem:[#allocation4 + $0x3c] sm:$0xf] %vm16504_vm8, %v11171_v29  ;;  %v10331_v58 = vpop.f32.mrf.mxu0  ;;  %v12584_v26 = vpop.f32.mrf.mxu1  ;;  %v12615_v32 = vsub.s32 %v12457_v4, %v3795_v42  ;;  %v12698_v39 = vadd.s32 80, %v12457_v4 }
 0x196   : > { %4453 = vst.msk [vmem:[#allocation4 + $0x40] sm:$0xf] %vm16504_vm8, %v11171_v29  ;;  %4454 = vst.msk [vmem:[#allocation4 + $0x44] sm:$0xf] %vm16504_vm8, %v11171_v29  ;;  %v2140_v21 = vadd.f32 %v10331_v58, %v12338_v6 }
 0x197   : > { %4455 = vst.msk [vmem:[#allocation4 + $0x48] sm:$0xf] %vm16504_vm8, %v11171_v29  ;;  %4456 = vst.msk [vmem:[#allocation4 + $0x4c] sm:$0xf] %vm16504_vm8, %v11171_v29  ;;  %v10373_v11 = vpop.f32.mrf.mxu1  ;;  %vm4184_vm11 = vcmp.ne.s32.totalorder %v12615_v32, 0  ;;  %vm4220_vm12 = vcmp.lt.s32.totalorder %v12615_v32, 0 }
 0x198   : > { %4457 = vst.msk [vmem:[#allocation4 + $0x50] sm:$0xf] %vm16504_vm8, %v11171_v29  ;;  %4458 = vst.msk [vmem:[#allocation4 + $0x54] sm:$0xf] %vm16504_vm8, %v11171_v29  ;;  %v12607_v61 = vadd.f32 %v12512_v51, %v2140_v21  ;;  %v3805_v51 = vshrl.u32 %v12569_v56, 4 }
 0x199   : > { %4459 = vst.msk [vmem:[#allocation4 + $0x58] sm:$0xf] %vm16504_vm8, %v11171_v29  ;;  %4460 = vst.msk [vmem:[#allocation4 + $0x5c] sm:$0xf] %vm16504_vm8, %v11171_v29  ;;  %v2373_v3 = vpop.f32.mrf.mxu1 }
 0x19a   : > { %4461 = vst.msk [vmem:[#allocation4 + $0x60] sm:$0xf] %vm16504_vm8, %v11171_v29  ;;  %4462 = vst.msk [vmem:[#allocation4 + $0x64] sm:$0xf] %vm16504_vm8, %v11171_v29 }
 0x19b   : > { %4463 = vst.msk [vmem:[#allocation4 + $0x68] sm:$0xf] %vm16504_vm8, %v11171_v29  ;;  %4464 = vst.msk [vmem:[#allocation4 + $0x6c] sm:$0xf] %vm16504_vm8, %v11171_v29  ;;  %v10374_v42 = vpop.f32.mrf.mxu1 }
 0x19c   : > { %4465 = vst.msk [vmem:[#allocation4 + $0x70] sm:$0xf] %vm16504_vm8, %v11171_v29  ;;  %4466 = vst.msk [vmem:[#allocation4 + $0x74] sm:$0xf] %vm16504_vm8, %v11171_v29 }
 0x19d   : > { %4467 = vst.msk [vmem:[#allocation4 + $0x78] sm:$0xf] %vm16504_vm8, %v11171_v29  ;;  %4468 = vst.msk [vmem:[#allocation4 + $0x7c] sm:$0xf] %vm16504_vm8, %v11171_v29 }
 0x19e   : > { %4469 = vst.msk [vmem:[#allocation4 + $0x80] sm:$0xf] %vm16504_vm8, %v11171_v29  ;;  %4470 = vst.msk [vmem:[#allocation4 + $0x84] sm:$0xf] %vm16504_vm8, %v11171_v29 }
 0x19f   : > { %4471 = vst.msk [vmem:[#allocation4 + $0x88] sm:$0xf] %vm16504_vm8, %v11171_v29  ;;  %4472 = vst.msk [vmem:[#allocation4 + $0x8c] sm:$0xf] %vm16504_vm8, %v11171_v29 }
 0x1a0   : > { %4473 = vst.msk [vmem:[#allocation4 + $0x90] sm:$0xf] %vm16504_vm8, %v11171_v29  ;;  %4474 = vst.msk [vmem:[#allocation4 + $0x94] sm:$0xf] %vm16504_vm8, %v11171_v29 }
 0x1a1   : > { %4475 = vst.msk [vmem:[#allocation4 + $0x98] sm:$0xf] %vm16504_vm8, %v11171_v29  ;;  %4476 = vst.msk [vmem:[#allocation4 + $0x9c] sm:$0xf] %vm16504_vm8, %v11171_v29 }
 0x1a2   : > { %4477 = vst.msk [vmem:[#allocation4 + $0xa0] sm:$0xf] %vm16504_vm8, %v11171_v29  ;;  %16690 = vst [vmem:[#allocation22_spill] sm:$0xff] %v12565_v12  ;;  %v12575_v29 = vmul.u32.u64.low 3817748708, %v12516_v63  ;;  %v12576_v45 = vmul.u32.u64.high 3817748708, %v12516_v63, %v12575_v29  ;;  %v16694_v12 = vld [vmem:[#allocation23_spill] sm:$0xff] }
 0x1a3   : > { %16691 = vst [vmem:[#allocation26_spill] sm:$0xff] %v12579_v14  ;;  %16692 = vst [vmem:[#allocation27_spill] sm:$0xff] %v12584_v26  ;;  %v947_v53 = vadd.f32 %v16694_v12, %v16693_v36  ;;  %v1684_v29 = vadd.f32 %v12291_v47, %v12306_v50  ;;  %v2043_v14 = vpop.f32.mrf.mxu0  ;;  %v12603_v26 = vsub.s32 %v12469_v7, %v3817_v9  ;;  %v3828_v12 = vmul.u32 18, %v3827_v10 }
 0x1a4   : > { %v2138_v13 = vadd.f32 %v2043_v14, %v12341_v16  ;;  %16697 = vst [vmem:[#allocation23_spill] sm:$0xff] %v12615_v32  ;;  %v12618_v6 = vmul.u32.u64.low 3817748708, %v12587_v38  ;;  %v12619_v7 = vmul.u32.u64.high 3817748708, %v12587_v38, %v12618_v6  ;;  %v12623_v16 = vadd.f32 %v12331_v34, %v12346_v62  ;;  %vm12684_vm0 = vmand %vm4220_vm12, %vm4184_vm11 }
 0x1a5   : > { %16696 = vst [vmem:[#allocation24_spill] sm:$0xff] %v12603_v26  ;;  %v1269_v47 = vadd.f32 %v12427_v55, %v947_v53  ;;  %v10332_v50 = vpop.f32.mrf.mxu0  ;;  %v12631_v55 = vadd.f32 %v12351_v43, %v12366_v1  ;;  %v12635_v14 = vadd.f32 %v12371_v2, %v12386_v44  ;;  %v12640_v34 = vsub.s32 %v12482_v49, %v3828_v12  ;;  %v12655_v44 = vpop.f32.mrf.mxu1 }
 0x1a6   : > { %v2141_v10 = vadd.f32 %v10332_v50, %v12348_v28  ;;  %v12626_v9 = vadd.f32 %v2357_v20, %v2138_v13  ;;  %v3860_v62 = vshrl.u32 %v12576_v45, 4  ;;  %v12645_v28 = vadd.f32 %v12394_v41, %v12409_v17 }
 0x1a7   : > { %v12637_v58 = vpop.f32.mrf.mxu0  ;;  %16698 = vst [vmem:[#allocation25_spill] sm:$0xff] %v12640_v34  ;;  %vm4186_vm9 = vcmp.ne.s32.totalorder %v12603_v26, 0  ;;  %vm4222_vm10 = vcmp.lt.s32.totalorder %v12603_v26, 0  ;;  %v12652_v43 = vadd.f32 %v12414_v15, %v1269_v47  ;;  %v2123_v1 = vadd.f32 %v12446_v23, %v1676_v54  ;;  %v10377_v15 = vpop.f32.mrf.mxu1 }
 0x1a8   : > { %v12647_v20 = vadd.f32 %v10370_v52, %v2141_v10  ;;  %v2127_v17 = vadd.f32 %v12466_v40, %v1680_v30  ;;  %v12662_v45 = vadd.s32 18, %v12603_v26  ;;  %v3806_v49 = vmul.u32 18, %v3805_v51  ;;  %vm12668_vm13 = vmand %vm4222_vm10, %vm4186_vm9 }
 0x1a9   : > { %v10335_v2 = vpop.f32.mrf.mxu0  ;;  %v16700_v54 = vmov 0  ;;  %v12673_v23 = vadd.s32 18, %v12615_v32  ;;  %vm4187_vm14 = vcmp.ne.s32.totalorder %v12640_v34, 0  ;;  %vm4223_vm15 = vcmp.lt.s32.totalorder %v12640_v34, 0  ;;  %v2389_v12 = vpop.f32.mrf.mxu1  ;;  %v5033_v32 = vld [vmem:[#allocation4 + $0x4] sm:$0xf] }
 0x1aa   : > { %v2144_v41 = vadd.f32 %v10335_v2, %v12358_v33  ;;  %16699 = vst [vmem:[#allocation28_spill] sm:$0xff] %v12662_v45  ;;  %v16701_v54 = vsel %vm12668_vm13, 4294967295, %v16700_v54  ;;  %v3861_v33 = vmul.u32 18, %v3860_v62  ;;  %v16704_v36 = vmov 0  ;;  %vm12726_vm1 = vmand %vm4223_vm15, %vm4187_vm14 }
 0x1ab   : > { %v2059_v52 = vpop.f32.mrf.mxu0  ;;  %16702 = vst [vmem:[#allocation29_spill] sm:$0xff] %v16701_v54  ;;  %16703 = vst [vmem:[#allocation30_spill] sm:$0xff] %v12673_v23  ;;  %v16705_v36 = vsel %vm12684_vm0, 4294967295, %v16704_v36  ;;  %v3838_v53 = vshrl.u32 %v12611_v57, 4  ;;  %v12690_v30 = vadd.s32 40, %v12457_v4  ;;  %v12693_v21 = vadd.f32 %v12433_v37, %v2123_v1 }
 0x1ac   : > { %v2142_v40 = vadd.f32 %v2059_v52, %v12361_v31  ;;  %v12678_v56 = vadd.f32 %v10373_v11, %v2144_v41  ;;  %16706 = vst [vmem:[#allocation31_spill] sm:$0xff] %v16705_v36  ;;  %v2131_v31 = vadd.f32 %v12496_v35, %v1684_v29  ;;  %v3871_v13 = vshrl.u32 %v12619_v7, 4  ;;  %v10378_v29 = vpop.f32.mrf.mxu1 }
 0x1ad   : > { %v10336_v11 = vpop.f32.mrf.mxu0  ;;  %v12704_v57 = vadd.s32 18, %v12640_v34  ;;  %v12707_v6 = vsub.s32 %v12510_v59, %v3806_v49  ;;  %v12710_v37 = vadd.f32 %v12452_v22, %v2127_v17  ;;  %v16709_v22 = vmov 0 }
 0x1ae   : > { %v2145_v47 = vadd.f32 %v10336_v11, %v12368_v60  ;;  %v12701_v50 = vadd.f32 %v2373_v3, %v2142_v40  ;;  %v16710_v22 = vsel %vm12726_vm1, 4294967295, %v16709_v22  ;;  %v12731_v59 = vsub.s32 %v12516_v63, %v3861_v33  ;;  %v12739_v2 = vpop.f32.mrf.mxu1  ;;  %v16718_v33 = vld [vmem:[#allocation11_spill] sm:$0xff] }
 0x1af   : > { %16707 = vst [vmem:[#allocation32_spill] sm:$0xff] %v12704_v57  ;;  %16708 = vst [vmem:[#allocation33_spill] sm:$0xff] %v12707_v6  ;;  %v12712_v35 = vpop.f32.mrf.mxu0  ;;  %v3839_v10 = vmul.u32 18, %v3838_v53  ;;  %v12736_v51 = vmul.u32.u64.low 3817748708, %v12690_v30  ;;  %v12737_v62 = vmul.u32.u64.high 3817748708, %v12690_v30, %v12736_v51  ;;  %v12746_v52 = vadd.s32 64, %v12457_v4 }
 0x1b0   : > { %16711 = vst [vmem:[#allocation34_spill] sm:$0xff] %v16710_v22  ;;  %16712 = vst [vmem:[#allocation35_spill] sm:$0xff] %v12731_v59  ;;  %v12733_v3 = vadd.f32 %v10374_v42, %v2145_v47  ;;  %v3872_v17 = vmul.u32 18, %v3871_v13  ;;  %v12742_v41 = vmul.u32.u64.low 3817748708, %v12698_v39  ;;  %v12743_v49 = vmul.u32.u64.high 3817748708, %v12698_v39, %v12742_v41  ;;  %v10381_v11 = vpop.f32.mrf.mxu1 }
 0x1b1   : > { %v10339_v1 = vpop.f32.mrf.mxu0  ;;  %v12749_v63 = vadd.f32 %v12474_v24, %v2131_v31  ;;  %vm4185_vm9 = vcmp.ne.s32.totalorder %v12707_v6, 0  ;;  %v12759_v40 = vadd.f32 %v12571_v8, %v12600_v46  ;;  %vm4221_vm10 = vcmp.lt.s32.totalorder %v12707_v6, 0  ;;  %v5032_v22 = vld [vmem:[#allocation4] sm:$0xf] }
 0x1b2   : > { %16713 = vst [vmem:[#allocation36_spill] sm:$0xff] %v12733_v3  ;;  %v2148_v42 = vadd.f32 %v10339_v1, %v12378_v48  ;;  %v12763_v24 = vadd.s32 18, %v12707_v6  ;;  %v12766_v48 = vadd.s32 88, %v12457_v4  ;;  %vm4190_vm11 = vcmp.ne.s32.totalorder %v12731_v59, 0  ;;  %v2405_v46 = vpop.f32.mrf.mxu1  ;;  %vm12827_vm4 = vmand %vm4221_vm10, %vm4185_vm9 }
 0x1b3   : > { %v2075_v53 = vpop.f32.mrf.mxu0  ;;  %v12773_v47 = vsub.s32 %v12582_v19, %v3839_v10  ;;  %vm4226_vm12 = vcmp.lt.s32.totalorder %v12731_v59, 0  ;;  %v12777_v51 = vsub.s32 %v12587_v38, %v3872_v17  ;;  %v12790_v19 = vadd.s32 72, %v12457_v4 }
 0x1b4   : > { %16714 = vst [vmem:[#allocation37_spill] sm:$0xff] %v12763_v24  ;;  %v2146_v31 = vadd.f32 %v2075_v53, %v12381_v18  ;;  %v12769_v13 = vadd.f32 %v10377_v15, %v2148_v42  ;;  %v12780_v1 = vmul.u32.u64.low 3817748708, %v12746_v52  ;;  %v12781_v41 = vmul.u32.u64.high 3817748708, %v12746_v52, %v12780_v1  ;;  %v10382_v53 = vpop.f32.mrf.mxu1  ;;  %vm12839_vm5 = vmand %vm4226_vm12, %vm4190_vm11 }
 0x1b5   : > { %16716 = vst [vmem:[#allocation39_spill] sm:$0xff] %v12773_v47  ;;  %v10340_v8 = vpop.f32.mrf.mxu0  ;;  %16717 = vst [vmem:[#allocation40_spill] sm:$0xff] %v12777_v51  ;;  %v12787_v42 = vadd.s32 18, %v12731_v59  ;;  %v12795_v38 = vmul.u32.u64.low 3817748708, %v12766_v48  ;;  %v12796_v17 = vmul.u32.u64.high 3817748708, %v12766_v48, %v12795_v38  ;;  %v12799_v60 = vadd.s32 112, %v12457_v4 }
 0x1b6   : > { %16715 = vst [vmem:[#allocation38_spill] sm:$0xff] %v12769_v13  ;;  %v2149_v18 = vadd.f32 %v10340_v8, %v16718_v33  ;;  %v12784_v15 = vadd.f32 %v2389_v12, %v2146_v31  ;;  %v12802_v33 = vadd.s32 96, %v12457_v4  ;;  %vm4188_vm14 = vcmp.ne.s32.totalorder %v12773_v47, 0  ;;  %v12811_v1 = vpop.f32.mrf.mxu1 }
 0x1b7   : > { %16720 = vst [vmem:[#allocation41_spill] sm:$0xff] %v12787_v42  ;;  %v12792_v10 = vpop.f32.mrf.mxu0  ;;  %vm4224_vm15 = vcmp.lt.s32.totalorder %v12773_v47, 0  ;;  %v12809_v31 = vadd.s32 18, %v12773_v47  ;;  %vm4191_vm6 = vcmp.ne.s32.totalorder %v12777_v51, 0  ;;  %vm4227_vm7 = vcmp.lt.s32.totalorder %v12777_v51, 0 }
 0x1b8   : > { %16719 = vst [vmem:[#allocation11_spill] sm:$0xff] %v12784_v15  ;;  %v12804_v12 = vadd.f32 %v10378_v29, %v2149_v18  ;;  %v3849_v38 = vshrl.u32 %v12737_v62, 4  ;;  %v3904_v7 = vshrl.u32 %v12743_v49, 4  ;;  %v11030_v29 = vld [vmem:[%s16466_s3] sm:$0xff]   ;;  %v2139_v18 = vadd.f32 %v12637_v58, %v12623_v16  ;;  %v10385_v36 = vpop.f32.mrf.mxu1  ;;  %vm12858_vm9 = vmand %vm4224_vm15, %vm4188_vm14 }
 0x1b9   : > { %16722 = vst [vmem:[#allocation43_spill] sm:$0xff] %v12809_v31  ;;  %v10343_v8 = vpop.f32.mrf.mxu0  ;;  %v16723_v57 = vmov 0  ;;  %v12832_v62 = vmul.u32.u64.low 3817748708, %v12790_v19  ;;  %v12833_v49 = vmul.u32.u64.high 3817748708, %v12790_v19, %v12832_v62  ;;  %10539 = vmatprep.subr.bf16.mxu0 %v11030_v29  ;;  %v16730_v54 = vmov 0  ;;  %vm12871_vm10 = vmand %vm4227_vm7, %vm4191_vm6  ;;  %v16744_v31 = vld [vmem:[#allocation13_spill] sm:$0xff] }
 0x1ba   : > { %16721 = vst [vmem:[#allocation42_spill] sm:$0xff] %v12804_v12  ;;  %v2152_v34 = vadd.f32 %v10343_v8, %v12401_v25  ;;  %v16724_v57 = vsel %vm12827_vm4, 4294967295, %v16723_v57  ;;  %v16726_v25 = vmov 0  ;;  %v16731_v54 = vsel %vm12858_vm9, 4294967295, %v16730_v54  ;;  %10540 = vmatpush3.bf16.msra.mxu0 %v11030_v29  ;;  %v2421_v15 = vpop.f32.mrf.mxu1 }
 0x1bb   : > { %16725 = vst [vmem:[#allocation44_spill] sm:$0xff] %v16724_v57  ;;  %v2091_v23 = vpop.f32.mrf.mxu0  ;;  %v16727_v25 = vsel %vm12839_vm5, 4294967295, %v16726_v25  ;;  %v12844_v16 = vmul.u32.u64.low 3817748708, %v12799_v60  ;;  %v12845_v58 = vmul.u32.u64.high 3817748708, %v12799_v60, %v12844_v16  ;;  %16732 = vst [vmem:[#allocation47_spill] sm:$0xff] %v16731_v54  ;;  %v12863_v12 = vadd.s32 18, %v12777_v51 }
 0x1bc   : > { %16728 = vst [vmem:[#allocation45_spill] sm:$0xff] %v16727_v25  ;;  %v12848_v8 = vmul.u32.u64.low 3817748708, %v12802_v33  ;;  %v12849_v26 = vmul.u32.u64.high 3817748708, %v12802_v33, %v12848_v8  ;;  %v2150_v62 = vadd.f32 %v2091_v23, %v12404_v27  ;;  %v12852_v45 = vadd.f32 %v10381_v11, %v2152_v34  ;;  %v10386_v13 = vpop.f32.mrf.mxu1 }
 0x1bd   : > { %16733 = vst [vmem:[#allocation48_spill] sm:$0xff] %v12863_v12  ;;  %v12865_v16 = vcombine.low %v5032_v22, %v5033_v32  ;;  %v10344_v8 = vpop.f32.mrf.mxu0  ;;  %v16734_v27 = vmov 0  ;;  %v3850_v34 = vmul.u32 18, %v3849_v38  ;;  %v3882_v23 = vshrl.u32 %v12781_v41, 4 }
 0x1be   : > { %16729 = vst [vmem:[#allocation46_spill] sm:$0xff] %v12852_v45  ;;  %v16735_v27 = vsel %vm12871_vm10, 4294967295, %v16734_v27  ;;  %v12877_v11 = vadd.s32 120, %v12457_v4  ;;  %vm16500_vm11 = vcmask 130048   ;;  %v2153_v32 = vadd.f32 %v10344_v8, %v12411_v5  ;;  %v12915_v59 = vpop.f32.mrf.mxu1 }
 0x1bf   : > { %16736 = vst [vmem:[#allocation49_spill] sm:$0xff] %v16735_v27  ;;  %v12880_v22 = vadd.f32 %v2405_v46, %v2150_v62  ;;  %v3905_v45 = vmul.u32 18, %v3904_v7  ;;  %10541 = vmatprep.mubr.msk.bf16.mxu0 %vm16500_vm11, %v12865_v16  ;;  %v12890_v41 = vadd.f32 %v12506_v0, %v12759_v40  ;;  %v12892_v38 = vpop.f32.mrf.mxu0  ;;  %v3915_v46 = vshrl.u32 %v12796_v17, 4  ;;  %v16738_v62 = vld [vmem:[#allocation27_spill] sm:$0xff] }
 0x1c0   : > { %v12904_v8 = vadd.f32 %v16738_v62, %v2139_v18  ;;  %v12906_v0 = vadd.f32 %v10382_v53, %v2153_v32  ;;  %v12913_v29 = vadd.s32 104, %v12457_v4  ;;  %v12918_v7 = vsub.s32 %v12690_v30, %v3850_v34  ;;  %v16742_v32 = vld [vmem:[#allocation14_spill] sm:$0xff]  ;;  %v12931_v47 = vpop.f32.mrf.mxu1 }
 0x1c1   : > { %16737 = vst [vmem:[#allocation50_spill] sm:$0xff] %v12880_v22  ;;  %v10347_v5 = vpop.f32.mrf.mxu0  ;;  %v3883_v17 = vmul.u32 18, %v3882_v23  ;;  %v12921_v18 = vmul.u32.u64.low 3817748708, %v12877_v11  ;;  %v12922_v62 = vmul.u32.u64.high 3817748708, %v12877_v11, %v12921_v18  ;;  %v2143_v53 = vadd.f32 %v12712_v35, %v12631_v55 }
 0x1c2   : > { %16739 = vst [vmem:[#allocation27_spill] sm:$0xff] %v12904_v8  ;;  %16740 = vst [vmem:[#allocation51_spill] sm:$0xff] %v12906_v0  ;;  %v2156_v27 = vadd.f32 %v10347_v5, %v16742_v32  ;;  %v12928_v40 = vsub.s32 %v12698_v39, %v3905_v45  ;;  %v3893_v51 = vshrl.u32 %v12833_v49, 4  ;;  %v3916_v30 = vmul.u32 18, %v3915_v46  ;;  %v12945_v5 = vpop.f32.mrf.mxu1 }
 0x1c3   : > { %16741 = vst [vmem:[#allocation52_spill] sm:$0xff] %v12918_v7  ;;  %v2107_v12 = vpop.f32.mrf.mxu0  ;;  %v3948_v34 = vshrl.u32 %v12845_v58, 4  ;;  %v3926_v23 = vshrl.u32 %v12849_v26, 4  ;;  %v12936_v18 = vadd.s32 144, %v12457_v4  ;;  %vm4189_vm6 = vcmp.ne.s32.totalorder %v12918_v7, 0 }
 0x1c4   : > { %16743 = vst [vmem:[#allocation14_spill] sm:$0xff] %v12928_v40  ;;  %v2154_v55 = vadd.f32 %v2107_v12, %v16744_v31  ;;  %v12939_v35 = vadd.f32 %v10385_v36, %v2156_v27  ;;  %v12942_v45 = vmul.u32.u64.low 3817748708, %v12913_v29  ;;  %v12943_v39 = vmul.u32.u64.high 3817748708, %v12913_v29, %v12942_v45  ;;  %v16749_v12 = vld [vmem:[#allocation8_spill] sm:$0xff] }
 0x1c5   : > { %v10348_v49 = vpop.f32.mrf.mxu0  ;;  %vm4225_vm7 = vcmp.lt.s32.totalorder %v12918_v7, 0  ;;  %v12950_v26 = vadd.s32 18, %v12918_v7  ;;  %v12953_v58 = vsub.s32 %v12746_v52, %v3883_v17  ;;  %v12956_v36 = vadd.f32 %v12655_v44, %v2143_v53  ;;  %v12963_v45 = vpop.f32.mrf.mxu1 }
 0x1c6   : > { %16745 = vst [vmem:[#allocation13_spill] sm:$0xff] %v12939_v35  ;;  %v2157_v31 = vadd.f32 %v10348_v49, %v16749_v12  ;;  %v12959_v27 = vadd.f32 %v2421_v15, %v2154_v55  ;;  %v3894_v46 = vmul.u32 18, %v3893_v51  ;;  %vm4194_vm12 = vcmp.ne.s32.totalorder %v12928_v40, 0  ;;  %vm13032_vm8 = vmand %vm4225_vm7, %vm4189_vm6 }
 0x1c7   : > { %16746 = vst [vmem:[#allocation53_spill] sm:$0xff] %v12950_v26  ;;  %16747 = vst [vmem:[#allocation54_spill] sm:$0xff] %v12953_v58  ;;  %v12961_v32 = vpop.f32.mrf.mxu0  ;;  %vm4230_vm14 = vcmp.lt.s32.totalorder %v12928_v40, 0  ;;  %v12968_v54 = vsub.s32 %v12766_v48, %v3916_v30  ;;  %v3949_v52 = vmul.u32 18, %v3948_v34  ;;  %v3927_v44 = vmul.u32 18, %v3926_v23  ;;  %v12976_v55 = vpop.f32.mrf.mxu1  ;;  %v16754_v30 = vld [vmem:[#allocation10_spill] sm:$0xff] }
 0x1c8   : > { %16748 = vst [vmem:[#allocation55_spill] sm:$0xff] %v12956_v36  ;;  %16750 = vst [vmem:[#allocation8_spill] sm:$0xff] %v12959_v27  ;;  %v12970_v17 = vadd.f32 %v10386_v13, %v2157_v31  ;;  %v12973_v53 = vmul.u32.u64.low 3817748708, %v12936_v18  ;;  %v12974_v15 = vmul.u32.u64.high 3817748708, %v12936_v18, %v12973_v53  ;;  %v12979_v49 = vadd.s32 18, %v12928_v40 }
 0x1c9   : > { %16751 = vst [vmem:[#allocation56_spill] sm:$0xff] %v12968_v54  ;;  %v10391_v51 = vpop.f32.mrf.mxu0  ;;  %vm4192_vm15 = vcmp.ne.s32.totalorder %v12953_v58, 0  ;;  %vm4228_vm3 = vcmp.lt.s32.totalorder %v12953_v58, 0  ;;  %v3959_v48 = vshrl.u32 %v12922_v62, 4  ;;  %v12988_v34 = vadd.s32 18, %v12953_v58  ;;  %v12998_v42 = vpop.f32.mrf.mxu1  ;;  %vm13049_vm2 = vmand %vm4230_vm14, %vm4194_vm12 }
 0x1ca   : > { %16752 = vst [vmem:[#allocation57_spill] sm:$0xff] %v12970_v17  ;;  %16753 = vst [vmem:[#allocation58_spill] sm:$0xff] %v12979_v49  ;;  %v12985_v13 = vadd.f32 %v10391_v51, %v16754_v30  ;;  %v12991_v23 = vsub.s32 %v12790_v19, %v3894_v46  ;;  %v12994_v12 = vadd.s32 128, %v12457_v4  ;;  %v2147_v31 = vadd.f32 %v12792_v10, %v12635_v14  ;;  %v16758_v30 = vld [vmem:[#allocation16_spill] sm:$0xff]  ;;  %v16790_v49 = vld [vmem:[#allocation9_spill] sm:$0xff] }
 0x1cb   : > { %16755 = vst [vmem:[#allocation10_spill] sm:$0xff] %v12988_v34  ;;  %v2732_v53 = vpop.f32.mrf.mxu0  ;;  %v13002_v62 = vsub.s32 %v12799_v60, %v3949_v52  ;;  %v13005_v51 = vadd.s32 152, %v12457_v4  ;;  %v13012_v46 = vsub.s32 %v12802_v33, %v3927_v44  ;;  %v3937_v14 = vshrl.u32 %v12943_v39, 4  ;;  %v13017_v6 = vpop.f32.mrf.mxu1  ;;  %vm13063_vm11 = vmand %vm4228_vm3, %vm4192_vm15 }
 0x1cc   : > { %16756 = vst [vmem:[#allocation59_spill] sm:$0xff] %v12991_v23  ;;  %v13008_v19 = vadd.f32 %v2732_v53, %v16758_v30  ;;  %v2151_v10 = vadd.f32 %v12892_v38, %v12645_v28  ;;  %v13020_v60 = vadd.s32 18, %v12968_v54  ;;  %v3960_v52 = vmul.u32 18, %v3959_v48  ;;  %v16761_v30 = vld [vmem:[#allocation15_spill] sm:$0xff] }
 0x1cd   : > { %16757 = vst [vmem:[#allocation60_spill] sm:$0xff] %v13002_v62  ;;  %16759 = vst [vmem:[#allocation16_spill] sm:$0xff] %v13012_v46  ;;  %v10392_v25 = vpop.f32.mrf.mxu0  ;;  %v13023_v53 = vadd.s32 136, %v12457_v4  ;;  %v16762_v33 = vmov 0  ;;  %v13038_v28 = vmul.u32.u64.low 3817748708, %v12994_v12  ;;  %v13039_v38 = vmul.u32.u64.high 3817748708, %v12994_v12, %v13038_v28  ;;  %v13043_v44 = vpop.f32.mrf.mxu1 }
 0x1ce   : > { %16760 = vst [vmem:[#allocation61_spill] sm:$0xff] %v13020_v60  ;;  %v13026_v24 = vadd.f32 %v10392_v25, %v16761_v30  ;;  %v16763_v33 = vsel %vm13032_vm8, 4294967295, %v16762_v33  ;;  %v16765_v25 = vmov 0  ;;  %v16768_v28 = vmov 0 }
 0x1cf   : > { %16764 = vst [vmem:[#allocation15_spill] sm:$0xff] %v16763_v33  ;;  %v13041_v39 = vpop.f32.mrf.mxu0  ;;  %v16766_v25 = vsel %vm13049_vm2, 4294967295, %v16765_v25  ;;  %v13056_v48 = vmul.u32.u64.low 3817748708, %v13005_v51  ;;  %v13057_v30 = vmul.u32.u64.high 3817748708, %v13005_v51, %v13056_v48  ;;  %v16769_v28 = vsel %vm13063_vm11, 4294967295, %v16768_v28  ;;  %v13070_v35 = vpop.f32.mrf.mxu1 }
 0x1d0   : > { %16767 = vst [vmem:[#allocation62_spill] sm:$0xff] %v16766_v25  ;;  %16770 = vst [vmem:[#allocation63_spill] sm:$0xff] %v16769_v28  ;;  %vm4234_vm12 = vcmp.lt.s32.totalorder %v13002_v62, 0  ;;  %vm4196_vm14 = vcmp.ne.s32.totalorder %v13012_v46, 0  ;;  %v3938_v57 = vmul.u32 18, %v3937_v14  ;;  %v3992_v17 = vshrl.u32 %v12974_v15, 4 }
 0x1d1   : > { %v10395_v27 = vpop.f32.mrf.mxu0  ;;  %vm16771_vm7 = vcmp.ne.s32.totalorder %v12968_v54, 0  ;;  %vm16772_vm6 = vcmp.lt.s32.totalorder %v12968_v54, 0  ;;  %v16773_v48 = vmov 0  ;;  %v13082_v0 = vsub.s32 %v12877_v11, %v3960_v52  ;;  %v16777_v15 = vld [vmem:[#allocation20_spill] sm:$0xff] }
 0x1d2   : > { %vm13076_vm10 = vmand %vm16772_vm6, %vm16771_vm7  ;;  %v13085_v14 = vmul.u32.u64.low 3817748708, %v13023_v53  ;;  %v13086_v22 = vmul.u32.u64.high 3817748708, %v13023_v53, %v13085_v14  ;;  %v13089_v36 = vadd.f32 %v10395_v27, %v16777_v15  ;;  %vm16778_vm15 = vcmp.ne.s32.totalorder %v12991_v23, 0  ;;  %v13113_v15 = vpop.f32.mrf.mxu1 }
 0x1d3   : > { %v16774_v48 = vsel %vm13076_vm10, 4294967295, %v16773_v48  ;;  %16776 = vst [vmem:[#allocation65_spill] sm:$0xff] %v13082_v0  ;;  %vm16779_vm6 = vcmp.lt.s32.totalorder %v12991_v23, 0  ;;  %v16780_v11 = vmov 0  ;;  %v13108_v27 = vadd.s32 18, %v12991_v23  ;;  %v2748_v14 = vpop.f32.mrf.mxu0 }
 0x1d4   : > { %16775 = vst [vmem:[#allocation64_spill] sm:$0xff] %v16774_v48  ;;  %vm13103_vm7 = vmand %vm16779_vm6, %vm16778_vm15  ;;  %v13111_v52 = vadd.f32 %v12739_v2, %v2147_v31  ;;  %vm16784_vm3 = vcmp.ne.s32.totalorder %v13002_v62, 0  ;;  %v16785_v8 = vmov 0  ;;  %v13128_v40 = vadd.s32 18, %v13002_v62  ;;  %v16818_v48 = vld [vmem:[#allocation18_spill] sm:$0xff] }
 0x1d5   : > { %v16781_v11 = vsel %vm13103_vm7, 4294967295, %v16780_v11  ;;  %16783 = vst [vmem:[#allocation66_spill] sm:$0xff] %v13108_v27  ;;  %vm13123_vm15 = vmand %vm4234_vm12, %vm16784_vm3  ;;  %v13131_v2 = vadd.s32 18, %v13012_v46  ;;  %v2155_v31 = vadd.f32 %v12961_v32, %v12652_v43  ;;  %v13136_v28 = vadd.f32 %v2748_v14, %v16790_v49  ;;  %v10396_v7 = vpop.f32.mrf.mxu0  ;;  %v13152_v43 = vpop.f32.mrf.mxu1  ;;  %v16796_v49 = vld [vmem:[#allocation12_spill] sm:$0xff] }
 0x1d6   : > { %16782 = vst [vmem:[#allocation20_spill] sm:$0xff] %v16781_v11  ;;  %v16786_v8 = vsel %vm13123_vm15, 4294967295, %v16785_v8  ;;  %16788 = vst [vmem:[#allocation68_spill] sm:$0xff] %v13128_v40  ;;  %vm16791_vm6 = vcmp.lt.s32.totalorder %v13012_v46, 0  ;;  %v16792_v3 = vmov 0  ;;  %v13147_v58 = vsub.s32 %v12913_v29, %v3938_v57 }
 0x1d7   : > { %16787 = vst [vmem:[#allocation67_spill] sm:$0xff] %v16786_v8  ;;  %16789 = vst [vmem:[#allocation69_spill] sm:$0xff] %v13131_v2  ;;  %v3993_v34 = vmul.u32 18, %v3992_v17  ;;  %v13150_v25 = vadd.f32 %v12811_v1, %v2151_v10  ;;  %vm4235_vm3 = vcmp.lt.s32.totalorder %v13082_v0, 0  ;;  %v13161_v14 = vadd.f32 %v10396_v7, %v16796_v49  ;;  %v13171_v17 = vpop.f32.mrf.mxu0  ;;  %v13173_v10 = vpop.f32.mrf.mxu1 }
 0x1d8   : > { %vm13142_vm12 = vmand %vm16791_vm6, %vm4196_vm14  ;;  %16795 = vst [vmem:[#allocation70_spill] sm:$0xff] %v13147_v58  ;;  %vm4199_vm14 = vcmp.ne.s32.totalorder %v13082_v0, 0  ;;  %v3970_v1 = vshrl.u32 %v13039_v38, 4  ;;  %v13169_v29 = vadd.s32 176, %v12457_v4  ;;  %v13184_v57 = vadd.s32 18, %v13082_v0 }
 0x1d9   : > { %v16793_v3 = vsel %vm13142_vm12, 4294967295, %v16792_v3  ;;  %v4003_v38 = vshrl.u32 %v13057_v30, 4  ;;  %v13188_v32 = vadd.f32 %v12915_v59, %v2155_v31  ;;  %vm13190_vm6 = vmand %vm4235_vm3, %vm4199_vm14  ;;  %v16798_v23 = vmov 0  ;;  %v10399_v46 = vpop.f32.mrf.mxu0  ;;  %v13203_v30 = vpop.f32.mrf.mxu1 }
 0x1da   : > { %16794 = vst [vmem:[#allocation9_spill] sm:$0xff] %v16793_v3  ;;  %16797 = vst [vmem:[#allocation12_spill] sm:$0xff] %v13184_v57  ;;  %v16799_v23 = vsel %vm13190_vm6, 4294967295, %v16798_v23  ;;  %vm4197_vm7 = vcmp.ne.s32.totalorder %v13147_v58, 0  ;;  %vm4233_vm15 = vcmp.lt.s32.totalorder %v13147_v58, 0  ;;  %v13197_v7 = vsub.s32 %v12936_v18, %v3993_v34  ;;  %v16803_v3 = vld [vmem:[#allocation19_spill] sm:$0xff] }
 0x1db   : > { %16800 = vst [vmem:[#allocation71_spill] sm:$0xff] %v16799_v23  ;;  %v13201_v49 = vadd.f32 %v12931_v47, %v12985_v13  ;;  %v13206_v59 = vadd.s32 18, %v13147_v58  ;;  %v3981_v31 = vshrl.u32 %v13086_v22, 4  ;;  %v13210_v2 = vadd.s32 160, %v12457_v4  ;;  %v2764_v8 = vpop.f32.mrf.mxu0  ;;  %v13225_v22 = vpop.f32.mrf.mxu1  ;;  %vm13235_vm14 = vmand %vm4233_vm15, %vm4197_vm7 }
 0x1dc   : > { %16801 = vst [vmem:[#allocation72_spill] sm:$0xff] %v13197_v7  ;;  %v13213_v62 = vadd.f32 %v10399_v46, %v16803_v3  ;;  %v3971_v18 = vmul.u32 18, %v3970_v1  ;;  %v13216_v34 = vmul.u32.u64.low 3817748708, %v13169_v29  ;;  %v13217_v40 = vmul.u32.u64.high 3817748708, %v13169_v29, %v13216_v34 }
 0x1dd   : > { %16802 = vst [vmem:[#allocation73_spill] sm:$0xff] %v13206_v59  ;;  %v13221_v47 = vadd.f32 %v12945_v5, %v13008_v19  ;;  %v2876_v13 = vadd.f32 %v13041_v39, %v12693_v21  ;;  %v16804_v46 = vmov 0  ;;  %v4004_v5 = vmul.u32 18, %v4003_v38  ;;  %v16807_v19 = vld [vmem:[#allocation21_spill] sm:$0xff]  ;;  %v10400_v34 = vpop.f32.mrf.mxu0  ;;  %v13249_v3 = vpop.f32.mrf.mxu1 }
 0x1de   : > { %v16805_v46 = vsel %vm13235_vm14, 4294967295, %v16804_v46  ;;  %v13240_v1 = vadd.f32 %v2764_v8, %v16807_v19  ;;  %vm4202_vm3 = vcmp.ne.s32.totalorder %v13197_v7, 0  ;;  %v13244_v21 = vadd.s32 184, %v12457_v4  ;;  %v16808_v8 = vld [vmem:[#allocation17_spill] sm:$0xff] }
 0x1df   : > { %16806 = vst [vmem:[#allocation19_spill] sm:$0xff] %v16805_v46  ;;  %v13247_v39 = vadd.s32 168, %v12457_v4  ;;  %vm4238_vm7 = vcmp.lt.s32.totalorder %v13197_v7, 0  ;;  %v3982_v0 = vmul.u32 18, %v3981_v31  ;;  %v13257_v19 = vadd.f32 %v10400_v34, %v16808_v8  ;;  %v11034_v31 = vld [vmem:[%s16466_s3 + $0x10] sm:$0xff]   ;;  %v2767_v54 = vpop.f32.mrf.mxu0  ;;  %v13270_v60 = vpop.f32.mrf.mxu1 }
 0x1e0   : > { %v13253_v57 = vmul.u32.u64.low 3817748708, %v13210_v2  ;;  %v13254_v38 = vmul.u32.u64.high 3817748708, %v13210_v2, %v13253_v57  ;;  %v13264_v27 = vsub.s32 %v12994_v12, %v3971_v18  ;;  %v5168_v11 = vshrl.u32 %v12865_v16, 16  ;;  %vm13284_vm15 = vmand %vm4238_vm7, %vm4202_vm3  ;;  %10577 = vmatprep.subr.bf16.mxu1 %v11034_v31 }
 0x1e1   : > { %v13273_v57 = vadd.s32 18, %v13197_v7  ;;  %v13276_v34 = vsub.s32 %v13005_v51, %v4004_v5  ;;  %v5170_v8 = vshll.u32 %v12865_v16, 16  ;;  %v4036_v12 = vshrl.u32 %v13217_v40, 4  ;;  %v10403_v31 = vpop.f32.mrf.mxu0  ;;  %v13307_v46 = vpop.f32.mrf.mxu1 }
 0x1e2   : > { %16809 = vst [vmem:[#allocation21_spill] sm:$0xff] %v13264_v27  ;;  %v16812_v18 = vmov 0  ;;  %v13289_v23 = vmul.u32.u64.low 3817748708, %v13244_v21  ;;  %v13290_v58 = vmul.u32.u64.high 3817748708, %v13244_v21, %v13289_v23  ;;  %v13298_v16 = vadd.f32 %v12963_v45, %v13026_v24 }
 0x1e3   : > { %16810 = vst [vmem:[#allocation17_spill] sm:$0xff] %v13273_v57  ;;  %16811 = vst [vmem:[#allocation74_spill] sm:$0xff] %v13276_v34  ;;  %v16813_v18 = vsel %vm13284_vm15, 4294967295, %v16812_v18  ;;  %v13293_v51 = vmul.u32.u64.low 3817748708, %v13247_v39  ;;  %v13294_v5 = vmul.u32.u64.high 3817748708, %v13247_v39, %v13293_v51  ;;  %v13301_v40 = vadd.f32 %v12976_v55, %v2876_v13  ;;  %v2780_v45 = vpop.f32.mrf.mxu0  ;;  %v13320_v55 = vpop.f32.mrf.mxu1 }
 0x1e4   : > { %16814 = vst [vmem:[#allocation75_spill] sm:$0xff] %v16813_v18  ;;  %v13305_v59 = vadd.f32 %v12998_v42, %v13089_v36  ;;  %v13310_v23 = vsub.s32 %v13023_v53, %v3982_v0  ;;  %v13313_v26 = vadd.f32 %v10403_v31, %v16818_v48  ;;  %v13318_v24 = vadd.s32 208, %v12457_v4  ;;  %v16820_v48 = vld [vmem:[#allocation22_spill] sm:$0xff] }
 0x1e5   : > { %16815 = vst [vmem:[#allocation76_spill] sm:$0xff] %v13301_v40  ;;  %v13327_v0 = vadd.s32 18, %v13264_v27  ;;  %v4037_v36 = vmul.u32 18, %v4036_v12  ;;  %v4014_v53 = vshrl.u32 %v13254_v38, 4  ;;  %v13331_v13 = vadd.f32 %v2780_v45, %v16820_v48  ;;  %v10404_v33 = vpop.f32.mrf.mxu0  ;;  %v13337_v18 = vpop.f32.mrf.mxu1  ;;  %v16825_v12 = vld [vmem:[#allocation26_spill] sm:$0xff] }
 0x1e6   : > { %16816 = vst [vmem:[#allocation77_spill] sm:$0xff] %v13305_v59  ;;  %16817 = vst [vmem:[#allocation78_spill] sm:$0xff] %v13310_v23  ;;  %vm4239_vm3 = vcmp.lt.s32.totalorder %v13276_v34, 0  ;;  %v5172_v51 = vrot.slane %v5170_v8, 1  ;;  %v2880_v31 = vadd.f32 %v13171_v17, %v12710_v37  ;;  %vm16821_vm15 = vcmp.ne.s32.totalorder %v13264_v27, 0 }
 0x1e7   : > { %16819 = vst [vmem:[#allocation18_spill] sm:$0xff] %v13327_v0  ;;  %vm16822_vm14 = vcmp.lt.s32.totalorder %v13264_v27, 0  ;;  %v16823_v38 = vmov 0  ;;  %vm4201_vm12 = vcmp.ne.s32.totalorder %v13310_v23, 0  ;;  %vm4237_vm7 = vcmp.lt.s32.totalorder %v13310_v23, 0  ;;  %v2783_v7 = vpop.f32.mrf.mxu0  ;;  %v13366_v57 = vpop.f32.mrf.mxu1 }
 0x1e8   : > { %vm13343_vm6 = vmand %vm16822_vm14, %vm16821_vm15  ;;  %v13350_v8 = vadd.s32 192, %v12457_v4  ;;  %v13353_v37 = vadd.f32 %v10404_v33, %v16825_v12  ;;  %v13356_v17 = vadd.s32 18, %v13276_v34  ;;  %v13364_v42 = vadd.f32 %v13017_v6, %v13136_v28 }
 0x1e9   : > { %v16824_v38 = vsel %vm13343_vm6, 4294967295, %v16823_v38  ;;  %v13359_v45 = vmul.u32.u64.low 3817748708, %v13318_v24  ;;  %v13360_v48 = vmul.u32.u64.high 3817748708, %v13318_v24, %v13359_v45  ;;  %vm16828_vm14 = vcmp.ne.s32.totalorder %v13276_v34, 0 }
 0x1ea   : > { %16826 = vst [vmem:[#allocation22_spill] sm:$0xff] %v13356_v17  ;;  %16827 = vst [vmem:[#allocation26_spill] sm:$0xff] %v13364_v42  ;;  %v16829_v33 = vmov 0  ;;  %v13377_v12 = vadd.s32 18, %v13310_v23  ;;  %v13380_v45 = vsub.s32 %v13169_v29, %v4037_v36  ;;  %v4015_v59 = vmul.u32 18, %v4014_v53 }
 0x1eb   : > { %vm13372_vm15 = vmand %vm4239_vm3, %vm16828_vm14  ;;  %v13384_v6 = vadd.f32 %v13043_v44, %v13161_v14  ;;  %v16834_v42 = vmov 0  ;;  %v4047_v40 = vshrl.u32 %v13290_v58, 4  ;;  %v4025_v29 = vshrl.u32 %v13294_v5, 4  ;;  %v10407_v44 = vpop.f32.mrf.mxu0  ;;  %v13401_v14 = vpop.f32.mrf.mxu1 }
 0x1ec   : > { %v16830_v33 = vsel %vm13372_vm15, 4294967295, %v16829_v33  ;;  %16832 = vst [vmem:[#allocation80_spill] sm:$0xff] %v13377_v12  ;;  %16833 = vst [vmem:[#allocation81_spill] sm:$0xff] %v13380_v45  ;;  %v13399_v36 = vadd.f32 %v13070_v35, %v2880_v31  ;;  %v13403_v53 = vor.u32 %v5172_v51, %v5168_v11  ;;  %v13411_v0 = vadd.f32 %v13113_v15, %v13213_v62 }
 0x1ed   : > { %16831 = vst [vmem:[#allocation79_spill] sm:$0xff] %v16830_v33  ;;  %vm13392_vm3 = vmand %vm4237_vm7, %vm4201_vm12  ;;  %v13406_v28 = vmul.u32.u64.low 3817748708, %v13350_v8  ;;  %v13407_v27 = vmul.u32.u64.high 3817748708, %v13350_v8, %v13406_v28  ;;  %v2884_v58 = vadd.f32 %v2767_v54, %v12749_v63  ;;  %v13415_v5 = vadd.f32 %v10407_v44, %v12607_v61  ;;  %v2796_v51 = vpop.f32.mrf.mxu0  ;;  %v13425_v31 = vpop.f32.mrf.mxu1 }
 0x1ee   : > { %v16835_v42 = vsel %vm13392_vm3, 4294967295, %v16834_v42  ;;  %16837 = vst [vmem:[#allocation83_spill] sm:$0xff] %v13403_v53  ;;  %v13423_v11 = vadd.f32 %v13152_v43, %v13240_v1  ;;  %v13433_v61 = vsub.s32 %v13210_v2, %v4015_v59  ;;  %v13436_v63 = vadd.f32 %v2796_v51, %v12626_v9 }
 0x1ef   : > { %16836 = vst [vmem:[#allocation82_spill] sm:$0xff] %v16835_v42  ;;  %v4048_v62 = vmul.u32 18, %v4047_v40  ;;  %v4026_v15 = vmul.u32 18, %v4025_v29  ;;  %v4080_v43 = vshrl.u32 %v13360_v48, 4  ;;  %v10408_v1 = vpop.f32.mrf.mxu0  ;;  %v13439_v28 = vpop.f32.mrf.mxu1  ;;  %vm4242_vm7 = vcmp.lt.s32.totalorder %v13380_v45, 0 }
 0x1f0   : > { %16838 = vst [vmem:[#allocation84_spill] sm:$0xff] %v13433_v61  ;;  %v4058_v44 = vshrl.u32 %v13407_v27, 4  ;;  %v13444_v54 = vadd.s32 216, %v12457_v4  ;;  %v13447_v2 = vadd.s32 200, %v12457_v4  ;;  %v13451_v9 = vadd.f32 %v13173_v10, %v13257_v19 }
 0x1f1   : > { %v13454_v59 = vadd.f32 %v13203_v30, %v2884_v58  ;;  %v13457_v40 = vadd.f32 %v10408_v1, %v12647_v20  ;;  %v13460_v48 = vadd.s32 18, %v13380_v45  ;;  %v2799_v27 = vpop.f32.mrf.mxu0  ;;  %v13462_v29 = vpop.f32.mrf.mxu1  ;;  %vm4204_vm14 = vcmp.ne.s32.totalorder %v13433_v61, 0 }
 0x1f2   : > { %vm4240_vm12 = vcmp.lt.s32.totalorder %v13433_v61, 0  ;;  %v4081_v51 = vmul.u32 18, %v4080_v43  ;;  %v13467_v10 = vadd.s32 240, %v12457_v4  ;;  %vm16840_vm3 = vcmp.ne.s32.totalorder %v13380_v45, 0 }
 0x1f3   : > { %16839 = vst [vmem:[#allocation85_spill] sm:$0xff] %v13460_v48  ;;  %vm13471_vm15 = vmand %vm4242_vm7, %vm16840_vm3  ;;  %v16841_v30 = vmov 0  ;;  %v13476_v20 = vsub.s32 %v13244_v21, %v4048_v62  ;;  %v13479_v19 = vsub.s32 %v13247_v39, %v4026_v15  ;;  %v13487_v43 = vadd.f32 %v13225_v22, %v13313_v26  ;;  %v10411_v35 = vpop.f32.mrf.mxu0  ;;  %v13489_v53 = vpop.f32.mrf.mxu1 }
 0x1f4   : > { %v16842_v30 = vsel %vm13471_vm15, 4294967295, %v16841_v30  ;;  %v13482_v58 = vmul.u32.u64.low 3817748708, %v13444_v54  ;;  %v13483_v1 = vmul.u32.u64.high 3817748708, %v13444_v54, %v13482_v58  ;;  %v4059_v23 = vmul.u32 18, %v4058_v44  ;;  %vm13518_vm3 = vmand %vm4240_vm12, %vm4204_vm14 }
 0x1f5   : > { %16843 = vst [vmem:[#allocation86_spill] sm:$0xff] %v16842_v30  ;;  %16844 = vst [vmem:[#allocation87_spill] sm:$0xff] %v13476_v20  ;;  %v13492_v12 = vmul.u32.u64.low 3817748708, %v13447_v2  ;;  %v13493_v42 = vmul.u32.u64.high 3817748708, %v13447_v2, %v13492_v12  ;;  %v2897_v21 = vadd.f32 %v10411_v35, %v12678_v56  ;;  %v13497_v39 = vadd.s32 18, %v13433_v61  ;;  %v2812_v44 = vpop.f32.mrf.mxu0  ;;  %v13508_v58 = vpop.f32.mrf.mxu1 }
 0x1f6   : > { %16845 = vst [vmem:[#allocation88_spill] sm:$0xff] %v13479_v19  ;;  %v13500_v62 = vmul.u32.u64.low 3817748708, %v13467_v10  ;;  %v13501_v15 = vmul.u32.u64.high 3817748708, %v13467_v10, %v13500_v62  ;;  %v13505_v26 = vadd.f32 %v13249_v3, %v13331_v13  ;;  %v2888_v22 = vadd.f32 %v2783_v7, %v12890_v41 }
 0x1f7   : > { %16846 = vst [vmem:[#allocation89_spill] sm:$0xff] %v13497_v39  ;;  %v16847_v12 = vmov 0  ;;  %v13523_v3 = vsub.s32 %v13318_v24, %v4081_v51  ;;  %v2895_v41 = vadd.f32 %v2812_v44, %v12701_v50  ;;  %vm4207_vm7 = vcmp.ne.s32.totalorder %v13476_v20, 0  ;;  %v10412_v7 = vpop.f32.mrf.mxu0  ;;  %v13529_v13 = vpop.f32.mrf.mxu1  ;;  %v16852_v51 = vld [vmem:[#allocation36_spill] sm:$0xff] }
 0x1f8   : > { %v16848_v12 = vsel %vm13518_vm3, 4294967295, %v16847_v12  ;;  %vm4243_vm6 = vcmp.lt.s32.totalorder %v13476_v20, 0  ;;  %vm4205_vm10 = vcmp.ne.s32.totalorder %v13479_v19, 0  ;;  %v13533_v35 = vsub.s32 %v13350_v8, %v4059_v23 }
 0x1f9   : > { %16849 = vst [vmem:[#allocation90_spill] sm:$0xff] %v16848_v12  ;;  %16850 = vst [vmem:[#allocation91_spill] sm:$0xff] %v13523_v3  ;;  %v4091_v62 = vshrl.u32 %v13483_v1, 4  ;;  %v13537_v24 = vadd.s32 224, %v12457_v4  ;;  %v13541_v50 = vadd.f32 %v13270_v60, %v13353_v37  ;;  %v2898_v44 = vadd.f32 %v10412_v7, %v16852_v51  ;;  %v2815_v23 = vpop.f32.mrf.mxu0  ;;  %v13549_v8 = vpop.f32.mrf.mxu1  ;;  %v16862_v12 = vld [vmem:[#allocation27_spill] sm:$0xff] }
 0x1fa   : > { %16851 = vst [vmem:[#allocation92_spill] sm:$0xff] %v13533_v35  ;;  %v4069_v45 = vshrl.u32 %v13493_v42, 4  ;;  %vm13555_vm12 = vmand %vm4243_vm6, %vm4207_vm7  ;;  %v16853_v1 = vmov 0  ;;  %v13560_v60 = vadd.s32 18, %v13476_v20  ;;  %v13563_v37 = vadd.s32 18, %v13479_v19  ;;  %v16877_v20 = vld [vmem:[#allocation42_spill] sm:$0xff] }
 0x1fb   : > { %v16854_v1 = vsel %vm13555_vm12, 4294967295, %v16853_v1  ;;  %vm4210_vm14 = vcmp.ne.s32.totalorder %v13523_v3, 0  ;;  %vm4246_vm15 = vcmp.lt.s32.totalorder %v13523_v3, 0  ;;  %vm16858_vm3 = vcmp.lt.s32.totalorder %v13479_v19, 0  ;;  %v10415_v30 = vpop.f32.mrf.mxu0  ;;  %v13584_v34 = vpop.f32.mrf.mxu1 }
 0x1fc   : > { %16855 = vst [vmem:[#allocation36_spill] sm:$0xff] %v16854_v1  ;;  %16856 = vst [vmem:[#allocation93_spill] sm:$0xff] %v13560_v60  ;;  %v16859_v42 = vmov 0  ;;  %v4092_v7 = vmul.u32 18, %v4091_v62  ;;  %v4124_v51 = vshrl.u32 %v13501_v15, 4  ;;  %v13581_v39 = vadd.f32 %v13307_v46, %v2888_v22  ;;  %v16863_v15 = vld [vmem:[#allocation38_spill] sm:$0xff] }
 0x1fd   : > { %16857 = vst [vmem:[#allocation94_spill] sm:$0xff] %v13563_v37  ;;  %vm13571_vm11 = vmand %vm16858_vm3, %vm4205_vm10  ;;  %v13577_v56 = vmul.u32.u64.low 3817748708, %v13537_v24  ;;  %v13578_v61 = vmul.u32.u64.high 3817748708, %v13537_v24, %v13577_v56  ;;  %v2892_v48 = vadd.f32 %v2799_v27, %v16862_v12  ;;  %vm4208_vm10 = vcmp.ne.s32.totalorder %v13533_v35, 0  ;;  %v2828_v22 = vpop.f32.mrf.mxu0  ;;  %v13602_v12 = vpop.f32.mrf.mxu1 }
 0x1fe   : > { %v16860_v42 = vsel %vm13571_vm11, 4294967295, %v16859_v42  ;;  %vm4244_vm6 = vcmp.lt.s32.totalorder %v13533_v35, 0  ;;  %v13590_v62 = vadd.f32 %v13320_v55, %v13415_v5  ;;  %v13593_v17 = vadd.f32 %v10415_v30, %v16863_v15  ;;  %vm13616_vm3 = vmand %vm4246_vm15, %vm4210_vm14  ;;  %v16870_v30 = vld [vmem:[#allocation11_spill] sm:$0xff] }
 0x1ff   : > { %16861 = vst [vmem:[#allocation95_spill] sm:$0xff] %v16860_v42  ;;  %v13596_v56 = vadd.s32 18, %v13523_v3  ;;  %v4070_v46 = vmul.u32 18, %v4069_v45  ;;  %v13600_v27 = vadd.f32 %v13337_v18, %v13436_v63  ;;  %v16865_v18 = vmov 0  ;;  %vm13634_vm7 = vmand %vm4244_vm6, %vm4208_vm10 }
 0x200   : > { %v16866_v18 = vsel %vm13616_vm3, 4294967295, %v16865_v18  ;;  %v13621_v45 = vadd.s32 18, %v13533_v35  ;;  %v13625_v63 = vadd.f32 %v13366_v57, %v13457_v40  ;;  %v13628_v15 = vadd.f32 %v2828_v22, %v16870_v30  ;;  %v10416_v40 = vpop.f32.mrf.mxu0 }
 0x201   : > { %16864 = vst [vmem:[#allocation27_spill] sm:$0xff] %v13596_v56  ;;  %16867 = vst [vmem:[#allocation38_spill] sm:$0xff] %v16866_v18  ;;  %v16871_v5 = vmov 0  ;;  %v13639_v55 = vsub.s32 %v13444_v54, %v4092_v7  ;;  %v4125_v19 = vmul.u32 18, %v4124_v51  ;;  %v13642_v37 = vadd.f32 %v13401_v14, %v2892_v48  ;;  %v13657_v54 = vpop.f32.mrf.mxu1 }
 0x202   : > { %16868 = vst [vmem:[#allocation96_spill] sm:$0xff] %v13621_v45  ;;  %16869 = vst [vmem:[#allocation97_spill] sm:$0xff] %v13625_v63  ;;  %v16872_v5 = vsel %vm13634_vm7, 4294967295, %v16871_v5  ;;  %v13645_v57 = vadd.f32 %v13425_v31, %v2897_v21  ;;  %v4102_v22 = vshrl.u32 %v13578_v61, 4  ;;  %v13649_v30 = vadd.s32 248, %v12457_v4  ;;  %v16878_v61 = vld [vmem:[#allocation55_spill] sm:$0xff]  ;;  %v2831_v21 = vpop.f32.mrf.mxu0 }
 0x203   : > { %16873 = vst [vmem:[#allocation11_spill] sm:$0xff] %v16872_v5  ;;  %16874 = vst [vmem:[#allocation98_spill] sm:$0xff] %v13642_v37  ;;  %v13652_v42 = vadd.f32 %v13439_v28, %v2895_v41  ;;  %v13655_v60 = vadd.f32 %v10416_v40, %v16877_v20  ;;  %v13664_v31 = vsub.s32 %v13447_v2, %v4070_v46  ;;  %v13672_v20 = vadd.s32 232, %v12457_v4  ;;  %v16881_v28 = vld [vmem:[#allocation46_spill] sm:$0xff] }
 0x204   : > { %16875 = vst [vmem:[#allocation99_spill] sm:$0xff] %v13645_v57  ;;  %v2896_v48 = vadd.f32 %v2815_v23, %v16878_v61  ;;  %v13675_v41 = vadd.s32 272, %v12457_v4  ;;  %v13678_v7 = vadd.f32 %v13462_v29, %v2898_v44  ;;  %vm4211_vm15 = vcmp.ne.s32.totalorder %v13639_v55, 0  ;;  %v10419_v51 = vpop.f32.mrf.mxu0  ;;  %v13695_v29 = vpop.f32.mrf.mxu1 }
 0x205   : > { %16876 = vst [vmem:[#allocation100_spill] sm:$0xff] %v13652_v42  ;;  %v13682_v2 = vsub.s32 %v13467_v10, %v4125_v19  ;;  %v4103_v23 = vmul.u32 18, %v4102_v22  ;;  %v13686_v46 = vmul.u32.u64.low 3817748708, %v13649_v30  ;;  %v13687_v40 = vmul.u32.u64.high 3817748708, %v13649_v30, %v13686_v46 }
 0x206   : > { %16879 = vst [vmem:[#allocation42_spill] sm:$0xff] %v13678_v7  ;;  %v13690_v61 = vadd.s32 256, %v12457_v4  ;;  %v13693_v14 = vadd.f32 %v10419_v51, %v16881_v28  ;;  %v13698_v44 = vadd.s32 18, %v13639_v55  ;;  %v13702_v10 = vadd.s32 280, %v12457_v4  ;;  %v2844_v19 = vpop.f32.mrf.mxu0  ;;  %v16882_v28 = vld [vmem:[#allocation50_spill] sm:$0xff]  ;;  %v16884_v7 = vld [vmem:[#allocation51_spill] sm:$0xff]  ;;  %v3294_v42 = vpop.f32.mrf.mxu1 }
 0x207   : > { %16880 = vst [vmem:[#allocation55_spill] sm:$0xff] %v13682_v2  ;;  %v13705_v22 = vmul.u32.u64.low 3817748708, %v13672_v20  ;;  %v13706_v46 = vmul.u32.u64.high 3817748708, %v13672_v20, %v13705_v22  ;;  %v13709_v35 = vmul.u32.u64.low 3817748708, %v13675_v41  ;;  %v13710_v45 = vmul.u32.u64.high 3817748708, %v13675_v41, %v13709_v35 }
 0x208   : > { %v2903_v51 = vadd.f32 %v2844_v19, %v16882_v28  ;;  %v13716_v5 = vsub.s32 %v13537_v24, %v4103_v23  ;;  %v10420_v3 = vpop.f32.mrf.mxu0  ;;  %v4135_v56 = vshrl.u32 %v13687_v40, 4  ;;  %vm16885_vm6 = vcmp.lt.s32.totalorder %v13639_v55, 0 }
 0x209   : > { %v13721_v22 = vmul.u32.u64.low 3817748708, %v13690_v61  ;;  %v13722_v18 = vmul.u32.u64.high 3817748708, %v13690_v61, %v13721_v22  ;;  %v2906_v35 = vadd.f32 %v10420_v3, %v16884_v7  ;;  %vm13729_vm14 = vmand %vm16885_vm6, %vm4211_vm15  ;;  %v16886_v19 = vmov 0 }
 0x20a   : > { %16883 = vst [vmem:[#allocation46_spill] sm:$0xff] %v13716_v5  ;;  %v16887_v19 = vsel %vm13729_vm14, 4294967295, %v16886_v19  ;;  %v13734_v24 = vadd.s32 18, %v13664_v31  ;;  %v13737_v23 = vmul.u32.u64.low 3817748708, %v13702_v10  ;;  %v13738_v40 = vmul.u32.u64.high 3817748708, %v13702_v10, %v13737_v23  ;;  %v2847_v28 = vpop.f32.mrf.mxu0 }
 0x20b   : > { %vm16888_vm10 = vcmp.ne.s32.totalorder %v13664_v31, 0  ;;  %vm16889_vm7 = vcmp.lt.s32.totalorder %v13664_v31, 0  ;;  %v16890_v3 = vmov 0  ;;  %v13749_v7 = vadd.s32 18, %v13682_v2 }
 0x20c   : > { %vm13744_vm3 = vmand %vm16889_vm7, %vm16888_vm10  ;;  %v4136_v22 = vmul.u32 18, %v4135_v56  ;;  %v4113_v1 = vshrl.u32 %v13706_v46, 4  ;;  %v4168_v57 = vshrl.u32 %v13710_v45, 4  ;;  %v13754_v37 = vadd.f32 %v13489_v53, %v2896_v48  ;;  %v10423_v56 = vpop.f32.mrf.mxu0  ;;  %v16905_v46 = vld [vmem:[#allocation28_spill] sm:$0xff] }
 0x20d   : > { %v16891_v3 = vsel %vm13744_vm3, 4294967295, %v16890_v3  ;;  %16892 = vst [vmem:[#allocation50_spill] sm:$0xff] %v13749_v7  ;;  %v13758_v23 = vadd.f32 %v13508_v58, %v13593_v17  ;;  %v2900_v63 = vadd.f32 %v2831_v21, %v13111_v52  ;;  %vm16894_vm7 = vcmp.ne.s32.totalorder %v13682_v2, 0  ;;  %v16899_v58 = vld [vmem:[#allocation13_spill] sm:$0xff]  ;;  %v10461_v21 = vpop.f32.mrf.mxu1 }
 0x20e   : > { %vm16895_vm15 = vcmp.lt.s32.totalorder %v13682_v2, 0  ;;  %v16896_v33 = vmov 0  ;;  %vm4212_vm6 = vcmp.ne.s32.totalorder %v13716_v5, 0  ;;  %vm4248_vm11 = vcmp.lt.s32.totalorder %v13716_v5, 0  ;;  %v16906_v2 = vld [vmem:[#allocation24_spill] sm:$0xff] }
 0x20f   : > { %16893 = vst [vmem:[#allocation51_spill] sm:$0xff] %v13758_v23  ;;  %vm13765_vm10 = vmand %vm16895_vm15, %vm16894_vm7  ;;  %v4114_v53 = vmul.u32 18, %v4113_v1  ;;  %v4169_v45 = vmul.u32 18, %v4168_v57  ;;  %v4146_v17 = vshrl.u32 %v13722_v18, 4  ;;  %v13774_v52 = vadd.f32 %v13529_v13, %v13628_v15  ;;  %v2860_v18 = vpop.f32.mrf.mxu0 }
 0x210   : > { %v16897_v33 = vsel %vm13765_vm10, 4294967295, %v16896_v33  ;;  %v2909_v48 = vadd.f32 %v10423_v56, %v16899_v58  ;;  %v13782_v23 = vsub.s32 %v13649_v30, %v4136_v22  ;;  %v13786_v1 = vadd.f32 %v13549_v8, %v13655_v60  ;;  %v16901_v30 = vld [vmem:[#allocation8_spill] sm:$0xff]  ;;  %vm13804_vm7 = vmand %vm4248_vm11, %vm4212_vm6 }
 0x211   : > { %16898 = vst [vmem:[#allocation101_spill] sm:$0xff] %v16897_v33  ;;  %v13797_v57 = vadd.s32 18, %v13716_v5  ;;  %v2907_v22 = vadd.f32 %v2860_v18, %v16901_v30  ;;  %v16902_v8 = vmov 0  ;;  %v13809_v60 = vsub.s32 %v13672_v20, %v4114_v53  ;;  %v10424_v18 = vpop.f32.mrf.mxu0  ;;  %v16915_v53 = vld [vmem:[#allocation30_spill] sm:$0xff]  ;;  %v13872_v30 = vld [vmem:[%s16465_s2] ss:$0 sm:$0xff] }
 0x212   : > { %16900 = vst [vmem:[#allocation13_spill] sm:$0xff] %v13782_v23  ;;  %v16903_v8 = vsel %vm13804_vm7, 4294967295, %v16902_v8  ;;  %v4147_v56 = vmul.u32 18, %v4146_v17  ;;  %v4179_v58 = vshrl.u32 %v13738_v40, 4  ;;  %v13813_v15 = vadd.f32 %v13584_v34, %v2900_v63  ;;  %v16953_v17 = vld [vmem:[#allocation35_spill] sm:$0xff] }
 0x213   : > { %v2904_v13 = vadd.f32 %v2847_v28, %v13150_v25  ;;  %v16907_v7 = vsel %vm12668_vm13, %v16905_v46, %v16906_v2  ;;  %v13826_v20 = vsub.s32 %v13675_v41, %v4169_v45  ;;  %v13829_v40 = vadd.s32 264, %v12457_v4  ;;  %v16911_v25 = vld [vmem:[#allocation57_spill] sm:$0xff]  ;;  %v3307_v28 = vpop.f32.mrf.mxu1  ;;  %v16916_v45 = vld [vmem:[#allocation23_spill] sm:$0xff] }
 0x214   : > { %vm13821_vm11 = vcmp.lt.s32.totalorder %v16907_v7, 16  ;;  %v13833_v34 = vadd.f32 %v13602_v12, %v13693_v14  ;;  %v2910_v63 = vadd.f32 %v10424_v18, %v16911_v25  ;;  %v13839_v2 = vadd.f32 %v13657_v54, %v2903_v51  ;;  %v2863_v7 = vpop.f32.mrf.mxu0  ;;  %v16926_v25 = vld [vmem:[#allocation25_spill] sm:$0xff]  ;;  %v16970_v5 = vld [vmem:[#allocation43_spill] sm:$0xff] }
 0x215   : > { %16910 = vst [vmem:[#allocation8_spill] sm:$0xff] %v13826_v20  ;;  %v13842_v41 = vadd.f32 %v13695_v29, %v2906_v35  ;;  %v16917_v12 = vsel %vm12684_vm0, %v16915_v53, %v16916_v45  ;;  %v13858_v54 = vsub.s32 %v13690_v61, %v4147_v56  ;;  %v13861_v29 = vadd.s32 18, %v13782_v23  ;;  %v16925_v56 = vld [vmem:[#allocation32_spill] sm:$0xff]  ;;  %v16938_v61 = vld [vmem:[#allocation33_spill] sm:$0xff] }
 0x216   : > { %16912 = vst [vmem:[#allocation29_spill] sm:$0xff] %v13839_v2  ;;  %vm13849_vm6 = vcmp.lt.s32.totalorder %v16917_v12, 16  ;;  %v4180_v51 = vmul.u32 18, %v4179_v58  ;;  %v13865_v35 = vadd.f32 %v3294_v42, %v2904_v13  ;;  %v13867_v46 = vadd.f32 %v10461_v21, %v2909_v48  ;;  %v10467_v18 = vpop.f32.mrf.mxu0  ;;  %v10462_v48 = vpop.f32.mrf.mxu1  ;;  %v16937_v12 = vld [vmem:[#allocation37_spill] sm:$0xff] }
 0x217   : > { %16913 = vst [vmem:[#allocation28_spill] sm:$0xff] %v13842_v41  ;;  %16920 = vst [vmem:[#allocation24_spill] sm:$0xff] %v13858_v54  ;;  %v16927_v4 = vsel %vm12726_vm1, %v16925_v56, %v16926_v25  ;;  %vm16930_vm15 = vcmp.ne.s32.totalorder %v13782_v23, 0  ;;  %vm16931_vm13 = vcmp.lt.s32.totalorder %v13782_v23, 0  ;;  %v16932_v42 = vmov 0 }
 0x218   : > { %16921 = vst [vmem:[#allocation57_spill] sm:$0xff] %v13861_v29  ;;  %16922 = vst [vmem:[#allocation31_spill] sm:$0xff] %v13865_v35  ;;  %vm13879_vm0 = vcmp.lt.s32.totalorder %v16927_v4, 16  ;;  %vm4218_vm10 = vcmp.ne.s32.totalorder %v13826_v20, 0  ;;  %v3638_v21 = vadd.f32 %v10467_v18, %v13201_v49  ;;  %v13897_v13 = vsub.s32 %v13702_v10, %v4180_v51  ;;  %v3493_v58 = vpop.f32.mrf.mxu0 }
 0x219   : > { %16923 = vst [vmem:[#allocation30_spill] sm:$0xff] %v13867_v46  ;;  %vm13887_vm7 = vmand %vm16931_vm13, %vm16930_vm15  ;;  %v16939_v56 = vsel %vm12827_vm4, %v16937_v12, %v16938_v61  ;;  %vm16942_vm13 = vcmp.ne.s32.totalorder %v13809_v60, 0  ;;  %vm16943_vm3 = vcmp.lt.s32.totalorder %v13809_v60, 0  ;;  %v13917_v10 = vadd.s32 18, %v13809_v60 }
 0x21a   : > { %v16933_v42 = vsel %vm13887_vm7, 4294967295, %v16932_v42  ;;  %16935 = vst [vmem:[#allocation34_spill] sm:$0xff] %v13897_v13  ;;  %vm13904_vm15 = vcmp.lt.s32.totalorder %v16939_v56, 16  ;;  %vm13912_vm1 = vmand %vm16943_vm3, %vm16942_vm13  ;;  %v13920_v51 = vadd.s32 18, %v13826_v20  ;;  %v3681_v45 = vadd.f32 %v13872_v30, %v3638_v21 }
 0x21b   : > { %16934 = vst [vmem:[#allocation23_spill] sm:$0xff] %v16933_v42  ;;  %v13923_v18 = vmul.u32.u64.low 3817748708, %v13829_v40  ;;  %v13924_v4 = vmul.u32.u64.high 3817748708, %v13829_v40, %v13923_v18  ;;  %v3636_v12 = vadd.f32 %v3493_v58, %v13221_v47  ;;  %vm16947_vm4 = vcmp.lt.s32.totalorder %v13826_v20, 0  ;;  %v10468_v47 = vpop.f32.mrf.mxu0  ;;  %v16952_v58 = vld [vmem:[#allocation41_spill] sm:$0xff]  ;;  %v17006_v20 = vld [vmem:[#allocation10_spill] sm:$0xff] }
 0x21c   : > { %16946 = vst [vmem:[#allocation32_spill] sm:$0xff] %v13920_v51  ;;  %vm13936_vm3 = vmand %vm16947_vm4, %vm4218_vm10  ;;  %v16948_v56 = vmov 0  ;;  %vm4219_vm13 = vcmp.ne.s32.totalorder %v13897_v13, 0  ;;  %v2908_v18 = vadd.f32 %v2863_v7, %v13188_v32  ;;  %vm4987_vm12 = vsmask.f32 7942  ;;  %v17007_v51 = vld [vmem:[#allocation54_spill] sm:$0xff] }
 0x21d   : > { %v16949_v56 = vsel %vm13936_vm3, 4294967295, %v16948_v56  ;;  %v16954_v61 = vsel %vm12839_vm5, %v16952_v58, %v16953_v17  ;;  %vm16957_vm10 = vcmp.ne.s32.totalorder %v13858_v54, 0  ;;  %vm16958_vm4 = vcmp.lt.s32.totalorder %v13858_v54, 0  ;;  %v3496_v29 = vpop.f32.mrf.mxu0 }
 0x21e   : > { %16950 = vst [vmem:[#allocation25_spill] sm:$0xff] %v16949_v56  ;;  %vm13947_vm7 = vcmp.lt.s32.totalorder %v16954_v61, 16  ;;  %vm13955_vm2 = vmand %vm16958_vm4, %vm16957_vm10  ;;  %v16959_v35 = vmov 0  ;;  %v13960_v32 = vadd.s32 18, %v13858_v54  ;;  %vm4255_vm14 = vcmp.lt.s32.totalorder %v13897_v13, 0  ;;  %v3310_v61 = vpop.f32.mrf.mxu1 }
 0x21f   : > { %v16960_v35 = vsel %vm13955_vm2, 4294967295, %v16959_v35  ;;  %v13964_v7 = vadd.s32 18, %v13897_v13  ;;  %v13966_v17 = vadd.f32 %v3307_v28, %v2907_v22  ;;  %v3717_v21 = vmax.f32 %v3681_v45, 0.0  ;;  %vm13972_vm5 = vmand %vm4255_vm14, %vm4219_vm13  ;;  %v16971_v22 = vld [vmem:[#allocation39_spill] sm:$0xff]  ;;  %v16978_v13 = vld [vmem:[#allocation26_spill] sm:$0xff] }
 0x220   : > { %16961 = vst [vmem:[#allocation44_spill] sm:$0xff] %v16960_v35  ;;  %16962 = vst [vmem:[#allocation37_spill] sm:$0xff] %v13960_v32  ;;  %v3679_v58 = vadd.f32 %v13872_v30, %v3636_v12  ;;  %v3639_v41 = vadd.f32 %v10468_v47, %v13298_v16  ;;  %v16965_v2 = vmov 0  ;;  %v13976_v23 = vadd.f32 %v10462_v48, %v2910_v63  ;;  %v16975_v47 = vld [vmem:[#allocation76_spill] sm:$0xff] }
 0x221   : > { %16963 = vst [vmem:[#allocation33_spill] sm:$0xff] %v13964_v7  ;;  %16964 = vst [vmem:[#allocation45_spill] sm:$0xff] %v13966_v17  ;;  %v16966_v2 = vsel %vm13972_vm5, 4294967295, %v16965_v2  ;;  %v16972_v28 = vsel %vm12858_vm9, %v16970_v5, %v16971_v22  ;;  %v4157_v48 = vshrl.u32 %v13924_v4, 4  ;;  %v4402_v42 = vsel %vm13821_vm11, %v3717_v21, 0.0  ;;  %v16991_v32 = vld [vmem:[#allocation52_spill] sm:$0xff] }
 0x222   : > { %16967 = vst [vmem:[#allocation41_spill] sm:$0xff] %v16966_v2  ;;  %16968 = vst [vmem:[#allocation35_spill] sm:$0xff] %v13976_v23  ;;  %vm13983_vm10 = vcmp.lt.s32.totalorder %v16972_v28, 16  ;;  %v3715_v5 = vmax.f32 %v3679_v58, 0.0  ;;  %v3682_v12 = vadd.f32 %v13872_v30, %v3639_v41  ;;  %vm4587_vm9 = vsmask.f32 1280  ;;  %v10471_v23 = vpop.f32.mrf.mxu0 }
 0x223   : > { %vm4588_vm14 = vsmask.f32 5392  ;;  %v3637_v22 = vadd.f32 %v3496_v29, %v16975_v47  ;;  %v14000_v28 = vadd.f32 %v3310_v61, %v2908_v18  ;;  %v9782_v16 = vpack.c.bf16 %v4402_v42, %v4402_v42  ;;  %v16977_v18 = vld [vmem:[#allocation77_spill] sm:$0xff] }
 0x224   : > { %v4400_v41 = vsel %vm13849_vm6, %v3715_v5, 0.0  ;;  %v3718_v4 = vmax.f32 %v3682_v12, 0.0  ;;  %v3642_v61 = vadd.f32 %v10471_v23, %v16977_v18  ;;  %v3509_v47 = vpop.f32.mrf.mxu0  ;;  %vm16979_vm11 = vcmask 125953  }
 0x225   : > { %16976 = vst [vmem:[#allocation47_spill] sm:$0xff] %v14000_v28  ;;  %v3680_v29 = vadd.f32 %v13872_v30, %v3637_v22  ;;  %v4610_v21 = vshrl.u32 %v9782_v16, 16  ;;  %v4613_v58 = vshll.u32 %v9782_v16, 16  ;;  %v9780_v42 = vpack.c.bf16 %v4400_v41, %v4400_v41  ;;  %vm14025_vm6 = vmand %vm16979_vm11, %vm4987_vm12 }
 0x226   : > { %v14014_v28 = vmul.u32 18, %v4157_v48  ;;  %v4403_v63 = vsel %vm13879_vm0, %v3718_v4, 0.0  ;;  %v3685_v33 = vadd.f32 %v13872_v30, %v3642_v61  ;;  %v3640_v14 = vadd.f32 %v3509_v47, %v16978_v13  ;;  %v10472_v2 = vpop.f32.mrf.mxu0  ;;  %v4989_v61 = vld [vmem:[#allocation4 + $0x8] sm:$0xe]  ;;  %v16982_v47 = vld [vmem:[#allocation49_spill] sm:$0xff] }
 0x227   : > { %v3716_v17 = vmax.f32 %v3680_v29, 0.0  ;;  %v4612_v5 = vrot.slane %v4610_v21, 6  ;;  %v4615_v12 = vrot.slane %v4613_v58, 7  ;;  %v4591_v7 = vshrl.u32 %v9780_v42, 16 }
 0x228   : > { %v4594_v22 = vshll.u32 %v9780_v42, 16  ;;  %v9783_v23 = vpack.c.bf16 %v4403_v63, %v4403_v63  ;;  %v3721_v41 = vmax.f32 %v3685_v33, 0.0  ;;  %v3683_v48 = vadd.f32 %v13872_v30, %v3640_v14  ;;  %v3512_v54 = vpop.f32.mrf.mxu0  ;;  %v16984_v14 = vld [vmem:[#allocation48_spill] sm:$0xff] }
 0x229   : > { %v4401_v16 = vsel %vm13904_vm15, %v3716_v17, 0.0  ;;  %v4616_v18 = vor.u32 %v4615_v12, %v4612_v5  ;;  %v4593_v53 = vrot.slane %v4591_v7, 6  ;;  %vm16983_vm0 = vnez %v16982_v47  ;;  %v16985_v5 = vld [vmem:[#allocation40_spill] sm:$0xff] }
 0x22a   : > { %v4596_v4 = vrot.slane %v4594_v22, 7  ;;  %v9781_v29 = vpack.c.bf16 %v4401_v16, %v4401_v16  ;;  %v4620_v21 = vshrl.u32 %v9783_v23, 16  ;;  %v4623_v63 = vshll.u32 %v9783_v23, 16  ;;  %v16990_v23 = vld [vmem:[#allocation53_spill] sm:$0xff] }
 0x22b   : > { %v4406_v25 = vsel %vm13947_vm7, %v3721_v41, 0.0  ;;  %v3719_v17 = vmax.f32 %v3683_v48, 0.0  ;;  %v4618_v33 = vrot.slane %v4616_v18, 4  ;;  %v16986_v12 = vsel %vm16983_vm0, %v16984_v14, %v16985_v5  ;;  %v10475_v48 = vpop.f32.mrf.mxu0 }
 0x22c   : > { %v4597_v58 = vor.u32 %v4596_v4, %v4593_v53  ;;  %v4600_v42 = vshrl.u32 %v9781_v29, 16  ;;  %v4603_v7 = vshll.u32 %v9781_v29, 16  ;;  %vm14036_vm12 = vcmp.lt.s32.totalorder %v16986_v12, 16  ;;  %v16995_v53 = vld [vmem:[#allocation62_spill] sm:$0xff] }
 0x22d   : > { %v16992_v46 = vsel %vm13032_vm8, %v16990_v23, %v16991_v32  ;;  %vm16996_vm15 = vnez %v16995_v53  ;;  %v16997_v4 = vld [vmem:[#allocation58_spill] sm:$0xff]  ;;  %v4622_v5 = vrot.slane %v4620_v21, 6  ;;  %v4625_v12 = vrot.slane %v4623_v63, 7  ;;  %vm14064_vm8 = vmor %vm4587_vm9, %vm4588_vm14 }
 0x22e   : > { %vm14045_vm7 = vcmp.lt.s32.totalorder %v16992_v46, 16  ;;  %v16998_v29 = vld [vmem:[#allocation14_spill] sm:$0xff]  ;;  %v9786_v16 = vpack.c.bf16 %v4406_v25, %v4406_v25  ;;  %v4404_v32 = vsel %vm13983_vm10, %v3719_v17, 0.0  ;;  %v4598_v23 = vrot.slane %v4597_v58, 4 }
 0x22f   : > { %v16999_v47 = vsel %vm16996_vm15, %v16997_v4, %v16998_v29  ;;  %v4990_v46 = vsel %vm14025_vm6, %v4597_v58, %v4989_v61  ;;  %v4602_v4 = vrot.slane %v4600_v42, 6  ;;  %v4605_v29 = vrot.slane %v4603_v7, 7  ;;  %v17004_v58 = vld [vmem:[#allocation63_spill] sm:$0xff] }
 0x230   : > { %vm14054_vm13 = vcmp.lt.s32.totalorder %v16999_v47, 16  ;;  %v3525_v47 = vpop.f32.mrf.mxu0  ;;  %4991 = vst [vmem:[#allocation4 + $0x8] sm:$0xe] %v4990_v46  ;;  %v4626_v21 = vor.u32 %v4625_v12, %v4622_v5  ;;  %v4650_v63 = vshrl.u32 %v9786_v16, 16  ;;  %v4653_v25 = vshll.u32 %v9786_v16, 16 }
 0x231   : > { %v9784_v35 = vpack.c.bf16 %v4404_v32, %v4404_v32  ;;  %v4606_v45 = vor.u32 %v4605_v29, %v4602_v4  ;;  %v3643_v17 = vadd.f32 %v10472_v2, %v13384_v6  ;;  %v3641_v13 = vadd.f32 %v3512_v54, %v13399_v36  ;;  %v11052_v29 = vld [vmem:[%s16466_s3 + $0x18] sm:$0xff]  }
 0x232   : > { %v3646_v61 = vadd.f32 %v10475_v48, %v13411_v0  ;;  %vm17005_vm4 = vnez %v17004_v58  ;;  %v10476_v7 = vpop.f32.mrf.mxu0  ;;  %v4627_v5 = vsel %vm14064_vm8, %v4618_v33, %v4626_v21  ;;  %v4628_v12 = vrot.slane %v4626_v21, 4  ;;  %10615 = vmatprep.subr.bf16.mxu0 %v11052_v29 }
 0x233   : > { %v17008_v56 = vsel %vm17005_vm4, %v17006_v20, %v17007_v51  ;;  %v4652_v16 = vrot.slane %v4650_v63, 6  ;;  %v4655_v6 = vrot.slane %v4653_v25, 7  ;;  %vm17011_vm14 = vcmask 125952   ;;  %v17012_v20 = vld [vmem:[#allocation64_spill] sm:$0xff]  ;;  %v17014_v51 = vld [vmem:[#allocation61_spill] sm:$0xff] }
 0x234   : > { %vm14076_vm10 = vcmp.lt.s32.totalorder %v17008_v56, 16  ;;  %4994 = vst.msk [vmem:[#allocation4 + $0x14] sm:$0xf] %vm17011_vm14, %v4627_v5  ;;  %v4607_v0 = vsel %vm14064_vm8, %v4598_v23, %v4606_v45  ;;  %v4608_v36 = vrot.slane %v4606_v45, 4  ;;  %v4630_v2 = vshrl.u32 %v9784_v35, 16  ;;  %v17015_v56 = vld [vmem:[#allocation56_spill] sm:$0xff]  ;;  %v3528_v33 = vpop.f32.mrf.mxu0  ;;  %vm17019_vm0 = vmmov %vm17011_vm14 }
 0x235   : > { %v4633_v54 = vshll.u32 %v9784_v35, 16  ;;  %vm17013_vm11 = vnez %v17012_v20  ;;  %4992 = vst.msk [vmem:[#allocation4 + $0xc] sm:$0xf] %vm17019_vm0, %v4607_v0  ;;  %v14095_v46 = vor.u32 %v4655_v6, %v4652_v16  ;;  %v3686_v4 = vadd.f32 %v13872_v30, %v3643_v17  ;;  %vm17020_vm15 = vmmov %vm17019_vm0  ;;  %v17023_v20 = vld [vmem:[#allocation66_spill] sm:$0xff] }
 0x236   : > { %v17016_v48 = vsel %vm17013_vm11, %v17014_v51, %v17015_v56  ;;  %v3684_v23 = vadd.f32 %v13872_v30, %v3641_v13  ;;  %v3689_v35 = vadd.f32 %v13872_v30, %v3646_v61  ;;  %v4617_v21 = vsel %vm14064_vm8, %v4608_v36, %v4616_v18  ;;  %v10479_v58 = vpop.f32.mrf.mxu0  ;;  %v17024_v51 = vld [vmem:[#allocation59_spill] sm:$0xff] }
 0x237   : > { %vm14090_vm6 = vcmp.lt.s32.totalorder %v17016_v48, 16  ;;  %v4632_v63 = vrot.slane %v4630_v2, 6  ;;  %v4635_v25 = vrot.slane %v4633_v54, 7  ;;  %v3644_v45 = vadd.f32 %v3525_v47, %v13423_v11  ;;  %4993 = vst.msk [vmem:[#allocation4 + $0x10] sm:$0xf] %vm17020_vm15, %v4617_v21  ;;  %v17021_v54 = vld [vmem:[#allocation20_spill] sm:$0xff] }
 0x238   : > { %v4658_v17 = vrot.slane %v14095_v46, 4  ;;  %v3722_v5 = vmax.f32 %v3686_v4, 0.0  ;;  %v3720_v13 = vmax.f32 %v3684_v23, 0.0  ;;  %v3725_v16 = vmax.f32 %v3689_v35, 0.0  ;;  %v14111_v36 = vpop.f32.mrf.mxu0  ;;  %v17029_v21 = vld [vmem:[#allocation67_spill] sm:$0xff] }
 0x239   : > { %v4636_v61 = vor.u32 %v4635_v25, %v4632_v63  ;;  %v3687_v6 = vadd.f32 %v13872_v30, %v3644_v45  ;;  %v3647_v0 = vadd.f32 %v10476_v7, %v13451_v9  ;;  %v3645_v18 = vadd.f32 %v3528_v33, %v13454_v59  ;;  %v17031_v63 = vld [vmem:[#allocation68_spill] sm:$0xff]  ;;  %v17061_v9 = vld [vmem:[#allocation75_spill] sm:$0xff] }
 0x23a   : > { %v4407_v11 = vsel %vm14036_vm12, %v3722_v5, 0.0  ;;  %v4405_v47 = vsel %vm14045_vm7, %v3720_v13, 0.0  ;;  %v4410_v2 = vsel %vm14054_vm13, %v3725_v16, 0.0  ;;  %vm17022_vm4 = vnez %v17021_v54  ;;  %v14131_v33 = vpop.f32.mrf.mxu0  ;;  %vm17028_vm12 = vmmov %vm17019_vm0 }
 0x23b   : > { %v17025_v56 = vsel %vm17022_vm4, %v17023_v20, %v17024_v51  ;;  %v3650_v59 = vadd.f32 %v10479_v58, %v13487_v43  ;;  %v4637_v22 = vsel %vm14064_vm8, %v4628_v12, %v4636_v61  ;;  %v4638_v7 = vrot.slane %v4636_v61, 4  ;;  %v17032_v43 = vld [vmem:[#allocation60_spill] sm:$0xff] }
 0x23c   : > { %vm14124_vm14 = vcmp.lt.s32.totalorder %v17025_v56, 16  ;;  %v9787_v41 = vpack.c.bf16 %v4407_v11, %v4407_v11  ;;  %v9785_v48 = vpack.c.bf16 %v4405_v47, %v4405_v47  ;;  %4995 = vst.msk [vmem:[#allocation4 + $0x18] sm:$0xf] %vm17028_vm12, %v4637_v22  ;;  %v9790_v14 = vpack.c.bf16 %v4410_v2, %v4410_v2  ;;  %v3544_v16 = vpop.f32.mrf.mxu0  ;;  %v14147_v11 = vld [vmem:[#allocation4 + $0x8] sm:$0xff]  }
 0x23d   : > { %v3723_v4 = vmax.f32 %v3687_v6, 0.0  ;;  %v3690_v23 = vadd.f32 %v13872_v30, %v3647_v0  ;;  %v3688_v35 = vadd.f32 %v13872_v30, %v3645_v18  ;;  %vm17030_vm7 = vnez %v17029_v21 }
 0x23e   : > { %v17033_v25 = vsel %vm17030_vm7, %v17031_v63, %v17032_v43  ;;  %v4660_v45 = vshrl.u32 %v9787_v41, 16  ;;  %v4663_v58 = vshll.u32 %v9787_v41, 16  ;;  %v4640_v5 = vshrl.u32 %v9785_v48, 16  ;;  %v10483_v51 = vpop.f32.mrf.mxu0  ;;  %vm17052_vm7 = vmmov %vm17028_vm12 }
 0x23f   : > { %vm14141_vm13 = vcmp.lt.s32.totalorder %v17033_v25, 16  ;;  %v4643_v13 = vshll.u32 %v9785_v48, 16  ;;  %v4690_v61 = vshrl.u32 %v9790_v14, 16  ;;  %v4693_v6 = vshll.u32 %v9790_v14, 16  ;;  %v14153_v48 = vld [vmem:[#allocation4 + $0x10] sm:$0xff]  }
 0x240   : > { %v4408_v0 = vsel %vm14076_vm10, %v3723_v4, 0.0  ;;  %v3726_v18 = vmax.f32 %v3690_v23, 0.0  ;;  %v4662_v47 = vrot.slane %v4660_v45, 6  ;;  %v4665_v2 = vrot.slane %v4663_v58, 7 }
 0x241   : > { %v4642_v54 = vrot.slane %v4640_v5, 6  ;;  %v4645_v20 = vrot.slane %v4643_v13, 7  ;;  %v4692_v56 = vrot.slane %v4690_v61, 6  ;;  %v4695_v22 = vrot.slane %v4693_v6, 7  ;;  %v17040_v13 = vld [vmem:[#allocation69_spill] sm:$0xff] }
 0x242   : > { %v9788_v21 = vpack.c.bf16 %v4408_v0, %v4408_v0  ;;  %v4411_v41 = vsel %vm14090_vm6, %v3726_v18, 0.0  ;;  %vm17036_vm11 = vcmask 130048   ;;  %v4666_v42 = vor.u32 %v4665_v2, %v4662_v47  ;;  %v17048_v0 = vld [vmem:[#allocation65_spill] sm:$0xff] }
 0x243   : > { %10542 = vmatmul.mubr.msk.bf16.vlgmr.msra.gmra.mxu0 %vm17036_vm11, %v14147_v11  ;;  %v4646_v14 = vor.u32 %v4645_v20, %v4642_v54  ;;  %v9791_v4 = vpack.c.bf16 %v4411_v41, %v4411_v41  ;;  %v3724_v23 = vmax.f32 %v3688_v35, 0.0  ;;  %v3693_v25 = vadd.f32 %v13872_v30, %v3650_v59  ;;  %vm17037_vm10 = vmmov %vm17036_vm11  ;;  %v17041_v59 = vld [vmem:[#allocation16_spill] sm:$0xff] }
 0x244   : > { %10616 = vmatpush3.bf16.msra.mxu0 %v11052_v29  ;;  %v4670_v63 = vshrl.u32 %v9788_v21, 16  ;;  %v4673_v43 = vshll.u32 %v9788_v21, 16  ;;  %10545 = vmatprep.mubr.msk.bf16.mxu0 %vm17037_vm10, %v14153_v48  ;;  %v14160_v32 = vsub.s32 %v13829_v40, %v14014_v28  ;;  %v4667_v45 = vsel %vm14064_vm8, %v4658_v17, %v4666_v42  ;;  %v17038_v29 = vld [vmem:[#allocation9_spill] sm:$0xff]  ;;  %v17045_v40 = vld [vmem:[#allocation71_spill] sm:$0xff]  ;;  %v17047_v28 = vld [vmem:[#allocation12_spill] sm:$0xff] }
 0x245   : > { %v4647_v58 = vsel %vm14064_vm8, %v4638_v7, %v4646_v14  ;;  %v4648_v5 = vrot.slane %v4646_v14, 4  ;;  %v14166_v35 = vor.u32 %v4695_v22, %v4692_v56  ;;  %vm17039_vm6 = vnez %v17038_v29  ;;  %v3557_v7 = vpop.f32.mrf.mxu0  ;;  %4998 = vst.msk [vmem:[#allocation4 + $0x24] sm:$0xf] %vm17028_vm12, %v4667_v45  ;;  %v17053_v56 = vld [vmem:[#allocation19_spill] sm:$0xff]  ;;  %v17055_v22 = vld [vmem:[#allocation73_spill] sm:$0xff]  ;;  %v17056_v21 = vld [vmem:[#allocation70_spill] sm:$0xff] }
 0x246   : > { %v17042_v61 = vsel %vm17039_vm6, %v17040_v13, %v17041_v59  ;;  %vm17046_vm15 = vnez %v17045_v40  ;;  %v4668_v47 = vrot.slane %v4666_v42, 4  ;;  %4996 = vst.msk [vmem:[#allocation4 + $0x1c] sm:$0xf] %vm17052_vm7, %v4647_v58  ;;  %v4672_v2 = vrot.slane %v4670_v63, 6  ;;  %vm17060_vm6 = vmmov %vm17052_vm7 }
 0x247   : > { %vm14173_vm0 = vcmp.lt.s32.totalorder %v17042_v61, 16  ;;  %v17049_v17 = vsel %vm17046_vm15, %v17047_v28, %v17048_v0  ;;  %v4675_v54 = vrot.slane %v4673_v43, 7  ;;  %v4700_v20 = vshrl.u32 %v9791_v4, 16  ;;  %v14219_v0 = vpop.f32.mrf.mxu0 }
 0x248   : > { %vm14182_vm4 = vcmp.lt.s32.totalorder %v17049_v17, 16  ;;  %vm17054_vm11 = vnez %v17053_v56  ;;  %v4657_v42 = vsel %vm14064_vm8, %v4648_v5, %v14095_v46  ;;  %v4703_v29 = vshll.u32 %v9791_v4, 16 }
 0x249   : > { %v17057_v41 = vsel %vm17054_vm11, %v17055_v22, %v17056_v21  ;;  %v4409_v45 = vsel %vm14124_vm14, %v3724_v23, 0.0  ;;  %v3729_v63 = vmax.f32 %v3693_v25, 0.0  ;;  %4997 = vst.msk [vmem:[#allocation4 + $0x20] sm:$0xf] %vm17060_vm6, %v4657_v42  ;;  %v4676_v43 = vor.u32 %v4675_v54, %v4672_v2  ;;  %v17063_v23 = vld [vmem:[#allocation17_spill] sm:$0xff]  ;;  %v17064_v25 = vld [vmem:[#allocation72_spill] sm:$0xff]  ;;  %vm17075_vm11 = vmmov %vm17060_vm6 }
 0x24a   : > { %vm14193_vm10 = vcmp.lt.s32.totalorder %v17057_v41, 16  ;;  %v4702_v58 = vrot.slane %v4700_v20, 6  ;;  %v9789_v13 = vpack.c.bf16 %v4409_v45, %v4409_v45  ;;  %v3648_v59 = vadd.f32 %v14111_v36, %v13505_v26  ;;  %v17070_v42 = vld [vmem:[#allocation18_spill] sm:$0xff] }
 0x24b   : > { %v4705_v61 = vrot.slane %v4703_v29, 7  ;;  %v4414_v40 = vsel %vm14141_vm13, %v3729_v63, 0.0  ;;  %v3651_v46 = vadd.f32 %v14131_v33, %v13541_v50  ;;  %v3649_v4 = vadd.f32 %v3544_v16, %v13581_v39  ;;  %vm17068_vm13 = vmmov %vm17060_vm6  ;;  %v17071_v29 = vld [vmem:[#allocation21_spill] sm:$0xff] }
 0x24c   : > { %vm17062_vm14 = vnez %v17061_v9  ;;  %v4698_v26 = vrot.slane %v14166_v35, 4  ;;  %v4677_v36 = vsel %vm14064_vm8, %v4668_v47, %v4676_v43  ;;  %v4680_v12 = vshrl.u32 %v9789_v13, 16  ;;  %v17097_v63 = vld [vmem:[#allocation85_spill] sm:$0xff] }
 0x24d   : > { %v17065_v5 = vsel %vm17062_vm14, %v17063_v23, %v17064_v25  ;;  %v4683_v50 = vshll.u32 %v9789_v13, 16  ;;  %4999 = vst.msk [vmem:[#allocation4 + $0x28] sm:$0xf] %vm17068_vm13, %v4677_v36  ;;  %v14225_v39 = vor.u32 %v4705_v61, %v4702_v58  ;;  %v9794_v33 = vpack.c.bf16 %v4414_v40, %v4414_v40  ;;  %v14243_v58 = vpop.f32.mrf.mxu0  ;;  %v14245_v13 = vld [vmem:[#allocation4 + $0x18] sm:$0xff]   ;;  %vm17077_vm14 = vmmov %vm17075_vm11 }
 0x24e   : > { %vm14215_vm15 = vcmp.lt.s32.totalorder %v17065_v5, 16  ;;  %v3691_v16 = vadd.f32 %v13872_v30, %v3648_v59  ;;  %v3694_v17 = vadd.f32 %v13872_v30, %v3651_v46  ;;  %v4682_v2 = vrot.slane %v4680_v12, 6 }
 0x24f   : > { %v4685_v54 = vrot.slane %v4683_v50, 7  ;;  %v3692_v20 = vadd.f32 %v13872_v30, %v3649_v4  ;;  %v3654_v56 = vadd.f32 %v10483_v51, %v13590_v62  ;;  %v4678_v22 = vrot.slane %v4676_v43, 4  ;;  %v14264_v12 = vpop.f32.mrf.mxu0 }
 0x250   : > { %v4707_v47 = vsel %vm14064_vm8, %v4698_v26, %v14225_v39  ;;  %v4730_v21 = vshrl.u32 %v9794_v33, 16  ;;  %v4733_v41 = vshll.u32 %v9794_v33, 16  ;;  %vm17069_vm12 = vnez %v16824_v38  ;;  %v14252_v4 = vld [vmem:[#allocation4 + $0x20] sm:$0xff]  }
 0x251   : > { %v17072_v45 = vsel %vm17069_vm12, %v17070_v42, %v17071_v29  ;;  %5002 = vst.msk [vmem:[#allocation4 + $0x34] sm:$0xf] %vm17075_vm11, %v4707_v47  ;;  %v4686_v62 = vor.u32 %v4685_v54, %v4682_v2  ;;  %v3727_v51 = vmax.f32 %v3691_v16, 0.0  ;;  %v3730_v43 = vmax.f32 %v3694_v17, 0.0 }
 0x252   : > { %vm14239_vm7 = vcmp.lt.s32.totalorder %v17072_v45, 16  ;;  %v3728_v59 = vmax.f32 %v3692_v20, 0.0  ;;  %v4732_v61 = vrot.slane %v4730_v21, 6  ;;  %v4735_v40 = vrot.slane %v4733_v41, 7  ;;  %v3573_v41 = vpop.f32.mrf.mxu0 }
 0x253   : > { %v3697_v38 = vadd.f32 %v13872_v30, %v3654_v56  ;;  %v3652_v46 = vadd.f32 %v3557_v7, %v13600_v27  ;;  %vm17076_vm6 = vcmask 130048   ;;  %v4687_v9 = vsel %vm14064_vm8, %v4678_v22, %v4686_v62 }
 0x254   : > { %10546 = vmatmul.mubr.msk.bf16.gmra.mxu0 %vm17076_vm6, %v14245_v13  ;;  %v4688_v23 = vrot.slane %v4686_v62, 4  ;;  %v4412_v25 = vsel %vm14173_vm0, %v3727_v51, 0.0  ;;  %v4415_v5 = vsel %vm14182_vm4, %v3730_v43, 0.0  ;;  %v4708_v26 = vrot.slane %v14225_v39, 4  ;;  %5000 = vst.msk [vmem:[#allocation4 + $0x2c] sm:$0xf] %vm17077_vm14, %v4687_v9  ;;  %vm17078_vm13 = vmmov %vm17076_vm6 }
 0x255   : > { %v9792_v27 = vpack.c.bf16 %v4412_v25, %v4412_v25  ;;  %v9795_v7 = vpack.c.bf16 %v4415_v5, %v4415_v5  ;;  %v4413_v36 = vsel %vm14193_vm10, %v3728_v59, 0.0  ;;  %10549 = vmatprep.mubr.msk.bf16.mxu0 %vm17078_vm13, %v14252_v4  ;;  %v3733_v50 = vmax.f32 %v3697_v38, 0.0  ;;  %vm17079_vm0 = vmmov %vm17075_vm11  ;;  %v17080_v51 = vld [vmem:[#allocation79_spill] sm:$0xff]  ;;  %v17082_v43 = vld [vmem:[#allocation22_spill] sm:$0xff] }
 0x256   : > { %v4697_v6 = vsel %vm14064_vm8, %v4688_v23, %v14166_v35  ;;  %v9793_v18 = vpack.c.bf16 %v4413_v36, %v4413_v36  ;;  %v3695_v39 = vadd.f32 %v13872_v30, %v3652_v46  ;;  %v4736_v33 = vor.u32 %v4735_v40, %v4732_v61  ;;  %v17083_v59 = vld [vmem:[#allocation74_spill] sm:$0xff]  ;;  %v17089_v25 = vld [vmem:[#allocation80_spill] sm:$0xff]  ;;  %vm17094_vm11 = vmmov %vm17079_vm0 }
 0x257   : > { %5001 = vst.msk [vmem:[#allocation4 + $0x30] sm:$0xf] %vm17079_vm0, %v4697_v6  ;;  %v4710_v16 = vshrl.u32 %v9792_v27, 16  ;;  %v4713_v17 = vshll.u32 %v9792_v27, 16  ;;  %v4740_v14 = vshrl.u32 %v9795_v7, 16  ;;  %v4743_v2 = vshll.u32 %v9795_v7, 16 }
 0x258   : > { %v4720_v54 = vshrl.u32 %v9793_v18, 16  ;;  %v4723_v20 = vshll.u32 %v9793_v18, 16  ;;  %v4418_v56 = vsel %vm14215_vm15, %v3733_v50, 0.0  ;;  %v3731_v62 = vmax.f32 %v3695_v39, 0.0  ;;  %v17087_v23 = vld [vmem:[#allocation82_spill] sm:$0xff] }
 0x259   : > { %v4712_v22 = vrot.slane %v4710_v16, 6  ;;  %v4715_v47 = vrot.slane %v4713_v17, 7  ;;  %v4742_v21 = vrot.slane %v4740_v14, 6  ;;  %v9798_v35 = vpack.c.bf16 %v4418_v56, %v4418_v56  ;;  %v17090_v5 = vld [vmem:[#allocation78_spill] sm:$0xff] }
 0x25a   : > { %v4745_v42 = vrot.slane %v4743_v2, 7  ;;  %v4722_v29 = vrot.slane %v4720_v54, 6  ;;  %v4725_v45 = vrot.slane %v4723_v20, 7  ;;  %vm17081_vm4 = vnez %v17080_v51  ;;  %v10488_v54 = vpop.f32.mrf.mxu0 }
 0x25b   : > { %v17084_v61 = vsel %vm17081_vm4, %v17082_v43, %v17083_v59  ;;  %v4716_v28 = vor.u32 %v4715_v47, %v4712_v22  ;;  %v4770_v38 = vshrl.u32 %v9798_v35, 16  ;;  %v4773_v46 = vshll.u32 %v9798_v35, 16  ;;  %v14296_v39 = vld [vmem:[#allocation4 + $0x28] sm:$0xff]   ;;  %v17098_v35 = vld [vmem:[#allocation81_spill] sm:$0xff]  ;;  %vm17110_vm4 = vmmov %vm17094_vm11 }
 0x25c   : > { %vm14280_vm10 = vcmp.lt.s32.totalorder %v17084_v61, 16  ;;  %v5183_v9 = vshll.u32 %v14153_v48, 16  ;;  %vm17088_vm15 = vnez %v17087_v23  ;;  %v4738_v36 = vrot.slane %v4736_v33, 4 }
 0x25d   : > { %v17091_v27 = vsel %vm17088_vm15, %v17089_v25, %v17090_v5  ;;  %v4746_v6 = vor.u32 %v4745_v42, %v4742_v21  ;;  %v4726_v18 = vor.u32 %v4725_v45, %v4722_v29  ;;  %v4416_v50 = vsel %vm14239_vm7, %v3731_v62, 0.0  ;;  %v17095_v21 = vld [vmem:[#allocation86_spill] sm:$0xff]  ;;  %v17104_v45 = vld [vmem:[#allocation89_spill] sm:$0xff]  ;;  %v17105_v62 = vld [vmem:[#allocation84_spill] sm:$0xff] }
 0x25e   : > { %vm14290_vm12 = vcmp.lt.s32.totalorder %v17091_v27, 16  ;;  %v4717_v16 = vsel %vm14064_vm8, %v4708_v26, %v4716_v28  ;;  %v4718_v17 = vrot.slane %v4716_v28, 4  ;;  %v4772_v14 = vrot.slane %v4770_v38, 6  ;;  %v17102_v26 = vld [vmem:[#allocation90_spill] sm:$0xff]  ;;  %v14323_v59 = vld [vmem:[#allocation4 + $0x30] sm:$0xff]   ;;  %vm17112_vm15 = vmmov %vm17110_vm4 }
 0x25f   : > { %v4775_v2 = vrot.slane %v4773_v46, 7  ;;  %5003 = vst.msk [vmem:[#allocation4 + $0x38] sm:$0xf] %vm17094_vm11, %v4717_v16  ;;  %v4747_v20 = vsel %vm14064_vm8, %v4738_v36, %v4746_v6  ;;  %v4748_v56 = vrot.slane %v4746_v6, 4  ;;  %v4728_v22 = vrot.slane %v4726_v18, 4  ;;  %v17111_v46 = vld [vmem:[#allocation97_spill] sm:$0xff] }
 0x260   : > { %v9796_v47 = vpack.c.bf16 %v4416_v50, %v4416_v50  ;;  %vm17096_vm6 = vnez %v17095_v21  ;;  %vm17103_vm14 = vnez %v17102_v26  ;;  %vm17109_vm0 = vcmask 130048   ;;  %5006 = vst.msk [vmem:[#allocation4 + $0x44] sm:$0xf] %vm17110_vm4, %v4747_v20  ;;  %v17113_v36 = vld [vmem:[#allocation98_spill] sm:$0xff]  ;;  %v3576_v50 = vpop.f32.mrf.mxu0  ;;  %v17117_v20 = vld [vmem:[#allocation36_spill] sm:$0xff] }
 0x261   : > { %v17099_v42 = vsel %vm17096_vm6, %v17097_v63, %v17098_v35  ;;  %v17106_v51 = vsel %vm17103_vm14, %v17104_v45, %v17105_v62  ;;  %10550 = vmatmul.mubr.msk.bf16.gmra.mxu0 %vm17109_vm0, %v14296_v39  ;;  %v4727_v61 = vsel %vm14064_vm8, %v4718_v17, %v4726_v18  ;;  %v14328_v28 = vor.u32 %v4775_v2, %v4772_v14  ;;  %vm17114_vm11 = vmmov %vm17109_vm0  ;;  %v17116_v2 = vld [vmem:[#allocation99_spill] sm:$0xff] }
 0x262   : > { %vm14308_vm7 = vcmp.lt.s32.totalorder %v17099_v42, 16  ;;  %vm14317_vm13 = vcmp.lt.s32.totalorder %v17106_v51, 16  ;;  %v14330_v38 = vrot.slane %v5183_v9, 1  ;;  %v3655_v23 = vadd.f32 %v14219_v0, %v17111_v46  ;;  %5004 = vst.msk [vmem:[#allocation4 + $0x3c] sm:$0xf] %vm17112_vm15, %v4727_v61  ;;  %10553 = vmatprep.mubr.msk.bf16.mxu0 %vm17114_vm11, %v14323_v59  ;;  %vm17115_vm6 = vmmov %vm17110_vm4  ;;  %v17124_v35 = vld [vmem:[#allocation95_spill] sm:$0xff] }
 0x263   : > { %v4737_v25 = vsel %vm14064_vm8, %v4728_v22, %v4736_v33  ;;  %v4750_v5 = vshrl.u32 %v9796_v47, 16  ;;  %v4753_v27 = vshll.u32 %v9796_v47, 16  ;;  %v3653_v6 = vadd.f32 %v14243_v58, %v17113_v36  ;;  %v17119_v22 = vld [vmem:[#allocation93_spill] sm:$0xff]  ;;  %v17120_v47 = vld [vmem:[#allocation87_spill] sm:$0xff]  ;;  %v17127_v42 = vld [vmem:[#allocation88_spill] sm:$0xff] }
 0x264   : > { %5005 = vst.msk [vmem:[#allocation4 + $0x40] sm:$0xf] %vm17115_vm6, %v4737_v25  ;;  %v4778_v9 = vrot.slane %v14328_v28, 4  ;;  %v3698_v18 = vadd.f32 %v13872_v30, %v3655_v23  ;;  %v5175_v0 = vshll.u32 %v14147_v11, 16  ;;  %v5179_v33 = vshrl.u32 %v14147_v11, 16  ;;  %v17126_v11 = vld [vmem:[#allocation94_spill] sm:$0xff] }
 0x265   : > { %v4752_v16 = vrot.slane %v4750_v5, 6  ;;  %v4755_v17 = vrot.slane %v4753_v27, 7  ;;  %v3696_v14 = vadd.f32 %v13872_v30, %v3653_v6  ;;  %v3658_v58 = vadd.f32 %v14264_v12, %v17116_v2  ;;  %v17131_v51 = vld [vmem:[#allocation100_spill] sm:$0xff]  ;;  %v17132_v46 = vld [vmem:[#allocation42_spill] sm:$0xff]  ;;  %v17133_v2 = vld [vmem:[#allocation83_spill] sm:$0xff] }
 0x266   : > { %vm17118_vm14 = vnez %v17117_v20  ;;  %vm17125_vm4 = vnez %v17124_v35  ;;  %v3734_v62 = vmax.f32 %v3698_v18, 0.0  ;;  %v5177_v12 = vrot.slane %v5175_v0, 1 }
 0x267   : > { %v17121_v21 = vsel %vm17118_vm14, %v17119_v22, %v17120_v47  ;;  %v17128_v26 = vsel %vm17125_vm4, %v17126_v11, %v17127_v42  ;;  %v3656_v61 = vadd.f32 %v3573_v41, %v17131_v51  ;;  %v3659_v23 = vadd.f32 %v10488_v54, %v17132_v46  ;;  %v11056_v41 = vld [vmem:[%s16466_s3 + $0x20] sm:$0xff]  }
 0x268   : > { %vm14354_vm0 = vcmp.lt.s32.totalorder %v17121_v21, 16  ;;  %vm14363_vm15 = vcmp.lt.s32.totalorder %v17128_v26, 16  ;;  %v4756_v25 = vor.u32 %v4755_v17, %v4752_v16  ;;  %v3732_v5 = vmax.f32 %v3696_v14, 0.0  ;;  %v14387_v14 = vpop.f32.mrf.mxu0 }
 0x269   : > { %v3701_v27 = vadd.f32 %v13872_v30, %v3658_v58  ;;  %v3657_v36 = vadd.f32 %v3576_v50, %v13754_v37  ;;  %v4419_v6 = vsel %vm14280_vm10, %v3734_v62, 0.0  ;;  %vm17134_vm11 = vsmask.f32 7424  ;;  %v14389_v58 = vld [vmem:[#allocation4 + $0x38] sm:$0xff]   ;;  %v11099_v62 = vld [vmem:[%s16466_s3 + $0x10] sm:$0xff]  }
 0x26a   : > { %v5178_v20 = vsel %vm17134_vm11, %v17133_v2, %v5177_v12  ;;  %v5181_v22 = vor.u32 %v5179_v33, %v5177_v12  ;;  %v3699_v18 = vadd.f32 %v13872_v30, %v3656_v61  ;;  %v4757_v54 = vsel %vm14064_vm8, %v4748_v56, %v4756_v25  ;;  %vm17137_vm14 = vmmov %vm17134_vm11 }
 0x26b   : > { %v4758_v0 = vrot.slane %v4756_v25, 4  ;;  %v9799_v16 = vpack.c.bf16 %v4419_v6, %v4419_v6  ;;  %v4417_v37 = vsel %vm14290_vm12, %v3732_v5, 0.0  ;;  %vm17135_vm6 = vcmask 130048   ;;  %v14394_v35 = vld [vmem:[#allocation4 + $0x40] sm:$0xff]  }
 0x26c   : > { %10503 = vmatprep.mubr.msk.bf16.mxu1 %vm17135_vm6, %v5178_v20  ;;  %vm17136_vm10 = vcmask 125952   ;;  %v9797_v40 = vpack.c.bf16 %v4417_v37, %v4417_v37  ;;  %v3737_v33 = vmax.f32 %v3701_v27, 0.0  ;;  %v5186_v50 = vsel %vm17137_vm14, %v5181_v22, %v14330_v38  ;;  %vm17138_vm4 = vmmov %vm17135_vm6 }
 0x26d   : > { %5007 = vst.msk [vmem:[#allocation4 + $0x48] sm:$0xf] %vm17136_vm10, %v4757_v54  ;;  %v3735_v17 = vmax.f32 %v3699_v18, 0.0  ;;  %v4780_v56 = vshrl.u32 %v9799_v16, 16  ;;  %v4783_v47 = vshll.u32 %v9799_v16, 16  ;;  %10504 = vmatmul.mubr.msk.bf16.vlgmr.msra.gmra.mxu1 %vm17138_vm4, %v5186_v50  ;;  %v3702_v7 = vadd.f32 %v13872_v30, %v3659_v23  ;;  %vm17139_vm12 = vmmov %vm17138_vm4 }
 0x26e   : > { %v3700_v21 = vadd.f32 %v13872_v30, %v3657_v36  ;;  %v4760_v11 = vshrl.u32 %v9797_v40, 16  ;;  %v4763_v42 = vshll.u32 %v9797_v40, 16  ;;  %v4422_v26 = vsel %vm14308_vm7, %v3737_v33, 0.0  ;;  %10578 = vmatpush3.bf16.msra.mxu1 %v11099_v62  ;;  %10554 = vmatmul.mubr.msk.bf16.gmra.mxu0 %vm17139_vm12, %v14389_v58  ;;  %vm17140_vm11 = vmmov %vm17138_vm4  ;;  %v3589_v36 = vpop.f32.mrf.mxu0 }
 0x26f   : > { %v4420_v12 = vsel %vm14317_vm13, %v3735_v17, 0.0  ;;  %v4782_v51 = vrot.slane %v4780_v56, 6  ;;  %v4785_v61 = vrot.slane %v4783_v47, 7  ;;  %v9802_v46 = vpack.c.bf16 %v4422_v26, %v4422_v26  ;;  %10557 = vmatprep.mubr.msk.bf16.mxu0 %vm17140_vm11, %v14394_v35  ;;  %10653 = vmatprep.subr.bf16.mxu1 %v11056_v41  ;;  %vm17141_vm7 = vmmov %vm17136_vm10  ;;  %v17146_v26 = vld [vmem:[#allocation91_spill] sm:$0xff] }
 0x270   : > { %v9800_v23 = vpack.c.bf16 %v4420_v12, %v4420_v12  ;;  %v4762_v29 = vrot.slane %v4760_v11, 6  ;;  %v4765_v25 = vrot.slane %v4763_v42, 7  ;;  %v3738_v5 = vmax.f32 %v3702_v7, 0.0  ;;  %v10492_v47 = vpop.f32.mrf.mxu0  ;;  %vm17142_vm13 = vmmov %vm17141_vm7  ;;  %v17145_v42 = vld [vmem:[#allocation27_spill] sm:$0xff]  ;;  %v17176_v12 = vld [vmem:[#allocation101_spill] sm:$0xff] }
 0x271   : > { %v3736_v27 = vmax.f32 %v3700_v21, 0.0  ;;  %v4786_v6 = vor.u32 %v4785_v61, %v4782_v51  ;;  %v4810_v2 = vshrl.u32 %v9802_v46, 16  ;;  %v4813_v43 = vshll.u32 %v9802_v46, 16  ;;  %vm17161_vm12 = vmmov %vm17141_vm7 }
 0x272   : > { %v4790_v20 = vshrl.u32 %v9800_v23, 16  ;;  %v4766_v22 = vor.u32 %v4765_v25, %v4762_v29  ;;  %v4793_v18 = vshll.u32 %v9800_v23, 16  ;;  %v4423_v54 = vsel %vm14354_vm0, %v3738_v5, 0.0  ;;  %v17150_v23 = vld [vmem:[#allocation11_spill] sm:$0xff]  ;;  %v17153_v29 = vld [vmem:[#allocation92_spill] sm:$0xff] }
 0x273   : > { %v4421_v16 = vsel %vm14363_vm15, %v3736_v27, 0.0  ;;  %v4787_v41 = vsel %vm14064_vm8, %v4778_v9, %v4786_v6  ;;  %v4788_v37 = vrot.slane %v4786_v6, 4  ;;  %v4812_v40 = vrot.slane %v4810_v2, 6  ;;  %v17143_v9 = vld [vmem:[#allocation38_spill] sm:$0xff] }
 0x274   : > { %v4815_v33 = vrot.slane %v4813_v43, 7  ;;  %5010 = vst.msk [vmem:[#allocation4 + $0x54] sm:$0xf] %vm17141_vm7, %v4787_v41  ;;  %v4767_v50 = vsel %vm14064_vm8, %v4758_v0, %v4766_v22  ;;  %v4768_v17 = vrot.slane %v4766_v22, 4  ;;  %v4792_v56 = vrot.slane %v4790_v20, 6 }
 0x275   : > { %v4795_v63 = vrot.slane %v4793_v18, 7  ;;  %5008 = vst.msk [vmem:[#allocation4 + $0x4c] sm:$0xf] %vm17142_vm13, %v4767_v50  ;;  %v9803_v7 = vpack.c.bf16 %v4423_v54, %v4423_v54  ;;  %v9801_v21 = vpack.c.bf16 %v4421_v16, %v4421_v16  ;;  %v5187_v11 = vshrl.u32 %v14153_v48, 16  ;;  %v17152_v48 = vld [vmem:[#allocation96_spill] sm:$0xff]  ;;  %v3592_v54 = vpop.f32.mrf.mxu0  ;;  %vm17166_vm13 = vmmov %vm17161_vm12  ;;  %v17167_v50 = vld [vmem:[#allocation51_spill] sm:$0xff] }
 0x276   : > { %v4816_v45 = vor.u32 %v4815_v33, %v4812_v40  ;;  %vm17144_vm0 = vnez %v17143_v9  ;;  %v4777_v0 = vsel %vm14064_vm8, %v4768_v17, %v14328_v28  ;;  %v5191_v61 = vshll.u32 %v14245_v13, 16 }
 0x277   : > { %v17147_v62 = vsel %vm17144_vm0, %v17145_v42, %v17146_v26  ;;  %v4796_v51 = vor.u32 %v4795_v63, %v4792_v56  ;;  %v5195_v46 = vshrl.u32 %v14245_v13, 16  ;;  %vm17151_vm6 = vnez %v17150_v23  ;;  %5009 = vst.msk [vmem:[#allocation4 + $0x50] sm:$0xf] %vm17161_vm12, %v4777_v0 }
 0x278   : > { %vm14425_vm15 = vcmp.lt.s32.totalorder %v17147_v62, 16  ;;  %v17154_v25 = vsel %vm17151_vm6, %v17152_v48, %v17153_v29  ;;  %vm17157_vm14 = vnez %v16887_v19  ;;  %v4818_v13 = vrot.slane %v4816_v45, 4 }
 0x279   : > { %vm14439_vm10 = vcmp.lt.s32.totalorder %v17154_v25, 16  ;;  %v17158_v27 = vsel %vm17157_vm14, %v13698_v44, %v13639_v55  ;;  %v4820_v6 = vshrl.u32 %v9803_v7, 16  ;;  %v4823_v2 = vshll.u32 %v9803_v7, 16  ;;  %vm17170_vm14 = vmmov %vm17161_vm12 }
 0x27a   : > { %vm14448_vm4 = vcmp.lt.s32.totalorder %v17158_v27, 16  ;;  %v4800_v43 = vshrl.u32 %v9801_v21, 16  ;;  %v4797_v20 = vsel %vm14064_vm8, %v4788_v37, %v4796_v51  ;;  %v4798_v22 = vrot.slane %v4796_v51, 4 }
 0x27b   : > { %v4803_v18 = vshll.u32 %v9801_v21, 16  ;;  %v5189_v19 = vor.u32 %v5187_v11, %v14330_v38  ;;  %vm17162_vm11 = vnez %v16891_v3  ;;  %5011 = vst.msk [vmem:[#allocation4 + $0x58] sm:$0xf] %vm17166_vm13, %v4797_v20  ;;  %v4822_v16 = vrot.slane %v4820_v6, 6  ;;  %v17178_v20 = vld [vmem:[#allocation50_spill] sm:$0xff] }
 0x27c   : > { %v17163_v55 = vsel %vm17162_vm11, %v13734_v24, %v13664_v31  ;;  %v4825_v41 = vrot.slane %v4823_v2, 7  ;;  %v4802_v40 = vrot.slane %v4800_v43, 6  ;;  %v5193_v37 = vrot.slane %v5191_v61, 1  ;;  %v14477_v42 = vld [vmem:[#allocation4 + $0x48] sm:$0xff]  }
 0x27d   : > { %vm14461_vm7 = vcmp.lt.s32.totalorder %v17163_v55, 16  ;;  %v4805_v33 = vrot.slane %v4803_v18, 7  ;;  %v3662_v38 = vadd.f32 %v14387_v14, %v17167_v50  ;;  %v5199_v17 = vshll.u32 %v14252_v4, 16  ;;  %v10495_v14 = vpop.f32.mrf.mxu0 }
 0x27e   : > { %v3660_v3 = vadd.f32 %v3589_v36, %v13774_v52  ;;  %v14470_v56 = vor.u32 %v4825_v41, %v4822_v16  ;;  %vm17168_vm0 = vsmask.f32 7424  ;;  %v5197_v24 = vor.u32 %v5195_v46, %v5193_v37  ;;  %v14491_v61 = vld [vmem:[#allocation4 + $0x50] sm:$0xff]   ;;  %v14498_v46 = vld [vmem:[%s16465_s2] ss:$0 sm:$0xff] }
 0x27f   : > { %v5194_v31 = vsel %vm17168_vm0, %v5189_v19, %v5193_v37  ;;  %v3663_v63 = vadd.f32 %v10492_v47, %v13786_v1  ;;  %v4806_v7 = vor.u32 %v4805_v33, %v4802_v40  ;;  %vm17169_vm6 = vcmask 130048   ;;  %vm17171_vm12 = vmmov %vm17168_vm0  ;;  %v3605_v6 = vpop.f32.mrf.mxu0 }
 0x280   : > { %10507 = vmatprep.mubr.msk.bf16.mxu1 %vm17169_vm6, %v5194_v31  ;;  %v3705_v21 = vadd.f32 %v13872_v30, %v3662_v38  ;;  %v5201_v11 = vrot.slane %v5199_v17, 1  ;;  %v3703_v9 = vadd.f32 %v13872_v30, %v3660_v3  ;;  %v4827_v52 = vsel %vm14064_vm8, %v4818_v13, %v14470_v56  ;;  %vm17172_vm11 = vmmov %vm17169_vm6 }
 0x281   : > { %v4828_v36 = vrot.slane %v14470_v56, 4  ;;  %v3706_v26 = vadd.f32 %v13872_v30, %v3663_v63  ;;  %v3661_v1 = vadd.f32 %v3592_v54, %v13813_v15  ;;  %5014 = vst.msk [vmem:[#allocation4 + $0x64] sm:$0xf] %vm17170_vm14, %v4827_v52  ;;  %v4807_v47 = vsel %vm14064_vm8, %v4798_v22, %v4806_v7  ;;  %10558 = vmatmul.mubr.msk.bf16.gmra.mxu0 %vm17172_vm11, %v14477_v42  ;;  %vm17173_vm0 = vmmov %vm17169_vm6  ;;  %v17179_v22 = vld [vmem:[#allocation55_spill] sm:$0xff]  ;;  %v10496_v17 = vpop.f32.mrf.mxu0 }
 0x282   : > { %v4808_v62 = vrot.slane %v4806_v7, 4  ;;  %v3741_v0 = vmax.f32 %v3705_v21, 0.0  ;;  %v5202_v51 = vsel %vm17171_vm12, %v5197_v24, %v5201_v11  ;;  %5012 = vst.msk [vmem:[#allocation4 + $0x5c] sm:$0xf] %vm17166_vm13, %v4807_v47  ;;  %v3739_v30 = vmax.f32 %v3703_v9, 0.0  ;;  %vm17174_vm6 = vmmov %vm17173_vm0  ;;  %v17185_v7 = vld [vmem:[#allocation46_spill] sm:$0xff] }
 0x283   : > { %10508 = vmatmul.mubr.msk.bf16.gmra.mxu1 %vm17173_vm0, %v5202_v51  ;;  %v3742_v15 = vmax.f32 %v3706_v26, 0.0  ;;  %v3704_v23 = vadd.f32 %v14498_v46, %v3661_v1  ;;  %v5203_v48 = vshrl.u32 %v14252_v4, 16  ;;  %v5207_v27 = vshll.u32 %v14296_v39, 16  ;;  %10561 = vmatprep.mubr.msk.bf16.mxu0 %vm17174_vm6, %v14491_v61  ;;  %vm17175_vm14 = vmmov %vm17166_vm13 }
 0x284   : > { %v4817_v29 = vsel %vm14064_vm8, %v4808_v62, %v4816_v45  ;;  %v4426_v25 = vsel %vm14425_vm15, %v3741_v0, 0.0  ;;  %v5211_v13 = vshrl.u32 %v14296_v39, 16  ;;  %v4424_v4 = vsel %vm14439_vm10, %v3739_v30, 0.0  ;;  %v17190_v62 = vld [vmem:[#allocation23_spill] sm:$0xff]  ;;  %v17193_v0 = vld [vmem:[#allocation13_spill] sm:$0xff]  ;;  %v17209_v39 = vld [vmem:[#allocation32_spill] sm:$0xff] }
 0x285   : > { %5013 = vst.msk [vmem:[#allocation4 + $0x60] sm:$0xf] %vm17175_vm14, %v4817_v29  ;;  %v9806_v2 = vpack.c.bf16 %v4426_v25, %v4426_v25  ;;  %v4427_v45 = vsel %vm14448_vm4, %v3742_v15, 0.0  ;;  %v3740_v43 = vmax.f32 %v3704_v23, 0.0  ;;  %vm17177_vm15 = vnez %v17176_v12 }
 0x286   : > { %v17180_v18 = vsel %vm17177_vm15, %v17178_v20, %v17179_v22  ;;  %v9804_v19 = vpack.c.bf16 %v4424_v4, %v4424_v4  ;;  %v9807_v54 = vpack.c.bf16 %v4427_v45, %v4427_v45  ;;  %v5205_v55 = vor.u32 %v5203_v48, %v5201_v11 }
 0x287   : > { %vm14520_vm12 = vcmp.lt.s32.totalorder %v17180_v18, 16  ;;  %v5209_v16 = vrot.slane %v5207_v27, 1  ;;  %v4850_v41 = vshrl.u32 %v9806_v2, 16  ;;  %v4853_v5 = vshll.u32 %v9806_v2, 16  ;;  %v14577_v18 = vld [vmem:[%s16466_s3 + $0x28] sm:$0xff]  }
 0x288   : > { %v4425_v28 = vsel %vm14461_vm7, %v3740_v43, 0.0  ;;  %v3666_v40 = vadd.f32 %v10495_v14, %v13833_v34  ;;  %v4830_v37 = vshrl.u32 %v9804_v19, 16  ;;  %v4833_v33 = vshll.u32 %v9804_v19, 16  ;;  %vm17189_vm7 = vmmov %vm17173_vm0  ;;  %10691 = vmatprep.subr.bf16.mxu0 %v14577_v18 }
 0x289   : > { %v4860_v50 = vshrl.u32 %v9807_v54, 16  ;;  %v4863_v38 = vshll.u32 %v9807_v54, 16  ;;  %v4852_v3 = vrot.slane %v4850_v41, 6  ;;  %v4855_v31 = vrot.slane %v4853_v5, 7  ;;  %v14556_v23 = vld [vmem:[#allocation4 + $0x58] sm:$0xff]   ;;  %v17206_v41 = vld [vmem:[#allocation31_spill] sm:$0xff] }
 0x28a   : > { %v9805_v24 = vpack.c.bf16 %v4425_v28, %v4425_v28  ;;  %vm17183_vm10 = vsmask.f32 7424  ;;  %vm17184_vm4 = vnez %v16903_v8  ;;  %v4832_v34 = vrot.slane %v4830_v37, 6  ;;  %v17192_v8 = vld [vmem:[#allocation57_spill] sm:$0xff] }
 0x28b   : > { %v5210_v63 = vsel %vm17183_vm10, %v5205_v55, %v5209_v16  ;;  %v17186_v21 = vsel %vm17184_vm4, %v13797_v57, %v17185_v7  ;;  %v4835_v11 = vrot.slane %v4833_v33, 7  ;;  %v4862_v9 = vrot.slane %v4860_v50, 6  ;;  %v17205_v55 = vld [vmem:[#allocation28_spill] sm:$0xff]  ;;  %v17220_v57 = vld [vmem:[#allocation37_spill] sm:$0xff] }
 0x28c   : > { %vm14533_vm11 = vcmp.lt.s32.totalorder %v17186_v21, 16  ;;  %v4865_v14 = vrot.slane %v4863_v38, 7  ;;  %10511 = vmatprep.mubr.msk.bf16.mxu1 %vm17189_vm7, %v5210_v63  ;;  %v4856_v52 = vor.u32 %v4855_v31, %v4852_v3  ;;  %v4840_v26 = vshrl.u32 %v9805_v24, 16  ;;  %v14562_v2 = vld [vmem:[#allocation4 + $0x60] sm:$0xff]   ;;  %v17210_v31 = vld [vmem:[#allocation8_spill] sm:$0xff] }
 0x28d   : > { %v4843_v1 = vshll.u32 %v9805_v24, 16  ;;  %v5213_v47 = vor.u32 %v5211_v13, %v5209_v16  ;;  %vm17191_vm13 = vnez %v17190_v62  ;;  %v17197_v30 = vsel %vm13912_vm1, %v13917_v10, %v13809_v60  ;;  %v3608_v13 = vpop.f32.mrf.mxu0  ;;  %v17200_v60 = vld [vmem:[#allocation29_spill] sm:$0xff]  ;;  %vm17201_vm1 = vmmov %vm17189_vm7 }
 0x28e   : > { %v17194_v51 = vsel %vm17191_vm13, %v17192_v8, %v17193_v0  ;;  %vm14552_vm6 = vcmp.lt.s32.totalorder %v17197_v30, 16  ;;  %v4836_v48 = vor.u32 %v4835_v11, %v4832_v34  ;;  %v14558_v29 = vor.u32 %v4865_v14, %v4862_v9  ;;  %10562 = vmatmul.mubr.msk.bf16.gmra.mxu0 %vm17201_vm1, %v14556_v23  ;;  %vm17202_vm14 = vmmov %vm17201_vm1 }
 0x28f   : > { %vm14543_vm0 = vcmp.lt.s32.totalorder %v17194_v51, 16  ;;  %v3709_v25 = vadd.f32 %v14498_v46, %v3666_v40  ;;  %v5215_v27 = vshll.u32 %v14323_v59, 16  ;;  %v4858_v49 = vrot.slane %v4856_v52, 4  ;;  %10565 = vmatprep.mubr.msk.bf16.mxu0 %vm17202_vm14, %v14562_v2  ;;  %v10499_v40 = vpop.f32.mrf.mxu0  ;;  %vm17215_vm13 = vmmov %vm17201_vm1 }
 0x290   : > { %v4842_v4 = vrot.slane %v4840_v26, 6  ;;  %v4845_v45 = vrot.slane %v4843_v1, 7  ;;  %v3664_v10 = vadd.f32 %v3605_v6, %v17200_v60  ;;  %v4837_v43 = vsel %vm14064_vm8, %v4828_v36, %v4836_v48 }
 0x291   : > { %v4838_v12 = vrot.slane %v4836_v48, 4  ;;  %v4868_v20 = vrot.slane %v14558_v29, 4  ;;  %v3745_v22 = vmax.f32 %v3709_v25, 0.0  ;;  %vm17203_vm15 = vcmask 125952   ;;  %v3621_v8 = vpop.f32.mrf.mxu0 }
 0x292   : > { %5015 = vst.msk [vmem:[#allocation4 + $0x68] sm:$0xf] %vm17203_vm15, %v4837_v43  ;;  %v4867_v56 = vsel %vm14064_vm8, %v4858_v49, %v14558_v29  ;;  %v4846_v6 = vor.u32 %v4845_v45, %v4842_v4  ;;  %v5217_v36 = vrot.slane %v5215_v27, 1  ;;  %v3707_v19 = vadd.f32 %v14498_v46, %v3664_v10  ;;  %vm17204_vm10 = vmmov %vm17203_vm15  ;;  %v17217_v27 = vld [vmem:[#allocation30_spill] sm:$0xff]  ;;  %v17238_v29 = vld [vmem:[#allocation35_spill] sm:$0xff] }
 0x293   : > { %5018 = vst.msk [vmem:[#allocation4 + $0x74] sm:$0xf] %vm17204_vm10, %v4867_v56  ;;  %v4430_v54 = vsel %vm14520_vm12, %v3745_v22, 0.0  ;;  %v3667_v16 = vadd.f32 %v10496_v17, %v17205_v55  ;;  %v3665_v5 = vadd.f32 %v3608_v13, %v17206_v41  ;;  %v5219_v28 = vshrl.u32 %v14323_v59, 16  ;;  %vm17214_vm7 = vmmov %vm17204_vm10 }
 0x294   : > { %v4847_v37 = vsel %vm14064_vm8, %v4838_v12, %v4846_v6  ;;  %v4848_v33 = vrot.slane %v4846_v6, 4  ;;  %v9810_v50 = vpack.c.bf16 %v4430_v54, %v4430_v54  ;;  %vm17207_vm4 = vsmask.f32 7424  ;;  %v17221_v6 = vld [vmem:[#allocation24_spill] sm:$0xff] }
 0x295   : > { %v5218_v38 = vsel %vm17207_vm4, %v5213_v47, %v5217_v36  ;;  %v17211_v24 = vsel %vm13936_vm3, %v17209_v39, %v17210_v31  ;;  %5016 = vst.msk [vmem:[#allocation4 + $0x6c] sm:$0xf] %vm17214_vm7, %v4847_v37  ;;  %v3743_v59 = vmax.f32 %v3707_v19, 0.0  ;;  %v3710_v63 = vadd.f32 %v14498_v46, %v3667_v16  ;;  %vm17216_vm3 = vmmov %vm17214_vm7  ;;  %v10500_v19 = vpop.f32.mrf.mxu0 }
 0x296   : > { %vm14599_vm12 = vcmp.lt.s32.totalorder %v17211_v24, 16  ;;  %10512 = vmatmul.mubr.msk.bf16.gmra.mxu1 %vm17215_vm13, %v5218_v38  ;;  %v3708_v7 = vadd.f32 %v14498_v46, %v3665_v5  ;;  %v5221_v21 = vor.u32 %v5219_v28, %v5217_v36  ;;  %v4857_v34 = vsel %vm14064_vm8, %v4848_v33, %v4856_v52  ;;  %v17228_v38 = vld [vmem:[#allocation34_spill] sm:$0xff]  ;;  %vm17236_vm15 = vmmov %vm17216_vm3 }
 0x297   : > { %v4890_v11 = vshrl.u32 %v9810_v50, 16  ;;  %v4893_v9 = vshll.u32 %v9810_v50, 16  ;;  %v5223_v14 = vshll.u32 %v14389_v58, 16  ;;  %5017 = vst.msk [vmem:[#allocation4 + $0x70] sm:$0xf] %vm17216_vm3, %v4857_v34  ;;  %v4428_v26 = vsel %vm14533_vm11, %v3743_v59, 0.0  ;;  %vm17218_vm11 = vmmov %vm17207_vm4 }
 0x298   : > { %v3746_v1 = vmax.f32 %v3710_v63, 0.0  ;;  %v3744_v47 = vmax.f32 %v3708_v7, 0.0  ;;  %v5227_v62 = vshrl.u32 %v14389_v58, 16  ;;  %v9808_v30 = vpack.c.bf16 %v4428_v26, %v4428_v26  ;;  %v17227_v50 = vld [vmem:[#allocation33_spill] sm:$0xff]  ;;  %vm17241_vm7 = vmmov %vm17216_vm3 }
 0x299   : > { %v4892_v0 = vrot.slane %v4890_v11, 6  ;;  %v4895_v51 = vrot.slane %v4893_v9, 7  ;;  %v5225_v48 = vrot.slane %v5223_v14, 1  ;;  %v3670_v13 = vadd.f32 %v10499_v40, %v17217_v27  ;;  %v17232_v7 = vld [vmem:[#allocation45_spill] sm:$0xff] }
 0x29a   : > { %v4431_v52 = vsel %vm14543_vm0, %v3746_v1, 0.0  ;;  %v4429_v25 = vsel %vm14552_vm6, %v3744_v47, 0.0  ;;  %v5231_v44 = vshll.u32 %v14394_v35, 16  ;;  %v4870_v4 = vshrl.u32 %v9808_v30, 16  ;;  %vm17225_vm6 = vmmov %vm17201_vm1  ;;  %v3624_v1 = vpop.f32.mrf.mxu0 }
 0x29b   : > { %v4896_v49 = vor.u32 %v4895_v51, %v4892_v0  ;;  %v4873_v45 = vshll.u32 %v9808_v30, 16  ;;  %v9811_v60 = vpack.c.bf16 %v4431_v52, %v4431_v52  ;;  %v9809_v10 = vpack.c.bf16 %v4429_v25, %v4429_v25  ;;  %v17239_v25 = vld [vmem:[#allocation47_spill] sm:$0xff] }
 0x29c   : > { %v5226_v43 = vsel %vm17218_vm11, %v5221_v21, %v5225_v48  ;;  %v5229_v12 = vor.u32 %v5227_v62, %v5225_v48  ;;  %v3713_v22 = vadd.f32 %v14498_v46, %v3670_v13  ;;  %v17222_v15 = vsel %vm13955_vm2, %v17220_v57, %v17221_v6  ;;  %v14641_v31 = vld [vmem:[#allocation4 + $0x68] sm:$0xff]   ;;  %vm17242_vm11 = vmmov %vm17241_vm7 }
 0x29d   : > { %vm14627_vm0 = vcmp.lt.s32.totalorder %v17222_v15, 16  ;;  %v4898_v54 = vrot.slane %v4896_v49, 4  ;;  %v4872_v55 = vrot.slane %v4870_v4, 6  ;;  %v4875_v16 = vrot.slane %v4873_v45, 7  ;;  %10515 = vmatprep.mubr.msk.bf16.mxu1 %vm17225_vm6, %v5226_v43 }
 0x29e   : > { %v4900_v41 = vshrl.u32 %v9811_v60, 16  ;;  %v4903_v5 = vshll.u32 %v9811_v60, 16  ;;  %v4880_v28 = vshrl.u32 %v9809_v10, 16  ;;  %v4883_v40 = vshll.u32 %v9809_v10, 16  ;;  %v14644_v34 = vld [vmem:[#allocation4 + $0x70] sm:$0xff]  }
 0x29f   : > { %v3749_v37 = vmax.f32 %v3713_v22, 0.0  ;;  %v17229_v3 = vsel %vm13972_vm5, %v17227_v50, %v17228_v38  ;;  %v4876_v24 = vor.u32 %v4875_v16, %v4872_v55  ;;  %v5233_v63 = vrot.slane %v5231_v44, 1  ;;  %vm17233_vm5 = vmmov %vm17201_vm1 }
 0x2a0   : > { %vm14637_vm2 = vcmp.lt.s32.totalorder %v17229_v3, 16  ;;  %v4902_v59 = vrot.slane %v4900_v41, 6  ;;  %v3668_v21 = vadd.f32 %v3621_v8, %v17232_v7  ;;  %v4905_v11 = vrot.slane %v4903_v5, 7  ;;  %10566 = vmatmul.mubr.msk.bf16.gmra.mxu0 %vm17233_vm5, %v14641_v31  ;;  %vm17234_vm1 = vmmov %vm17207_vm4 }
 0x2a1   : > { %v4882_v9 = vrot.slane %v4880_v28, 6  ;;  %v4885_v14 = vrot.slane %v4883_v40, 7  ;;  %v4434_v26 = vsel %vm14599_vm12, %v3749_v37, 0.0  ;;  %v4877_v47 = vsel %vm14064_vm8, %v4868_v20, %v4876_v24  ;;  %vm17235_vm14 = vmmov %vm17233_vm5 }
 0x2a2   : > { %v4878_v62 = vrot.slane %v4876_v24, 4  ;;  %v9814_v0 = vpack.c.bf16 %v4434_v26, %v4434_v26  ;;  %v5234_v8 = vsel %vm17234_vm1, %v5229_v12, %v5233_v63  ;;  %10569 = vmatprep.mubr.msk.bf16.mxu0 %vm17235_vm14, %v14644_v34  ;;  %5019 = vst.msk [vmem:[#allocation4 + $0x78] sm:$0xf] %vm17236_vm15, %v4877_v47  ;;  %v14658_v17 = vor.u32 %v4905_v11, %v4902_v59  ;;  %vm17237_vm10 = vmmov %vm17233_vm5 }
 0x2a3   : > { %v4886_v51 = vor.u32 %v4885_v14, %v4882_v9  ;;  %10516 = vmatmul.mubr.msk.bf16.gmra.mxu1 %vm17237_vm10, %v5234_v8  ;;  %v3711_v30 = vadd.f32 %v14498_v46, %v3668_v21  ;;  %v3671_v48 = vadd.f32 %v10500_v19, %v17238_v29  ;;  %v3669_v27 = vadd.f32 %v3624_v1, %v17239_v25  ;;  %vm17240_vm12 = vmmov %vm17216_vm3  ;;  %v14766_v25 = vld [vmem:[#allocation4 + $0x38] sm:$0xff]  }
 0x2a4   : > { %v4930_v52 = vshrl.u32 %v9814_v0, 16  ;;  %v4933_v20 = vshll.u32 %v9814_v0, 16  ;;  %vm4217_vm4 = vcmp.ne.s32.totalorder %v14160_v32, 0  ;;  %v4907_v13 = vsel %vm14064_vm8, %v4898_v54, %v14658_v17 }
 0x2a5   : > { %v4908_v44 = vrot.slane %v14658_v17, 4  ;;  %v4887_v4 = vsel %vm14064_vm8, %v4878_v62, %v4886_v51  ;;  %v4888_v45 = vrot.slane %v4886_v51, 4  ;;  %5022 = vst.msk [vmem:[#allocation4 + $0x84] sm:$0xf] %vm17240_vm12, %v4907_v13  ;;  %v3747_v43 = vmax.f32 %v3711_v30, 0.0 }
 0x2a6   : > { %5020 = vst.msk [vmem:[#allocation4 + $0x7c] sm:$0xf] %vm17241_vm7, %v4887_v4  ;;  %v4932_v60 = vrot.slane %v4930_v52, 6  ;;  %v4935_v10 = vrot.slane %v4933_v20, 7  ;;  %v3714_v12 = vadd.f32 %v14498_v46, %v3671_v48  ;;  %vm5027_vm13 = vcmask 123904  }
 0x2a7   : > { %v4897_v22 = vsel %vm14064_vm8, %v4888_v45, %v4896_v49  ;;  %v3712_v56 = vadd.f32 %v14498_v46, %v3669_v27  ;;  %vm4253_vm3 = vcmp.lt.s32.totalorder %v14160_v32, 0  ;;  %v4325_v57 = vadd.s32 18, %v14160_v32  ;;  %v5029_v27 = vld [vmem:[#allocation4 + $0x98] sm:$0x3] }
 0x2a8   : > { %5021 = vst.msk [vmem:[#allocation4 + $0x80] sm:$0xf] %vm17242_vm11, %v4897_v22  ;;  %v14680_v6 = vor.u32 %v4935_v10, %v4932_v60  ;;  %v4432_v15 = vsel %vm14627_vm0, %v3747_v43, 0.0  ;;  %v3750_v19 = vmax.f32 %v3714_v12, 0.0  ;;  %vm4289_vm6 = vmand %vm4253_vm3, %vm4217_vm4  ;;  %v5235_v49 = vshrl.u32 %v14394_v35, 16 }
 0x2a9   : > { %v9812_v54 = vpack.c.bf16 %v4432_v15, %v4432_v15  ;;  %v3748_v55 = vmax.f32 %v3712_v56, 0.0  ;;  %v4361_v46 = vsel %vm4289_vm6, %v4325_v57, %v14160_v32  ;;  %v5239_v16 = vshll.u32 %v14477_v42, 16  ;;  %vm17243_vm0 = vmmov %vm17234_vm1  ;;  %v5772_v15 = vld [vmem:[#allocation4] sm:$0xe] }
 0x2aa   : > { %v4938_v41 = vrot.slane %v14680_v6, 4  ;;  %v4435_v5 = vsel %vm14637_vm2, %v3750_v19, 0.0  ;;  %vm4397_vm5 = vcmp.lt.s32.totalorder %v4361_v46, 16  ;;  %v5237_v36 = vor.u32 %v5235_v49, %v5233_v63  ;;  %vm17244_vm2 = vmmov %vm17237_vm10  ;;  %v14731_v46 = vld [vmem:[#allocation4 + $0xc] sm:$0xf] }
 0x2ab   : > { %v4910_v28 = vshrl.u32 %v9812_v54, 16  ;;  %v4913_v40 = vshll.u32 %v9812_v54, 16  ;;  %v9815_v37 = vpack.c.bf16 %v4435_v5, %v4435_v5  ;;  %v4433_v33 = vsel %vm4397_vm5, %v3748_v55, 0.0  ;;  %vm17245_vm1 = vmmov %vm17244_vm2 }
 0x2ac   : > { %v9813_v50 = vpack.c.bf16 %v4433_v33, %v4433_v33  ;;  %v5241_v38 = vrot.slane %v5239_v16, 1  ;;  %v5243_v3 = vshrl.u32 %v14477_v42, 16  ;;  %v5247_v24 = vshll.u32 %v14491_v61, 16  ;;  %vm17246_vm14 = vmmov %vm17243_vm0 }
 0x2ad   : > { %v4912_v32 = vrot.slane %v4910_v28, 6  ;;  %v4915_v59 = vrot.slane %v4913_v40, 7  ;;  %v4940_v7 = vshrl.u32 %v9815_v37, 16  ;;  %v4943_v21 = vshll.u32 %v9815_v37, 16  ;;  %v14695_v63 = vld [vmem:[#allocation4 + $0x78] sm:$0xff]   ;;  %vm17247_vm15 = vmmov %vm17245_vm1 }
 0x2ae   : > { %v4920_v11 = vshrl.u32 %v9813_v50, 16  ;;  %v4923_v9 = vshll.u32 %v9813_v50, 16  ;;  %v5242_v39 = vsel %vm17243_vm0, %v5237_v36, %v5241_v38  ;;  %v5245_v14 = vor.u32 %v5243_v3, %v5241_v38  ;;  %10570 = vmatmul.mubr.msk.bf16.gmra.mxu0 %vm17245_vm1, %v14695_v63  ;;  %vm17248_vm10 = vmmov %vm17241_vm7  ;;  %v14738_v36 = vld [vmem:[#allocation4 + $0x10] sm:$0xff]   ;;  %v6089_v50 = vld [vmem:[#allocation4 + $0x8] sm:$0xe] }
 0x2af   : > { %v4916_v26 = vor.u32 %v4915_v59, %v4912_v32  ;;  %v4942_v1 = vrot.slane %v4940_v7, 6  ;;  %v4945_v47 = vrot.slane %v4943_v21, 7  ;;  %10519 = vmatprep.mubr.msk.bf16.mxu1 %vm17244_vm2, %v5242_v39  ;;  %v5249_v62 = vrot.slane %v5247_v24, 1  ;;  %v14698_v0 = vld [vmem:[#allocation4 + $0x80] sm:$0xff]   ;;  %vm14712_vm4 = vmand %vm5027_vm13, %vm4587_vm9  ;;  %v14752_v39 = vld [vmem:[#allocation4 + $0x18] sm:$0xff]  }
 0x2b0   : > { %v4922_v8 = vrot.slane %v4920_v11, 6  ;;  %v4925_v17 = vrot.slane %v4923_v9, 7  ;;  %v5251_v51 = vshrl.u32 %v14491_v61, 16  ;;  %v5255_v30 = vshll.u32 %v14556_v23, 16  ;;  %10573 = vmatprep.mubr.msk.bf16.mxu0 %vm17247_vm15, %v14698_v0  ;;  %vm17251_vm12 = vmmov %vm17245_vm1 }
 0x2b1   : > { %v4917_v29 = vsel %vm14064_vm8, %v4908_v44, %v4916_v26  ;;  %v4918_v48 = vrot.slane %v4916_v26, 4  ;;  %v4946_v52 = vor.u32 %v4945_v47, %v4942_v1  ;;  %v5250_v20 = vsel %vm17246_vm14, %v5245_v14, %v5249_v62  ;;  %vm17252_vm9 = vmmov %vm17243_vm0  ;;  %v14754_v14 = vld [vmem:[#allocation4 + $0x20] sm:$0xff]  }
 0x2b2   : > { %5023 = vst.msk [vmem:[#allocation4 + $0x88] sm:$0xf] %vm17248_vm10, %v4917_v29  ;;  %v4926_v13 = vor.u32 %v4925_v17, %v4922_v8  ;;  %10520 = vmatmul.mubr.msk.bf16.gmra.mxu1 %vm17251_vm12, %v5250_v20  ;;  %v5253_v44 = vor.u32 %v5251_v51, %v5249_v62  ;;  %v5257_v4 = vrot.slane %v5255_v30, 1  ;;  %v5259_v45 = vshrl.u32 %v14556_v23, 16  ;;  %vm17253_vm13 = vmmov %vm17241_vm7  ;;  %v14758_v62 = vld [vmem:[#allocation4 + $0x28] sm:$0xff]   ;;  %v14760_v8 = vld [vmem:[#allocation4 + $0x30] sm:$0xff]  }
 0x2b3   : > { %v4947_v60 = vsel %vm14064_vm8, %v4938_v41, %v4946_v52  ;;  %v4948_v10 = vrot.slane %v4946_v52, 4  ;;  %v5263_v43 = vshll.u32 %v14562_v2, 16  ;;  %vm17254_vm3 = vmmov %vm17245_vm1  ;;  %v5267_v54 = vshrl.u32 %v14562_v2, 16  ;;  %v11102_v30 = vld [vmem:[#allocation4 + $0x10] sm:$0xff]  }
 0x2b4   : > { %5026 = vst.msk [vmem:[#allocation4 + $0x94] sm:$0xf] %vm17241_vm7, %v4947_v60  ;;  %v4927_v12 = vsel %vm14064_vm8, %v4918_v48, %v4926_v13  ;;  %v4928_v22 = vrot.slane %v4926_v13, 4  ;;  %v5258_v56 = vsel %vm17252_vm9, %v5253_v44, %v5257_v4  ;;  %v5261_v57 = vor.u32 %v5259_v45, %v5257_v4  ;;  %vm17255_vm11 = vmmov %vm17241_vm7  ;;  %v11103_v44 = vld [vmem:[#allocation4 + $0x8] sm:$0xff]   ;;  %v14773_v60 = vld [vmem:[#allocation4 + $0x40] sm:$0xff]  }
 0x2b5   : > { %v5030_v19 = vsel %vm14712_vm4, %v4948_v10, %v5029_v27  ;;  %5024 = vst.msk [vmem:[#allocation4 + $0x8c] sm:$0xf] %vm17253_vm13, %v4927_v12  ;;  %10523 = vmatprep.mubr.msk.bf16.mxu1 %vm17254_vm3, %v5258_v56  ;;  %v5265_v49 = vrot.slane %v5263_v43, 1  ;;  %v5271_v55 = vshll.u32 %v14641_v31, 16  ;;  %v5279_v41 = vshll.u32 %v14644_v34, 16  ;;  %vm17256_vm6 = vmmov %vm17243_vm0  ;;  %v11104_v56 = vld [vmem:[#allocation4 + $0x18] sm:$0xff]  }
 0x2b6   : > { %5031 = vst [vmem:[#allocation4 + $0x98] sm:$0x3] %v5030_v19  ;;  %v4937_v16 = vsel %vm14064_vm8, %v4928_v22, %v14680_v6  ;;  %v5287_v5 = vshll.u32 %v14695_v63, 16  ;;  %v5275_v33 = vshrl.u32 %v14641_v31, 16  ;;  %v5295_v3 = vshll.u32 %v14698_v0, 16  ;;  %vm17257_vm8 = vmmov %vm17243_vm0 }
 0x2b7   : > { %5025 = vst.msk [vmem:[#allocation4 + $0x90] sm:$0xf] %vm17255_vm11, %v4937_v16  ;;  %v5266_v28 = vsel %vm17256_vm6, %v5261_v57, %v5265_v49  ;;  %v5269_v40 = vor.u32 %v5267_v54, %v5265_v49  ;;  %v5273_v37 = vrot.slane %v5271_v55, 1  ;;  %v14745_v53 = vcombine.low %v6089_v50, %v14731_v46  ;;  %v11101_v6 = vld [vmem:[#allocation4 + $0x4] sm:$0xf]  ;;  %vm17258_vm5 = vmmov %vm17245_vm1  ;;  %v14783_v55 = vld [vmem:[#allocation4 + $0x48] sm:$0xff]  }
 0x2b8   : > { %v5289_v38 = vrot.slane %v5287_v5, 1  ;;  %v9586_v24 = vcombine.low %v5772_v15, %v11101_v6  ;;  %v5281_v7 = vrot.slane %v5279_v41, 1  ;;  %v5291_v21 = vshrl.u32 %v14695_v63, 16  ;;  %vm17259_vm0 = vmmov %vm17245_vm1  ;;  %v14785_v16 = vld [vmem:[#allocation4 + $0x8] sm:$0xc] }
 0x2b9   : > { %v5274_v32 = vsel %vm17257_vm8, %v5269_v40, %v5273_v37  ;;  %v5277_v59 = vor.u32 %v5275_v33, %v5273_v37  ;;  %v6222_v11 = vrot.slane %v14745_v53, 1  ;;  %v6223_v9 = vrot.slane %v14738_v36, 1  ;;  %vm17260_vm2 = vmmov %vm17256_vm6  ;;  %v11106_v37 = vld [vmem:[#allocation4 + $0x28] sm:$0xff]  }
 0x2ba   : > { %10524 = vmatmul.mubr.msk.bf16.gmra.mxu1 %vm17258_vm5, %v5266_v28  ;;  %v5283_v26 = vshrl.u32 %v14644_v34, 16  ;;  %v5293_v1 = vor.u32 %v5291_v21, %v5289_v38  ;;  %v5297_v47 = vrot.slane %v5295_v3, 1  ;;  %v5779_v51 = vrot.slane %v9586_v24, 1  ;;  %vm17261_vm1 = vmmov %vm17259_vm0  ;;  %v11105_v28 = vld [vmem:[#allocation4 + $0x20] sm:$0xff]  }
 0x2bb   : > { %10527 = vmatprep.mubr.msk.bf16.mxu1 %vm17259_vm0, %v5274_v32  ;;  %v5782_v29 = vrot.slane %v11102_v30, 1  ;;  %v5282_v48 = vsel %vm17260_vm2, %v5277_v59, %v5281_v7  ;;  %v5299_v20 = vshrl.u32 %v14698_v0, 16  ;;  %vm17262_vm14 = vcmask 1046528   ;;  %vm17263_vm15 = vmmov %vm17260_vm2 }
 0x2bc   : > { %v14762_v17 = vld [vmem:[#allocation4 + $0x88] sm:$0xff]   ;;  %v5285_v52 = vor.u32 %v5283_v26, %v5281_v7  ;;  %v6224_v27 = vsel %vm17262_vm14, %v6222_v11, %v6223_v9  ;;  %v5780_v4 = vrot.slane %v11103_v44, 1  ;;  %v6225_v45 = vrot.slane %v14752_v39, 1  ;;  %vm17264_vm10 = vmmov %vm17260_vm2  ;;  %v14804_v7 = vld [vmem:[#allocation4 + $0x50] sm:$0xff]  }
 0x2bd   : > { %10574 = vmatmul.mubr.msk.bf16.gmra.mxu0 %vm17261_vm1, %v14762_v17  ;;  %v5303_v13 = vshll.u32 %v14762_v17, 16  ;;  %v5298_v43 = vsel %vm17264_vm10, %v5293_v1, %v5297_v47  ;;  %vm17265_vm4 = vmmov %vm17259_vm0  ;;  %v6227_v22 = vrot.slane %v14754_v14, 1  ;;  %v5784_v57 = vrot.slane %v11104_v56, 1  ;;  %v14828_v44 = vld [vmem:[#allocation4 + $0x60] sm:$0xff]  }
 0x2be   : > { %v5290_v10 = vsel %vm17263_vm15, %v5285_v52, %v5289_v38  ;;  %10617 = vmatprep.mubr.msk.bf16.mxu0 %vm17265_vm4, %v6224_v27  ;;  %v14778_v12 = vld [vmem:[#allocation4 + $0x90] ss:$0 sps:$4 sm:$0x11]   ;;  %v5301_v15 = vor.u32 %v5299_v20, %v5297_v47  ;;  %v6229_v49 = vrot.slane %v14758_v62, 1  ;;  %v6231_v54 = vrot.slane %v14760_v8, 1  ;;  %vm17266_vm12 = vmmov %vm17259_vm0  ;;  %v14817_v52 = vld [vmem:[#allocation4 + $0x58] sm:$0xff]  }
 0x2bf   : > { %v5305_v19 = vrot.slane %v5303_v13, 1  ;;  %v5307_v41 = vshrl.u32 %v14762_v17, 16  ;;  %v5311_v5 = vshll.u32 %v14778_v12, 16  ;;  %v5786_v40 = vrot.slane %v11105_v28, 1  ;;  %vm17267_vm7 = vmmov %vm17262_vm14 }
 0x2c0   : > { %v5788_v33 = vrot.slane %v11106_v37, 1  ;;  %v14791_v50 = vsel %vm17267_vm7, %v5779_v51, %v5780_v4  ;;  %vm17268_vm9 = vmmov %vm17267_vm7  ;;  %v6233_v3 = vrot.slane %v14766_v25, 1  ;;  %v6235_v6 = vrot.slane %v14773_v60, 1 }
 0x2c1   : > { %v6226_v38 = vsel %vm17268_vm9, %v6223_v9, %v6225_v45  ;;  %vm17269_vm13 = vmmov %vm17259_vm0  ;;  %v9670_v21 = vcombine.low %v14785_v16, %v14731_v46  ;;  %v5309_v11 = vor.u32 %v5307_v41, %v5305_v19  ;;  %v5313_v9 = vrot.slane %v5311_v5, 1 }
 0x2c2   : > { %10528 = vmatmul.mubr.msk.bf16.gmra.mxu1 %vm17266_vm12, %v5282_v48  ;;  %vm17270_vm3 = vmmov %vm17267_vm7  ;;  %v5792_v27 = vrot.slane %v14389_v58, 1  ;;  %v6237_v13 = vrot.slane %v14783_v55, 1  ;;  %v5800_v56 = vrot.slane %v14556_v23, 1  ;;  %v6241_v16 = vrot.slane %v14817_v52, 1 }
 0x2c3   : > { %10531 = vmatprep.mubr.msk.bf16.mxu1 %vm17269_vm13, %v5290_v10  ;;  %v6228_v24 = vsel %vm17270_vm3, %v6225_v45, %v6227_v22  ;;  %vm17271_vm11 = vmmov %vm17270_vm3  ;;  %v6239_v45 = vrot.slane %v14804_v7, 1  ;;  %v16604_v10 = vrot.slane %v14477_v42, 1 }
 0x2c4   : > { %v14799_v32 = vsel %vm17271_vm11, %v5780_v4, %v5782_v29  ;;  %vm17272_vm6 = vmmov %vm17270_vm3  ;;  %v14830_v4 = vld [vmem:[#allocation4 + $0x68] sm:$0xff]  }
 0x2c5   : > { %v14802_v59 = vsel %vm17272_vm6, %v5782_v29, %v5784_v57  ;;  %vm17273_vm8 = vmmov %vm17270_vm3  ;;  %v11107_v29 = vld [vmem:[#allocation4 + $0x30] sm:$0xff]  }
 0x2c6   : > { %v6230_v26 = vsel %vm17273_vm8, %v6227_v22, %v6229_v49  ;;  %vm17274_vm5 = vmmov %vm17270_vm3  ;;  %v5790_v48 = vrot.slane %v11107_v29, 1  ;;  %v5798_v22 = vrot.slane %v14491_v61, 1  ;;  %v6990_v29 = vrot.slane %v14738_v36, 2 }
 0x2c7   : > { %v6232_v1 = vsel %vm17274_vm5, %v6229_v49, %v6231_v54  ;;  %vm17275_vm0 = vmmov %vm17260_vm2  ;;  %v5804_v49 = vrot.slane %v14641_v31, 1 }
 0x2c8   : > { %v5306_v47 = vsel %vm17275_vm0, %v5301_v15, %v5305_v19  ;;  %vm17276_vm2 = vmmov %vm17270_vm3  ;;  %v14840_v15 = vld [vmem:[#allocation4 + $0x70] sm:$0xff]   ;;  %v5802_v19 = vrot.slane %v14562_v2, 1  ;;  %v6245_v2 = vrot.slane %v14830_v4, 1 }
 0x2c9   : > { %v14812_v51 = vsel %vm17276_vm2, %v5784_v57, %v5786_v40  ;;  %vm17277_vm1 = vmmov %vm17276_vm2  ;;  %v16603_v57 = vrot.slane %v14394_v35, 1 }
 0x2ca   : > { %v14815_v30 = vsel %vm17277_vm1, %v5786_v40, %v5788_v33  ;;  %vm17278_vm14 = vmmov %vm17265_vm4  ;;  %v5808_v40 = vrot.slane %v14695_v63, 1 }
 0x2cb   : > { %10618 = vmatmul.mubr.msk.bf16.vlgmr.msra.gmra.mxu0 %vm17278_vm14, %v6226_v38  ;;  %vm17279_vm15 = vmmov %vm17277_vm1  ;;  %v5810_v38 = vrot.slane %v14698_v0, 1 }
 0x2cc   : > { %v14821_v46 = vsel %vm17279_vm15, %v6231_v54, %v6233_v3  ;;  %vm17280_vm10 = vmmov %vm17277_vm1  ;;  %10621 = vmatprep.mubr.msk.bf16.mxu0 %vm17265_vm4, %v6228_v24  ;;  %10692 = vmatpush3.bf16.msra.mxu0 %v14577_v18  ;;  %v6243_v18 = vrot.slane %v14828_v44, 1 }
 0x2cd   : > { %v14824_v20 = vsel %vm17280_vm10, %v6233_v3, %v6235_v6  ;;  %vm17281_vm12 = vmmov %vm17275_vm0  ;;  %v5812_v3 = vrot.slane %v14762_v17, 1 }
 0x2ce   : > { %v5314_v58 = vsel %vm17281_vm12, %v5309_v11, %v5313_v9  ;;  %vm17282_vm7 = vmmov %vm17277_vm1 }
 0x2cf   : > { %v14845_v54 = vsel %vm17282_vm7, %v5788_v33, %v5790_v48  ;;  %vm17283_vm9 = vmmov %vm17277_vm1  ;;  %v16602_v33 = vrot.slane %v14840_v15, 1 }
 0x2d0   : > { %v14851_v61 = vsel %vm17283_vm9, %v16604_v10, %v5798_v22  ;;  %vm17284_vm13 = vmmov %vm17277_vm1 }
 0x2d1   : > { %v14854_v23 = vsel %vm17284_vm13, %v5798_v22, %v5800_v56  ;;  %vm17285_vm3 = vmmov %vm17265_vm4  ;;  %v6551_v22 = vshll.u32 %v14738_v36, 16 }
 0x2d2   : > { %10532 = vmatmul.mubr.msk.bf16.gmra.mxu1 %vm17285_vm3, %v5298_v43  ;;  %vm17286_vm11 = vmmov %vm17277_vm1  ;;  %v5806_v43 = vrot.slane %v14644_v34, 1 }
 0x2d3   : > { %v14860_v31 = vsel %vm17286_vm11, %v5800_v56, %v5802_v19  ;;  %vm17287_vm6 = vmmov %vm17277_vm1  ;;  %v6992_v56 = vrot.slane %v14752_v39, 2 }
 0x2d4   : > { %v14863_v41 = vsel %vm17287_vm6, %v5802_v19, %v5804_v49  ;;  %vm17288_vm8 = vmmov %vm17285_vm3  ;;  %vm17302_vm6 = vcmask 1045504  }
 0x2d5   : > { %10535 = vmatprep.mubr.msk.bf16.mxu1 %vm17288_vm8, %v5306_v47  ;;  %vm17289_vm5 = vmmov %vm17277_vm1  ;;  %v6989_v47 = vrot.slane %v9670_v21, 2 }
 0x2d6   : > { %v14867_v5 = vsel %vm17289_vm5, %v5790_v48, %v5792_v27  ;;  %vm17290_vm0 = vmmov %vm17277_vm1  ;;  %v5814_v48 = vrot.slane %v14778_v12, 1 }
 0x2d7   : > { %v14870_v28 = vsel %vm17290_vm0, %v6235_v6, %v6237_v13  ;;  %vm17291_vm2 = vmmov %vm17290_vm0 }
 0x2d8   : > { %v14875_v37 = vsel %vm17291_vm2, %v6237_v13, %v6239_v45  ;;  %vm17292_vm1 = vmmov %vm17290_vm0  ;;  %v6543_v13 = vshll.u32 %v14745_v53, 16 }
 0x2d9   : > { %v14883_v24 = vsel %vm17292_vm1, %v5792_v27, %v16603_v57  ;;  %vm17293_vm14 = vmmov %vm17290_vm0 }
 0x2da   : > { %v14886_v6 = vsel %vm17293_vm14, %v6239_v45, %v6241_v16  ;;  %vm17294_vm15 = vmmov %vm17290_vm0  ;;  %v6548_v45 = vshrl.u32 %v14738_v36, 16  ;;  %v6545_v19 = vrot.slane %v6543_v13, 2  ;;  %v6998_v13 = vrot.slane %v14760_v8, 2 }
 0x2db   : > { %v14889_v34 = vsel %vm17294_vm15, %v5804_v49, %v5806_v43  ;;  %vm17295_vm10 = vmmov %vm17290_vm0  ;;  %vm17309_vm15 = vsmask.f32 6400 }
 0x2dc   : > { %v14892_v63 = vsel %vm17295_vm10, %v5806_v43, %v5808_v40  ;;  %vm17296_vm4 = vmmov %vm17285_vm3  ;;  %v6550_v49 = vrot.slane %v6548_v45, 1  ;;  %v6566_v43 = vshrl.u32 %v14754_v14, 16  ;;  %v6575_v45 = vshrl.u32 %v14758_v62, 16 }
 0x2dd   : > { %10622 = vmatmul.mubr.msk.bf16.gmra.mxu0 %vm17296_vm4, %v6230_v26  ;;  %vm17297_vm12 = vmmov %vm17290_vm0  ;;  %v6540_v26 = vshrl.u32 %v14745_v53, 16  ;;  %v6994_v53 = vrot.slane %v14754_v14, 2 }
 0x2de   : > { %v14896_v0 = vsel %vm17297_vm12, %v6241_v16, %v6243_v18  ;;  %vm17298_vm7 = vmmov %vm17290_vm0  ;;  %10625 = vmatprep.mubr.msk.bf16.mxu0 %vm17285_vm3, %v6232_v1  ;;  %v14920_v1 = vsel %vm17302_vm6, %v6989_v47, %v6990_v29  ;;  %v6553_v16 = vrot.slane %v6551_v22, 2 }
 0x2df   : > { %v14899_v17 = vsel %vm17298_vm7, %v6243_v18, %v6245_v2  ;;  %vm17299_vm9 = vmmov %vm17290_vm0  ;;  %v6542_v12 = vrot.slane %v6540_v26, 1  ;;  %v6557_v18 = vshrl.u32 %v14752_v39, 16  ;;  %v6568_v26 = vrot.slane %v6566_v43, 1 }
 0x2e0   : > { %v14902_v11 = vsel %vm17299_vm9, %v5808_v40, %v5810_v38  ;;  %vm17300_vm13 = vmmov %vm17290_vm0 }
 0x2e1   : > { %v14905_v9 = vsel %vm17300_vm13, %v5810_v38, %v5812_v3  ;;  %vm17301_vm11 = vmmov %vm17290_vm0  ;;  %v6546_v40 = vor.u32 %v6545_v19, %v6542_v12  ;;  %v6554_v38 = vor.u32 %v6553_v16, %v6550_v49  ;;  %v6559_v47 = vrot.slane %v6557_v18, 1 }
 0x2e2   : > { %v14914_v27 = vsel %vm17301_vm11, %v6245_v2, %v16602_v33  ;;  %vm17303_vm8 = vmmov %vm17290_vm0  ;;  %v6560_v2 = vshll.u32 %v14752_v39, 16  ;;  %v6578_v12 = vshll.u32 %v14758_v62, 16  ;;  %v6577_v16 = vrot.slane %v6575_v45, 1 }
 0x2e3   : > { %v14923_v21 = vsel %vm17303_vm8, %v5812_v3, %v5814_v48  ;;  %vm17304_vm5 = vmmov %vm17285_vm3  ;;  %v6569_v3 = vshll.u32 %v14754_v14, 16 }
 0x2e4   : > { %10536 = vmatmul.mubr.msk.bf16.gmra.mxu1 %vm17304_vm5, %v5314_v58  ;;  %vm17305_vm0 = vmmov %vm17285_vm3  ;;  %v6562_v48 = vrot.slane %v6560_v2, 2 }
 0x2e5   : > { %10579 = vmatprep.mubr.msk.bf16.mxu1 %vm17305_vm0, %v14791_v50  ;;  %vm17306_vm2 = vmmov %vm17302_vm6  ;;  %v6996_v50 = vrot.slane %v14758_v62, 2  ;;  %v6571_v39 = vrot.slane %v6569_v3, 2  ;;  %v7000_v62 = vrot.slane %v14766_v25, 2  ;;  %v7002_v3 = vrot.slane %v14773_v60, 2 }
 0x2e6   : > { %v14931_v36 = vsel %vm17306_vm2, %v6990_v29, %v6992_v56  ;;  %vm17307_vm1 = vmmov %vm17306_vm2  ;;  %v14944_v29 = vsel %vm17309_vm15, %v6546_v40, %v6554_v38  ;;  %v6563_v14 = vor.u32 %v6562_v48, %v6559_v47  ;;  %v6593_v47 = vshrl.u32 %v14766_v25, 16 }
 0x2e7   : > { %v14937_v58 = vsel %vm17307_vm1, %v6992_v56, %v6994_v53  ;;  %vm17308_vm14 = vmmov %vm17305_vm0  ;;  %v6584_v56 = vshrl.u32 %v14760_v8, 16  ;;  %v6572_v19 = vor.u32 %v6571_v39, %v6568_v26  ;;  %v6602_v26 = vshrl.u32 %v14773_v60, 16 }
 0x2e8   : > { %10626 = vmatmul.mubr.msk.bf16.gmra.mxu0 %vm17308_vm14, %v14821_v46  ;;  %vm17310_vm10 = vmmov %vm17305_vm0  ;;  %v14958_v46 = vld [vmem:[%s16466_s3 + $0x30] sm:$0xff]  }
 0x2e9   : > { %10629 = vmatprep.mubr.msk.bf16.mxu0 %vm17310_vm10, %v14824_v20  ;;  %vm17311_vm4 = vmmov %vm17307_vm1  ;;  %v6587_v20 = vshll.u32 %v14760_v8, 16  ;;  %v6586_v2 = vrot.slane %v6584_v56, 1  ;;  %v11108_v8 = vld [vmem:[%s16466_s3 + $0x20] sm:$0xff]   ;;  %v7004_v56 = vrot.slane %v14783_v55, 2 }
 0x2ea   : > { %v14951_v22 = vsel %vm17311_vm4, %v6994_v53, %v6996_v50  ;;  %vm17312_vm12 = vmmov %vm17307_vm1  ;;  %v6580_v53 = vrot.slane %v6578_v12, 2  ;;  %v6604_v12 = vrot.slane %v6602_v26, 1 }
 0x2eb   : > { %v14961_v49 = vsel %vm17312_vm12, %v6996_v50, %v6998_v13  ;;  %vm17313_vm7 = vmmov %vm17309_vm15  ;;  %v6589_v40 = vrot.slane %v6587_v20, 2  ;;  %v14988_v50 = vld [vmem:[%s16466_s3 + $0x38] sm:$0xff]  }
 0x2ec   : > { %v14965_v18 = vsel %vm17313_vm7, %v6554_v38, %v6563_v14  ;;  %vm17314_vm9 = vmmov %vm17305_vm0  ;;  %v6581_v38 = vor.u32 %v6580_v53, %v6577_v16  ;;  %10767 = vmatprep.subr.bf16.mxu0 %v14988_v50  ;;  %v7006_v53 = vrot.slane %v14804_v7, 2 }
 0x2ed   : > { %10580 = vmatmul.mubr.msk.bf16.vlgmr.msra.gmra.mxu1 %vm17314_vm9, %v14799_v32  ;;  %vm17315_vm13 = vmmov %vm17313_vm7  ;;  %v6596_v32 = vshll.u32 %v14766_v25, 16  ;;  %v6590_v39 = vor.u32 %v6589_v40, %v6586_v2  ;;  %v15010_v2 = vsel %vm17307_vm1, %v7002_v3, %v7004_v56  ;;  %v6620_v40 = vshrl.u32 %v14804_v7, 16 }
 0x2ee   : > { %v14971_v43 = vsel %vm17315_vm13, %v6563_v14, %v6572_v19  ;;  %10654 = vmatpush3.bf16.msra.mxu1 %v11108_v8  ;;  %vm17316_vm3 = vmmov %vm17305_vm0  ;;  %v6605_v14 = vshll.u32 %v14773_v60, 16  ;;  %v6611_v60 = vshrl.u32 %v14783_v55, 16 }
 0x2ef   : > { %10583 = vmatprep.mubr.msk.bf16.mxu1 %vm17316_vm3, %v14802_v59  ;;  %vm17317_vm11 = vmmov %vm17307_vm1  ;;  %10729 = vmatprep.subr.bf16.mxu1 %v14958_v46  ;;  %v6595_v59 = vrot.slane %v6593_v47, 1  ;;  %v6598_v25 = vrot.slane %v6596_v32, 2 }
 0x2f0   : > { %v14981_v48 = vsel %vm17317_vm11, %v6998_v13, %v7000_v62  ;;  %vm17318_vm6 = vmmov %vm17307_vm1  ;;  %v6607_v20 = vrot.slane %v6605_v14, 2  ;;  %v6613_v8 = vrot.slane %v6611_v60, 1  ;;  %v7010_v14 = vrot.slane %v14828_v44, 2 }
 0x2f1   : > { %v14992_v45 = vsel %vm17318_vm6, %v7000_v62, %v7002_v3  ;;  %vm17319_vm8 = vmmov %vm17313_vm7  ;;  %v6614_v62 = vshll.u32 %v14783_v55, 16 }
 0x2f2   : > { %v14996_v13 = vsel %vm17319_vm8, %v6572_v19, %v6581_v38  ;;  %vm17320_vm5 = vmmov %vm17305_vm0  ;;  %v6599_v19 = vor.u32 %v6598_v25, %v6595_v59  ;;  %v7008_v59 = vrot.slane %v14817_v52, 2  ;;  %v6629_v25 = vshrl.u32 %v14817_v52, 16 }
 0x2f3   : > { %10630 = vmatmul.mubr.msk.bf16.gmra.mxu0 %vm17320_vm5, %v14870_v28  ;;  %vm17321_vm0 = vmmov %vm17313_vm7  ;;  %v6608_v28 = vor.u32 %v6607_v20, %v6604_v12  ;;  %v6616_v26 = vrot.slane %v6614_v62, 2  ;;  %v6632_v12 = vshll.u32 %v14817_v52, 16  ;;  %v15040_v62 = vld [vmem:[#allocation4 + $0x78] sm:$0xff]   ;;  %v15048_v52 = vld [vmem:[#allocation4 + $0x80] sm:$0xff]  }
 0x2f4   : > { %v15003_v16 = vsel %vm17321_vm0, %v6581_v38, %v6590_v39  ;;  %vm17322_vm2 = vmmov %vm17316_vm3  ;;  %v6623_v38 = vshll.u32 %v14804_v7, 16  ;;  %v6631_v60 = vrot.slane %v6629_v25, 1  ;;  %v6677_v57 = vshll.u32 %v15048_v52, 16 }
 0x2f5   : > { %10633 = vmatprep.mubr.msk.bf16.mxu0 %vm17322_vm2, %v14875_v37  ;;  %vm17323_vm14 = vmmov %vm17307_vm1  ;;  %v6622_v37 = vrot.slane %v6620_v40, 1  ;;  %v6617_v7 = vor.u32 %v6616_v26, %v6613_v8 }
 0x2f6   : > { %v15015_v47 = vsel %vm17323_vm14, %v7004_v56, %v7006_v53  ;;  %vm17324_vm15 = vmmov %vm17321_vm0  ;;  %v6625_v3 = vrot.slane %v6623_v38, 2  ;;  %v6638_v56 = vshrl.u32 %v14828_v44, 16 }
 0x2f7   : > { %v15019_v32 = vsel %vm17324_vm15, %v6590_v39, %v6599_v19  ;;  %vm17325_vm10 = vmmov %vm17322_vm2 }
 0x2f8   : > { %10584 = vmatmul.mubr.msk.bf16.gmra.mxu1 %vm17325_vm10, %v14812_v51  ;;  %vm17326_vm4 = vmmov %vm17321_vm0  ;;  %v6626_v51 = vor.u32 %v6625_v3, %v6622_v37  ;;  %v6640_v8 = vrot.slane %v6638_v56, 1  ;;  %v6647_v37 = vshrl.u32 %v14830_v4, 16  ;;  %v6650_v3 = vshll.u32 %v14830_v4, 16 }
 0x2f9   : > { %v15025_v55 = vsel %vm17326_vm4, %v6599_v19, %v6608_v28  ;;  %vm17327_vm12 = vmmov %vm17322_vm2  ;;  %v6641_v19 = vshll.u32 %v14828_v44, 16  ;;  %v7014_v44 = vrot.slane %v14840_v15, 2  ;;  %v6659_v56 = vshll.u32 %v14840_v15, 16 }
 0x2fa   : > { %10587 = vmatprep.mubr.msk.bf16.mxu1 %vm17327_vm12, %v14815_v30  ;;  %vm17328_vm7 = vmmov %vm17307_vm1  ;;  %v6634_v30 = vrot.slane %v6632_v12, 2  ;;  %v6649_v12 = vrot.slane %v6647_v37, 1 }
 0x2fb   : > { %v15032_v39 = vsel %vm17328_vm7, %v7006_v53, %v7008_v59  ;;  %vm17329_vm9 = vmmov %vm17307_vm1  ;;  %v7012_v53 = vrot.slane %v14830_v4, 2  ;;  %v6643_v26 = vrot.slane %v6641_v19, 2  ;;  %v15066_v19 = vld [vmem:[#allocation4 + $0x88] sm:$0xff]   ;;  %v15074_v4 = vld [vmem:[#allocation4 + $0x90] sm:$0xff]  }
 0x2fc   : > { %v15037_v20 = vsel %vm17329_vm9, %v7008_v59, %v7010_v14  ;;  %vm17330_vm13 = vmmov %vm17321_vm0 }
 0x2fd   : > { %v15043_v40 = vsel %vm17330_vm13, %v6608_v28, %v6617_v7  ;;  %vm17331_vm3 = vmmov %vm17322_vm2  ;;  %v6635_v28 = vor.u32 %v6634_v30, %v6631_v60  ;;  %v6644_v25 = vor.u32 %v6643_v26, %v6640_v8  ;;  %v6661_v8 = vrot.slane %v6659_v56, 2 }
 0x2fe   : > { %10634 = vmatmul.mubr.msk.bf16.gmra.mxu0 %vm17331_vm3, %v14886_v6  ;;  %vm17332_vm11 = vmmov %vm17321_vm0  ;;  %v6656_v6 = vshrl.u32 %v14840_v15, 16  ;;  %v6665_v26 = vshrl.u32 %v15040_v62, 16 }
 0x2ff   : > { %v15051_v38 = vsel %vm17332_vm11, %v6617_v7, %v6626_v51  ;;  %vm17333_vm6 = vmmov %vm17322_vm2  ;;  %v15069_v33 = vsel %vm17321_vm0, %v6626_v51, %v6635_v28 }
 0x300   : > { %10637 = vmatprep.mubr.msk.bf16.mxu0 %vm17333_vm6, %v14896_v0  ;;  %vm17334_vm8 = vmmov %vm17307_vm1  ;;  %v6652_v0 = vrot.slane %v6650_v3, 2  ;;  %v6658_v60 = vrot.slane %v6656_v6, 1  ;;  %10588 = vmatmul.mubr.msk.bf16.gmra.mxu1 %vm17322_vm2, %v14845_v54  ;;  %v6668_v3 = vshll.u32 %v15040_v62, 16  ;;  %v6674_v54 = vshrl.u32 %v15048_v52, 16 }
 0x301   : > { %v15058_v59 = vsel %vm17334_vm8, %v7010_v14, %v7012_v53  ;;  %vm17335_vm5 = vmmov %vm17307_vm1  ;;  %v7016_v14 = vrot.slane %v15040_v62, 2  ;;  %v6667_v56 = vrot.slane %v6665_v26, 1  ;;  %v6686_v26 = vshll.u32 %v15066_v19, 16 }
 0x302   : > { %v15063_v7 = vsel %vm17335_vm5, %v7012_v53, %v7014_v44  ;;  %vm17336_vm1 = vmmov %vm17321_vm0  ;;  %v7018_v53 = vrot.slane %v15048_v52, 2  ;;  %v6653_v51 = vor.u32 %v6652_v0, %v6649_v12  ;;  %v6662_v6 = vor.u32 %v6661_v8, %v6658_v60 }
 0x303   : > { %v15077_v30 = vsel %vm17336_vm1, %v6635_v28, %v6644_v25  ;;  %vm17338_vm14 = vmmov %vm17322_vm2  ;;  %v7020_v12 = vrot.slane %v15066_v19, 2  ;;  %v6679_v0 = vrot.slane %v6677_v57, 2  ;;  %v16605_v60 = vrot.slane %v15074_v4, 2 }
 0x304   : > { %17337 = vst [vmem:[#allocation43_spill] sm:$0xff] %v15077_v30  ;;  %10591 = vmatprep.mubr.msk.bf16.mxu1 %vm17338_vm14, %v14867_v5  ;;  %vm17339_vm15 = vmmov %vm17335_vm5  ;;  %v6670_v30 = vrot.slane %v6668_v3, 2  ;;  %v6676_v5 = vrot.slane %v6674_v54, 1  ;;  %v6692_v3 = vshrl.u32 %v15074_v4, 16  ;;  %v6695_v54 = vshll.u32 %v15074_v4, 16 }
 0x305   : > { %v15084_v37 = vsel %vm17339_vm15, %v7014_v44, %v7016_v14  ;;  %vm17340_vm10 = vmmov %vm17335_vm5  ;;  %vm17352_vm8 = vcmask 1046528  }
 0x306   : > { %v15089_v28 = vsel %vm17340_vm10, %v7016_v14, %v7018_v53  ;;  %vm17341_vm4 = vmmov %vm17321_vm0  ;;  %v6683_v14 = vshrl.u32 %v15066_v19, 16 }
 0x307   : > { %v15093_v10 = vsel %vm17341_vm4, %v6644_v25, %v6653_v51  ;;  %vm17342_vm12 = vmmov %vm17322_vm2  ;;  %v6671_v25 = vor.u32 %v6670_v30, %v6667_v56  ;;  %v6688_v30 = vrot.slane %v6686_v26, 2  ;;  %v17350_v56 = vrot.slane %v14477_v42, 1 }
 0x308   : > { %10638 = vmatmul.mubr.msk.bf16.gmra.mxu0 %vm17342_vm12, %v14899_v17  ;;  %vm17343_vm7 = vmmov %vm17321_vm0  ;;  %v6680_v17 = vor.u32 %v6679_v0, %v6676_v5  ;;  %v17351_v5 = vrot.slane %v14394_v35, 1  ;;  %v6251_v0 = vrot.slane %v15048_v52, 1 }
 0x309   : > { %v15099_v44 = vsel %vm17343_vm7, %v6653_v51, %v6662_v6  ;;  %vm17345_vm9 = vmmov %vm17322_vm2  ;;  %v6685_v51 = vrot.slane %v6683_v14, 1 }
 0x30a   : > { %17344 = vst [vmem:[#allocation39_spill] sm:$0xff] %v15099_v44  ;;  %10641 = vmatprep.mubr.msk.bf16.mxu0 %vm17345_vm9, %v14914_v27  ;;  %vm17346_vm13 = vmmov %vm17335_vm5  ;;  %v6249_v44 = vrot.slane %v15040_v62, 1  ;;  %v6697_v62 = vrot.slane %v6695_v54, 2  ;;  %v15203_v54 = vld [vmem:[#allocation4 + $0x48] sm:$0xff]  }
 0x30b   : > { %v15106_v8 = vsel %vm17346_vm13, %v7018_v53, %v7020_v12  ;;  %vm17347_vm3 = vmmov %vm17335_vm5  ;;  %v6694_v53 = vrot.slane %v6692_v3, 1  ;;  %v17355_v3 = vrot.slane %v14840_v15, 1  ;;  %v6255_v15 = vrot.slane %v15074_v4, 1 }
 0x30c   : > { %v15113_v57 = vsel %vm17347_vm3, %v7020_v12, %v16605_v60  ;;  %vm17348_vm11 = vmmov %vm17321_vm0  ;;  %v5797_v12 = vsel %vm17352_vm8, %v17351_v5, %v17350_v56  ;;  %v15212_v56 = vld [vmem:[#allocation4 + $0x58] sm:$0xff]   ;;  %v15214_v5 = vld [vmem:[#allocation4 + $0x60] sm:$0xff]  }
 0x30d   : > { %v15118_v27 = vsel %vm17348_vm11, %v6662_v6, %v6671_v25  ;;  %vm17349_vm6 = vmmov %vm17322_vm2  ;;  %v6689_v6 = vor.u32 %v6688_v30, %v6685_v51  ;;  %v15132_v26 = vor.u32 %v6697_v62, %v6694_v53  ;;  %v11071_v51 = vld [vmem:[#allocation4 + $0x98] ss:$0 sps:$4 sm:$0x11]  }
 0x30e   : > { %10592 = vmatmul.mubr.msk.bf16.gmra.mxu1 %vm17349_vm6, %v14883_v24  ;;  %vm17353_vm5 = vmmov %vm17321_vm0 }
 0x30f   : > { %v15129_v14 = vsel %vm17353_vm5, %v6671_v25, %v6680_v17  ;;  %vm17354_vm0 = vmmov %vm17322_vm2  ;;  %v15138_v42 = vsel %vm17336_vm1, %v6680_v17, %v6689_v6  ;;  %v6253_v25 = vrot.slane %v15066_v19, 1 }
 0x310   : > { %10595 = vmatprep.mubr.msk.bf16.mxu1 %vm17354_vm0, %v5797_v12  ;;  %vm17356_vm2 = vmmov %vm17352_vm8  ;;  %v15216_v12 = vld [vmem:[#allocation4 + $0x68] sm:$0xff]  }
 0x311   : > { %v6250_v24 = vsel %vm17356_vm2, %v17355_v3, %v6249_v44  ;;  %vm17357_vm14 = vmmov %vm17354_vm0  ;;  %v15221_v3 = vld [vmem:[#allocation4 + $0x70] sm:$0xff]  }
 0x312   : > { %10642 = vmatmul.mubr.msk.bf16.gmra.mxu0 %vm17357_vm14, %v6250_v24  ;;  %vm17358_vm15 = vmmov %vm17356_vm2  ;;  %v15225_v24 = vld [vmem:[#allocation4 + $0x80] sm:$0xff]  }
 0x313   : > { %v6252_v35 = vsel %vm17358_vm15, %v6249_v44, %v6251_v0  ;;  %vm17359_vm10 = vmmov %vm17336_vm1  ;;  %17381 = vst [vmem:[#allocation76_spill] sm:$0xff] %v15225_v24 }
 0x314   : > { %v15144_v52 = vsel %vm17359_vm10, %v6689_v6, %v15132_v26  ;;  %vm17360_vm4 = vmmov %vm17354_vm0 }
 0x315   : > { %10645 = vmatprep.mubr.msk.bf16.mxu0 %vm17360_vm4, %v6252_v35  ;;  %vm17361_vm12 = vmmov %vm17354_vm0 }
 0x316   : > { %10596 = vmatmul.mubr.msk.bf16.gmra.mxu1 %vm17361_vm12, %v14851_v61  ;;  %vm17362_vm7 = vmmov %vm17354_vm0  ;;  %v6257_v61 = vrot.slane %v11071_v51, 1 }
 0x317   : > { %10599 = vmatprep.mubr.msk.bf16.mxu1 %vm17362_vm7, %v14854_v23  ;;  %vm17363_vm9 = vmmov %vm17356_vm2  ;;  %v15178_v23 = vpop.f32.mrf.mxu0 }
 0x318   : > { %v6254_v17 = vsel %vm17363_vm9, %v6251_v0, %v6253_v25  ;;  %vm17364_vm13 = vmmov %vm17354_vm0 }
 0x319   : > { %vm17365_vm3 = vmmov %vm17356_vm2 }
 0x31a   : > { %10646 = vmatmul.mubr.msk.bf16.gmra.mxu0 %vm17364_vm13, %v6254_v17  ;;  %v6256_v44 = vsel %vm17365_vm3, %v6253_v25, %v6255_v15  ;;  %vm17366_vm11 = vmmov %vm17354_vm0  ;;  %v15234_v17 = vld [vmem:[#allocation4 + $0x88] sm:$0xff]  }
 0x31b   : > { %10649 = vmatprep.mubr.msk.bf16.mxu0 %vm17366_vm11, %v6256_v44  ;;  %vm17367_vm6 = vmmov %vm17354_vm0  ;;  %vm17382_vm11 = vcmask 1044480  }
 0x31c   : > { %vm17368_vm8 = vmmov %vm17354_vm0 }
 0x31d   : > { %vm17369_vm5 = vmmov %vm17356_vm2 }
 0x31e   : > { %10600 = vmatmul.mubr.msk.bf16.gmra.mxu1 %vm17367_vm6, %v14860_v31  ;;  %v6258_v19 = vsel %vm17369_vm5, %v6255_v15, %v6257_v61  ;;  %vm17370_vm2 = vmmov %vm17354_vm0  ;;  %v15180_v31 = vld [vmem:[#allocation4 + $0x18] sm:$0xff]  }
 0x31f   : > { %10603 = vmatprep.mubr.msk.bf16.mxu1 %vm17368_vm8, %v14863_v41  ;;  %vm17371_vm1 = vmmov %vm17354_vm0  ;;  %v8192_v41 = vld [vmem:[#allocation4 + $0x10] sm:$0x8]  ;;  %v8200_v30 = vrot.slane %v15180_v31, 3 }
 0x320   : > { %vm17372_vm14 = vmmov %vm17354_vm0 }
 0x321   : > { %vm17373_vm15 = vmmov %vm17354_vm0 }
 0x322   : > { %10650 = vmatmul.mubr.msk.bf16.gmra.mxu0 %vm17354_vm0, %v6258_v19  ;;  %vm17374_vm10 = vmmov %vm17354_vm0  ;;  %v8212_v19 = vrot.slane %v15203_v54, 3 }
 0x323   : > { %10693 = vmatprep.mubr.msk.bf16.mxu0 %vm17370_vm2, %v14920_v1  ;;  %vm17375_vm4 = vmmov %vm17354_vm0  ;;  %v15190_v1 = vld [vmem:[#allocation4 + $0x20] sm:$0xff]  }
 0x324   : > { %vm17376_vm12 = vmmov %vm17354_vm0  ;;  %v8202_v0 = vrot.slane %v15190_v1, 3 }
 0x325   : > { %vm17377_vm7 = vmmov %vm17354_vm0 }
 0x326   : > { %10604 = vmatmul.mubr.msk.bf16.gmra.mxu1 %vm17371_vm1, %v14889_v34  ;;  %v15184_v34 = vpop.f32.mrf.mxu0  ;;  %vm17378_vm9 = vmmov %vm17354_vm0 }
 0x327   : > { %10607 = vmatprep.mubr.msk.bf16.mxu1 %vm17372_vm14, %v14892_v63  ;;  %v15186_v63 = vld [vmem:[#allocation4 + $0x14] sm:$0xf]  ;;  %vm17379_vm13 = vmmov %vm17354_vm0 }
 0x328   : > { %vm17380_vm3 = vmmov %vm17354_vm0 }
 0x329   : > { %vm17384_vm6 = vmmov %vm17382_vm11 }
 0x32a   : > { %10694 = vmatmul.mubr.msk.bf16.vlgmr.msra.gmra.mxu0 %vm17373_vm15, %v14931_v36  ;;  %v15196_v36 = vld [vmem:[#allocation4 + $0x38] sm:$0xff]   ;;  %v15237_v44 = vsel %vm17384_vm6, %v8200_v30, %v8202_v0  ;;  %vm17386_vm8 = vmmov %vm17384_vm6 }
 0x32b   : > { %10697 = vmatprep.mubr.msk.bf16.mxu0 %vm17374_vm10, %v14937_v58  ;;  %10768 = vmatpush3.bf16.msra.mxu0 %v14988_v50  ;;  %v15198_v58 = vld [vmem:[#allocation4 + $0x40] sm:$0xff]   ;;  %v9754_v50 = vcombine.low %v8192_v41, %v15186_v63  ;;  %v8208_v35 = vrot.slane %v15196_v36, 3  ;;  %17385 = vst [vmem:[#allocation26_spill] sm:$0xff] %v15237_v44  ;;  %vm17388_vm5 = vmmov %vm17384_vm6  ;;  %v15248_v41 = vld [vmem:[#allocation4 + $0x90] sm:$0xff]  }
 0x32c   : > { %v8210_v25 = vrot.slane %v15198_v58, 3  ;;  %vm17390_vm2 = vmmov %vm17388_vm5 }
 0x32d   : > { %v8199_v53 = vrot.slane %v9754_v50, 3  ;;  %v15250_v50 = vld [vmem:[#allocation4 + $0xa0] ss:$0 sps:$4 sm:$0x77]   ;;  %vm17392_vm1 = vmmov %vm17390_vm2 }
 0x32e   : > { %10608 = vmatmul.mubr.msk.bf16.gmra.mxu1 %vm17375_vm4, %v14902_v11  ;;  %v15192_v11 = vld [vmem:[#allocation4 + $0x28] sm:$0xff]   ;;  %vm17394_vm14 = vmmov %vm17354_vm0 }
 0x32f   : > { %10611 = vmatprep.mubr.msk.bf16.mxu1 %vm17376_vm12, %v14905_v9  ;;  %v15194_v9 = vld [vmem:[#allocation4 + $0x30] sm:$0xff]   ;;  %v8204_v62 = vrot.slane %v15192_v11, 3  ;;  %vm17395_vm15 = vmmov %vm17392_vm1 }
 0x330   : > { %v8206_v6 = vrot.slane %v15194_v9, 3  ;;  %v15264_v60 = vsel %vm17395_vm15, %v8210_v25, %v8212_v19  ;;  %vm17397_vm10 = vmmov %vm17392_vm1 }
 0x331   : > { %v15240_v51 = vsel %vm17386_vm8, %v8202_v0, %v8204_v62  ;;  %17396 = vst [vmem:[#allocation53_spill] sm:$0xff] %v15264_v60  ;;  %vm17399_vm4 = vmmov %vm17392_vm1 }
 0x332   : > { %10698 = vmatmul.mubr.msk.bf16.gmra.mxu0 %vm17377_vm7, %v14951_v22  ;;  %v15201_v22 = vpop.f32.mrf.mxu0  ;;  %17387 = vst [vmem:[#allocation49_spill] sm:$0xff] %v15240_v51  ;;  %v15243_v61 = vsel %vm17388_vm5, %v8204_v62, %v8206_v6  ;;  %v15261_v62 = vld [vmem:[#allocation4 + $0x98] sm:$0xff]   ;;  %vm17401_vm12 = vmmov %vm17392_vm1 }
 0x333   : > { %10701 = vmatprep.mubr.msk.bf16.mxu0 %vm17378_vm9, %v14961_v49  ;;  %v15208_v49 = vld [vmem:[#allocation4 + $0x50] sm:$0xff]   ;;  %17389 = vst [vmem:[#allocation48_spill] sm:$0xff] %v15243_v61  ;;  %v8218_v61 = vrot.slane %v15214_v5, 3  ;;  %vm17403_vm7 = vmmov %vm17392_vm1 }
 0x334   : > { %v15232_v15 = vpop.f32.mrf.mxu0  ;;  %v8214_v0 = vrot.slane %v15208_v49, 3  ;;  %vm17405_vm9 = vmmov %vm17354_vm0 }
 0x335   : > { %vm17412_vm6 = vmmov %vm17354_vm0 }
 0x336   : > { %10612 = vmatmul.mubr.msk.bf16.gmra.mxu1 %vm17379_vm13, %v14923_v21  ;;  %v15223_v21 = vld [vmem:[#allocation4 + $0x78] sm:$0xff]   ;;  %v15280_v60 = vpop.f32.mrf.mxu0  ;;  %vm17406_vm13 = vmmov %vm17392_vm1 }
 0x337   : > { %10655 = vmatprep.mubr.msk.bf16.mxu1 %vm17380_vm3, %v14944_v29  ;;  %v15228_v29 = vsel %vm17382_vm11, %v8199_v53, %v8200_v30  ;;  %v15253_v53 = vsel %vm17390_vm2, %v8206_v6, %v8208_v35  ;;  %v15256_v30 = vsel %vm17392_vm1, %v8208_v35, %v8210_v25  ;;  %v8220_v6 = vrot.slane %v15216_v12, 3  ;;  %v15272_v35 = vld [vmem:[%s16466_s3 + $0x40] sm:$0xff]   ;;  %vm17408_vm3 = vmmov %vm17392_vm1 }
 0x338   : > { %17383 = vst [vmem:[#allocation77_spill] sm:$0xff] %v15228_v29  ;;  %17391 = vst [vmem:[#allocation40_spill] sm:$0xff] %v15253_v53  ;;  %v8224_v53 = vrot.slane %v15223_v21, 3  ;;  %v8226_v25 = vrot.slane %v15225_v24, 3 }
 0x339   : > { %17393 = vst [vmem:[#allocation15_spill] sm:$0xff] %v15256_v30  ;;  %v15275_v30 = vsel %vm17397_vm10, %v8212_v19, %v8214_v0  ;;  %v15289_v29 = vsel %vm17403_vm7, %v8218_v61, %v8220_v6  ;;  %v8228_v19 = vrot.slane %v15234_v17, 3  ;;  %vm17410_vm11 = vmmov %vm17392_vm1 }
 0x33a   : > { %10702 = vmatmul.mubr.msk.bf16.gmra.mxu0 %vm17354_vm0, %v14981_v48  ;;  %v8216_v48 = vrot.slane %v15212_v56, 3  ;;  %17398 = vst [vmem:[#allocation52_spill] sm:$0xff] %v15275_v30  ;;  %17404 = vst [vmem:[#allocation14_spill] sm:$0xff] %v15289_v29 }
 0x33b   : > { %10705 = vmatprep.mubr.msk.bf16.mxu0 %vm17394_vm14, %v14992_v45  ;;  %v8222_v45 = vrot.slane %v15221_v3, 3  ;;  %vm17413_vm8 = vmmov %vm17392_vm1 }
 0x33c   : > { %v15283_v51 = vsel %vm17399_vm4, %v8214_v0, %v8216_v48  ;;  %v15286_v44 = vsel %vm17401_vm12, %v8216_v48, %v8218_v61  ;;  %v15301_v0 = vsel %vm17410_vm11, %v8224_v53, %v8226_v25  ;;  %v8230_v48 = vrot.slane %v15248_v41, 3  ;;  %v15307_v61 = vpop.f32.mrf.mxu0  ;;  %vm17415_vm5 = vmmov %vm17392_vm1 }
 0x33d   : > { %17400 = vst [vmem:[#allocation62_spill] sm:$0xff] %v15283_v51  ;;  %17402 = vst [vmem:[#allocation58_spill] sm:$0xff] %v15286_v44  ;;  %v15295_v30 = vsel %vm17406_vm13, %v8220_v6, %v8222_v45  ;;  %v15298_v24 = vsel %vm17408_vm3, %v8222_v45, %v8224_v53  ;;  %v8232_v6 = vrot.slane %v15261_v62, 3  ;;  %v8234_v45 = vrot.slane %v15250_v50, 3 }
 0x33e   : > { %10656 = vmatmul.mubr.msk.bf16.vlgmr.msra.gmra.mxu1 %vm17405_vm9, %v14965_v18  ;;  %17407 = vst [vmem:[#allocation63_spill] sm:$0xff] %v15295_v30  ;;  %17409 = vst [vmem:[#allocation10_spill] sm:$0xff] %v15298_v24  ;;  %v15310_v18 = vsel %vm17413_vm8, %v8226_v25, %v8228_v19  ;;  %v15316_v53 = vsel %vm17415_vm5, %v8228_v19, %v8230_v48 }
 0x33f   : > { %17411 = vst [vmem:[#allocation54_spill] sm:$0xff] %v15301_v0  ;;  %10730 = vmatpush3.bf16.msra.mxu1 %v14958_v46  ;;  %10659 = vmatprep.mubr.msk.bf16.mxu1 %vm17412_vm6, %v14971_v43  ;;  %17414 = vst [vmem:[#allocation64_spill] sm:$0xff] %v15310_v18  ;;  %v15318_v0 = vpop.f32.mrf.mxu0  ;;  %v7779_v18 = vshll.u32 %v15192_v11, 16 }
 0x340   : > { %10805 = vmatprep.subr.bf16.mxu1 %v15272_v35  ;;  %17416 = vst [vmem:[#allocation61_spill] sm:$0xff] %v15316_v53  ;;  %vm17417_vm0 = vmmov %vm17392_vm1  ;;  %v7770_v53 = vshll.u32 %v15190_v1, 16 }
 0x341   : > { %v15321_v46 = vsel %vm17417_vm0, %v8230_v48, %v8232_v6  ;;  %vm17419_vm2 = vmmov %vm17417_vm0  ;;  %v15330_v25 = vpop.f32.mrf.mxu0 }
 0x342   : > { %17418 = vst [vmem:[#allocation56_spill] sm:$0xff] %v15321_v46  ;;  %v15324_v43 = vsel %vm17419_vm2, %v8232_v6, %v8234_v45  ;;  %vm17421_vm1 = vmmov %vm17412_vm6  ;;  %v7299_v45 = vld [vmem:[#allocation4 + $0x10] sm:$0xc]  ;;  %v7767_v46 = vshrl.u32 %v15190_v1, 16  ;;  %v7772_v44 = vrot.slane %v7770_v53, 3 }
 0x343   : > { %17420 = vst [vmem:[#allocation20_spill] sm:$0xff] %v15324_v43  ;;  %10706 = vmatmul.mubr.msk.bf16.gmra.mxu0 %vm17421_vm1, %v15010_v2  ;;  %vm17422_vm14 = vmmov %vm17421_vm1  ;;  %v15336_v19 = vpop.f32.mrf.mxu0 }
 0x344   : > { %10709 = vmatprep.mubr.msk.bf16.mxu0 %vm17422_vm14, %v15015_v47  ;;  %vm17423_vm15 = vmmov %vm17421_vm1  ;;  %v7769_v29 = vrot.slane %v7767_v46, 2 }
 0x345   : > { %vm17424_vm10 = vmmov %vm17421_vm1  ;;  %v15340_v48 = vpop.f32.mrf.mxu0 }
 0x346   : > { %10660 = vmatmul.mubr.msk.bf16.gmra.mxu1 %vm17423_vm15, %v14996_v13  ;;  %vm17425_vm4 = vmmov %vm17421_vm1 }
 0x347   : > { %10663 = vmatprep.mubr.msk.bf16.mxu1 %vm17424_vm10, %v15003_v16  ;;  %vm17426_vm12 = vmmov %vm17421_vm1  ;;  %v15344_v2 = vpop.f32.mrf.mxu0  ;;  %v10505_v16 = vpop.f32.mrf.mxu1 }
 0x348   : > { %vm17427_vm7 = vmmov %vm17421_vm1  ;;  %v15357_v47 = vadd.f32 %v15178_v23, %v10505_v16 }
 0x349   : > { %vm17428_vm9 = vmmov %vm17421_vm1  ;;  %v15350_v13 = vpop.f32.mrf.mxu0 }
 0x34a   : > { %vm17429_vm13 = vmmov %vm17421_vm1 }
 0x34b   : > { %10710 = vmatmul.mubr.msk.bf16.gmra.mxu0 %vm17425_vm4, %v15032_v39  ;;  %vm17430_vm3 = vmmov %vm17421_vm1  ;;  %v15359_v39 = vpop.f32.mrf.mxu0  ;;  %vm17445_vm4 = vcmask 1045504  }
 0x34c   : > { %10713 = vmatprep.mubr.msk.bf16.mxu0 %vm17426_vm12, %v15037_v20  ;;  %v5410_v20 = vpop.f32.mrf.mxu1  ;;  %vm17431_vm11 = vmmov %vm17421_vm1 }
 0x34d   : > { %vm17432_vm6 = vmmov %vm17421_vm1 }
 0x34e   : > { %10664 = vmatmul.mubr.msk.bf16.gmra.mxu1 %vm17427_vm7, %v15019_v32  ;;  %v15362_v32 = vadd.f32 %v15184_v34, %v5410_v20  ;;  %vm17433_vm8 = vmmov %vm17421_vm1  ;;  %v7758_v34 = vshrl.u32 %v15180_v31, 16  ;;  %vm17447_vm7 = vsmask.f32 5376 }
 0x34f   : > { %10667 = vmatprep.mubr.msk.bf16.mxu1 %vm17428_vm9, %v15025_v55  ;;  %v10506_v55 = vpop.f32.mrf.mxu1  ;;  %vm17434_vm5 = vmmov %vm17421_vm1 }
 0x350   : > { %vm17435_vm0 = vmmov %vm17421_vm1 }
 0x351   : > { %v5413_v23 = vpop.f32.mrf.mxu1  ;;  %vm17437_vm2 = vmmov %vm17435_vm0 }
 0x352   : > { %v15374_v6 = vadd.f32 %v15232_v15, %v5413_v23  ;;  %v17436_v15 = vld [vmem:[#allocation43_spill] sm:$0xff]  ;;  %vm17438_vm1 = vmmov %vm17435_vm0 }
 0x353   : > { %10714 = vmatmul.mubr.msk.bf16.gmra.mxu0 %vm17429_vm13, %v15058_v59  ;;  %v15369_v59 = vadd.f32 %v15201_v22, %v10506_v55  ;;  %v7761_v22 = vshll.u32 %v15180_v31, 16  ;;  %vm17439_vm14 = vmmov %vm17435_vm0  ;;  %v10509_v23 = vpop.f32.mrf.mxu1 }
 0x354   : > { %10717 = vmatprep.mubr.msk.bf16.mxu0 %vm17430_vm3, %v15063_v7  ;;  %v15371_v7 = vpop.f32.mrf.mxu0  ;;  %v15404_v43 = vadd.f32 %v15280_v60, %v10509_v23  ;;  %vm17440_vm15 = vmmov %vm17435_vm0 }
 0x355   : > { %v7763_v20 = vrot.slane %v7761_v22, 3  ;;  %v7776_v22 = vshrl.u32 %v15192_v11, 16  ;;  %vm17442_vm10 = vmmov %vm17435_vm0 }
 0x356   : > { %10668 = vmatmul.mubr.msk.bf16.gmra.mxu1 %vm17431_vm11, %v15043_v40  ;;  %v15380_v40 = vpop.f32.mrf.mxu0  ;;  %vm17446_vm12 = vmmov %vm17435_vm0 }
 0x357   : > { %10671 = vmatprep.mubr.msk.bf16.mxu1 %vm17432_vm6, %v15051_v38  ;;  %v15383_v38 = vcombine.low %v7299_v45, %v15186_v63  ;;  %v7760_v63 = vrot.slane %v7758_v34, 2  ;;  %vm17448_vm9 = vmmov %vm17435_vm0 }
 0x358   : > { %v15391_v16 = vpop.f32.mrf.mxu0  ;;  %vm17449_vm13 = vmmov %vm17435_vm0 }
 0x359   : > { %v7764_v34 = vor.u32 %v7763_v20, %v7760_v63  ;;  %vm17450_vm3 = vmmov %vm17435_vm0 }
 0x35a   : > { %v15401_v55 = vpop.f32.mrf.mxu0  ;;  %vm17451_vm11 = vmmov %vm17447_vm7 }
 0x35b   : > { %10718 = vmatmul.mubr.msk.bf16.gmra.mxu0 %vm17433_vm8, %v15084_v37  ;;  %v7750_v37 = vshrl.u32 %v15383_v38, 16  ;;  %vm17452_vm6 = vmmov %vm17435_vm0 }
 0x35c   : > { %10721 = vmatprep.mubr.msk.bf16.mxu0 %vm17434_vm5, %v15089_v28  ;;  %v7753_v28 = vshll.u32 %v15383_v38, 16  ;;  %vm17453_vm8 = vmmov %vm17447_vm7 }
 0x35d   : > { %v7752_v45 = vrot.slane %v7750_v37, 2  ;;  %v17441_v37 = vld [vmem:[#allocation39_spill] sm:$0xff]  ;;  %vm17454_vm5 = vmmov %vm17435_vm0 }
 0x35e   : > { %10672 = vmatmul.mubr.msk.bf16.gmra.mxu1 %vm17435_vm0, %v15069_v33  ;;  %v15399_v33 = vld [vmem:[#allocation4 + $0x98] ss:$0 sps:$4 sm:$0x33]  }
 0x35f   : > { %10675 = vmatprep.mubr.msk.bf16.mxu1 %vm17437_vm2, %v17436_v15  ;;  %v7755_v15 = vrot.slane %v7753_v28, 3  ;;  %v7024_v60 = vrot.slane %v15399_v33, 2  ;;  %vm17455_vm2 = vmmov %vm17435_vm0 }
 0x361   : > { %v7756_v24 = vor.u32 %v7755_v15, %v7752_v45  ;;  %v7773_v45 = vor.u32 %v7772_v44, %v7769_v29 }
 0x363   : > { %10722 = vmatmul.mubr.msk.bf16.gmra.mxu0 %vm17438_vm1, %v15106_v8  ;;  %v15408_v8 = vpop.f32.mrf.mxu0  ;;  %vm17456_vm1 = vmmov %vm17447_vm7 }
 0x364   : > { %10725 = vmatprep.mubr.msk.bf16.mxu0 %vm17439_vm14, %v15113_v57  ;;  %v5426_v57 = vpop.f32.mrf.mxu1  ;;  %vm17457_vm14 = vmmov %vm17435_vm0 }
 0x365   : > { %v15418_v28 = vadd.f32 %v15307_v61, %v5426_v57  ;;  %v15420_v23 = vpop.f32.mrf.mxu0  ;;  %v7778_v61 = vrot.slane %v7776_v22, 2  ;;  %v7781_v57 = vrot.slane %v7779_v18, 3  ;;  %v7797_v18 = vshll.u32 %v15196_v36, 16 }
 0x366   : > { %10676 = vmatmul.mubr.msk.bf16.gmra.mxu1 %vm17440_vm15, %v15093_v10  ;;  %v10510_v30 = vpop.f32.mrf.mxu1  ;;  %v17444_v10 = vrot.slane %v15074_v4, 2  ;;  %vm17458_vm15 = vmmov %vm17456_vm1 }
 0x367   : > { %10679 = vmatprep.mubr.msk.bf16.mxu1 %vm17442_vm10, %v17441_v37  ;;  %17443 = vst [vmem:[#allocation66_spill] sm:$0xff] %v15418_v28  ;;  %v15426_v20 = vadd.f32 %v15318_v0, %v10510_v30  ;;  %v7765_v37 = vsel %vm17447_vm7, %v7756_v24, %v7764_v34  ;;  %v15430_v28 = vpop.f32.mrf.mxu0  ;;  %v7785_v30 = vshrl.u32 %v15194_v9, 16  ;;  %v7788_v0 = vshll.u32 %v15194_v9, 16  ;;  %vm17459_vm10 = vmmov %vm17435_vm0 }
 0x368   : > { %v7025_v63 = vsel %vm17445_vm4, %v17444_v10, %v7024_v60  ;;  %v5429_v51 = vpop.f32.mrf.mxu1  ;;  %v7782_v53 = vor.u32 %v7781_v57, %v7778_v61  ;;  %v7794_v24 = vshrl.u32 %v15196_v36, 16  ;;  %v7799_v22 = vrot.slane %v7797_v18, 3 }
 0x369   : > { %v15434_v4 = vadd.f32 %v15330_v25, %v5429_v51  ;;  %v15442_v46 = vpop.f32.mrf.mxu0  ;;  %v7774_v51 = vsel %vm17451_vm11, %v7764_v34, %v7773_v45  ;;  %v7787_v29 = vrot.slane %v7785_v30, 2  ;;  %v7790_v44 = vrot.slane %v7788_v0, 3  ;;  %vm17466_vm11 = vmmov %vm17456_vm1 }
 0x36a   : > { %v7796_v15 = vrot.slane %v7794_v24, 2  ;;  %v10513_v60 = vpop.f32.mrf.mxu1  ;;  %v6701_v10 = vshrl.u32 %v15399_v33, 16  ;;  %v7803_v61 = vshrl.u32 %v15198_v58, 16  ;;  %v7806_v57 = vshll.u32 %v15198_v58, 16 }
 0x36b   : > { %10726 = vmatmul.mubr.msk.bf16.gmra.mxu0 %vm17446_vm12, %v7025_v63  ;;  %v15447_v25 = vpop.f32.mrf.mxu0  ;;  %v6704_v63 = vshll.u32 %v15399_v33, 16  ;;  %v7812_v0 = vshrl.u32 %v15203_v54, 16  ;;  %vm17460_vm4 = vsmask.f32 6400  ;;  %vm17461_vm12 = vmmov %vm17435_vm0  ;;  %vm17462_vm7 = vcmask 1045504  }
 0x36c   : > { %10769 = vmatprep.mubr.msk.bf16.mxu0 %vm17448_vm9, %v7765_v37  ;;  %v5442_v34 = vpop.f32.mrf.mxu1  ;;  %v7791_v37 = vor.u32 %v7790_v44, %v7787_v29  ;;  %v7800_v33 = vor.u32 %v7799_v22, %v7796_v15  ;;  %v6703_v24 = vrot.slane %v6701_v10, 1  ;;  %v7433_v44 = vrot.slane %v15180_v31, 2  ;;  %vm17463_vm9 = vmmov %vm17435_vm0 }
 0x36d   : > { %v15459_v30 = vpop.f32.mrf.mxu0  ;;  %v6706_v18 = vrot.slane %v6704_v63, 2  ;;  %v7808_v15 = vrot.slane %v7806_v57, 3  ;;  %v7814_v10 = vrot.slane %v7812_v0, 2  ;;  %v7432_v31 = vrot.slane %v15383_v38, 2 }
 0x36e   : > { %10680 = vmatmul.mubr.msk.bf16.gmra.mxu1 %vm17449_vm13, %v15118_v27  ;;  %v7783_v27 = vsel %vm17453_vm8, %v7773_v45, %v7782_v53  ;;  %v15464_v45 = vadd.f32 %v15340_v48, %v5442_v34  ;;  %v7792_v48 = vsel %vm17456_vm1, %v7782_v53, %v7791_v37  ;;  %v7824_v57 = vshll.u32 %v15208_v49, 16  ;;  %vm17464_vm13 = vmmov %vm17456_vm1 }
 0x36f   : > { %10683 = vmatprep.mubr.msk.bf16.mxu1 %vm17450_vm3, %v15129_v14  ;;  %v15455_v14 = vadd.f32 %v15336_v19, %v10513_v60  ;;  %v7815_v19 = vshll.u32 %v15203_v54, 16  ;;  %v15475_v22 = vpop.f32.mrf.mxu0  ;;  %vm17465_vm3 = vmmov %vm17435_vm0 }
 0x370   : > { %vm17468_vm8 = vmmov %vm17462_vm7 }
 0x371   : > { %v7817_v63 = vrot.slane %v7815_v19, 3  ;;  %v7830_v19 = vshrl.u32 %v15212_v56, 16 }
 0x373   : > { %10770 = vmatmul.mubr.msk.bf16.vlgmr.msra.gmra.mxu0 %vm17452_vm6, %v7774_v51  ;;  %v10514_v51 = vpop.f32.mrf.mxu1  ;;  %v7818_v0 = vor.u32 %v7817_v63, %v7814_v10  ;;  %vm17467_vm6 = vmmov %vm17435_vm0 }
 0x374   : > { %10773 = vmatprep.mubr.msk.bf16.mxu0 %vm17454_vm5, %v7783_v27  ;;  %v15471_v29 = vadd.f32 %v15344_v2, %v10514_v51  ;;  %v7805_v27 = vrot.slane %v7803_v61, 2  ;;  %v6707_v2 = vor.u32 %v6706_v18, %v6703_v24  ;;  %v15486_v61 = vpop.f32.mrf.mxu0  ;;  %v7833_v24 = vshll.u32 %v15212_v56, 16  ;;  %vm17469_vm5 = vmmov %vm17462_vm7 }
 0x375   : > { %v7435_v18 = vrot.slane %v15190_v1, 2 }
 0x376   : > { %10684 = vmatmul.mubr.msk.bf16.gmra.mxu1 %vm17435_vm0, %v15138_v42  ;;  %v5445_v42 = vpop.f32.mrf.mxu1  ;;  %v6708_v53 = vsel %vm17460_vm4, %v15132_v26, %v6707_v2  ;;  %v7809_v34 = vor.u32 %v7808_v15, %v7805_v27  ;;  %v15499_v51 = vpop.f32.mrf.mxu0  ;;  %v7835_v2 = vrot.slane %v7833_v24, 3  ;;  %vm17474_vm4 = vmmov %vm17469_vm5 }
 0x377   : > { %10687 = vmatprep.mubr.msk.bf16.mxu1 %vm17455_vm2, %v15144_v52  ;;  %v15478_v60 = vadd.f32 %v15350_v13, %v5445_v42  ;;  %v7801_v52 = vsel %vm17458_vm15, %v7791_v37, %v7800_v33  ;;  %v7821_v13 = vshrl.u32 %v15208_v49, 16  ;;  %v7434_v37 = vsel %vm17462_vm7, %v7432_v31, %v7433_v44  ;;  %vm17470_vm2 = vmmov %vm17435_vm0 }
 0x378   : > { %v10517_v38 = vpop.f32.mrf.mxu1  ;;  %v7437_v42 = vrot.slane %v15192_v11, 2  ;;  %v7810_v27 = vsel %vm17464_vm13, %v7800_v33, %v7809_v34  ;;  %v7819_v63 = vsel %vm17466_vm11, %v7809_v34, %v7818_v0  ;;  %v7436_v1 = vsel %vm17468_vm8, %v7433_v44, %v7435_v18  ;;  %v15513_v33 = vpop.f32.mrf.mxu0  ;;  %vm17472_vm15 = vmmov %vm17456_vm1 }
 0x379   : > { %v15496_v26 = vadd.f32 %v15359_v39, %v10517_v38  ;;  %v7823_v15 = vrot.slane %v7821_v13, 2  ;;  %v7832_v39 = vrot.slane %v7830_v19, 2  ;;  %v7842_v34 = vshll.u32 %v15214_v5, 16  ;;  %vm17476_vm7 = vmmov %vm17474_vm4 }
 0x37a   : > { %v7848_v44 = vshrl.u32 %v15216_v12, 16  ;;  %v15526_v24 = vpop.f32.mrf.mxu0  ;;  %v7439_v38 = vrot.slane %v15194_v9, 2  ;;  %v7857_v9 = vshrl.u32 %v15221_v3, 16  ;;  %vm17478_vm13 = vmmov %vm17456_vm1 }
 0x37b   : > { %10774 = vmatmul.mubr.msk.bf16.gmra.mxu0 %vm17457_vm14, %v7792_v48  ;;  %v5458_v48 = vpop.f32.mrf.mxu1  ;;  %v7836_v19 = vor.u32 %v7835_v2, %v7832_v39  ;;  %vm17471_vm14 = vmmov %vm17435_vm0 }
 0x37c   : > { %10777 = vmatprep.mubr.msk.bf16.mxu0 %vm17459_vm10, %v7801_v52  ;;  %v7826_v52 = vrot.slane %v7824_v57, 3  ;;  %v15504_v10 = vadd.f32 %v15371_v7, %v5458_v48  ;;  %v7839_v57 = vshrl.u32 %v15214_v5, 16  ;;  %vm17473_vm10 = vmmov %vm17435_vm0  ;;  %v7440_v39 = vsel %vm17474_vm4, %v7437_v42, %v7439_v38 }
 0x37d   : > { %v10518_v31 = vpop.f32.mrf.mxu1  ;;  %vm17480_vm11 = vmmov %vm17456_vm1 }
 0x37e   : > { %10688 = vmatmul.mubr.msk.bf16.gmra.mxu1 %vm17461_vm12, %v6708_v53  ;;  %v15511_v11 = vadd.f32 %v15380_v40, %v10518_v31  ;;  %v7438_v53 = vsel %vm17469_vm5, %v7435_v18, %v7437_v42  ;;  %v7827_v13 = vor.u32 %v7826_v52, %v7823_v15  ;;  %v7851_v40 = vshll.u32 %v15216_v12, 16  ;;  %vm17475_vm12 = vmmov %vm17435_vm0 }
 0x37f   : > { %10731 = vmatprep.mubr.msk.bf16.mxu1 %vm17463_vm9, %v7434_v37  ;;  %v5461_v7 = vpop.f32.mrf.mxu1  ;;  %v7841_v48 = vrot.slane %v7839_v57, 2  ;;  %v7850_v52 = vrot.slane %v7848_v44, 2  ;;  %vm17477_vm9 = vmmov %vm17435_vm0 }
 0x380   : > { %v15520_v37 = vadd.f32 %v15391_v16, %v5461_v7  ;;  %v7828_v18 = vsel %vm17456_vm1, %v7818_v0, %v7827_v13  ;;  %v7441_v16 = vrot.slane %v15196_v36, 2  ;;  %v7837_v15 = vsel %vm17472_vm15, %v7827_v13, %v7836_v19  ;;  %vm17482_vm8 = vmmov %vm17474_vm4 }
 0x381   : > { %v7860_v0 = vshll.u32 %v15221_v3, 16  ;;  %v10521_v31 = vpop.f32.mrf.mxu1  ;;  %v7866_v7 = vshrl.u32 %v15223_v21, 16  ;;  %v7869_v13 = vshll.u32 %v15223_v21, 16  ;;  %vm17484_vm5 = vmmov %vm17435_vm0 }
 0x382   : > { %v7442_v36 = vsel %vm17476_vm7, %v7439_v38, %v7441_v16  ;;  %v15546_v57 = vadd.f32 %v15401_v55, %v10521_v31  ;;  %v7859_v38 = vrot.slane %v7857_v9, 2  ;;  %v17483_v9 = vld [vmem:[#allocation76_spill] sm:$0xff]  ;;  %vm17487_vm15 = vmmov %vm17456_vm1 }
 0x383   : > { %10778 = vmatmul.mubr.msk.bf16.gmra.mxu0 %vm17465_vm3, %v7810_v27  ;;  %v7844_v27 = vrot.slane %v7842_v34, 3  ;;  %v5474_v42 = vpop.f32.mrf.mxu1  ;;  %v7443_v34 = vrot.slane %v15198_v58, 2  ;;  %vm17479_vm3 = vmmov %vm17435_vm0 }
 0x384   : > { %10781 = vmatprep.mubr.msk.bf16.mxu0 %vm17467_vm6, %v7819_v63  ;;  %v7853_v63 = vrot.slane %v7851_v40, 3  ;;  %v15551_v44 = vadd.f32 %v15408_v8, %v5474_v42  ;;  %vm17481_vm6 = vmmov %vm17435_vm0 }
 0x385   : > { %v7845_v2 = vor.u32 %v7844_v27, %v7841_v48  ;;  %v10522_v48 = vpop.f32.mrf.mxu1  ;;  %v7445_v27 = vrot.slane %v15203_v54, 2 }
 0x386   : > { %10732 = vmatmul.mubr.msk.bf16.vlgmr.msra.gmra.mxu1 %vm17435_vm0, %v7436_v1  ;;  %v7854_v1 = vor.u32 %v7853_v63, %v7850_v52  ;;  %v7868_v52 = vrot.slane %v7866_v7, 2  ;;  %v7871_v63 = vrot.slane %v7869_v13, 3  ;;  %v15560_v58 = vadd.f32 %v15420_v23, %v10522_v48  ;;  %vm17485_vm0 = vmmov %vm17474_vm4 }
 0x387   : > { %10806 = vmatpush3.bf16.msra.mxu1 %v15272_v35  ;;  %10735 = vmatprep.mubr.msk.bf16.mxu1 %vm17470_vm2, %v7438_v53  ;;  %v15534_v35 = vpop.f32.mrf.mxu0  ;;  %v7846_v40 = vsel %vm17478_vm13, %v7836_v19, %v7845_v2  ;;  %v5477_v8 = vpop.f32.mrf.mxu1  ;;  %v7444_v19 = vsel %vm17482_vm8, %v7441_v16, %v7443_v34  ;;  %v7884_v13 = vshrl.u32 %v15234_v17, 16  ;;  %v7887_v16 = vshll.u32 %v15234_v17, 16  ;;  %vm17489_vm4 = vmmov %vm17485_vm0 }
 0x388   : > { %v7855_v55 = vsel %vm17480_vm11, %v7845_v2, %v7854_v1  ;;  %v7878_v2 = vshll.u32 %v17483_v9, 16  ;;  %v7872_v7 = vor.u32 %v7871_v63, %v7868_v52  ;;  %v7449_v52 = vrot.slane %v15212_v56, 2  ;;  %vm17491_vm7 = vmmov %vm17485_vm0 }
 0x389   : > { %v15541_v53 = vpop.f32.mrf.mxu0  ;;  %v10525_v31 = vpop.f32.mrf.mxu1  ;;  %vm17493_vm13 = vmmov %vm17456_vm1 }
 0x38a   : > { %v7880_v48 = vrot.slane %v7878_v2, 3  ;;  %vm17495_vm11 = vmmov %vm17456_vm1 }
 0x38b   : > { %10782 = vmatmul.mubr.msk.bf16.gmra.mxu0 %vm17471_vm14, %v7828_v18  ;;  %v7862_v18 = vrot.slane %v7860_v0, 3  ;;  %v7875_v0 = vshrl.u32 %v17483_v9, 16  ;;  %v5490_v42 = vpop.f32.mrf.mxu1  ;;  %vm17486_vm14 = vmmov %vm17470_vm2 }
 0x38c   : > { %10785 = vmatprep.mubr.msk.bf16.mxu0 %vm17473_vm10, %v7837_v15  ;;  %v15557_v15 = vpop.f32.mrf.mxu0  ;;  %vm17488_vm10 = vmmov %vm17470_vm2 }
 0x38d   : > { %v7863_v54 = vor.u32 %v7862_v18, %v7859_v38  ;;  %v15581_v38 = vadd.f32 %v15447_v25, %v5490_v42  ;;  %v7877_v18 = vrot.slane %v7875_v0, 2  ;;  %v7451_v42 = vrot.slane %v15214_v5, 2  ;;  %vm17497_vm8 = vmmov %vm17485_vm0 }
 0x38e   : > { %10736 = vmatmul.mubr.msk.bf16.gmra.mxu1 %vm17475_vm12, %v7440_v39  ;;  %v15565_v39 = vadd.f32 %v15430_v28, %v5477_v8  ;;  %v15571_v23 = vpop.f32.mrf.mxu0  ;;  %v15576_v28 = vadd.f32 %v15442_v46, %v10525_v31  ;;  %v7886_v8 = vrot.slane %v7884_v13, 2  ;;  %v7893_v31 = vshrl.u32 %v15248_v41, 16  ;;  %vm17490_vm12 = vmmov %vm17470_vm2 }
 0x38f   : > { %10739 = vmatprep.mubr.msk.bf16.mxu1 %vm17477_vm9, %v7442_v36  ;;  %v7446_v36 = vsel %vm17485_vm0, %v7443_v34, %v7445_v27  ;;  %v7864_v34 = vsel %vm17456_vm1, %v7854_v1, %v7863_v54  ;;  %v7873_v46 = vsel %vm17487_vm15, %v7863_v54, %v7872_v7  ;;  %v7881_v2 = vor.u32 %v7880_v48, %v7877_v18  ;;  %vm17492_vm9 = vmmov %vm17470_vm2 }
 0x390   : > { %v15585_v63 = vpop.f32.mrf.mxu0  ;;  %v7896_v54 = vshll.u32 %v15248_v41, 16  ;;  %v7902_v18 = vshrl.u32 %v15261_v62, 16  ;;  %v7905_v48 = vshll.u32 %v15261_v62, 16  ;;  %vm17500_vm15 = vmmov %vm17456_vm1 }
 0x392   : > { %v15594_v0 = vpop.f32.mrf.mxu0 }
 0x393   : > { %10786 = vmatmul.mubr.msk.bf16.gmra.mxu0 %vm17479_vm3, %v7846_v40  ;;  %v7447_v40 = vrot.slane %v15208_v49, 2  ;;  %vm17494_vm3 = vmmov %vm17470_vm2 }
 0x394   : > { %10789 = vmatprep.mubr.msk.bf16.mxu0 %vm17481_vm6, %v7855_v55  ;;  %v10526_v55 = vpop.f32.mrf.mxu1  ;;  %v15603_v13 = vpop.f32.mrf.mxu0  ;;  %vm17496_vm6 = vmmov %vm17470_vm2 }
 0x395   : > { %v15590_v49 = vadd.f32 %v15459_v30, %v10526_v55  ;;  %v7448_v1 = vsel %vm17489_vm4, %v7445_v27, %v7447_v40  ;;  %v7450_v30 = vsel %vm17491_vm7, %v7447_v40, %v7449_v52  ;;  %v7882_v40 = vsel %vm17493_vm13, %v7872_v7, %v7881_v2  ;;  %vm17502_vm4 = vmmov %vm17485_vm0 }
 0x396   : > { %10740 = vmatmul.mubr.msk.bf16.gmra.mxu1 %vm17484_vm5, %v7444_v19  ;;  %v7889_v19 = vrot.slane %v7887_v16, 3  ;;  %v5493_v25 = vpop.f32.mrf.mxu1  ;;  %vm17498_vm5 = vmmov %vm17470_vm2 }
 0x397   : > { %10743 = vmatprep.mubr.msk.bf16.mxu1 %vm17470_vm2, %v7446_v36  ;;  %v15597_v56 = vadd.f32 %v15475_v22, %v5493_v25  ;;  %vm17504_vm7 = vmmov %vm17485_vm0 }
 0x398   : > { %v10529_v36 = vpop.f32.mrf.mxu1  ;;  %v7890_v16 = vor.u32 %v7889_v19, %v7886_v8  ;;  %v7898_v8 = vrot.slane %v7896_v54, 3  ;;  %v7453_v19 = vrot.slane %v15216_v12, 2  ;;  %v7907_v54 = vrot.slane %v7905_v48, 3  ;;  %vm17506_vm13 = vmmov %vm17456_vm1 }
 0x399   : > { %v15606_v27 = vadd.f32 %v15486_v61, %v10529_v36  ;;  %v7452_v36 = vsel %vm17497_vm8, %v7449_v52, %v7451_v42  ;;  %vm17510_vm8 = vmmov %vm17485_vm0 }
 0x39a   : > { %v5506_v22 = vpop.f32.mrf.mxu1  ;;  %v7891_v5 = vsel %vm17495_vm11, %v7881_v2, %v7890_v16  ;;  %v7914_v2 = vshll.u32 %v15250_v50, 16  ;;  %vm17508_vm11 = vmmov %vm17485_vm0 }
 0x39b   : > { %10790 = vmatmul.mubr.msk.bf16.gmra.mxu0 %vm17486_vm14, %v7864_v34  ;;  %v15610_v34 = vpop.f32.mrf.mxu0  ;;  %v15615_v55 = vadd.f32 %v15499_v51, %v5506_v22  ;;  %v7911_v22 = vshrl.u32 %v15250_v50, 16  ;;  %vm17499_vm14 = vmmov %vm17470_vm2 }
 0x39c   : > { %10793 = vmatprep.mubr.msk.bf16.mxu0 %vm17488_vm10, %v7873_v46  ;;  %v7895_v46 = vrot.slane %v7893_v31, 2  ;;  %v10530_v61 = vpop.f32.mrf.mxu1  ;;  %v7904_v31 = vrot.slane %v7902_v18, 2  ;;  %vm17501_vm10 = vmmov %vm17470_vm2 }
 0x39d   : > { %v15619_v25 = vpop.f32.mrf.mxu0 }
 0x39e   : > { %10744 = vmatmul.mubr.msk.bf16.gmra.mxu1 %vm17490_vm12, %v7448_v1  ;;  %v15624_v1 = vadd.f32 %v15513_v33, %v10530_v61  ;;  %v5509_v51 = vpop.f32.mrf.mxu1  ;;  %v7454_v33 = vsel %vm17485_vm0, %v7451_v42, %v7453_v19  ;;  %v7916_v42 = vrot.slane %v7914_v2, 3  ;;  %vm17503_vm12 = vmmov %vm17470_vm2 }
 0x39f   : > { %10747 = vmatprep.mubr.msk.bf16.mxu1 %vm17492_vm9, %v7450_v30  ;;  %v15628_v7 = vpop.f32.mrf.mxu0  ;;  %v15631_v12 = vadd.f32 %v15526_v24, %v5509_v51  ;;  %v7899_v30 = vor.u32 %v7898_v8, %v7895_v46  ;;  %v7455_v24 = vrot.slane %v15221_v3, 2  ;;  %v7908_v46 = vor.u32 %v7907_v54, %v7904_v31  ;;  %vm17505_vm9 = vmmov %vm17470_vm2 }
 0x3a1   : > { %v15637_v61 = vpop.f32.mrf.mxu0  ;;  %v7900_v8 = vsel %vm17456_vm1, %v7890_v16, %v7899_v30  ;;  %v7456_v54 = vsel %vm17502_vm4, %v7453_v19, %v7455_v24  ;;  %vm17512_vm1 = vmmov %vm17485_vm0 }
 0x3a2   : > { %vm17518_vm4 = vmmov %vm17470_vm2 }
 0x3a3   : > { %10794 = vmatmul.mubr.msk.bf16.gmra.mxu0 %vm17494_vm3, %v7882_v40  ;;  %v10533_v40 = vpop.f32.mrf.mxu1  ;;  %v15644_v48 = vpop.f32.mrf.mxu0  ;;  %vm17507_vm3 = vmmov %vm17470_vm2 }
 0x3a4   : > { %10797 = vmatprep.mubr.msk.bf16.mxu0 %vm17496_vm6, %v7891_v5  ;;  %v15640_v52 = vadd.f32 %v15534_v35, %v10533_v40  ;;  %v7913_v5 = vrot.slane %v7911_v22, 2  ;;  %v7909_v40 = vsel %vm17500_vm15, %v7899_v30, %v7908_v46  ;;  %vm17509_vm6 = vmmov %vm17470_vm2 }
 0x3a5   : > { %v5522_v18 = vpop.f32.mrf.mxu1  ;;  %v15651_v35 = vpop.f32.mrf.mxu0  ;;  %vm17515_vm15 = vmmov %vm17485_vm0 }
 0x3a6   : > { %10748 = vmatmul.mubr.msk.bf16.gmra.mxu1 %vm17498_vm5, %v7452_v36  ;;  %v15647_v50 = vadd.f32 %v15541_v53, %v5522_v18  ;;  %v7457_v36 = vrot.slane %v15223_v21, 2  ;;  %v7917_v22 = vor.u32 %v7916_v42, %v7913_v5  ;;  %v7461_v42 = vrot.slane %v15234_v17, 2  ;;  %vm17511_vm5 = vmmov %vm17470_vm2 }
 0x3a7   : > { %10751 = vmatprep.mubr.msk.bf16.mxu1 %vm17470_vm2, %v7454_v33  ;;  %v10534_v51 = vpop.f32.mrf.mxu1  ;;  %v6369_v31 = vpop.f32.mrf.mxu0 }
 0x3a8   : > { %v15656_v3 = vadd.f32 %v15557_v15, %v10534_v51  ;;  %v7458_v2 = vsel %vm17504_vm7, %v7455_v24, %v7457_v36  ;;  %v7918_v19 = vsel %vm17506_vm13, %v7908_v46, %v7917_v22  ;;  %vm17522_vm7 = vmmov %vm17470_vm2 }
 0x3a9   : > { %v5525_v53 = vpop.f32.mrf.mxu1  ;;  %v10624_v33 = vpop.f32.mrf.mxu0  ;;  %vm17526_vm13 = vmmov %vm17470_vm2 }
 0x3aa   : > { %v15660_v16 = vadd.f32 %v15571_v23, %v5525_v53  ;;  %v7459_v23 = vrot.slane %v17483_v9, 2 }
 0x3ab   : > { %10798 = vmatmul.mubr.msk.bf16.gmra.mxu0 %vm17499_vm14, %v7900_v8  ;;  %v10537_v21 = vpop.f32.mrf.mxu1  ;;  %v6372_v18 = vpop.f32.mrf.mxu0  ;;  %vm17513_vm14 = vmmov %vm17470_vm2 }
 0x3ac   : > { %10801 = vmatprep.mubr.msk.bf16.mxu0 %vm17501_vm10, %v7909_v40  ;;  %v15666_v30 = vadd.f32 %v15585_v63, %v10537_v21  ;;  %v7462_v9 = vsel %vm17510_vm8, %v7459_v23, %v7461_v42  ;;  %vm17516_vm10 = vmmov %vm17470_vm2 }
 0x3ad   : > { %v5538_v15 = vpop.f32.mrf.mxu1  ;;  %v10627_v51 = vpop.f32.mrf.mxu0  ;;  %vm17534_vm8 = vmmov %vm17470_vm2 }
 0x3ae   : > { %10752 = vmatmul.mubr.msk.bf16.gmra.mxu1 %vm17503_vm12, %v7456_v54  ;;  %v15670_v8 = vadd.f32 %v15594_v0, %v5538_v15  ;;  %v7460_v0 = vsel %vm17508_vm11, %v7457_v36, %v7459_v23  ;;  %vm17520_vm12 = vmmov %vm17470_vm2 }
 0x3af   : > { %10755 = vmatprep.mubr.msk.bf16.mxu1 %vm17505_vm9, %v7458_v2  ;;  %v10538_v5 = vpop.f32.mrf.mxu1  ;;  %v6385_v40 = vpop.f32.mrf.mxu0  ;;  %v7463_v2 = vrot.slane %v15248_v41, 2  ;;  %vm17524_vm9 = vmmov %vm17470_vm2 }
 0x3b0   : > { %v15677_v63 = vadd.f32 %v15603_v13, %v10538_v5  ;;  %vm17530_vm11 = vmmov %vm17470_vm2 }
 0x3b1   : > { %v5541_v24 = vpop.f32.mrf.mxu1  ;;  %v10628_v46 = vpop.f32.mrf.mxu0 }
 0x3b2   : > { %v15680_v53 = vadd.f32 %v15610_v34, %v5541_v24 }
 0x3b3   : > { %10802 = vmatmul.mubr.msk.bf16.gmra.mxu0 %vm17507_vm3, %v7918_v19  ;;  %v10581_v54 = vpop.f32.mrf.mxu1  ;;  %v6388_v13 = vpop.f32.mrf.mxu0  ;;  %vm17528_vm3 = vmmov %vm17470_vm2 }
 0x3b4   : > { %v6055_v17 = vadd.f32 %v10581_v54, %v15357_v47  ;;  %v7465_v47 = vrot.slane %v15261_v62, 2  ;;  %v11097_v54 = vld [vmem:[#allocation4 + $0xa0] ss:$0 sps:$4 sm:$0x33]  }
 0x3b5   : > { %v5910_v22 = vpop.f32.mrf.mxu1  ;;  %v10631_v15 = vpop.f32.mrf.mxu0 }
 0x3b6   : > { %10756 = vmatmul.mubr.msk.bf16.gmra.mxu1 %vm17509_vm6, %v7460_v0  ;;  %v6053_v21 = vadd.f32 %v5910_v22, %v15362_v32  ;;  %v15690_v34 = vadd.f32 %v15619_v25, %v6055_v17  ;;  %v7464_v32 = vsel %vm17485_vm0, %v7461_v42, %v7463_v2  ;;  %v17514_v42 = vld [vmem:[#allocation66_spill] sm:$0xff]  ;;  %vm17532_vm6 = vmmov %vm17470_vm2 }
 0x3b7   : > { %10759 = vmatprep.mubr.msk.bf16.mxu1 %vm17511_vm5, %v7462_v9  ;;  %v10582_v36 = vpop.f32.mrf.mxu1  ;;  %v6401_v24 = vpop.f32.mrf.mxu0  ;;  %vm17536_vm5 = vmmov %vm17470_vm2 }
 0x3b8   : > { %v6056_v19 = vadd.f32 %v10582_v36, %v15369_v59  ;;  %v15694_v23 = vadd.f32 %v15628_v7, %v6053_v21  ;;  %v7466_v59 = vsel %vm17512_vm1, %v7463_v2, %v7465_v47  ;;  %v7467_v21 = vrot.slane %v11097_v54, 2  ;;  %vm17538_vm0 = vmmov %vm17470_vm2 }
 0x3b9   : > { %v5913_v5 = vpop.f32.mrf.mxu1  ;;  %v10632_v9 = vpop.f32.mrf.mxu0  ;;  %vm17542_vm1 = vmmov %vm17538_vm0 }
 0x3ba   : > { %v6054_v0 = vadd.f32 %v5913_v5, %v15374_v6  ;;  %v15700_v41 = vadd.f32 %v15637_v61, %v6056_v19 }
 0x3bb   : > { %v10585_v25 = vpop.f32.mrf.mxu1  ;;  %v6404_v17 = vpop.f32.mrf.mxu0 }
 0x3bc   : > { %v6059_v7 = vadd.f32 %v10585_v25, %v15404_v43  ;;  %v15707_v62 = vadd.f32 %v15644_v48, %v6054_v0  ;;  %v7468_v48 = vsel %vm17515_vm15, %v7465_v47, %v7467_v21  ;;  %vm17546_vm15 = vmmov %vm17538_vm0 }
 0x3bd   : > { %v5926_v6 = vpop.f32.mrf.mxu1 }
 0x3be   : > { %10760 = vmatmul.mubr.msk.bf16.gmra.mxu1 %vm17470_vm2, %v7464_v32  ;;  %v6057_v22 = vadd.f32 %v5926_v6, %v17514_v42  ;;  %v15711_v61 = vadd.f32 %v15651_v35, %v6059_v7  ;;  %v10635_v19 = vpop.f32.mrf.mxu0  ;;  %v17517_v7 = vld [vmem:[#allocation77_spill] sm:$0xff]  ;;  %vm17540_vm2 = vmmov %vm17538_vm0 }
 0x3bf   : > { %10763 = vmatprep.mubr.msk.bf16.mxu1 %vm17513_vm14, %v7466_v59  ;;  %v10586_v36 = vpop.f32.mrf.mxu1  ;;  %vm17544_vm14 = vmmov %vm17538_vm0 }
 0x3c0   : > { %v6060_v2 = vadd.f32 %v10586_v36, %v15426_v20  ;;  %v15714_v5 = vadd.f32 %v6369_v31, %v6057_v22  ;;  %v6417_v32 = vpop.f32.mrf.mxu0 }
 0x3c1   : > { %v5929_v43 = vpop.f32.mrf.mxu1 }
 0x3c2   : > { %v6058_v25 = vadd.f32 %v5929_v43, %v15434_v4  ;;  %v15718_v0 = vadd.f32 %v10624_v33, %v6060_v2  ;;  %v10636_v54 = vpop.f32.mrf.mxu0 }
 0x3c3   : > { %v10589_v59 = vpop.f32.mrf.mxu1 }
 0x3c4   : > { %v6063_v35 = vadd.f32 %v10589_v59, %v15455_v14  ;;  %v15724_v20 = vadd.f32 %v6372_v18, %v6058_v25  ;;  %v6420_v6 = vpop.f32.mrf.mxu0  ;;  %v17519_v25 = vld [vmem:[#allocation26_spill] sm:$0xff] }
 0x3c5   : > { %v5942_v31 = vpop.f32.mrf.mxu1 }
 0x3c6   : > { %10764 = vmatmul.mubr.msk.bf16.gmra.mxu1 %vm17516_vm10, %v7468_v48  ;;  %v6061_v42 = vadd.f32 %v5942_v31, %v15464_v45  ;;  %v15727_v4 = vadd.f32 %v10627_v51, %v6063_v35  ;;  %v17521_v51 = vld [vmem:[#allocation49_spill] sm:$0xff]  ;;  %vm17548_vm10 = vmmov %vm17538_vm0 }
 0x3c7   : > { %10807 = vmatprep.mubr.msk.bf16.mxu1 %vm17518_vm4, %v17517_v7  ;;  %v10590_v47 = vpop.f32.mrf.mxu1  ;;  %vm17550_vm4 = vmmov %vm17538_vm0 }
 0x3c8   : > { %v10639_v33 = vpop.f32.mrf.mxu0  ;;  %v6064_v22 = vadd.f32 %v10590_v47, %v15471_v29  ;;  %v15730_v21 = vadd.f32 %v6385_v40, %v6061_v42 }
 0x3c9   : > { %v5945_v36 = vpop.f32.mrf.mxu1 }
 0x3ca   : > { %v6433_v2 = vpop.f32.mrf.mxu0  ;;  %v6062_v14 = vadd.f32 %v5945_v36, %v15478_v60  ;;  %v15733_v43 = vadd.f32 %v10628_v46, %v6064_v22 }
 0x3cc   : > { %v10640_v48 = vpop.f32.mrf.mxu0  ;;  %v15740_v59 = vadd.f32 %v6388_v13, %v6062_v14  ;;  %v17523_v14 = vld [vmem:[#allocation48_spill] sm:$0xff] }
 0x3ce   : > { %v10593_v18 = vpop.f32.mrf.mxu1  ;;  %10808 = vmatmul.mubr.msk.bf16.vlgmr.msra.gmra.mxu1 %vm17520_vm12, %v17519_v25  ;;  %v6436_v40 = vpop.f32.mrf.mxu0  ;;  %vm17552_vm12 = vmmov %vm17538_vm0 }
 0x3cf   : > { %v6067_v45 = vadd.f32 %v10593_v18, %v15496_v26  ;;  %10811 = vmatprep.mubr.msk.bf16.mxu1 %vm17522_vm7, %v17521_v51  ;;  %vm17557_vm7 = vmmov %vm17538_vm0 }
 0x3d0   : > { %v5958_v29 = vpop.f32.mrf.mxu1 }
 0x3d1   : > { %v6065_v35 = vadd.f32 %v5958_v29, %v15504_v10  ;;  %v15743_v7 = vadd.f32 %v10631_v15, %v6067_v45  ;;  %v17525_v15 = vld [vmem:[#allocation40_spill] sm:$0xff] }
 0x3d2   : > { %v10594_v60 = vpop.f32.mrf.mxu1  ;;  %v10643_v46 = vpop.f32.mrf.mxu0 }
 0x3d3   : > { %v6068_v31 = vadd.f32 %v10594_v60, %v15511_v11  ;;  %v15746_v42 = vadd.f32 %v6401_v24, %v6065_v35 }
 0x3d4   : > { %v5961_v47 = vpop.f32.mrf.mxu1  ;;  %v6449_v22 = vpop.f32.mrf.mxu0 }
 0x3d5   : > { %v6066_v26 = vadd.f32 %v5961_v47, %v15520_v37  ;;  %v15749_v36 = vadd.f32 %v10632_v9, %v6068_v31 }
 0x3d6   : > { %v10597_v13 = vpop.f32.mrf.mxu1  ;;  %10812 = vmatmul.mubr.msk.bf16.gmra.mxu1 %vm17524_vm9, %v17523_v14  ;;  %v10644_v18 = vpop.f32.mrf.mxu0  ;;  %vm17558_vm9 = vmmov %vm17538_vm0 }
 0x3d7   : > { %v6071_v10 = vadd.f32 %v10597_v13, %v15546_v57  ;;  %10815 = vmatprep.mubr.msk.bf16.mxu1 %vm17526_vm13, %v17525_v15  ;;  %v15756_v25 = vadd.f32 %v6404_v17, %v6066_v26  ;;  %v17527_v26 = vld [vmem:[#allocation15_spill] sm:$0xff]  ;;  %vm17559_vm13 = vmmov %vm17538_vm0 }
 0x3d8   : > { %v5974_v11 = vpop.f32.mrf.mxu1  ;;  %v6452_v24 = vpop.f32.mrf.mxu0 }
 0x3d9   : > { %v6069_v45 = vadd.f32 %v5974_v11, %v15551_v44  ;;  %v15759_v51 = vadd.f32 %v10635_v19, %v6071_v10  ;;  %v17529_v19 = vld [vmem:[#allocation53_spill] sm:$0xff] }
 0x3da   : > { %v10598_v37 = vpop.f32.mrf.mxu1  ;;  %v10647_v9 = vpop.f32.mrf.mxu0 }
 0x3db   : > { %v6072_v29 = vadd.f32 %v10598_v37, %v15560_v58  ;;  %v15762_v35 = vadd.f32 %v6417_v32, %v6069_v45 }
 0x3dc   : > { %v5977_v60 = vpop.f32.mrf.mxu1  ;;  %v6465_v31 = vpop.f32.mrf.mxu0 }
 0x3dd   : > { %v6070_v57 = vadd.f32 %v5977_v60, %v15565_v39  ;;  %v15765_v47 = vadd.f32 %v10636_v54, %v6072_v29 }
 0x3de   : > { %v10601_v17 = vpop.f32.mrf.mxu1  ;;  %10816 = vmatmul.mubr.msk.bf16.gmra.mxu1 %vm17528_vm3, %v17527_v26  ;;  %v10648_v13 = vpop.f32.mrf.mxu0  ;;  %vm17560_vm3 = vmmov %vm17538_vm0 }
 0x3df   : > { %v6075_v44 = vadd.f32 %v10601_v17, %v15576_v28  ;;  %10819 = vmatprep.mubr.msk.bf16.mxu1 %vm17530_vm11, %v17529_v19  ;;  %v15772_v14 = vadd.f32 %v6420_v6, %v6070_v57  ;;  %v17531_v57 = vld [vmem:[#allocation52_spill] sm:$0xff]  ;;  %vm17561_vm11 = vmmov %vm17538_vm0 }
 0x3e0   : > { %v5990_v58 = vpop.f32.mrf.mxu1  ;;  %v6468_v32 = vpop.f32.mrf.mxu0 }
 0x3e1   : > { %v6073_v10 = vadd.f32 %v5990_v58, %v15581_v38  ;;  %v15775_v15 = vadd.f32 %v10639_v33, %v6075_v44  ;;  %v17533_v33 = vld [vmem:[#allocation62_spill] sm:$0xff] }
 0x3e2   : > { %v10602_v39 = vpop.f32.mrf.mxu1  ;;  %v10651_v54 = vpop.f32.mrf.mxu0 }
 0x3e3   : > { %v6076_v11 = vadd.f32 %v10602_v39, %v15590_v49  ;;  %v15778_v45 = vadd.f32 %v6433_v2, %v6073_v10 }
 0x3e4   : > { %v5993_v37 = vpop.f32.mrf.mxu1  ;;  %v6481_v29 = vpop.f32.mrf.mxu0 }
 0x3e5   : > { %v6074_v28 = vadd.f32 %v5993_v37, %v15597_v56  ;;  %v15781_v60 = vadd.f32 %v10640_v48, %v6076_v11 }
 0x3e6   : > { %v10605_v6 = vpop.f32.mrf.mxu1  ;;  %10820 = vmatmul.mubr.msk.bf16.gmra.mxu1 %vm17532_vm6, %v17531_v57  ;;  %v10652_v17 = vpop.f32.mrf.mxu0  ;;  %vm17562_vm6 = vmmov %vm17538_vm0 }
 0x3e7   : > { %v6079_v38 = vadd.f32 %v10605_v6, %v15606_v27  ;;  %10823 = vmatprep.mubr.msk.bf16.mxu1 %vm17534_vm8, %v17533_v33  ;;  %v15788_v26 = vadd.f32 %v6436_v40, %v6074_v28  ;;  %v17535_v28 = vld [vmem:[#allocation58_spill] sm:$0xff]  ;;  %vm17563_vm8 = vmmov %vm17538_vm0 }
 0x3e8   : > { %v6006_v49 = vpop.f32.mrf.mxu1  ;;  %v6484_v2 = vpop.f32.mrf.mxu0 }
 0x3e9   : > { %v6077_v44 = vadd.f32 %v6006_v49, %v15615_v55  ;;  %v15791_v19 = vadd.f32 %v10643_v46, %v6079_v38  ;;  %v17537_v46 = vld [vmem:[#allocation14_spill] sm:$0xff] }
 0x3ea   : > { %v10606_v56 = vpop.f32.mrf.mxu1  ;;  %v10695_v48 = vpop.f32.mrf.mxu0 }
 0x3eb   : > { %v6080_v58 = vadd.f32 %v10606_v56, %v15624_v1  ;;  %v15794_v10 = vadd.f32 %v6449_v22, %v6077_v44 }
 0x3ec   : > { %v6009_v39 = vpop.f32.mrf.mxu1  ;;  %v7120_v11 = vpop.f32.mrf.mxu0 }
 0x3ed   : > { %v6078_v27 = vadd.f32 %v6009_v39, %v15631_v12  ;;  %v15797_v37 = vadd.f32 %v10644_v18, %v6080_v58 }
 0x3ee   : > { %v10609_v40 = vpop.f32.mrf.mxu1  ;;  %10824 = vmatmul.mubr.msk.bf16.gmra.mxu1 %vm17536_vm5, %v17535_v28  ;;  %v10696_v6 = vpop.f32.mrf.mxu0  ;;  %vm17564_vm5 = vmmov %vm17538_vm0 }
 0x3ef   : > { %v6083_v55 = vadd.f32 %v10609_v40, %v15640_v52  ;;  %10827 = vmatprep.mubr.msk.bf16.mxu1 %vm17538_vm0, %v17537_v46  ;;  %v15804_v57 = vadd.f32 %v6452_v24, %v6078_v27  ;;  %v17539_v27 = vld [vmem:[#allocation63_spill] sm:$0xff] }
 0x3f0   : > { %v6022_v1 = vpop.f32.mrf.mxu1  ;;  %v7123_v22 = vpop.f32.mrf.mxu0 }
 0x3f1   : > { %v6081_v38 = vadd.f32 %v6022_v1, %v15647_v50  ;;  %v15807_v33 = vadd.f32 %v10647_v9, %v6083_v55  ;;  %v17541_v9 = vld [vmem:[#allocation10_spill] sm:$0xff] }
 0x3f2   : > { %v10610_v12 = vpop.f32.mrf.mxu1  ;;  %v10699_v18 = vpop.f32.mrf.mxu0 }
 0x3f3   : > { %v6084_v49 = vadd.f32 %v10610_v12, %v15656_v3  ;;  %v15810_v44 = vadd.f32 %v6465_v31, %v6081_v38 }
 0x3f4   : > { %v6025_v56 = vpop.f32.mrf.mxu1  ;;  %v7136_v58 = vpop.f32.mrf.mxu0 }
 0x3f5   : > { %v6082_v52 = vadd.f32 %v6025_v56, %v15660_v16  ;;  %v15813_v39 = vadd.f32 %v10648_v13, %v6084_v49 }
 0x3f6   : > { %v10613_v24 = vpop.f32.mrf.mxu1  ;;  %10828 = vmatmul.mubr.msk.bf16.gmra.mxu1 %vm17540_vm2, %v17539_v27  ;;  %v10700_v40 = vpop.f32.mrf.mxu0  ;;  %vm17565_vm2 = vmmov %vm17538_vm0 }
 0x3f7   : > { %v6087_v50 = vadd.f32 %v10613_v24, %v15666_v30  ;;  %10831 = vmatprep.mubr.msk.bf16.mxu1 %vm17542_vm1, %v17541_v9  ;;  %v15820_v28 = vadd.f32 %v6468_v32, %v6082_v52  ;;  %v17543_v52 = vld [vmem:[#allocation54_spill] sm:$0xff]  ;;  %vm17566_vm1 = vmmov %vm17538_vm0 }
 0x3f8   : > { %v6038_v3 = vpop.f32.mrf.mxu1  ;;  %v7139_v31 = vpop.f32.mrf.mxu0 }
 0x3f9   : > { %v6085_v55 = vadd.f32 %v6038_v3, %v15670_v8  ;;  %v15823_v46 = vadd.f32 %v10651_v54, %v6087_v50  ;;  %v17545_v54 = vld [vmem:[#allocation64_spill] sm:$0xff] }
 0x3fa   : > { %v10614_v16 = vpop.f32.mrf.mxu1  ;;  %v10703_v13 = vpop.f32.mrf.mxu0 }
 0x3fb   : > { %v6088_v1 = vadd.f32 %v10614_v16, %v15677_v63  ;;  %v15826_v38 = vadd.f32 %v6481_v29, %v6085_v55 }
 0x3fc   : > { %v6041_v12 = vpop.f32.mrf.mxu1  ;;  %v7152_v49 = vpop.f32.mrf.mxu0 }
 0x3fd   : > { %v6086_v30 = vadd.f32 %v6041_v12, %v15680_v53  ;;  %v15829_v56 = vadd.f32 %v10652_v17, %v6088_v1 }
 0x3fe   : > { %v10657_v32 = vpop.f32.mrf.mxu1  ;;  %10832 = vmatmul.mubr.msk.bf16.gmra.mxu1 %vm17544_vm14, %v17543_v52  ;;  %v10704_v24 = vpop.f32.mrf.mxu0  ;;  %vm17567_vm14 = vmmov %vm17538_vm0 }
 0x3ff   : > { %v6948_v8 = vadd.f32 %v10657_v32, %v15690_v34  ;;  %10835 = vmatprep.mubr.msk.bf16.mxu1 %vm17546_vm15, %v17545_v54  ;;  %v15836_v27 = vadd.f32 %v6484_v2, %v6086_v30  ;;  %v17547_v30 = vld [vmem:[#allocation61_spill] sm:$0xff]  ;;  %vm17568_vm15 = vmmov %vm17538_vm0 }
 0x400   : > { %v6803_v63 = vpop.f32.mrf.mxu1  ;;  %v7155_v29 = vpop.f32.mrf.mxu0 }
 0x401   : > { %v6946_v50 = vadd.f32 %v6803_v63, %v15694_v23  ;;  %v15839_v9 = vadd.f32 %v10695_v48, %v6948_v8  ;;  %v17549_v48 = vld [vmem:[#allocation56_spill] sm:$0xff] }
 0x402   : > { %v10658_v53 = vpop.f32.mrf.mxu1 }
 0x403   : > { %v10707_v17 = vpop.f32.mrf.mxu0  ;;  %v6949_v3 = vadd.f32 %v10658_v53, %v15700_v41  ;;  %v15842_v55 = vadd.f32 %v7120_v11, %v6946_v50 }
 0x404   : > { %v6806_v16 = vpop.f32.mrf.mxu1 }
 0x405   : > { %v7168_v1 = vpop.f32.mrf.mxu0  ;;  %v6947_v34 = vadd.f32 %v6806_v16, %v15707_v62  ;;  %v15845_v12 = vadd.f32 %v10696_v6, %v6949_v3 }
 0x406   : > { %v10661_v2 = vpop.f32.mrf.mxu1  ;;  %10836 = vmatmul.mubr.msk.bf16.gmra.mxu1 %vm17548_vm10, %v17547_v30  ;;  %vm17569_vm10 = vmmov %vm17538_vm0 }
 0x407   : > { %v10708_v32 = vpop.f32.mrf.mxu0  ;;  %v6952_v23 = vadd.f32 %v10661_v2, %v15711_v61  ;;  %10839 = vmatprep.mubr.msk.bf16.mxu1 %vm17550_vm4, %v17549_v48  ;;  %v15852_v52 = vadd.f32 %v7123_v22, %v6947_v34  ;;  %v17551_v34 = vld [vmem:[#allocation20_spill] sm:$0xff]  ;;  %vm17570_vm4 = vmmov %vm17538_vm0 }
 0x408   : > { %v6819_v41 = vpop.f32.mrf.mxu1 }
 0x409   : > { %v7171_v11 = vpop.f32.mrf.mxu0  ;;  %v6950_v8 = vadd.f32 %v6819_v41, %v15714_v5  ;;  %v15855_v54 = vadd.f32 %v10699_v18, %v6952_v23 }
 0x40a   : > { %v10662_v62 = vpop.f32.mrf.mxu1 }
 0x40b   : > { %v10711_v6 = vpop.f32.mrf.mxu0  ;;  %v6953_v63 = vadd.f32 %v10662_v62, %v15718_v0  ;;  %v15858_v50 = vadd.f32 %v7136_v58, %v6950_v8 }
 0x40c   : > { %v6822_v53 = vpop.f32.mrf.mxu1 }
 0x40d   : > { %v7184_v3 = vpop.f32.mrf.mxu0  ;;  %v6951_v61 = vadd.f32 %v6822_v53, %v15724_v20  ;;  %v15861_v16 = vadd.f32 %v10700_v40, %v6953_v63 }
 0x40e   : > { %v10665_v22 = vpop.f32.mrf.mxu1  ;;  %10840 = vmatmul.mubr.msk.bf16.gmra.mxu1 %vm17552_vm12, %v17551_v34  ;;  %vm17571_vm12 = vmmov %vm17538_vm0 }
 0x40f   : > { %v10712_v2 = vpop.f32.mrf.mxu0  ;;  %v6956_v5 = vadd.f32 %v10665_v22, %v15727_v4  ;;  %v15866_v18 = vadd.f32 %v7139_v31, %v6951_v61 }
 0x410   : > { %v6835_v30 = vpop.f32.mrf.mxu1 }
 0x411   : > { %v7187_v23 = vpop.f32.mrf.mxu0  ;;  %v6954_v0 = vadd.f32 %v6835_v30, %v15730_v21  ;;  %v15869_v58 = vadd.f32 %v10703_v13, %v6956_v5 }
 0x412   : > { %v10666_v48 = vpop.f32.mrf.mxu1 }
 0x413   : > { %v10715_v41 = vpop.f32.mrf.mxu0  ;;  %v6957_v20 = vadd.f32 %v10666_v48, %v15733_v43  ;;  %v15872_v40 = vadd.f32 %v7152_v49, %v6954_v0 }
 0x414   : > { %v6838_v8 = vpop.f32.mrf.mxu1 }
 0x415   : > { %v7200_v62 = vpop.f32.mrf.mxu0  ;;  %v6955_v63 = vadd.f32 %v6838_v8, %v15740_v59  ;;  %v15875_v53 = vadd.f32 %v10704_v24, %v6957_v20 }
 0x416   : > { %v10669_v4 = vpop.f32.mrf.mxu1 }
 0x417   : > { %v10716_v31 = vpop.f32.mrf.mxu0  ;;  %v6960_v61 = vadd.f32 %v10669_v4, %v15743_v7  ;;  %v15878_v22 = vadd.f32 %v7155_v29, %v6955_v63 }
 0x418   : > { %v6851_v21 = vpop.f32.mrf.mxu1 }
 0x419   : > { %v7203_v13 = vpop.f32.mrf.mxu0  ;;  %v6958_v34 = vadd.f32 %v6851_v21, %v15746_v42  ;;  %v15881_v5 = vadd.f32 %v10707_v17, %v6960_v61 }
 0x41a   : > { %v10670_v43 = vpop.f32.mrf.mxu1 }
 0x41b   : > { %v10719_v49 = vpop.f32.mrf.mxu0  ;;  %v6961_v30 = vadd.f32 %v10670_v43, %v15749_v36  ;;  %v15884_v0 = vadd.f32 %v7168_v1, %v6958_v34 }
 0x41c   : > { %v6854_v59 = vpop.f32.mrf.mxu1 }
 0x41d   : > { %v7216_v24 = vpop.f32.mrf.mxu0  ;;  %v6959_v48 = vadd.f32 %v6854_v59, %v15756_v25  ;;  %v15887_v20 = vadd.f32 %v10708_v32, %v6961_v30 }
 0x41e   : > { %v10673_v7 = vpop.f32.mrf.mxu1 }
 0x41f   : > { %v10720_v29 = vpop.f32.mrf.mxu0  ;;  %v6964_v8 = vadd.f32 %v10673_v7, %v15759_v51  ;;  %v15890_v63 = vadd.f32 %v7171_v11, %v6959_v48 }
 0x420   : > { %v6867_v42 = vpop.f32.mrf.mxu1 }
 0x421   : > { %v6962_v17 = vadd.f32 %v6867_v42, %v15762_v35  ;;  %v7219_v4 = vpop.f32.mrf.mxu0  ;;  %v15893_v61 = vadd.f32 %v10711_v6, %v6964_v8 }
 0x422   : > { %v10674_v36 = vpop.f32.mrf.mxu1 }
 0x423   : > { %v6965_v1 = vadd.f32 %v10674_v36, %v15765_v47  ;;  %v15896_v21 = vadd.f32 %v7184_v3, %v6962_v17  ;;  %v10723_v34 = vpop.f32.mrf.mxu0 }
 0x424   : > { %v6870_v25 = vpop.f32.mrf.mxu1 }
 0x425   : > { %v6963_v32 = vadd.f32 %v6870_v25, %v15772_v14  ;;  %v15899_v43 = vadd.f32 %v10712_v2, %v6965_v1  ;;  %v7232_v59 = vpop.f32.mrf.mxu0 }
 0x426   : > { %v10677_v51 = vpop.f32.mrf.mxu1 }
 0x427   : > { %v6968_v11 = vadd.f32 %v10677_v51, %v15775_v15  ;;  %v15902_v30 = vadd.f32 %v7187_v23, %v6963_v32  ;;  %v10724_v8 = vpop.f32.mrf.mxu0 }
 0x428   : > { %v6883_v35 = vpop.f32.mrf.mxu1 }
 0x429   : > { %v6966_v6 = vadd.f32 %v6883_v35, %v15778_v45  ;;  %v15905_v48 = vadd.f32 %v10715_v41, %v6968_v11  ;;  %v7235_v36 = vpop.f32.mrf.mxu0 }
 0x42a   : > { %v10678_v47 = vpop.f32.mrf.mxu1 }
 0x42b   : > { %v6969_v3 = vadd.f32 %v10678_v47, %v15781_v60  ;;  %v15908_v7 = vadd.f32 %v7200_v62, %v6966_v6  ;;  %v10727_v32 = vpop.f32.mrf.mxu0 }
 0x42c   : > { %v6886_v14 = vpop.f32.mrf.mxu1 }
 0x42d   : > { %v6967_v2 = vadd.f32 %v6886_v14, %v15788_v26  ;;  %v15911_v42 = vadd.f32 %v10716_v31, %v6969_v3  ;;  %v7248_v35 = vpop.f32.mrf.mxu0 }
 0x42e   : > { %v10681_v15 = vpop.f32.mrf.mxu1 }
 0x42f   : > { %v6972_v23 = vadd.f32 %v10681_v15, %v15791_v19  ;;  %v15914_v17 = vadd.f32 %v7203_v13, %v6967_v2  ;;  %v10728_v3 = vpop.f32.mrf.mxu0 }
 0x430   : > { %v6899_v45 = vpop.f32.mrf.mxu1 }
 0x431   : > { %v6970_v41 = vadd.f32 %v6899_v45, %v15794_v10  ;;  %v15917_v1 = vadd.f32 %v10719_v49, %v6972_v23  ;;  %v7251_v15 = vpop.f32.mrf.mxu0 }
 0x432   : > { %v10682_v60 = vpop.f32.mrf.mxu1 }
 0x433   : > { %v6973_v62 = vadd.f32 %v10682_v60, %v15797_v37  ;;  %v15920_v25 = vadd.f32 %v7216_v24, %v6970_v41 }
 0x434   : > { %v6902_v26 = vpop.f32.mrf.mxu1 }
 0x435   : > { %v6971_v31 = vadd.f32 %v6902_v26, %v15804_v57  ;;  %v15923_v51 = vadd.f32 %v10720_v29, %v6973_v62 }
 0x436   : > { %v10685_v19 = vpop.f32.mrf.mxu1 }
 0x437   : > { %v6976_v13 = vadd.f32 %v10685_v19, %v15807_v33  ;;  %v15926_v11 = vadd.f32 %v7219_v4, %v6971_v31 }
 0x438   : > { %v6915_v10 = vpop.f32.mrf.mxu1 }
 0x439   : > { %v6974_v49 = vadd.f32 %v6915_v10, %v15810_v44  ;;  %v15929_v6 = vadd.f32 %v10723_v34, %v6976_v13 }
 0x43a   : > { %v10686_v37 = vpop.f32.mrf.mxu1 }
 0x43b   : > { %v6977_v24 = vadd.f32 %v10686_v37, %v15813_v39  ;;  %v15932_v47 = vadd.f32 %v7232_v59, %v6974_v49 }
 0x43c   : > { %v6918_v57 = vpop.f32.mrf.mxu1 }
 0x43d   : > { %v6975_v29 = vadd.f32 %v6918_v57, %v15820_v28  ;;  %v15935_v14 = vadd.f32 %v10724_v8, %v6977_v24  ;;  %v15946_v28 = vpop.f32.mrf.mxu0 }
 0x43e   : > { %v10689_v33 = vpop.f32.mrf.mxu1 }
 0x43f   : > { %v6980_v4 = vadd.f32 %v10689_v33, %v15823_v46  ;;  %v15938_v2 = vadd.f32 %v7235_v36, %v6975_v29  ;;  %v15956_v26 = vpop.f32.mrf.mxu0 }
 0x440   : > { %v6931_v44 = vpop.f32.mrf.mxu1 }
 0x441   : > { %v6978_v34 = vadd.f32 %v6931_v44, %v15826_v38  ;;  %v15941_v23 = vadd.f32 %v10727_v32, %v6980_v4 }
 0x442   : > { %v10690_v39 = vpop.f32.mrf.mxu1 }
 0x443   : > { %v6981_v59 = vadd.f32 %v10690_v39, %v15829_v56  ;;  %v15944_v45 = vadd.f32 %v7248_v35, %v6978_v34 }
 0x444   : > { %v6934_v41 = vpop.f32.mrf.mxu1 }
 0x445   : > { %v6979_v8 = vadd.f32 %v6934_v41, %v15836_v27  ;;  %v15949_v60 = vadd.f32 %v10728_v3, %v6981_v59  ;;  %v15964_v27 = vpop.f32.mrf.mxu0 }
 0x446   : > { %v10733_v46 = vpop.f32.mrf.mxu1 }
 0x447   : > { %v15952_v36 = vadd.f32 %v10733_v46, %v15839_v9  ;;  %v15954_v62 = vadd.f32 %v7251_v15, %v6979_v8  ;;  %v15972_v35 = vpop.f32.mrf.mxu0 }
 0x448   : > { %v7563_v38 = vpop.f32.mrf.mxu1 }
 0x449   : > { %v15959_v56 = vadd.f32 %v7563_v38, %v15842_v55  ;;  %v15980_v57 = vpop.f32.mrf.mxu0 }
 0x44a   : > { %v10734_v31 = vpop.f32.mrf.mxu1 }
 0x44b   : > { %v15962_v32 = vadd.f32 %v10734_v31, %v15845_v12  ;;  %v15988_v33 = vpop.f32.mrf.mxu0 }
 0x44c   : > { %v7566_v19 = vpop.f32.mrf.mxu1 }
 0x44d   : > { %v15967_v13 = vadd.f32 %v7566_v19, %v15852_v52  ;;  %v15996_v15 = vpop.f32.mrf.mxu0 }
 0x44e   : > { %v10737_v9 = vpop.f32.mrf.mxu1 }
 0x44f   : > { %v15970_v10 = vadd.f32 %v10737_v9, %v15855_v54  ;;  %v16004_v59 = vpop.f32.mrf.mxu0 }
 0x450   : > { %v7579_v49 = vpop.f32.mrf.mxu1 }
 0x451   : > { %v15975_v55 = vadd.f32 %v7579_v49, %v15858_v50  ;;  %v16012_v46 = vpop.f32.mrf.mxu0 }
 0x452   : > { %v10738_v37 = vpop.f32.mrf.mxu1 }
 0x453   : > { %v15978_v12 = vadd.f32 %v10738_v37, %v15861_v16  ;;  %v16020_v19 = vpop.f32.mrf.mxu0 }
 0x454   : > { %v7582_v24 = vpop.f32.mrf.mxu1 }
 0x455   : > { %v15983_v52 = vadd.f32 %v7582_v24, %v15866_v18  ;;  %v16028_v37 = vpop.f32.mrf.mxu0 }
 0x456   : > { %v10741_v3 = vpop.f32.mrf.mxu1 }
 0x457   : > { %v15986_v54 = vadd.f32 %v10741_v3, %v15869_v58 }
 0x458   : > { %v7595_v29 = vpop.f32.mrf.mxu1 }
 0x459   : > { %v15991_v50 = vadd.f32 %v7595_v29, %v15872_v40  ;;  %v16036_v29 = vpop.f32.mrf.mxu0 }
 0x45a   : > { %v10742_v4 = vpop.f32.mrf.mxu1 }
 0x45b   : > { %v15994_v16 = vadd.f32 %v10742_v4, %v15875_v53 }
 0x45c   : > { %v7598_v44 = vpop.f32.mrf.mxu1 }
 0x45d   : > { %v15999_v18 = vadd.f32 %v7598_v44, %v15878_v22 }
 0x45e   : > { %v10745_v34 = vpop.f32.mrf.mxu1 }
 0x45f   : > { %v16002_v58 = vadd.f32 %v10745_v34, %v15881_v5  ;;  %v16044_v34 = vpop.f32.mrf.mxu0 }
 0x460   : > { %v7611_v39 = vpop.f32.mrf.mxu1 }
 0x461   : > { %v16007_v40 = vadd.f32 %v7611_v39, %v15884_v0 }
 0x462   : > { %v10746_v41 = vpop.f32.mrf.mxu1 }
 0x463   : > { %v16010_v53 = vadd.f32 %v10746_v41, %v15887_v20 }
 0x464   : > { %v7614_v8 = vpop.f32.mrf.mxu1 }
 0x465   : > { %v16015_v22 = vadd.f32 %v7614_v8, %v15890_v63  ;;  %v16052_v8 = vpop.f32.mrf.mxu0 }
 0x466   : > { %v10749_v38 = vpop.f32.mrf.mxu1 }
 0x467   : > { %v16018_v5 = vadd.f32 %v10749_v38, %v15893_v61 }
 0x468   : > { %v7627_v31 = vpop.f32.mrf.mxu1 }
 0x469   : > { %v16023_v0 = vadd.f32 %v7627_v31, %v15896_v21 }
 0x46a   : > { %v10750_v9 = vpop.f32.mrf.mxu1 }
 0x46b   : > { %v16026_v20 = vadd.f32 %v10750_v9, %v15899_v43  ;;  %v16060_v9 = vpop.f32.mrf.mxu0 }
 0x46c   : > { %v7630_v49 = vpop.f32.mrf.mxu1 }
 0x46d   : > { %v16031_v63 = vadd.f32 %v7630_v49, %v15902_v30 }
 0x46e   : > { %v10753_v24 = vpop.f32.mrf.mxu1 }
 0x46f   : > { %v16034_v61 = vadd.f32 %v10753_v24, %v15905_v48 }
 0x470   : > { %v7643_v3 = vpop.f32.mrf.mxu1 }
 0x471   : > { %v16039_v21 = vadd.f32 %v7643_v3, %v15908_v7  ;;  %v16068_v3 = vpop.f32.mrf.mxu0 }
 0x472   : > { %v10754_v4 = vpop.f32.mrf.mxu1 }
 0x473   : > { %v16042_v43 = vadd.f32 %v10754_v4, %v15911_v42 }
 0x474   : > { %v7646_v44 = vpop.f32.mrf.mxu1 }
 0x475   : > { %v16047_v30 = vadd.f32 %v7646_v44, %v15914_v17 }
 0x476   : > { %v10757_v39 = vpop.f32.mrf.mxu1 }
 0x477   : > { %v16050_v48 = vadd.f32 %v10757_v39, %v15917_v1  ;;  %v16076_v39 = vpop.f32.mrf.mxu0 }
 0x478   : > { %v7659_v41 = vpop.f32.mrf.mxu1 }
 0x479   : > { %v16055_v7 = vadd.f32 %v7659_v41, %v15920_v25 }
 0x47a   : > { %v10758_v38 = vpop.f32.mrf.mxu1 }
 0x47b   : > { %v16058_v42 = vadd.f32 %v10758_v38, %v15923_v51 }
 0x47c   : > { %v7662_v31 = vpop.f32.mrf.mxu1 }
 0x47d   : > { %v16063_v17 = vadd.f32 %v7662_v31, %v15926_v11  ;;  %v16084_v31 = vpop.f32.mrf.mxu0 }
 0x47e   : > { %v10761_v49 = vpop.f32.mrf.mxu1 }
 0x47f   : > { %v16066_v1 = vadd.f32 %v10761_v49, %v15929_v6 }
 0x480   : > { %v7675_v24 = vpop.f32.mrf.mxu1 }
 0x481   : > { %v16071_v25 = vadd.f32 %v7675_v24, %v15932_v47 }
 0x482   : > { %v10762_v4 = vpop.f32.mrf.mxu1 }
 0x483   : > { %v16074_v51 = vadd.f32 %v10762_v4, %v15935_v14  ;;  %v16092_v4 = vpop.f32.mrf.mxu0 }
 0x484   : > { %v7678_v44 = vpop.f32.mrf.mxu1 }
 0x485   : > { %v16079_v11 = vadd.f32 %v7678_v44, %v15938_v2 }
 0x486   : > { %v10765_v41 = vpop.f32.mrf.mxu1 }
 0x487   : > { %v16082_v6 = vadd.f32 %v10765_v41, %v15941_v23  ;;  %v8158_v23 = vadd.f32 %v15946_v28, %v15952_v36  ;;  %v16102_v41 = vld [vmem:[%s16467_s4] ss:$0 sm:$0xff] }
 0x488   : > { %v7691_v38 = vpop.f32.mrf.mxu1 }
 0x489   : > { %17553 = vst [vmem:[#allocation59_spill] sm:$0xff] %v16082_v6  ;;  %v16087_v47 = vadd.f32 %v7691_v38, %v15944_v45 }
 0x48a   : > { %v10766_v49 = vpop.f32.mrf.mxu1 }
 0x48b   : > { %17554 = vst [vmem:[#allocation67_spill] sm:$0xff] %v16087_v47  ;;  %v16090_v14 = vadd.f32 %v10766_v49, %v15949_v60  ;;  %v8156_v60 = vadd.f32 %v15956_v26, %v15959_v56  ;;  %v16106_v49 = vpop.f32.mrf.mxu0 }
 0x48c   : > { %v7694_v24 = vpop.f32.mrf.mxu1 }
 0x48d   : > { %17555 = vst [vmem:[#allocation68_spill] sm:$0xff] %v16090_v14  ;;  %v16095_v2 = vadd.f32 %v7694_v24, %v15954_v62  ;;  %v8159_v24 = vadd.f32 %v15964_v27, %v15962_v32  ;;  %v16114_v6 = vpop.f32.mrf.mxu0  ;;  %v8162_v32 = vadd.f32 %v15980_v57, %v15970_v10  ;;  %v8163_v10 = vadd.f32 %v15996_v15, %v15978_v12 }
 0x48e   : > { %v10809_v44 = vpop.f32.mrf.mxu1  ;;  %v8166_v12 = vadd.f32 %v16012_v46, %v15986_v54 }
 0x48f   : > { %17556 = vst [vmem:[#allocation60_spill] sm:$0xff] %v16095_v2  ;;  %v8475_v45 = vadd.f32 %v10809_v44, %v8158_v23  ;;  %v8157_v23 = vadd.f32 %v15972_v35, %v15967_v13  ;;  %v8160_v13 = vadd.f32 %v15988_v33, %v15975_v55  ;;  %v8161_v55 = vadd.f32 %v16004_v59, %v15983_v52 }
 0x490   : > { %v8330_v38 = vpop.f32.mrf.mxu1  ;;  %v8164_v52 = vadd.f32 %v16020_v19, %v15991_v50  ;;  %v8165_v19 = vadd.f32 %v16036_v29, %v15999_v18 }
 0x491   : > { %v8518_v14 = vadd.f32 %v16102_v41, %v8475_v45  ;;  %v8473_v62 = vadd.f32 %v8330_v38, %v8156_v60 }
 0x492   : > { %v10810_v28 = vpop.f32.mrf.mxu1 }
 0x493   : > { %v8554_v36 = vmax.f32 %v8518_v14, 0.0  ;;  %v8516_v2 = vadd.f32 %v16102_v41, %v8473_v62  ;;  %v8476_v47 = vadd.f32 %v10810_v28, %v8159_v24  ;;  %v16124_v62 = vpop.f32.mrf.mxu0 }
 0x494   : > { %v8333_v44 = vpop.f32.mrf.mxu1 }
 0x495   : > { %8590 = vst.msk [vmem:[#allocation2 + $0x10] sm:$0xff] %vm17557_vm7, %v8554_v36  ;;  %v8552_v26 = vmax.f32 %v8516_v2, 0.0  ;;  %v8519_v56 = vadd.f32 %v16102_v41, %v8476_v47  ;;  %v8474_v45 = vadd.f32 %v8333_v44, %v8157_v23  ;;  %v16134_v44 = vpop.f32.mrf.mxu0  ;;  %vm17572_vm7 = vmmov %vm17538_vm0 }
 0x496   : > { %v10813_v27 = vpop.f32.mrf.mxu1 }
 0x497   : > { %8588 = vst.msk [vmem:[#allocation2] sm:$0xff] %vm17558_vm9, %v8552_v26  ;;  %v8555_v14 = vmax.f32 %v8519_v56, 0.0  ;;  %v8517_v60 = vadd.f32 %v16102_v41, %v8474_v45  ;;  %v8479_v38 = vadd.f32 %v10813_v27, %v8162_v32  ;;  %vm17573_vm9 = vmmov %vm17538_vm0 }
 0x498   : > { %v8346_v35 = vpop.f32.mrf.mxu1 }
 0x499   : > { %8591 = vst.msk [vmem:[#allocation2 + $0x18] sm:$0xff] %vm17559_vm13, %v8555_v14  ;;  %v8553_v47 = vmax.f32 %v8517_v60, 0.0  ;;  %v8522_v2 = vadd.f32 %v16102_v41, %v8479_v38  ;;  %v8477_v24 = vadd.f32 %v8346_v35, %v8160_v13  ;;  %v16144_v13 = vpop.f32.mrf.mxu0  ;;  %vm17574_vm13 = vmmov %vm17538_vm0 }
 0x49a   : > { %v10814_v57 = vpop.f32.mrf.mxu1 }
 0x49b   : > { %8589 = vst.msk [vmem:[#allocation2 + $0x8] sm:$0xff] %vm17560_vm3, %v8553_v47  ;;  %v8558_v28 = vmax.f32 %v8522_v2, 0.0  ;;  %v8520_v36 = vadd.f32 %v16102_v41, %v8477_v24  ;;  %v8480_v23 = vadd.f32 %v10814_v57, %v8163_v10  ;;  %vm17575_vm3 = vmmov %vm17538_vm0 }
 0x49c   : > { %v8349_v33 = vpop.f32.mrf.mxu1  ;;  %v8626_v59 = vld [vmem:[#allocation2 + $0x10] sm:$0xff] }
 0x49d   : > { %8594 = vst.msk [vmem:[#allocation2 + $0x30] sm:$0xff] %vm17561_vm11, %v8558_v28  ;;  %v8556_v26 = vmax.f32 %v8520_v36, 0.0  ;;  %v8523_v56 = vadd.f32 %v16102_v41, %v8480_v23  ;;  %v8478_v45 = vadd.f32 %v8349_v33, %v8161_v55  ;;  %v8167_v28 = vadd.f32 %v16028_v37, %v15994_v16  ;;  %vm17576_vm11 = vmmov %vm17538_vm0 }
 0x49e   : > { %v10817_v15 = vpop.f32.mrf.mxu1  ;;  %v8624_v35 = vld [vmem:[#allocation2] sm:$0xff]  ;;  %v8170_v37 = vadd.f32 %v16044_v34, %v16002_v58 }
 0x49f   : > { %8592 = vst.msk [vmem:[#allocation2 + $0x20] sm:$0xff] %vm17562_vm6, %v8556_v26  ;;  %v8559_v32 = vmax.f32 %v8523_v56, 0.0  ;;  %v8521_v27 = vadd.f32 %v16102_v41, %v8478_v45  ;;  %v8483_v14 = vadd.f32 %v10817_v15, %v8166_v12  ;;  %v16155_v45 = vpop.f32.mrf.mxu0  ;;  %vm17577_vm6 = vmmov %vm17538_vm0 }
 0x4a0   : > { %v8662_v60 = vld [vmem:[#allocation2 + $0x11] sm:$0xff]  ;;  %v8362_v38 = vpop.f32.mrf.mxu1 }
 0x4a1   : > { %v8698_v47 = vmax.f32 %v8626_v59, %v8662_v60  ;;  %8595 = vst.msk [vmem:[#allocation2 + $0x38] sm:$0xff] %vm17563_vm8, %v8559_v32  ;;  %v8557_v54 = vmax.f32 %v8521_v27, 0.0  ;;  %v8526_v46 = vadd.f32 %v16102_v41, %v8483_v14  ;;  %v8481_v2 = vadd.f32 %v8362_v38, %v8164_v52  ;;  %v8627_v29 = vld [vmem:[#allocation2 + $0x18] sm:$0xff]  ;;  %vm17578_vm8 = vmmov %vm17538_vm0 }
 0x4a2   : > { %v8625_v24 = vld [vmem:[#allocation2 + $0x8] sm:$0xff]  ;;  %v10818_v50 = vpop.f32.mrf.mxu1  ;;  %v8168_v59 = vadd.f32 %v16052_v8, %v16007_v40  ;;  %v8171_v40 = vadd.f32 %v16060_v9, %v16010_v53  ;;  %v8174_v9 = vadd.f32 %v16076_v39, %v16018_v5 }
 0x4a3   : > { %v8660_v10 = vld [vmem:[#allocation2 + $0x1] sm:$0xff]  ;;  %v8661_v57 = vld [vmem:[#allocation2 + $0x9] sm:$0xff]  ;;  %8734 = vst.msk [vmem:[#allocation3 + $0x10] sm:$0xff] %vm17564_vm5, %v8698_v47  ;;  %v8562_v55 = vmax.f32 %v8526_v46, 0.0  ;;  %v8524_v33 = vadd.f32 %v16102_v41, %v8481_v2  ;;  %v8484_v26 = vadd.f32 %v10818_v50, %v8167_v28  ;;  %v8169_v50 = vadd.f32 %v16068_v3, %v16015_v22  ;;  %vm17579_vm5 = vmmov %vm17538_vm0 }
 0x4a4   : > { %v8696_v36 = vmax.f32 %v8624_v35, %v8660_v10  ;;  %v8697_v23 = vmax.f32 %v8625_v24, %v8661_v57  ;;  %8593 = vst.msk [vmem:[#allocation2 + $0x28] sm:$0xff] %vm17538_vm0, %v8557_v54  ;;  %v8365_v56 = vpop.f32.mrf.mxu1  ;;  %v8630_v60 = vld [vmem:[#allocation2 + $0x30] sm:$0xff]  ;;  %v16167_v54 = vpop.f32.mrf.mxu0 }
 0x4a5   : > { %8598 = vst.msk [vmem:[#allocation2 + $0x50] sm:$0xff] %vm17567_vm14, %v8562_v55  ;;  %v8560_v16 = vmax.f32 %v8524_v33, 0.0  ;;  %v8482_v18 = vadd.f32 %v8365_v56, %v8165_v19  ;;  %v8527_v15 = vadd.f32 %v16102_v41, %v8484_v26  ;;  %vm17582_vm14 = vmmov %vm17538_vm0 }
 0x4a6   : > { %8732 = vst.msk [vmem:[#allocation3] sm:$0xff] %vm17565_vm2, %v8696_v36  ;;  %v8663_v12 = vld [vmem:[#allocation2 + $0x19] sm:$0xff]  ;;  %v10821_v32 = vpop.f32.mrf.mxu1  ;;  %v16179_v56 = vpop.f32.mrf.mxu0  ;;  %vm17580_vm2 = vmmov %vm17538_vm0 }
 0x4a7   : > { %8733 = vst.msk [vmem:[#allocation3 + $0x8] sm:$0xff] %vm17566_vm1, %v8697_v23  ;;  %v8699_v27 = vmax.f32 %v8627_v29, %v8663_v12  ;;  %v8525_v14 = vadd.f32 %v16102_v41, %v8482_v18  ;;  %v8487_v52 = vadd.f32 %v10821_v32, %v8170_v37  ;;  %v8563_v35 = vmax.f32 %v8527_v15, 0.0  ;;  %v8628_v58 = vld [vmem:[#allocation2 + $0x20] sm:$0xff]  ;;  %vm17581_vm1 = vmmov %vm17538_vm0 }
 0x4a8   : > { %8596 = vst.msk [vmem:[#allocation2 + $0x40] sm:$0xff] %vm17568_vm15, %v8560_v16  ;;  %v8666_v38 = vld [vmem:[#allocation2 + $0x31] sm:$0xff]  ;;  %v8378_v47 = vpop.f32.mrf.mxu1  ;;  %v8172_v32 = vadd.f32 %v16084_v31, %v16023_v0  ;;  %v8175_v31 = vadd.f32 %v16092_v4, %v16026_v20  ;;  %vm17583_vm15 = vmmov %vm17538_vm0 }
 0x4a9   : > { %8735 = vst.msk [vmem:[#allocation3 + $0x18] sm:$0xff] %vm17569_vm10, %v8699_v27  ;;  %v8702_v34 = vmax.f32 %v8630_v60, %v8666_v38  ;;  %v8561_v46 = vmax.f32 %v8525_v14, 0.0  ;;  %v8530_v2 = vadd.f32 %v16102_v41, %v8487_v52  ;;  %v8485_v24 = vadd.f32 %v8378_v47, %v8168_v59  ;;  %v8631_v3 = vld [vmem:[#allocation2 + $0x38] sm:$0xff]  ;;  %v16191_v60 = vpop.f32.mrf.mxu0  ;;  %vm17584_vm10 = vmmov %vm17538_vm0 }
 0x4aa   : > { %8599 = vst.msk [vmem:[#allocation2 + $0x58] sm:$0xff] %vm17570_vm4, %v8563_v35  ;;  %v10822_v8 = vpop.f32.mrf.mxu1  ;;  %vm17585_vm4 = vmmov %vm17538_vm0 }
 0x4ab   : > { %v8629_v10 = vld [vmem:[#allocation2 + $0x28] sm:$0xff]  ;;  %8738 = vst.msk [vmem:[#allocation3 + $0x30] sm:$0xff] %vm17571_vm12, %v8702_v34  ;;  %v8566_v23 = vmax.f32 %v8530_v2, 0.0  ;;  %v8528_v55 = vadd.f32 %v16102_v41, %v8485_v24  ;;  %v8488_v33 = vadd.f32 %v10822_v8, %v8171_v40  ;;  %v16204_v4 = vpop.f32.mrf.mxu0  ;;  %vm17586_vm12 = vmmov %vm17538_vm0 }
 0x4ac   : > { %v8664_v57 = vld [vmem:[#allocation2 + $0x21] sm:$0xff]  ;;  %v8665_v28 = vld [vmem:[#allocation2 + $0x29] sm:$0xff]  ;;  %8597 = vst.msk [vmem:[#allocation2 + $0x48] sm:$0xff] %vm17572_vm7, %v8561_v46  ;;  %v8381_v26 = vpop.f32.mrf.mxu1  ;;  %vm17587_vm7 = vmmov %vm17538_vm0 }
 0x4ad   : > { %v8700_v19 = vmax.f32 %v8628_v58, %v8664_v57  ;;  %v8701_v36 = vmax.f32 %v8629_v10, %v8665_v28  ;;  %8602 = vst.msk [vmem:[#allocation2 + $0x70] sm:$0xff] %vm17575_vm3, %v8566_v23  ;;  %v8564_v53 = vmax.f32 %v8528_v55, 0.0  ;;  %v8486_v22 = vadd.f32 %v8381_v26, %v8169_v50  ;;  %v8769_v27 = vld [vmem:[#allocation3] sm:$0xff]  ;;  %v8634_v5 = vld [vmem:[#allocation2 + $0x50] sm:$0xff]  ;;  %vm17590_vm3 = vmmov %vm17538_vm0 }
 0x4ae   : > { %v8531_v18 = vadd.f32 %v16102_v41, %v8488_v33  ;;  %v10825_v37 = vpop.f32.mrf.mxu1  ;;  %v8173_v57 = vadd.f32 %v16106_v49, %v16031_v63 }
 0x4af   : > { %8736 = vst.msk [vmem:[#allocation3 + $0x20] sm:$0xff] %vm17573_vm9, %v8700_v19  ;;  %v8667_v16 = vld [vmem:[#allocation2 + $0x39] sm:$0xff]  ;;  %v8529_v12 = vadd.f32 %v16102_v41, %v8486_v22  ;;  %v8491_v15 = vadd.f32 %v10825_v37, %v8174_v9  ;;  %v8770_v19 = vld [vmem:[#allocation3 + $0x8] sm:$0xff]  ;;  %v8178_v9 = vadd.f32 %v16114_v6, %v16034_v61  ;;  %vm17588_vm9 = vmmov %vm17538_vm0 }
 0x4b0   : > { %8737 = vst.msk [vmem:[#allocation3 + $0x28] sm:$0xff] %vm17574_vm13, %v8701_v36  ;;  %v8703_v29 = vmax.f32 %v8631_v3, %v8667_v16  ;;  %v8803_v14 = vld [vmem:[#allocation3 + $0x12] sm:$0xff]  ;;  %v8567_v52 = vmax.f32 %v8531_v18, 0.0  ;;  %v8394_v59 = vpop.f32.mrf.mxu1  ;;  %v8632_v39 = vld [vmem:[#allocation2 + $0x40] sm:$0xff]  ;;  %vm17589_vm13 = vmmov %vm17538_vm0 }
 0x4b1   : > { %8600 = vst.msk [vmem:[#allocation2 + $0x60] sm:$0xff] %vm17576_vm11, %v8564_v53  ;;  %v8670_v38 = vld [vmem:[#allocation2 + $0x51] sm:$0xff]  ;;  %v8565_v35 = vmax.f32 %v8529_v12, 0.0  ;;  %v8534_v47 = vadd.f32 %v16102_v41, %v8491_v15  ;;  %v8489_v58 = vadd.f32 %v8394_v59, %v8172_v32  ;;  %v8837_v34 = vmax.f32 %v8769_v27, %v8803_v14  ;;  %vm17591_vm11 = vmmov %vm17538_vm0 }
 0x4b2   : > { %8739 = vst.msk [vmem:[#allocation3 + $0x38] sm:$0xff] %vm17577_vm6, %v8703_v29  ;;  %v8706_v46 = vmax.f32 %v8634_v5, %v8670_v38  ;;  %v10826_v10 = vpop.f32.mrf.mxu1  ;;  %v8771_v36 = vld [vmem:[#allocation3 + $0x10] sm:$0xff]  ;;  %v8772_v33 = vld [vmem:[#allocation3 + $0x18] sm:$0xff]  ;;  %v8176_v14 = vadd.f32 %v16124_v62, %v16039_v21  ;;  %v16219_v5 = vpop.f32.mrf.mxu0  ;;  %vm17592_vm6 = vmmov %vm17538_vm0 }
 0x4b3   : > { %v8633_v2 = vld [vmem:[#allocation2 + $0x48] sm:$0xff]  ;;  %8603 = vst.msk [vmem:[#allocation2 + $0x78] sm:$0xff] %vm17578_vm8, %v8567_v52  ;;  %v8570_v8 = vmax.f32 %v8534_v47, 0.0  ;;  %v8532_v50 = vadd.f32 %v16102_v41, %v8489_v58  ;;  %v8492_v55 = vadd.f32 %v10826_v10, %v8175_v31  ;;  %v8635_v18 = vld [vmem:[#allocation2 + $0x58] sm:$0xff]  ;;  %v8177_v10 = vadd.f32 %v16144_v13, %v16047_v30  ;;  %vm17593_vm8 = vmmov %vm17538_vm0 }
 0x4b4   : > { %v8668_v24 = vld [vmem:[#allocation2 + $0x41] sm:$0xff]  ;;  %v8669_v0 = vld [vmem:[#allocation2 + $0x49] sm:$0xff]  ;;  %8601 = vst.msk [vmem:[#allocation2 + $0x68] sm:$0xff] %vm17579_vm5, %v8565_v35  ;;  %v8397_v20 = vpop.f32.mrf.mxu1  ;;  %vm17594_vm5 = vmmov %vm17538_vm0 }
 0x4b5   : > { %v8704_v28 = vmax.f32 %v8632_v39, %v8668_v24  ;;  %v8705_v40 = vmax.f32 %v8633_v2, %v8669_v0  ;;  %8871 = vst.msk [vmem:[#allocation2] sm:$0xff] %vm17538_vm0, %v8837_v34  ;;  %v8568_v53 = vmax.f32 %v8532_v50, 0.0  ;;  %v8490_v22 = vadd.f32 %v8397_v20, %v8173_v57  ;;  %v8638_v38 = vld [vmem:[#allocation2 + $0x70] sm:$0xff] }
 0x4b6   : > { %v8804_v23 = vld [vmem:[#allocation3 + $0x1a] sm:$0xff]  ;;  %8742 = vst.msk [vmem:[#allocation3 + $0x50] sm:$0xff] %vm17580_vm2, %v8706_v46  ;;  %v8535_v29 = vadd.f32 %v16102_v41, %v8492_v55  ;;  %v10829_v12 = vpop.f32.mrf.mxu1  ;;  %v8179_v0 = vadd.f32 %v16134_v44, %v16042_v43  ;;  %v16232_v44 = vpop.f32.mrf.mxu0  ;;  %vm17595_vm2 = vmmov %vm17538_vm0 }
 0x4b7   : > { %v8805_v63 = vld [vmem:[#allocation3 + $0x22] sm:$0xff]  ;;  %v8806_v49 = vld [vmem:[#allocation3 + $0x2a] sm:$0xff]  ;;  %v8838_v26 = vmax.f32 %v8770_v19, %v8804_v23  ;;  %8740 = vst.msk [vmem:[#allocation3 + $0x40] sm:$0xff] %vm17581_vm1, %v8704_v28  ;;  %v8533_v32 = vadd.f32 %v16102_v41, %v8490_v22  ;;  %v8495_v27 = vadd.f32 %v10829_v12, %v8178_v9  ;;  %vm17596_vm1 = vmmov %vm17538_vm0 }
 0x4b8   : > { %8741 = vst.msk [vmem:[#allocation3 + $0x48] sm:$0xff] %vm17582_vm14, %v8705_v40  ;;  %v8839_v3 = vmax.f32 %v8771_v36, %v8805_v63  ;;  %v8840_v16 = vmax.f32 %v8772_v33, %v8806_v49  ;;  %v8671_v37 = vld [vmem:[#allocation2 + $0x59] sm:$0xff]  ;;  %v8571_v6 = vmax.f32 %v8535_v29, 0.0  ;;  %v8410_v59 = vpop.f32.mrf.mxu1  ;;  %v8774_v50 = vld [vmem:[#allocation3 + $0x28] sm:$0xff]  ;;  %v8775_v19 = vld [vmem:[#allocation3 + $0x30] sm:$0xff]  ;;  %v8182_v49 = vadd.f32 %v16155_v45, %v16050_v48 }
 0x4b9   : > { %8606 = vst.msk [vmem:[#allocation2 + $0x90] sm:$0xff] %vm17583_vm15, %v8570_v8  ;;  %v8707_v15 = vmax.f32 %v8635_v18, %v8671_v37  ;;  %v8773_v52 = vld [vmem:[#allocation3 + $0x20] sm:$0xff]  ;;  %v8807_v61 = vld [vmem:[#allocation3 + $0x32] sm:$0xff]  ;;  %v8569_v58 = vmax.f32 %v8533_v32, 0.0  ;;  %v8538_v34 = vadd.f32 %v16102_v41, %v8495_v27  ;;  %v8493_v21 = vadd.f32 %v8410_v59, %v8176_v14  ;;  %vm17597_vm14 = vmmov %vm17538_vm0 }
 0x4ba   : > { %8872 = vst.msk [vmem:[#allocation2 + $0x8] sm:$0xff] %vm17584_vm10, %v8838_v26  ;;  %v8841_v39 = vmax.f32 %v8773_v52, %v8807_v61  ;;  %v8636_v35 = vld [vmem:[#allocation2 + $0x60] sm:$0xff]  ;;  %v8674_v47 = vld [vmem:[#allocation2 + $0x71] sm:$0xff]  ;;  %v10830_v31 = vpop.f32.mrf.mxu1  ;;  %v8180_v48 = vadd.f32 %v16167_v54, %v16055_v7  ;;  %vm17598_vm15 = vmmov %vm17538_vm0 }
 0x4bb   : > { %8604 = vst.msk [vmem:[#allocation2 + $0x80] sm:$0xff] %vm17585_vm4, %v8568_v53  ;;  %v8710_v62 = vmax.f32 %v8638_v38, %v8674_v47  ;;  %v8637_v46 = vld [vmem:[#allocation2 + $0x68] sm:$0xff]  ;;  %v8574_v40 = vmax.f32 %v8538_v34, 0.0  ;;  %v8536_v8 = vadd.f32 %v16102_v41, %v8493_v21  ;;  %v8496_v23 = vadd.f32 %v10830_v31, %v8179_v0  ;;  %v8776_v55 = vld [vmem:[#allocation3 + $0x38] sm:$0xff]  ;;  %v16249_v47 = vpop.f32.mrf.mxu0  ;;  %vm17599_vm10 = vmmov %vm17538_vm0 }
 0x4bc   : > { %8873 = vst.msk [vmem:[#allocation2 + $0x10] sm:$0xff] %vm17586_vm12, %v8839_v3  ;;  %v8672_v2 = vld [vmem:[#allocation2 + $0x61] sm:$0xff]  ;;  %v8673_v24 = vld [vmem:[#allocation2 + $0x69] sm:$0xff]  ;;  %v8413_v43 = vpop.f32.mrf.mxu1  ;;  %v8639_v9 = vld [vmem:[#allocation2 + $0x78] sm:$0xff]  ;;  %v8183_v38 = vadd.f32 %v16179_v56, %v16058_v42  ;;  %v8181_v56 = vadd.f32 %v16191_v60, %v16063_v17 }
 0x4bd   : > { %8874 = vst.msk [vmem:[#allocation2 + $0x18] sm:$0xff] %vm17587_vm7, %v8840_v16  ;;  %v8708_v57 = vmax.f32 %v8636_v35, %v8672_v2  ;;  %v8709_v28 = vmax.f32 %v8637_v46, %v8673_v24  ;;  %v8572_v33 = vmax.f32 %v8536_v8, 0.0  ;;  %v8494_v63 = vadd.f32 %v8413_v43, %v8177_v10  ;;  %v8906_v45 = vld [vmem:[#allocation2] sm:$0xff]  ;;  %vm17600_vm4 = vmmov %vm17538_vm0  ;;  %v16263_v60 = vpop.f32.mrf.mxu0 }
 0x4be   : > { %8743 = vst.msk [vmem:[#allocation3 + $0x58] sm:$0xff] %vm17588_vm9, %v8707_v15  ;;  %v8808_v36 = vld [vmem:[#allocation3 + $0x3a] sm:$0xff]  ;;  %v8539_v16 = vadd.f32 %v16102_v41, %v8496_v23  ;;  %v10833_v18 = vpop.f32.mrf.mxu1  ;;  %vm17601_vm12 = vmmov %vm17538_vm0  ;;  %v8779_v23 = vld [vmem:[#allocation3 + $0x50] sm:$0xff] }
 0x4bf   : > { %8607 = vst.msk [vmem:[#allocation2 + $0x98] sm:$0xff] %vm17589_vm13, %v8571_v6  ;;  %v8809_v30 = vld [vmem:[#allocation3 + $0x42] sm:$0xff]  ;;  %v8810_v13 = vld [vmem:[#allocation3 + $0x4a] sm:$0xff]  ;;  %v8842_v20 = vmax.f32 %v8774_v50, %v8808_v36  ;;  %v8537_v32 = vadd.f32 %v16102_v41, %v8494_v63  ;;  %v8499_v27 = vadd.f32 %v10833_v18, %v8182_v49  ;;  %vm17602_vm7 = vmmov %vm17538_vm0 }
 0x4c0   : > { %8875 = vst.msk [vmem:[#allocation2 + $0x20] sm:$0xff] %vm17590_vm3, %v8841_v39  ;;  %v8777_v26 = vld [vmem:[#allocation3 + $0x40] sm:$0xff]  ;;  %v8843_v53 = vmax.f32 %v8775_v19, %v8809_v30  ;;  %v8844_v22 = vmax.f32 %v8776_v55, %v8810_v13  ;;  %v8642_v12 = vld [vmem:[#allocation2 + $0x90] sm:$0xff]  ;;  %v8575_v59 = vmax.f32 %v8539_v16, 0.0  ;;  %v8426_v39 = vpop.f32.mrf.mxu1  ;;  %vm17603_vm9 = vmmov %vm17538_vm0 }
 0x4c1   : > { %8605 = vst.msk [vmem:[#allocation2 + $0x88] sm:$0xff] %vm17591_vm11, %v8569_v58  ;;  %v8907_v14 = vld [vmem:[#allocation2 + $0x8] sm:$0xff]  ;;  %v8573_v54 = vmax.f32 %v8537_v32, 0.0  ;;  %v8542_v21 = vadd.f32 %v16102_v41, %v8499_v27  ;;  %vm17604_vm13 = vmmov %vm17538_vm0 }
 0x4c2   : > { %8746 = vst.msk [vmem:[#allocation3 + $0x70] sm:$0xff] %vm17592_vm6, %v8710_v62  ;;  %v8675_v3 = vld [vmem:[#allocation2 + $0x79] sm:$0xff]  ;;  %v8940_v35 = vld [vmem:[#allocation2 + $0x2] sm:$0xff]  ;;  %v8497_v62 = vadd.f32 %v8426_v39, %v8180_v48  ;;  %v10834_v42 = vpop.f32.mrf.mxu1  ;;  %vm17605_vm3 = vmmov %vm17538_vm0  ;;  %v8184_v48 = vadd.f32 %v16219_v5, %v16071_v25  ;;  %v8141_v39 = vpop.f32.mrf.mxu0 }
 0x4c3   : > { %8744 = vst.msk [vmem:[#allocation3 + $0x60] sm:$0xff] %vm17593_vm8, %v8708_v57  ;;  %v8908_v37 = vld [vmem:[#allocation2 + $0x10] sm:$0xff]  ;;  %v8711_v15 = vmax.f32 %v8639_v9, %v8675_v3  ;;  %v8640_v6 = vld [vmem:[#allocation2 + $0x80] sm:$0xff]  ;;  %v8974_v10 = vadd.f32 %v8940_v35, %v8906_v45  ;;  %v8578_v50 = vmax.f32 %v8542_v21, 0.0  ;;  %v8778_v36 = vld [vmem:[#allocation3 + $0x48] sm:$0xff]  ;;  %v8500_v30 = vadd.f32 %v10834_v42, %v8183_v38 }
 0x4c4   : > { %8745 = vst.msk [vmem:[#allocation3 + $0x68] sm:$0xff] %vm17594_vm5, %v8709_v28  ;;  %v8942_v29 = vld [vmem:[#allocation2 + $0x12] sm:$0xff]  ;;  %v8941_v46 = vld [vmem:[#allocation2 + $0xa] sm:$0xff]  ;;  %v8540_v19 = vadd.f32 %v16102_v41, %v8497_v62  ;;  %v8429_v17 = vpop.f32.mrf.mxu1  ;;  %vm17606_vm11 = vmmov %vm17538_vm0 }
 0x4c5   : > { %8610 = vst.msk [vmem:[#allocation2 + $0xb0] sm:$0xff] %vm17538_vm0, %v8574_v40  ;;  %v8976_v52 = vadd.f32 %v8942_v29, %v8908_v37  ;;  %v8811_v61 = vld [vmem:[#allocation3 + $0x52] sm:$0xff]  ;;  %v8975_v57 = vadd.f32 %v8941_v46, %v8907_v14  ;;  %vm17607_vm6 = vmmov %vm17538_vm0  ;;  %v8543_v18 = vadd.f32 %v16102_v41, %v8500_v30 }
 0x4c6   : > { %8876 = vst.msk [vmem:[#allocation2 + $0x28] sm:$0xff] %vm17595_vm2, %v8842_v20  ;;  %v8909_v58 = vld [vmem:[#allocation2 + $0x18] sm:$0xff]  ;;  %v8845_v34 = vmax.f32 %v8777_v26, %v8811_v61  ;;  %vm17608_vm8 = vmmov %vm17538_vm0  ;;  %v8576_v49 = vmax.f32 %v8540_v19, 0.0  ;;  %v8498_v26 = vadd.f32 %v8429_v17, %v8181_v56  ;;  %v10837_v37 = vpop.f32.mrf.mxu1  ;;  %v17624_v17 = vld [vmem:[#allocation59_spill] sm:$0xff] }
 0x4c7   : > { %8608 = vst.msk [vmem:[#allocation2 + $0xa0] sm:$0xff] %vm17596_vm1, %v8572_v33  ;;  %v8678_v7 = vld [vmem:[#allocation2 + $0x91] sm:$0xff]  ;;  %v8943_v2 = vld [vmem:[#allocation2 + $0x1a] sm:$0xff]  ;;  %vm17609_vm5 = vmmov %vm17538_vm0  ;;  %v8579_v61 = vmax.f32 %v8543_v18, 0.0 }
 0x4c8   : > { %8877 = vst.msk [vmem:[#allocation2 + $0x30] sm:$0xff] %vm17597_vm14, %v8843_v53  ;;  %v8714_v24 = vmax.f32 %v8642_v12, %v8678_v7  ;;  %v8641_v0 = vld [vmem:[#allocation2 + $0x88] sm:$0xff]  ;;  %v8977_v28 = vadd.f32 %v8943_v2, %v8909_v58  ;;  %v8780_v13 = vld [vmem:[#allocation3 + $0x58] sm:$0xff]  ;;  %v8186_v53 = vadd.f32 %v16204_v4, %v16066_v1  ;;  %vm17610_vm2 = vmmov %vm17538_vm0  ;;  %v8541_v1 = vadd.f32 %v16102_v41, %v8498_v26 }
 0x4c9   : > { %8878 = vst.msk [vmem:[#allocation2 + $0x38] sm:$0xff] %vm17598_vm15, %v8844_v22  ;;  %v8676_v31 = vld [vmem:[#allocation2 + $0x81] sm:$0xff]  ;;  %v8677_v40 = vld [vmem:[#allocation2 + $0x89] sm:$0xff]  ;;  %v8643_v3 = vld [vmem:[#allocation2 + $0x98] sm:$0xff]  ;;  %v8187_v2 = vadd.f32 %v16232_v44, %v16074_v51 }
 0x4ca   : > { %8747 = vst.msk [vmem:[#allocation3 + $0x78] sm:$0xff] %vm17599_vm10, %v8711_v15  ;;  %v8712_v8 = vmax.f32 %v8640_v6, %v8676_v31  ;;  %v8812_v43 = vld [vmem:[#allocation3 + $0x5a] sm:$0xff]  ;;  %v8713_v55 = vmax.f32 %v8641_v0, %v8677_v40  ;;  %vm17611_vm1 = vmmov %vm17538_vm0  ;;  %v8503_v4 = vadd.f32 %v10837_v37, %v8186_v53  ;;  %v8442_v6 = vpop.f32.mrf.mxu1  ;;  %v8577_v7 = vmax.f32 %v8541_v1, 0.0  ;;  %v17630_v1 = vld [vmem:[#allocation68_spill] sm:$0xff] }
 0x4cb   : > { %9010 = vst.msk [vmem:[#allocation3 + $0x10] sm:$0xff] %vm17600_vm4, %v8976_v52  ;;  %v8813_v20 = vld [vmem:[#allocation3 + $0x62] sm:$0xff]  ;;  %v8814_v33 = vld [vmem:[#allocation3 + $0x6a] sm:$0xff]  ;;  %v8846_v63 = vmax.f32 %v8778_v36, %v8812_v43  ;;  %vm17612_vm14 = vmmov %vm17538_vm0  ;;  %v8501_v5 = vadd.f32 %v8442_v6, %v8184_v48  ;;  %v8185_v0 = vadd.f32 %v16249_v47, %v16079_v11 }
 0x4cc   : > { %8611 = vst.msk [vmem:[#allocation2 + $0xb8] sm:$0xff] %vm17601_vm12, %v8575_v59  ;;  %v8847_v22 = vmax.f32 %v8779_v23, %v8813_v20  ;;  %v8848_v9 = vmax.f32 %v8780_v13, %v8814_v33  ;;  %v8781_v14 = vld [vmem:[#allocation3 + $0x60] sm:$0xff]  ;;  %vm17613_vm15 = vmmov %vm17538_vm0  ;;  %v8646_v35 = vld [vmem:[#allocation2 + $0xb0] sm:$0xff]  ;;  %v8546_v25 = vadd.f32 %v16102_v41, %v8503_v4  ;;  %v8190_v13 = vadd.f32 %v16263_v60, %v17624_v17 }
 0x4cd   : > { %8879 = vst.msk [vmem:[#allocation2 + $0x40] sm:$0xff] %vm17602_vm7, %v8845_v34  ;;  %v8911_v29 = vld [vmem:[#allocation2 + $0x28] sm:$0xff]  ;;  %vm17614_vm10 = vmmov %vm17538_vm0 }
 0x4ce   : > { %8609 = vst.msk [vmem:[#allocation2 + $0xa8] sm:$0xff] %vm17603_vm9, %v8573_v54  ;;  %v8679_v16 = vld [vmem:[#allocation2 + $0x99] sm:$0xff]  ;;  %vm17615_vm4 = vmmov %vm17538_vm0  ;;  %v8582_v56 = vmax.f32 %v8546_v25, 0.0  ;;  %v8782_v40 = vld [vmem:[#allocation3 + $0x68] sm:$0xff] }
 0x4cf   : > { %8750 = vst.msk [vmem:[#allocation3 + $0x90] sm:$0xff] %vm17604_vm13, %v8714_v24  ;;  %v8912_v12 = vld [vmem:[#allocation2 + $0x30] sm:$0xff]  ;;  %v8715_v27 = vmax.f32 %v8643_v3, %v8679_v16  ;;  %v8644_v58 = vld [vmem:[#allocation2 + $0xa0] sm:$0xff]  ;;  %vm17616_vm12 = vmmov %vm17538_vm0  ;;  %v10838_v24 = vpop.f32.mrf.mxu1 }
 0x4d0   : > { %9008 = vst.msk [vmem:[#allocation3] sm:$0xff] %vm17605_vm3, %v8974_v10  ;;  %v8945_v15 = vld [vmem:[#allocation2 + $0x2a] sm:$0xff]  ;;  %v8946_v32 = vld [vmem:[#allocation2 + $0x32] sm:$0xff]  ;;  %vm17617_vm7 = vmmov %vm17538_vm0  ;;  %v8544_v10 = vadd.f32 %v16102_v41, %v8501_v5  ;;  %v8504_v44 = vadd.f32 %v10838_v24, %v8187_v2 }
 0x4d1   : > { %9009 = vst.msk [vmem:[#allocation3 + $0x8] sm:$0xff] %vm17606_vm11, %v8975_v57  ;;  %v8980_v45 = vadd.f32 %v8946_v32, %v8912_v12  ;;  %v8815_v52 = vld [vmem:[#allocation3 + $0x72] sm:$0xff]  ;;  %v8979_v59 = vadd.f32 %v8945_v15, %v8911_v29  ;;  %vm17618_vm9 = vmmov %vm17538_vm0  ;;  %v8910_v57 = vld [vmem:[#allocation2 + $0x20] sm:$0xff]  ;;  %v8445_v11 = vpop.f32.mrf.mxu1 }
 0x4d2   : > { %9011 = vst.msk [vmem:[#allocation3 + $0x18] sm:$0xff] %vm17607_vm6, %v8977_v28  ;;  %v8849_v38 = vmax.f32 %v8781_v14, %v8815_v52  ;;  %vm17619_vm13 = vmmov %vm17538_vm0  ;;  %v8944_v28 = vld [vmem:[#allocation2 + $0x22] sm:$0xff]  ;;  %v8784_v19 = vld [vmem:[#allocation3 + $0x78] sm:$0xff]  ;;  %v8502_v30 = vadd.f32 %v8445_v11, %v8185_v0  ;;  %v8547_v26 = vadd.f32 %v16102_v41, %v8504_v44 }
 0x4d3   : > { %8748 = vst.msk [vmem:[#allocation3 + $0x80] sm:$0xff] %vm17608_vm8, %v8712_v8  ;;  %v8682_v34 = vld [vmem:[#allocation2 + $0xb1] sm:$0xff]  ;;  %vm17620_vm3 = vmmov %vm17538_vm0  ;;  %v8978_v47 = vadd.f32 %v8944_v28, %v8910_v57  ;;  %v10841_v53 = vpop.f32.mrf.mxu1  ;;  %v17627_v16 = vld [vmem:[#allocation67_spill] sm:$0xff] }
 0x4d4   : > { %8614 = vst.msk [vmem:[#allocation2 + $0xd0] sm:$0xff] %vm17609_vm5, %v8578_v50  ;;  %v8718_v54 = vmax.f32 %v8646_v35, %v8682_v34  ;;  %v8783_v8 = vld [vmem:[#allocation3 + $0x70] sm:$0xff]  ;;  %v10804_v50 = vpop.f32.mrf.mxu0  ;;  %vm17621_vm11 = vmmov %vm17538_vm0  ;;  %v8507_v3 = vadd.f32 %v10841_v53, %v8190_v13  ;;  %v8188_v18 = vadd.f32 %v8141_v39, %v17627_v16  ;;  %v8913_v60 = vld [vmem:[#allocation2 + $0x38] sm:$0xff]  ;;  %v8583_v32 = vmax.f32 %v8547_v26, 0.0 }
 0x4d5   : > { %8749 = vst.msk [vmem:[#allocation3 + $0x88] sm:$0xff] %vm17538_vm0, %v8713_v55  ;;  %v8645_v21 = vld [vmem:[#allocation2 + $0xa8] sm:$0xff]  ;;  %vm17622_vm6 = vmmov %vm17538_vm0  ;;  %v8580_v55 = vmax.f32 %v8544_v10, 0.0  ;;  %v8914_v37 = vld [vmem:[#allocation2 + $0x40] sm:$0xff]  ;;  %v8191_v4 = vadd.f32 %v10804_v50, %v17630_v1 }
 0x4d6   : > { %8880 = vst.msk [vmem:[#allocation2 + $0x48] sm:$0xff] %vm17610_vm2, %v8846_v63  ;;  %v8680_v62 = vld [vmem:[#allocation2 + $0xa1] sm:$0xff]  ;;  %v8681_v46 = vld [vmem:[#allocation2 + $0xa9] sm:$0xff]  ;;  %vm17623_vm8 = vmmov %vm17538_vm0  ;;  %v8144_v14 = vpop.f32.mrf.mxu0  ;;  %v8550_v39 = vadd.f32 %v16102_v41, %v8507_v3 }
 0x4d7   : > { %8612 = vst.msk [vmem:[#allocation2 + $0xc0] sm:$0xff] %vm17611_vm1, %v8576_v49  ;;  %v8716_v31 = vmax.f32 %v8644_v58, %v8680_v62  ;;  %v8717_v42 = vmax.f32 %v8645_v21, %v8681_v46  ;;  %v8647_v63 = vld [vmem:[#allocation2 + $0xb8] sm:$0xff]  ;;  %vm17625_vm5 = vmmov %vm17538_vm0  ;;  %v8787_v46 = vld [vmem:[#allocation3 + $0x90] sm:$0xff] }
 0x4d8   : > { %8882 = vst.msk [vmem:[#allocation2 + $0x58] sm:$0xff] %vm17612_vm14, %v8848_v9  ;;  %vm17626_vm2 = vmmov %vm17538_vm0  ;;  %v8545_v9 = vadd.f32 %v16102_v41, %v8502_v30  ;;  %v8947_v29 = vld [vmem:[#allocation2 + $0x3a] sm:$0xff]  ;;  %v8586_v0 = vmax.f32 %v8550_v39, 0.0 }
 0x4d9   : > { %8881 = vst.msk [vmem:[#allocation2 + $0x50] sm:$0xff] %vm17613_vm15, %v8847_v22  ;;  %vm17628_vm1 = vmmov %vm17538_vm0 }
 0x4da   : > { %8751 = vst.msk [vmem:[#allocation3 + $0x98] sm:$0xff] %vm17614_vm10, %v8715_v27  ;;  %v8816_v51 = vld [vmem:[#allocation3 + $0x7a] sm:$0xff]  ;;  %vm17629_vm14 = vmmov %vm17538_vm0  ;;  %v8458_v27 = vpop.f32.mrf.mxu1 }
 0x4db   : > { %9014 = vst.msk [vmem:[#allocation3 + $0x30] sm:$0xff] %vm17615_vm4, %v8980_v45  ;;  %v8850_v43 = vmax.f32 %v8782_v40, %v8816_v51  ;;  %v8785_v12 = vld [vmem:[#allocation3 + $0x80] sm:$0xff]  ;;  %v8981_v45 = vadd.f32 %v8947_v29, %v8913_v60  ;;  %vm17631_vm15 = vmmov %vm17538_vm0 }
 0x4dc   : > { %8615 = vst.msk [vmem:[#allocation2 + $0xd8] sm:$0xff] %vm17616_vm12, %v8579_v61  ;;  %v8817_v36 = vld [vmem:[#allocation3 + $0x82] sm:$0xff]  ;;  %v8818_v23 = vld [vmem:[#allocation3 + $0x8a] sm:$0xff]  ;;  %vm17632_vm10 = vmmov %vm17538_vm0  ;;  %v10842_v5 = vpop.f32.mrf.mxu1 }
 0x4dd   : > { %9013 = vst.msk [vmem:[#allocation3 + $0x28] sm:$0xff] %vm17617_vm7, %v8979_v59  ;;  %v8851_v20 = vmax.f32 %v8783_v8, %v8817_v36  ;;  %v8852_v33 = vmax.f32 %v8784_v19, %v8818_v23  ;;  %v8948_v48 = vld [vmem:[#allocation2 + $0x42] sm:$0xff]  ;;  %v8650_v61 = vld [vmem:[#allocation2 + $0xd0] sm:$0xff]  ;;  %v8581_v59 = vmax.f32 %v8545_v9, 0.0  ;;  %vm17634_vm4 = vmmov %vm17538_vm0 }
 0x4de   : > { %8883 = vst.msk [vmem:[#allocation2 + $0x60] sm:$0xff] %vm17618_vm9, %v8849_v38  ;;  %v8683_v49 = vld [vmem:[#allocation2 + $0xb9] sm:$0xff]  ;;  %v8505_v38 = vadd.f32 %v8458_v27, %v8188_v18  ;;  %v8915_v35 = vld [vmem:[#allocation2 + $0x48] sm:$0xff]  ;;  %v8982_v62 = vadd.f32 %v8948_v48, %v8914_v37  ;;  %vm17635_vm12 = vmmov %vm17538_vm0  ;;  %v8461_v8 = vpop.f32.mrf.mxu1 }
 0x4df   : > { %8613 = vst.msk [vmem:[#allocation2 + $0xc8] sm:$0xff] %vm17619_vm13, %v8577_v7  ;;  %v8719_v22 = vmax.f32 %v8647_v63, %v8683_v49  ;;  %v8648_v58 = vld [vmem:[#allocation2 + $0xc0] sm:$0xff]  ;;  %vm17636_vm7 = vmmov %vm17538_vm0  ;;  %v8786_v10 = vld [vmem:[#allocation3 + $0x88] sm:$0xff] }
 0x4e0   : > { %8754 = vst.msk [vmem:[#allocation3 + $0xb0] sm:$0xff] %vm17620_vm3, %v8718_v54  ;;  %v17633_v54 = vld [vmem:[#allocation60_spill] sm:$0xff]  ;;  %vm17637_vm9 = vmmov %vm17538_vm0 }
 0x4e1   : > { %8752 = vst.msk [vmem:[#allocation3 + $0xa0] sm:$0xff] %vm17621_vm11, %v8716_v31  ;;  %v8819_v15 = vld [vmem:[#allocation3 + $0x92] sm:$0xff]  ;;  %v8189_v21 = vadd.f32 %v8144_v14, %v17633_v54  ;;  %v8548_v31 = vadd.f32 %v16102_v41, %v8505_v38  ;;  %vm17638_vm13 = vmmov %vm17538_vm0 }
 0x4e2   : > { %8753 = vst.msk [vmem:[#allocation3 + $0xa8] sm:$0xff] %vm17622_vm6, %v8717_v42  ;;  %v8853_v52 = vmax.f32 %v8785_v12, %v8819_v15  ;;  %v8508_v42 = vadd.f32 %v10842_v5, %v8191_v4  ;;  %v8788_v57 = vld [vmem:[#allocation3 + $0x98] sm:$0xff]  ;;  %vm17639_vm3 = vmmov %vm17538_vm0 }
 0x4e3   : > { %8618 = vst.msk [vmem:[#allocation2 + $0xf0] sm:$0xff] %vm17623_vm8, %v8582_v56  ;;  %v8686_v6 = vld [vmem:[#allocation2 + $0xd1] sm:$0xff]  ;;  %vm17640_vm11 = vmmov %vm17538_vm0  ;;  %v8584_v19 = vmax.f32 %v8548_v31, 0.0  ;;  %v8506_v23 = vadd.f32 %v8461_v8, %v8189_v21 }
 0x4e4   : > { %9012 = vst.msk [vmem:[#allocation3 + $0x20] sm:$0xff] %vm17625_vm5, %v8978_v47  ;;  %v8722_v34 = vmax.f32 %v8650_v61, %v8686_v6  ;;  %v8949_v56 = vld [vmem:[#allocation2 + $0x4a] sm:$0xff]  ;;  %v8551_v36 = vadd.f32 %v16102_v41, %v8508_v42  ;;  %vm17641_vm6 = vmmov %vm17538_vm0  ;;  %v8651_v49 = vld [vmem:[#allocation2 + $0xd8] sm:$0xff] }
 0x4e5   : > { %8884 = vst.msk [vmem:[#allocation2 + $0x68] sm:$0xff] %vm17538_vm0, %v8850_v43  ;;  %v8983_v51 = vadd.f32 %v8949_v56, %v8915_v35  ;;  %v8918_v44 = vld [vmem:[#allocation2 + $0x60] sm:$0xff]  ;;  %vm17642_vm8 = vmmov %vm17538_vm0  ;;  %v8916_v61 = vld [vmem:[#allocation2 + $0x50] sm:$0xff] }
 0x4e6   : > { %8616 = vst.msk [vmem:[#allocation2 + $0xe0] sm:$0xff] %vm17626_vm2, %v8580_v55  ;;  %v8649_v7 = vld [vmem:[#allocation2 + $0xc8] sm:$0xff]  ;;  %vm17643_vm5 = vmmov %vm17538_vm0  ;;  %v8587_v53 = vmax.f32 %v8551_v36, 0.0  ;;  %v8950_v31 = vld [vmem:[#allocation2 + $0x52] sm:$0xff] }
 0x4e7   : > { %8885 = vst.msk [vmem:[#allocation2 + $0x70] sm:$0xff] %vm17628_vm1, %v8851_v20  ;;  %v8684_v25 = vld [vmem:[#allocation2 + $0xc1] sm:$0xff]  ;;  %v8685_v2 = vld [vmem:[#allocation2 + $0xc9] sm:$0xff]  ;;  %vm17644_vm2 = vmmov %vm17538_vm0 }
 0x4e8   : > { %8886 = vst.msk [vmem:[#allocation2 + $0x78] sm:$0xff] %vm17629_vm14, %v8852_v33  ;;  %v8720_v24 = vmax.f32 %v8648_v58, %v8684_v25  ;;  %v8820_v28 = vld [vmem:[#allocation3 + $0x9a] sm:$0xff]  ;;  %v8721_v40 = vmax.f32 %v8649_v7, %v8685_v2  ;;  %vm17645_vm1 = vmmov %vm17538_vm0 }
 0x4e9   : > { %8755 = vst.msk [vmem:[#allocation3 + $0xb8] sm:$0xff] %vm17631_vm15, %v8719_v22  ;;  %v8821_v11 = vld [vmem:[#allocation3 + $0xa2] sm:$0xff]  ;;  %v8822_v47 = vld [vmem:[#allocation3 + $0xaa] sm:$0xff]  ;;  %v8854_v50 = vmax.f32 %v8786_v10, %v8820_v28  ;;  %v8549_v22 = vadd.f32 %v16102_v41, %v8506_v23  ;;  %vm17646_vm14 = vmmov %vm17538_vm0 }
 0x4ea   : > { %8619 = vst.msk [vmem:[#allocation2 + $0xf8] sm:$0xff] %vm17632_vm10, %v8583_v32  ;;  %v8789_v30 = vld [vmem:[#allocation3 + $0xa0] sm:$0xff]  ;;  %v8855_v17 = vmax.f32 %v8787_v46, %v8821_v11  ;;  %v8856_v13 = vmax.f32 %v8788_v57, %v8822_v47  ;;  %v8654_v26 = vld [vmem:[#allocation2 + $0xf0] sm:$0xff]  ;;  %vm17647_vm15 = vmmov %vm17538_vm0  ;;  %v8984_v57 = vadd.f32 %v8950_v31, %v8916_v61 }
 0x4eb   : > { %9015 = vst.msk [vmem:[#allocation3 + $0x38] sm:$0xff] %vm17634_vm4, %v8981_v45  ;;  %v8585_v32 = vmax.f32 %v8549_v22, 0.0  ;;  %vm17648_vm10 = vmmov %vm17538_vm0  ;;  %v8790_v6 = vld [vmem:[#allocation3 + $0xa8] sm:$0xff]  ;;  %v8917_v2 = vld [vmem:[#allocation2 + $0x58] sm:$0xff] }
 0x4ec   : > { %8887 = vst.msk [vmem:[#allocation2 + $0x80] sm:$0xff] %vm17635_vm12, %v8853_v52  ;;  %v8919_v43 = vld [vmem:[#allocation2 + $0x68] sm:$0xff]  ;;  %vm17649_vm4 = vmmov %vm17538_vm0  ;;  %v8951_v8 = vld [vmem:[#allocation2 + $0x5a] sm:$0xff] }
 0x4ed   : > { %8617 = vst.msk [vmem:[#allocation2 + $0xe8] sm:$0xff] %vm17636_vm7, %v8581_v59  ;;  %v8952_v55 = vld [vmem:[#allocation2 + $0x62] sm:$0xff]  ;;  %v8687_v12 = vld [vmem:[#allocation2 + $0xd9] sm:$0xff]  ;;  %vm17650_vm12 = vmmov %vm17538_vm0 }
 0x4ee   : > { %8758 = vst.msk [vmem:[#allocation3 + $0xd0] sm:$0xff] %vm17637_vm9, %v8722_v34  ;;  %v8920_v20 = vld [vmem:[#allocation2 + $0x70] sm:$0xff]  ;;  %v8986_v63 = vadd.f32 %v8952_v55, %v8918_v44  ;;  %v8652_v18 = vld [vmem:[#allocation2 + $0xe0] sm:$0xff]  ;;  %v8723_v27 = vmax.f32 %v8651_v49, %v8687_v12  ;;  %vm17651_vm7 = vmmov %vm17538_vm0 }
 0x4ef   : > { %9016 = vst.msk [vmem:[#allocation3 + $0x40] sm:$0xff] %vm17638_vm13, %v8982_v62  ;;  %v8953_v33 = vld [vmem:[#allocation2 + $0x6a] sm:$0xff]  ;;  %v8954_v9 = vld [vmem:[#allocation2 + $0x72] sm:$0xff]  ;;  %vm17652_vm9 = vmmov %vm17538_vm0 }
 0x4f0   : > { %8756 = vst.msk [vmem:[#allocation3 + $0xc0] sm:$0xff] %vm17639_vm3, %v8720_v24  ;;  %v8987_v3 = vadd.f32 %v8953_v33, %v8919_v43  ;;  %v8823_v16 = vld [vmem:[#allocation3 + $0xb2] sm:$0xff]  ;;  %v8988_v37 = vadd.f32 %v8954_v9, %v8920_v20  ;;  %vm17653_vm13 = vmmov %vm17538_vm0 }
 0x4f1   : > { %8622 = vst.msk [vmem:[#allocation2 + $0x110] sm:$0xff] %vm17640_vm11, %v8586_v0  ;;  %v8921_v60 = vld [vmem:[#allocation2 + $0x78] sm:$0xff]  ;;  %v8857_v29 = vmax.f32 %v8789_v30, %v8823_v16  ;;  %v8791_v59 = vld [vmem:[#allocation3 + $0xb0] sm:$0xff]  ;;  %vm17654_vm3 = vmmov %vm17538_vm0 }
 0x4f2   : > { %8757 = vst.msk [vmem:[#allocation3 + $0xc8] sm:$0xff] %vm17641_vm6, %v8721_v40  ;;  %v8690_v15 = vld [vmem:[#allocation2 + $0xf1] sm:$0xff]  ;;  %vm17655_vm11 = vmmov %vm17538_vm0 }
 0x4f3   : > { %9017 = vst.msk [vmem:[#allocation3 + $0x48] sm:$0xff] %vm17642_vm8, %v8983_v51  ;;  %v8955_v41 = vld [vmem:[#allocation2 + $0x7a] sm:$0xff]  ;;  %v8726_v1 = vmax.f32 %v8654_v26, %v8690_v15  ;;  %vm17656_vm6 = vmmov %vm17538_vm0 }
 0x4f4   : > { %8888 = vst.msk [vmem:[#allocation2 + $0x88] sm:$0xff] %vm17643_vm5, %v8854_v50  ;;  %v8653_v4 = vld [vmem:[#allocation2 + $0xe8] sm:$0xff]  ;;  %v8989_v45 = vadd.f32 %v8955_v41, %v8921_v60  ;;  %v8792_v35 = vld [vmem:[#allocation3 + $0xb8] sm:$0xff]  ;;  %vm17657_vm8 = vmmov %vm17538_vm0 }
 0x4f5   : > { %8620 = vst.msk [vmem:[#allocation2 + $0x100] sm:$0xff] %vm17538_vm0, %v8584_v19  ;;  %v8688_v48 = vld [vmem:[#allocation2 + $0xe1] sm:$0xff]  ;;  %v8689_v14 = vld [vmem:[#allocation2 + $0xe9] sm:$0xff]  ;;  %v8655_v54 = vld [vmem:[#allocation2 + $0xf8] sm:$0xff]  ;;  %v8985_v19 = vadd.f32 %v8951_v8, %v8917_v2 }
 0x4f6   : > { %8889 = vst.msk [vmem:[#allocation2 + $0x90] sm:$0xff] %vm17644_vm2, %v8855_v17  ;;  %v8724_v52 = vmax.f32 %v8652_v18, %v8688_v48  ;;  %v8725_v38 = vmax.f32 %v8653_v4, %v8689_v14  ;;  %v8922_v24 = vld [vmem:[#allocation2 + $0x80] sm:$0xff]  ;;  %vm17658_vm5 = vmmov %vm17538_vm0  ;;  %vm8767_vm2 = vcmask 129024  }
 0x4f7   : > { %8890 = vst.msk [vmem:[#allocation2 + $0x98] sm:$0xff] %vm17645_vm1, %v8856_v13  ;;  %v8824_v39 = vld [vmem:[#allocation3 + $0xba] sm:$0xff]  ;;  %vm17659_vm1 = vmmov %vm17538_vm0  ;;  %v8795_v13 = vld [vmem:[#allocation3 + $0xd0] sm:$0xff] }
 0x4f8   : > { %9020 = vst.msk [vmem:[#allocation3 + $0x60] sm:$0xff] %vm17646_vm14, %v8986_v63  ;;  %v8858_v7 = vmax.f32 %v8790_v6, %v8824_v39  ;;  %v8658_v62 = vld [vmem:[#allocation2 + $0x110] sm:$0xff]  ;;  %vm17660_vm14 = vmmov %vm17538_vm0  ;;  %v8793_v43 = vld [vmem:[#allocation3 + $0xc0] sm:$0xff] }
 0x4f9   : > { %8623 = vst.msk [vmem:[#allocation2 + $0x118] sm:$0xff] %vm17647_vm15, %v8587_v53  ;;  %v8825_v58 = vld [vmem:[#allocation3 + $0xc2] sm:$0xff]  ;;  %v8826_v34 = vld [vmem:[#allocation3 + $0xca] sm:$0xff]  ;;  %vm17661_vm15 = vmmov %vm17538_vm0 }
 0x4fa   : > { %9021 = vst.msk [vmem:[#allocation3 + $0x68] sm:$0xff] %vm17648_vm10, %v8987_v3  ;;  %v8859_v25 = vmax.f32 %v8791_v59, %v8825_v58  ;;  %v8860_v5 = vmax.f32 %v8792_v35, %v8826_v34  ;;  %v8794_v20 = vld [vmem:[#allocation3 + $0xc8] sm:$0xff]  ;;  %vm17662_vm10 = vmmov %vm17538_vm0 }
 0x4fb   : > { %9022 = vst.msk [vmem:[#allocation3 + $0x70] sm:$0xff] %vm17649_vm4, %v8988_v37  ;;  %v8923_v0 = vld [vmem:[#allocation2 + $0x88] sm:$0xff]  ;;  %vm17663_vm4 = vmmov %vm17538_vm0 }
 0x4fc   : > { %8891 = vst.msk [vmem:[#allocation2 + $0xa0] sm:$0xff] %vm17650_vm12, %v8857_v29  ;;  %v8691_v21 = vld [vmem:[#allocation2 + $0xf9] sm:$0xff]  ;;  %v8956_v51 = vld [vmem:[#allocation2 + $0x82] sm:$0xff]  ;;  %vm17664_vm12 = vmmov %vm17538_vm0 }
 0x4fd   : > { %8621 = vst.msk [vmem:[#allocation2 + $0x108] sm:$0xff] %vm17651_vm7, %v8585_v32  ;;  %v8727_v46 = vmax.f32 %v8655_v54, %v8691_v21  ;;  %v8957_v44 = vld [vmem:[#allocation2 + $0x8a] sm:$0xff]  ;;  %v8656_v11 = vld [vmem:[#allocation2 + $0x100] sm:$0xff]  ;;  %v8990_v36 = vadd.f32 %v8956_v51, %v8922_v24  ;;  %vm17665_vm7 = vmmov %vm17538_vm0 }
 0x4fe   : > { %8759 = vst.msk [vmem:[#allocation3 + $0xd8] sm:$0xff] %vm17652_vm9, %v8723_v27  ;;  %v8991_v23 = vadd.f32 %v8957_v44, %v8923_v0  ;;  %v8924_v26 = vld [vmem:[#allocation2 + $0x90] sm:$0xff]  ;;  %vm17666_vm9 = vmmov %vm17538_vm0  ;;  %v8925_v15 = vld [vmem:[#allocation2 + $0x98] sm:$0xff] }
 0x4ff   : > { %8762 = vst.msk [vmem:[#allocation3 + $0xf0] sm:$0xff] %vm17653_vm13, %v8726_v1  ;;  %vm17667_vm13 = vmmov %vm17538_vm0  ;;  %v8958_v37 = vld [vmem:[#allocation2 + $0x92] sm:$0xff] }
 0x500   : > { %9023 = vst.msk [vmem:[#allocation3 + $0x78] sm:$0xff] %vm17654_vm3, %v8989_v45  ;;  %v8659_v42 = vld [vmem:[#allocation2 + $0x118] sm:$0x7f]  ;;  %vm17668_vm3 = vmmov %vm17538_vm0  ;;  %v8992_v32 = vadd.f32 %v8958_v37, %v8924_v26 }
 0x501   : > { %8760 = vst.msk [vmem:[#allocation3 + $0xe0] sm:$0xff] %vm17655_vm11, %v8724_v52  ;;  %v8694_v56 = vld [vmem:[#allocation2 + $0x111] sm:$0xff]  ;;  %v8695_v10 = vld [vmem:[#allocation2 + $0x119] sm:$0x7f]  ;;  %vm17669_vm11 = vmmov %vm17538_vm0 }
 0x502   : > { %8761 = vst.msk [vmem:[#allocation3 + $0xe8] sm:$0xff] %vm17656_vm6, %v8725_v38  ;;  %v8730_v28 = vmax.f32 %v8658_v62, %v8694_v56  ;;  %v8731_v40 = vmax.f32 %v8659_v42, %v8695_v10  ;;  %vm17670_vm6 = vmmov %vm17538_vm0 }
 0x503   : > { %8892 = vst.msk [vmem:[#allocation2 + $0xa8] sm:$0xff] %vm17657_vm8, %v8858_v7  ;;  %v8926_v14 = vld [vmem:[#allocation2 + $0xa0] sm:$0xff]  ;;  %vm17671_vm8 = vmmov %vm17538_vm0 }
 0x504   : > { %8893 = vst.msk [vmem:[#allocation2 + $0xb0] sm:$0xff] %vm17658_vm5, %v8859_v25  ;;  %v8657_v47 = vld [vmem:[#allocation2 + $0x108] sm:$0xff]  ;;  %v8959_v52 = vld [vmem:[#allocation2 + $0x9a] sm:$0xff]  ;;  %vm17672_vm5 = vmmov %vm17538_vm0 }
 0x505   : > { %8894 = vst.msk [vmem:[#allocation2 + $0xb8] sm:$0xff] %vm17538_vm0, %v8860_v5  ;;  %v8692_v50 = vld [vmem:[#allocation2 + $0x101] sm:$0xff]  ;;  %v8827_v55 = vld [vmem:[#allocation3 + $0xd2] sm:$0xff]  ;;  %v8693_v30 = vld [vmem:[#allocation2 + $0x109] sm:$0xff]  ;;  %v8993_v6 = vadd.f32 %v8959_v52, %v8925_v15 }
 0x506   : > { %8763 = vst.msk [vmem:[#allocation3 + $0xf8] sm:$0xff] %vm17659_vm1, %v8727_v46  ;;  %v8728_v17 = vmax.f32 %v8656_v11, %v8692_v50  ;;  %v8861_v33 = vmax.f32 %v8793_v43, %v8827_v55  ;;  %v8729_v49 = vmax.f32 %v8657_v47, %v8693_v30  ;;  %v8796_v22 = vld [vmem:[#allocation3 + $0xd8] sm:$0xff]  ;;  %vm17673_vm1 = vmmov %vm17538_vm0  ;;  %v8799_v58 = vld [vmem:[#allocation3 + $0xf0] sm:$0xff] }
 0x507   : > { %9018 = vst.msk [vmem:[#allocation3 + $0x50] sm:$0xff] %vm17660_vm14, %v8984_v57  ;;  %vm17674_vm14 = vmmov %vm17538_vm0  ;;  %v9050_v52 = vld [vmem:[#allocation3 + $0x38] sm:$0xff] }
 0x508   : > { %8766 = vst.msk [vmem:[#allocation3 + $0x110] sm:$0xff] %vm17661_vm15, %v8730_v28  ;;  %v8828_v63 = vld [vmem:[#allocation3 + $0xda] sm:$0xff]  ;;  %vm17675_vm15 = vmmov %vm17538_vm0 }
 0x509   : > { %8768 = vst.msk [vmem:[#allocation3 + $0x118] sm:$0x7f] %vm8767_vm2, %v8731_v40  ;;  %v8862_v53 = vmax.f32 %v8794_v20, %v8828_v63  ;;  %v8829_v9 = vld [vmem:[#allocation3 + $0xe2] sm:$0xff]  ;;  %v8830_v3 = vld [vmem:[#allocation3 + $0xea] sm:$0xff] }
 0x50a   : > { %9019 = vst.msk [vmem:[#allocation3 + $0x58] sm:$0xff] %vm17662_vm10, %v8985_v19  ;;  %v8927_v16 = vld [vmem:[#allocation2 + $0xa8] sm:$0xff]  ;;  %v8863_v18 = vmax.f32 %v8795_v13, %v8829_v9  ;;  %v8864_v60 = vmax.f32 %v8796_v22, %v8830_v3  ;;  %v8797_v1 = vld [vmem:[#allocation3 + $0xe0] sm:$0xff]  ;;  %vm8904_vm10 = vcmask 126976  }
 0x50b   : > { %9024 = vst.msk [vmem:[#allocation3 + $0x80] sm:$0xff] %vm17663_vm4, %v8990_v36  ;;  %v8928_v29 = vld [vmem:[#allocation2 + $0xb0] sm:$0xff]  ;;  %v8960_v61 = vld [vmem:[#allocation2 + $0xa2] sm:$0xff]  ;;  %vm17676_vm4 = vmmov %vm17538_vm0 }
 0x50c   : > { %9025 = vst.msk [vmem:[#allocation3 + $0x88] sm:$0xff] %vm17664_vm12, %v8991_v23  ;;  %v8961_v12 = vld [vmem:[#allocation2 + $0xaa] sm:$0xff]  ;;  %v8962_v41 = vld [vmem:[#allocation2 + $0xb2] sm:$0xff]  ;;  %v8994_v59 = vadd.f32 %v8960_v61, %v8926_v14  ;;  %vm17677_vm12 = vmmov %vm17538_vm0 }
 0x50d   : > { %8764 = vst.msk [vmem:[#allocation3 + $0x100] sm:$0xff] %vm17665_vm7, %v8728_v17  ;;  %v8995_v27 = vadd.f32 %v8961_v12, %v8927_v16  ;;  %v8831_v4 = vld [vmem:[#allocation3 + $0xf2] sm:$0xff]  ;;  %v8996_v48 = vadd.f32 %v8962_v41, %v8928_v29  ;;  %v8798_v38 = vld [vmem:[#allocation3 + $0xe8] sm:$0xff]  ;;  %vm17678_vm7 = vmmov %vm17538_vm0 }
 0x50e   : > { %8895 = vst.msk [vmem:[#allocation2 + $0xc0] sm:$0xff] %vm17666_vm9, %v8861_v33  ;;  %v8865_v45 = vmax.f32 %v8797_v1, %v8831_v4  ;;  %v8929_v39 = vld [vmem:[#allocation2 + $0xb8] sm:$0xff]  ;;  %vm17679_vm9 = vmmov %vm17538_vm0  ;;  %v9043_v29 = vld [vmem:[#allocation3] sm:$0xff] }
 0x50f   : > { %8765 = vst.msk [vmem:[#allocation3 + $0x108] sm:$0xff] %vm17667_vm13, %v8729_v49  ;;  %v8800_v34 = vld [vmem:[#allocation3 + $0xf8] sm:$0xff]  ;;  %vm17680_vm13 = vmmov %vm17538_vm0  ;;  %v9045_v12 = vld [vmem:[#allocation3 + $0x10] sm:$0xff] }
 0x510   : > { %8896 = vst.msk [vmem:[#allocation2 + $0xc8] sm:$0xff] %vm17668_vm3, %v8862_v53  ;;  %v8835_v35 = vld [vmem:[#allocation3 + $0x112] sm:$0xff]  ;;  %v8836_v5 = vld [vmem:[#allocation3 + $0x11a] sm:$0x1f]  ;;  %vm17681_vm3 = vmmov %vm17538_vm0 }
 0x511   : > { %8897 = vst.msk [vmem:[#allocation2 + $0xd0] sm:$0xff] %vm17669_vm11, %v8863_v18  ;;  %vm17682_vm11 = vmmov %vm17538_vm0  ;;  %v9044_v41 = vld [vmem:[#allocation3 + $0x8] sm:$0xff]  ;;  %v9047_v1 = vld [vmem:[#allocation3 + $0x20] sm:$0xff] }
 0x512   : > { %8898 = vst.msk [vmem:[#allocation2 + $0xd8] sm:$0xff] %vm17670_vm6, %v8864_v60  ;;  %vm17683_vm6 = vmmov %vm17538_vm0  ;;  %v9049_v4 = vld [vmem:[#allocation3 + $0x30] sm:$0xff]  ;;  %v9051_v61 = vld [vmem:[#allocation3 + $0x40] sm:$0xff] }
 0x513   : > { %9026 = vst.msk [vmem:[#allocation3 + $0x90] sm:$0xff] %vm17671_vm8, %v8992_v32  ;;  %v9060_v43 = vld [vmem:[#allocation3 + $0x88] sm:$0xff]  ;;  %vm17684_vm8 = vmmov %vm17538_vm0 }
 0x514   : > { %9029 = vst.msk [vmem:[#allocation3 + $0xa8] sm:$0xff] %vm17672_vm5, %v8995_v27  ;;  %v8801_v7 = vld [vmem:[#allocation3 + $0x100] sm:$0xff]  ;;  %vm9041_vm5 = vcmask 124928   ;;  %v9046_v27 = vld [vmem:[#allocation3 + $0x18] sm:$0xff]  ;;  %v9073_v14 = vld [vmem:[#allocation3 + $0x2c] sm:$0xff] }
 0x515   : > { %9030 = vst.msk [vmem:[#allocation3 + $0xb0] sm:$0xff] %vm17538_vm0, %v8996_v48  ;;  %v8832_v25 = vld [vmem:[#allocation3 + $0xfa] sm:$0xff]  ;;  %v8869_v2 = vmax.f32 %v8801_v7, %v8835_v35  ;;  %v9048_v48 = vld [vmem:[#allocation3 + $0x28] sm:$0xff] }
 0x516   : > { %8899 = vst.msk [vmem:[#allocation2 + $0xe0] sm:$0xff] %vm17673_vm1, %v8865_v45  ;;  %v8930_v54 = vld [vmem:[#allocation2 + $0xc0] sm:$0xff]  ;;  %v8802_v62 = vld [vmem:[#allocation3 + $0x108] sm:$0x1f]  ;;  %v8866_v46 = vmax.f32 %v8798_v38, %v8832_v25  ;;  %vm17685_vm1 = vmmov %vm17538_vm0 }
 0x517   : > { %9027 = vst.msk [vmem:[#allocation3 + $0x98] sm:$0xff] %vm17674_vm14, %v8993_v6  ;;  %v8963_v21 = vld [vmem:[#allocation2 + $0xba] sm:$0xff]  ;;  %v8964_v0 = vld [vmem:[#allocation2 + $0xc2] sm:$0xff]  ;;  %v8834_v42 = vld [vmem:[#allocation3 + $0x10a] sm:$0xff]  ;;  %v8870_v56 = vmax.f32 %v8802_v62, %v8836_v5 }
 0x518   : > { %9028 = vst.msk [vmem:[#allocation3 + $0xa0] sm:$0xff] %vm17675_vm15, %v8994_v59  ;;  %v8997_v24 = vadd.f32 %v8963_v21, %v8929_v39  ;;  %v8833_v31 = vld [vmem:[#allocation3 + $0x102] sm:$0xff]  ;;  %v8998_v10 = vadd.f32 %v8964_v0, %v8930_v54  ;;  %v8868_v28 = vmax.f32 %v8800_v34, %v8834_v42  ;;  %v8965_v8 = vld [vmem:[#allocation2 + $0xca] sm:$0xff]  ;;  %vm17686_vm14 = vmmov %vm17538_vm0 }
 0x519   : > { %v8867_v57 = vmax.f32 %v8799_v58, %v8833_v31  ;;  %8900 = vst.msk [vmem:[#allocation2 + $0xe8] sm:$0xff] %vm17676_vm4, %v8866_v46  ;;  %v8931_v40 = vld [vmem:[#allocation2 + $0xc8] sm:$0xff]  ;;  %v8932_v44 = vld [vmem:[#allocation2 + $0xd0] sm:$0xff]  ;;  %v8933_v19 = vld [vmem:[#allocation2 + $0xd8] sm:$0xff]  ;;  %v9102_v58 = vadd.f32 %v9073_v14, %v9044_v41 }
 0x51a   : > { %8903 = vst.msk [vmem:[#allocation2 + $0x100] sm:$0xff] %vm17677_vm12, %v8869_v2  ;;  %v8999_v51 = vadd.f32 %v8965_v8, %v8931_v40  ;;  %v8966_v11 = vld [vmem:[#allocation2 + $0xd2] sm:$0xff]  ;;  %vm17687_vm15 = vmmov %vm17538_vm0  ;;  %v9072_v45 = vld [vmem:[#allocation3 + $0x24] sm:$0xff] }
 0x51b   : > { %9031 = vst.msk [vmem:[#allocation3 + $0xb8] sm:$0xff] %vm17678_vm7, %v8997_v24  ;;  %v9000_v47 = vadd.f32 %v8966_v11, %v8932_v44  ;;  %vm17689_vm4 = vmmov %vm17538_vm0  ;;  %v9052_v6 = vld [vmem:[#allocation3 + $0x48] sm:$0xff]  ;;  %v9074_v59 = vld [vmem:[#allocation3 + $0x34] sm:$0xff]  ;;  %v9101_v35 = vadd.f32 %v9072_v45, %v9043_v29 }
 0x51c   : > { %8905 = vst.msk [vmem:[#allocation2 + $0x108] sm:$0x1f] %vm8904_vm10, %v8870_v56  ;;  %v9089_v50 = vld [vmem:[#allocation3 + $0xac] sm:$0xff]  ;;  %vm17688_vm10 = vmmov %vm17538_vm0  ;;  %v9075_v39 = vld [vmem:[#allocation3 + $0x3c] sm:$0xff]  ;;  %v9103_v21 = vadd.f32 %v9074_v59, %v9045_v12 }
 0x51d   : > { %9032 = vst.msk [vmem:[#allocation3 + $0xc0] sm:$0xff] %vm17679_vm9, %v8998_v10  ;;  %v8967_v36 = vld [vmem:[#allocation2 + $0xda] sm:$0xff]  ;;  %v9118_v30 = vadd.f32 %v9089_v50, %v9060_v43  ;;  %v9076_v38 = vld [vmem:[#allocation3 + $0x44] sm:$0xff]  ;;  %v9053_v34 = vld [vmem:[#allocation3 + $0x50] sm:$0xff]  ;;  %v9104_v62 = vadd.f32 %v9075_v39, %v9046_v27 }
 0x51e   : > { %8901 = vst.msk [vmem:[#allocation2 + $0xf0] sm:$0xff] %vm17680_vm13, %v8867_v57  ;;  %v9001_v23 = vadd.f32 %v8967_v36, %v8933_v19  ;;  %v8934_v55 = vld [vmem:[#allocation2 + $0xe0] sm:$0xff]  ;;  %v9054_v7 = vld [vmem:[#allocation3 + $0x58] sm:$0xff]  ;;  %v9077_v5 = vld [vmem:[#allocation3 + $0x4c] sm:$0xff]  ;;  %v9105_v46 = vadd.f32 %v9076_v38, %v9047_v1 }
 0x51f   : > { %8902 = vst.msk [vmem:[#allocation2 + $0xf8] sm:$0xff] %vm17681_vm3, %v8868_v28  ;;  %v9055_v25 = vld [vmem:[#allocation3 + $0x60] sm:$0xff]  ;;  %v9078_v54 = vld [vmem:[#allocation3 + $0x54] sm:$0xff]  ;;  %v9056_v24 = vld [vmem:[#allocation3 + $0x68] sm:$0xff]  ;;  %v9106_v56 = vadd.f32 %v9077_v5, %v9048_v48 }
 0x520   : > { %9033 = vst.msk [vmem:[#allocation3 + $0xc8] sm:$0xff] %vm17682_vm11, %v8999_v51  ;;  %v8935_v17 = vld [vmem:[#allocation2 + $0xe8] sm:$0xff]  ;;  %v9079_v0 = vld [vmem:[#allocation3 + $0x5c] sm:$0xff]  ;;  %v9107_v10 = vadd.f32 %v9078_v54, %v9049_v4  ;;  %vm17690_vm12 = vmmov %vm17538_vm0 }
 0x521   : > { %9034 = vst.msk [vmem:[#allocation3 + $0xd0] sm:$0xff] %vm17683_vm6, %v9000_v47  ;;  %v8938_v13 = vld [vmem:[#allocation2 + $0x100] sm:$0xff]  ;;  %v9081_v42 = vld [vmem:[#allocation3 + $0x6c] sm:$0xff]  ;;  %vm17691_vm7 = vmmov %vm17538_vm0  ;;  %v9108_v44 = vadd.f32 %v9079_v0, %v9050_v52 }
 0x522   : > { %v8968_v20 = vld [vmem:[#allocation2 + $0xe2] sm:$0xff]  ;;  %9035 = vst.msk [vmem:[#allocation3 + $0xd8] sm:$0xff] %vm17684_vm8, %v9001_v23  ;;  %v9066_v2 = vld [vmem:[#allocation3 + $0xb8] sm:$0xff]  ;;  %v9057_v57 = vld [vmem:[#allocation3 + $0x70] sm:$0xff]  ;;  %v9110_v47 = vadd.f32 %v9081_v42, %v9052_v6 }
 0x523   : > { %v8939_v33 = vld [vmem:[#allocation2 + $0x108] sm:$0x7]  ;;  %v9002_v26 = vadd.f32 %v8968_v20, %v8934_v55  ;;  %9147 = vst.msk [vmem:[#allocation2 + $0x88] sm:$0xff] %vm17538_vm0, %v9118_v30  ;;  %v9058_v28 = vld [vmem:[#allocation3 + $0x78] sm:$0xff]  ;;  %vm17692_vm9 = vmmov %vm17538_vm0 }
 0x524   : > { %v8972_v63 = vld [vmem:[#allocation2 + $0x102] sm:$0xff]  ;;  %v8973_v49 = vld [vmem:[#allocation2 + $0x10a] sm:$0x7]  ;;  %9130 = vst.msk [vmem:[#allocation2] sm:$0xff] %vm17690_vm12, %v9101_v35  ;;  %v9082_v40 = vld [vmem:[#allocation3 + $0x74] sm:$0xff] }
 0x525   : > { %v8936_v53 = vld [vmem:[#allocation2 + $0xf0] sm:$0xff]  ;;  %v9006_v3 = vadd.f32 %v8972_v63, %v8938_v13  ;;  %v9007_v16 = vadd.f32 %v8973_v49, %v8939_v33  ;;  %9036 = vst.msk [vmem:[#allocation3 + $0xe0] sm:$0xff] %vm17685_vm1, %v9002_v26  ;;  %v9080_v31 = vld [vmem:[#allocation3 + $0x64] sm:$0xff]  ;;  %v9083_v8 = vld [vmem:[#allocation3 + $0x7c] sm:$0xff]  ;;  %v9111_v30 = vadd.f32 %v9082_v40, %v9053_v34 }
 0x526   : > { %v8937_v22 = vld [vmem:[#allocation2 + $0xf8] sm:$0xff]  ;;  %v8969_v9 = vld [vmem:[#allocation2 + $0xea] sm:$0xff]  ;;  %9131 = vst.msk [vmem:[#allocation2 + $0x8] sm:$0xff] %vm17691_vm7, %v9102_v58  ;;  %v9109_v11 = vadd.f32 %v9080_v31, %v9051_v61  ;;  %vm17693_vm13 = vmmov %vm17538_vm0 }
 0x527   : > { %v8970_v18 = vld [vmem:[#allocation2 + $0xf2] sm:$0xff]  ;;  %v8971_v60 = vld [vmem:[#allocation2 + $0xfa] sm:$0xff]  ;;  %v9003_v37 = vadd.f32 %v8969_v9, %v8935_v17  ;;  %9040 = vst.msk [vmem:[#allocation3 + $0x100] sm:$0xff] %vm17686_vm14, %v9006_v3  ;;  %v9084_v51 = vld [vmem:[#allocation3 + $0x84] sm:$0xff]  ;;  %v9112_v17 = vadd.f32 %v9083_v8, %v9054_v7 }
 0x528   : > { %v9004_v15 = vadd.f32 %v8970_v18, %v8936_v53  ;;  %v9005_v32 = vadd.f32 %v8971_v60, %v8937_v22  ;;  %9042 = vst.msk [vmem:[#allocation3 + $0x108] sm:$0x7] %vm9041_vm5, %v9007_v16  ;;  %vm17694_vm3 = vmmov %vm17538_vm0  ;;  %v9067_v50 = vld [vmem:[#allocation3 + $0xc0] sm:$0xff]  ;;  %v9061_v43 = vld [vmem:[#allocation3 + $0x90] sm:$0xff]  ;;  %v9113_v13 = vadd.f32 %v9084_v51, %v9055_v25 }
 0x529   : > { %9037 = vst.msk [vmem:[#allocation3 + $0xe8] sm:$0xff] %vm17687_vm15, %v9003_v37  ;;  %v9059_v23 = vld [vmem:[#allocation3 + $0x80] sm:$0xff]  ;;  %v9085_v55 = vld [vmem:[#allocation3 + $0x8c] sm:$0xff]  ;;  %vm17695_vm11 = vmmov %vm17538_vm0 }
 0x52a   : > { %9038 = vst.msk [vmem:[#allocation3 + $0xf0] sm:$0xff] %vm17688_vm10, %v9004_v15  ;;  %vm17696_vm6 = vmmov %vm17538_vm0  ;;  %v9068_v20 = vld [vmem:[#allocation3 + $0xc8] sm:$0xff]  ;;  %v9070_v33 = vld [vmem:[#allocation3 + $0xd8] sm:$0xff]  ;;  %v9114_v9 = vadd.f32 %v9085_v55, %v9056_v24 }
 0x52b   : > { %9039 = vst.msk [vmem:[#allocation3 + $0xf8] sm:$0xff] %vm17689_vm4, %v9005_v32  ;;  %v9069_v26 = vld [vmem:[#allocation3 + $0xd0] sm:$0xff]  ;;  %v9087_v22 = vld [vmem:[#allocation3 + $0x9c] sm:$0xff]  ;;  %vm17697_vm8 = vmmov %vm17538_vm0 }
 0x52c   : > { %9132 = vst.msk [vmem:[#allocation2 + $0x10] sm:$0xff] %vm17692_vm9, %v9103_v21  ;;  %v9071_v19 = vld [vmem:[#allocation3 + $0xe0] sm:$0x7f]  ;;  %v9086_v53 = vld [vmem:[#allocation3 + $0x94] sm:$0xff]  ;;  %vm17698_vm5 = vmmov %vm17538_vm0  ;;  %v9116_v32 = vadd.f32 %v9087_v22, %v9058_v28 }
 0x52d   : > { %9133 = vst.msk [vmem:[#allocation2 + $0x18] sm:$0xff] %vm17693_vm13, %v9104_v62  ;;  %v9095_v36 = vld [vmem:[#allocation3 + $0xdc] sm:$0xff]  ;;  %v9064_v37 = vld [vmem:[#allocation3 + $0xa8] sm:$0xff]  ;;  %v9090_v12 = vld [vmem:[#allocation3 + $0xb4] sm:$0xff]  ;;  %v9115_v15 = vadd.f32 %v9086_v53, %v9057_v57 }
 0x52e   : > { %9134 = vst.msk [vmem:[#allocation2 + $0x20] sm:$0xff] %vm17694_vm3, %v9105_v46  ;;  %v9124_v49 = vadd.f32 %v9095_v36, %v9066_v2  ;;  %v9062_v18 = vld [vmem:[#allocation3 + $0x98] sm:$0xff]  ;;  %v9063_v60 = vld [vmem:[#allocation3 + $0xa0] sm:$0xff]  ;;  %vm17699_vm1 = vmmov %vm17538_vm0  ;;  %v9119_v45 = vadd.f32 %v9090_v12, %v9061_v43 }
 0x52f   : > { %9135 = vst.msk [vmem:[#allocation2 + $0x28] sm:$0xff] %vm17695_vm11, %v9106_v56  ;;  %v9100_v63 = vld [vmem:[#allocation3 + $0x104] sm:$0x7f]  ;;  %vm17700_vm14 = vmmov %vm17538_vm0  ;;  %v9091_v61 = vld [vmem:[#allocation3 + $0xbc] sm:$0xff] }
 0x530   : > { %9136 = vst.msk [vmem:[#allocation2 + $0x30] sm:$0xff] %vm17696_vm6, %v9107_v10  ;;  %v9096_v3 = vld [vmem:[#allocation3 + $0xe4] sm:$0xff]  ;;  %v9129_v16 = vadd.f32 %v9100_v63, %v9071_v19  ;;  %vm17701_vm15 = vmmov %vm17538_vm0  ;;  %v9093_v59 = vld [vmem:[#allocation3 + $0xcc] sm:$0xff]  ;;  %v9120_v58 = vadd.f32 %v9091_v61, %v9062_v18 }
 0x531   : > { %9137 = vst.msk [vmem:[#allocation2 + $0x38] sm:$0xff] %vm17697_vm8, %v9108_v44  ;;  %v9088_v29 = vld [vmem:[#allocation3 + $0xa4] sm:$0xff]  ;;  %v9097_v41 = vld [vmem:[#allocation3 + $0xec] sm:$0xff]  ;;  %v9125_v4 = vadd.f32 %v9096_v3, %v9067_v50  ;;  %vm17702_vm10 = vmmov %vm17538_vm0  ;;  %v9122_v7 = vadd.f32 %v9093_v59, %v9064_v37 }
 0x532   : > { %9138 = vst.msk [vmem:[#allocation2 + $0x40] sm:$0xff] %vm17698_vm5, %v9109_v11  ;;  %v9098_v27 = vld [vmem:[#allocation3 + $0xf4] sm:$0xff]  ;;  %v9099_v1 = vld [vmem:[#allocation3 + $0xfc] sm:$0xff]  ;;  %v9117_v48 = vadd.f32 %v9088_v29, %v9059_v23  ;;  %vm17703_vm4 = vmmov %vm17538_vm0  ;;  %v9126_v14 = vadd.f32 %v9097_v41, %v9068_v20 }
 0x533   : > { %9139 = vst.msk [vmem:[#allocation2 + $0x48] sm:$0xff] %vm17538_vm0, %v9110_v47  ;;  %v9128_v52 = vadd.f32 %v9099_v1, %v9070_v33  ;;  %v9092_v6 = vld [vmem:[#allocation3 + $0xc4] sm:$0xff]  ;;  %v9127_v39 = vadd.f32 %v9098_v27, %v9069_v26  ;;  %vm17704_vm12 = vmmov %vm17538_vm0  ;;  %v9065_v38 = vld [vmem:[#allocation3 + $0xb0] sm:$0xff] }
 0x534   : > { %9140 = vst.msk [vmem:[#allocation2 + $0x50] sm:$0xff] %vm17699_vm1, %v9111_v30  ;;  %vm17705_vm7 = vmmov %vm17538_vm0  ;;  %v9094_v35 = vld [vmem:[#allocation3 + $0xd4] sm:$0xff]  ;;  %v9121_v34 = vadd.f32 %v9092_v6, %v9063_v60  ;;  %v9159_v25 = vld [vmem:[#allocation2] ss:$4 sm:$0xf] }
 0x535   : > { %9141 = vst.msk [vmem:[#allocation2 + $0x58] sm:$0xff] %vm17700_vm14, %v9112_v17  ;;  %vm17706_vm9 = vmmov %vm17538_vm0  ;;  %v9123_v5 = vadd.f32 %v9094_v35, %v9065_v38  ;;  %v9160_v54 = vmul.f32 0.25, %v9159_v25  ;;  %vm17715_vm14 = vcmask 125952  }
 0x536   : > { %9142 = vst.msk [vmem:[#allocation2 + $0x60] sm:$0xff] %vm17701_vm15, %v9113_v13  ;;  %vm17707_vm13 = vmmov %vm17538_vm0 }
 0x537   : > { %9153 = vst.msk [vmem:[#allocation2 + $0xb8] sm:$0xff] %vm17702_vm10, %v9124_v49  ;;  %vm17708_vm3 = vmmov %vm17538_vm0 }
 0x538   : > { %9143 = vst.msk [vmem:[#allocation2 + $0x68] sm:$0xff] %vm17703_vm4, %v9114_v9  ;;  %vm17710_vm11 = vmmov %vm17538_vm0 }
 0x539   : > { %9158 = vst.msk [vmem:[#allocation2 + $0xe0] sm:$0x7f] %vm8767_vm2, %v9129_v16  ;;  %vm17709_vm2 = vmmov %vm17538_vm0 }
 0x53a   : > { %9144 = vst.msk [vmem:[#allocation2 + $0x70] sm:$0xff] %vm17704_vm12, %v9115_v15  ;;  %vm17711_vm6 = vmmov %vm17538_vm0 }
 0x53b   : > { %9145 = vst.msk [vmem:[#allocation2 + $0x78] sm:$0xff] %vm17705_vm7, %v9116_v32  ;;  %vm17712_vm8 = vmmov %vm17538_vm0  ;;  %v9163_v21 = vld [vmem:[#allocation2 + $0x48] ss:$4 sm:$0xf] }
 0x53c   : > { %9154 = vst.msk [vmem:[#allocation2 + $0xc0] sm:$0xff] %vm17706_vm9, %v9125_v4  ;;  %vm17713_vm5 = vmmov %vm17538_vm0  ;;  %v9164_v62 = vmul.f32 0.25, %v9163_v21 }
 0x53d   : > { %9146 = vst.msk [vmem:[#allocation2 + $0x80] sm:$0xff] %vm17707_vm13, %v9117_v48  ;;  %vm17714_vm1 = vmmov %vm17538_vm0 }
 0x53e   : > { %9148 = vst.msk [vmem:[#allocation2 + $0x90] sm:$0xff] %vm17708_vm3, %v9119_v45  ;;  %vm17716_vm15 = vmmov %vm17715_vm14 }
 0x53f   : > { %9155 = vst.msk [vmem:[#allocation2 + $0xc8] sm:$0xff] %vm17709_vm2, %v9126_v14  ;;  %vm17717_vm10 = vmmov %vm17715_vm14 }
 0x540   : > { %9156 = vst.msk [vmem:[#allocation2 + $0xd0] sm:$0xff] %vm17710_vm11, %v9127_v39  ;;  %vm17718_vm4 = vmmov %vm17717_vm10 }
 0x541   : > { %9157 = vst.msk [vmem:[#allocation2 + $0xd8] sm:$0xff] %vm17711_vm6, %v9128_v52 }
 0x542   : > { %9149 = vst.msk [vmem:[#allocation2 + $0x98] sm:$0xff] %vm17712_vm8, %v9120_v58 }
 0x543   : > { %9150 = vst.msk [vmem:[#allocation2 + $0xa0] sm:$0xff] %vm17713_vm5, %v9121_v34 }
 0x544   : > { %9151 = vst.msk [vmem:[#allocation2 + $0xa8] sm:$0xff] %vm17538_vm0, %v9122_v7 }
 0x545   : > { %9152 = vst.msk [vmem:[#allocation2 + $0xb0] sm:$0xff] %vm17714_vm1, %v9123_v5 }
 0x546   : > { %9161 = vst.msk [vmem:[%s217_s10] sm:$0xf] %vm17715_vm14, %v9160_v54 }
 0x547   : > { %9165 = vst.msk [vmem:[%s217_s10 + $0x4] sm:$0xf] %vm17716_vm15, %v9164_v62 }
 0x548   : > { %v9171_v46 = vld [vmem:[#allocation2 + $0xd8] ss:$4 sm:$0xf] }
 0x549   : > { %v9167_v2 = vld [vmem:[#allocation2 + $0x90] ss:$4 sm:$0xf]  ;;  %v9172_v24 = vmul.f32 0.25, %v9171_v46 }
 0x54a   : > { %v9168_v0 = vmul.f32 0.25, %v9167_v2 }
 0x54b   : > { %9173 = vst.msk [vmem:[%s217_s10 + $0xc] sm:$0xf] %vm17717_vm10, %v9172_v24 }
 0x54c   : > { %9169 = vst.msk [vmem:[%s217_s10 + $0x8] sm:$0xf] %vm17718_vm4, %v9168_v0 }
 0x54d   : > { %11122 = shalt.err (!%p11119_p3)
}
 0x54e   : > { %s11123_s26 = scalar_lea.hbm %s16415_s15, 256  ;;  %s11127_s7 = scalar_lea.hbm %s16468_s5, 512 }
 0x54f   : > { %p11124_p4 = scmp.ne.s32.totalorder %s16415_s15, %s11123_s26  ;;  %p11128_p9 = scmp.lt.s32.totalorder %s16415_s15, %s16468_s5 }
 0x550   : > { %p11129_p10 = scmp.lt.s32.totalorder %s11127_s7, %s11123_s26 }
 0x551   : > { %p11125_p7 = pnand %p11124_p4, %p11243_p5 }
 0x552   : > { %p11130_p11 = por %p11129_p10, %p11128_p9 }
 0x553   : > { %p11126_p8 = pneg %p11125_p7 }
 0x555   : > { %p11131_p12 = pnand %p11130_p11, %p11126_p8 }
 0x557   : > { %11134 = shalt.err (!%p11131_p12)
}
 0x558   : > { %s11173_s10 = smov 128   ;;  %s11174_s11 = smov 8  }
 0x559   : > { %10925 = dma.vmem_to_hbm [thread:$0]  (%p11243_p5), %s16417_s12, 256, %s16415_s15, %s16423_s22, %s11173_s10, %s11173_s10, %s11174_s11  }
 0x55a PF: > { %p10931_p13 = scmp.ge.s32.totalorder %s11169_s21, 2  ;;  %s9203_s13 = sand.u32 1, %s11157_s18  }
 0x55b   : > { %s9204_s14 = scalar_lea.sflag [#allocation6], %s9203_s13 }
 0x55c   : > { %p10928_p0 = pnand %p10931_p13, %p11247_p6 }
 0x55e   : > { %p10929_p1 = pneg %p10928_p0 }
 0x560   : > { %11152 = dma.done.wait (%p10929_p1), %s9204_s14, 256  }
 0x561   : > { %11154 = vsyncadd (%p10929_p1), %s9204_s14, 4294967040  ;;  %p15_p2 = scmp.ge.s32.totalorder %s11230_s24, 4   ;;  %s17719_s18 = smov %s11161_s19 }
 0x562   : > { %s17720_s19 = smov %s11165_s20  ;;  %s17721_s20 = smov %s11241_s27 }
 0x563   : > { %s17722_s21 = smov %s11230_s24  ;;  %17 = sbr.rel (!%p15_p2) target bundleno = 3 (0x3), region = 94 }
 0x568   :  { %9209 = vsyncpa [#allocation6], 1 }
 0x569   :  { %9211 = vsyncpa [#allocation6 + $0x1], 1 }

</bundles_post_ra>
